<compile_context>
chip_gen: v7x
topology: tpu7x:2x2x1
jax: 0.10.0
libtpu: 0.0.40
codegen_flags: <defaults>
</compile_context>

<pallas_src>
import functools

import jax
import jax.numpy as jnp
import numpy as np
from jax import lax
from jax.experimental import pallas as pl
from jax.experimental.pallas import tpu as pltpu

GROUPS = 32   # normalization(channels) == GroupNorm32(32, channels)
EPS = 1e-5


def _round_up(v, m):
    return (v + m - 1) // m * m


def _choose_batch_block(n, c, hw, max_b=8):
    """Images per grid step: as large as possible while staying tiny in VMEM
    and leaving >= 2 grid steps so both v7x TensorCores get work."""
    per_img = hw * (10 * c * 2      # wide im2col rows (bf16)
                    + c * 4         # conv output staging (f32)
                    + 4 * c * 4)    # double-buffered in/out blocks (f32)
    cap = max(1, min(max_b, (16 * 1024 * 1024) // max(per_img, 1)))
    cands = [b for b in range(1, min(n, cap) + 1) if n % b == 0]
    good = [b for b in cands if n // b >= 2]     # keep grid >= 2 (v7x: 2 TCs)
    return max(good) if good else max(cands)


def efficient_resblock_kernel(
    x_ref, embo_ref, msk_ref, pvec_ref, w1_ref, w2s_ref,
    o_ref,
    hpad_ref, col_ref, h1_ref,
    *, H, W, C, B, lpad, rpad):
    HW = H * W
    bf16 = jnp.bfloat16

    # Zero only the two pad strips of the staging buffer (interior is fully
    # overwritten per use).  Done every step — cheap (2 x (C,128) bf16 stores
    # amortised over B images) and safe under a megacore "parallel" split
    # where a core may never execute program_id == 0.
    hpad_ref[:, :lpad] = jnp.zeros((C, lpad), bf16)
    hpad_ref[:, lpad + HW:] = jnp.zeros((C, rpad), bf16)

    # Horizontal-border masks (0/1 f32 from the wrapper); turned into bools
    # once and applied with a select, so no bf16 multiplies are needed.
    msk = msk_ref[...]
    mask_l = msk[0:1, :] > 0.5     # 0 where x-position == 0      (dx == 0 taps)
    mask_r = msk[1:2, :] > 0.5     # 0 where x-position == W - 1  (dx == 2 taps)

    # Per-channel vectors packed into a single (C, 5) input.
    pv = pvec_ref[...]
    g1, gb1 = pv[:, 0:1], pv[:, 1:2]
    g2, gb2 = pv[:, 2:3], pv[:, 3:4]
    b2s = pv[:, 4:5]               # conv2 bias + scaled shortcut bias

    inv_n = 1.0 / HW

    def gn_silu(h, gamma, beta):
        # GroupNorm with one channel per group (C == 32 groups): per-channel
        # stats over the lane (spatial) axis; two-pass variance; eps = 1e-5.
        # TODO(synk): channels_per_group > 1 needs a grouped sublane reduction.
        mean = jnp.sum(h, axis=1, keepdims=True) * inv_n
        d = h - mean
        var = jnp.sum(d * d, axis=1, keepdims=True) * inv_n
        hn = d * lax.rsqrt(var + EPS) * gamma + beta
        return hn * jax.nn.sigmoid(hn)

    def fill_taps(h, b):
        # Stage h (single f32->bf16 cast) in the zero-padded buffer so every
        # 3x3 tap is a contiguous lane-window read (the >= W+1 zero pad covers
        # the vertical borders; horizontal borders masked per tap), then drop
        # each tap into its C-row slice of the wide im2col buffer at this
        # image's lane offset.
        hpad_ref[:, lpad:lpad + HW] = h.astype(bf16)
        for k in range(9):
            dy, dx = divmod(k, 3)
            off = (dy - 1) * W + (dx - 1)
            tap = hpad_ref[:, lpad + off:lpad + off + HW]
            if dx == 0:
                tap = jnp.where(mask_l, tap, jnp.zeros_like(tap))
            elif dx == 2:
                tap = jnp.where(mask_r, tap, jnp.zeros_like(tap))
            col_ref[k * C:(k + 1) * C, b * HW:(b + 1) * HW] = tap

    # ------------ phase 1: per image GN -> SiLU -> im2col; skip rows --------
    for b in range(B):             # short static loop; nothing carried over b
        x = x_ref[b]               # (C, HW) f32
        # The 1x1 shortcut input occupies the last C rows of the im2col buffer
        # so the scaled skip conv rides along in the second matmul.
        col_ref[9 * C:, b * HW:(b + 1) * HW] = x.astype(bf16)
        fill_taps(gn_silu(x, g1, gb1), b)

    # ONE MXU matmul for conv1 over all B images: (C, 9C) x (9C, B*HW).
    h1_ref[...] = jnp.dot(w1_ref[...], col_ref[:9 * C, :],
                          preferred_element_type=jnp.float32)

    # ------------ phase 2: + emb, GN -> SiLU -> im2col ----------------------
    # embo already holds emb_layers(emb) + conv1 bias (folded in the wrapper).
    # TODO(synk): use_scale_shift_norm=True variant (chunked scale/shift) not
    # implemented; this follows the module's default (False) path.
    for b in range(B):
        h = h1_ref[:, b * HW:(b + 1) * HW] + embo_ref[b]
        fill_taps(gn_silu(h, g2, gb2), b)

    # ONE matmul for conv2 + fused scaled 1x1 shortcut: (C, 10C) x (10C, B*HW).
    h1_ref[...] = jnp.dot(w2s_ref[...], col_ref[...],
                          preferred_element_type=jnp.float32)
    for b in range(B):
        o_ref[b] = h1_ref[:, b * HW:(b + 1) * HW] + b2s


def efficient_resblock(x, emb, params, *, shortcut_scale=1.0, block_b=None):
    """Fused EfficientResBlock forward.

    x:      (N, C, H, W) float32 (NCHW, as in the PyTorch module)
    emb:    (N, E) float32
    params: torch-layout parameters (see __main__).
    """
    N, C_in, H, W = x.shape
    C_out = params["conv1_w"].shape[0]
    HW = H * W
    # GroupNorm32 restriction of this kernel: one channel per group.
    if C_in != GROUPS or C_out != GROUPS:
        raise NotImplementedError(
            "kernel supports exactly 32 channels (one channel per GroupNorm32 group)")

    B = _choose_batch_block(N, C_out, HW) if block_b is None else block_b
    assert N % B == 0, "batch must be divisible by the per-step block"

    # Pad the flattened spatial axis by >= W+1 zeros on both sides so each of
    # the 9 conv taps is a contiguous lane window; round to 128 lanes so the
    # interior staging store stays lane-aligned.
    lpad = _round_up(W + 1, 128)
    rpad = lpad

    f32, bf16 = jnp.float32, jnp.bfloat16
    x_flat = x.reshape(N, C_in, HW).astype(f32)

    # emb_layers hoisted out of the kernel (one batched matmul), with the
    # conv1 bias folded in: saves a broadcast add per step and one input.
    emb_out = (jax.nn.silu(emb) @ params["emb_w"].T
               + params["emb_b"] + params["conv1_b"])
    emb_out = emb_out.reshape(N, C_out, 1).astype(f32)

    # Conv weights packed as (C_out, 9*C_in) bf16, K index = (ky*3+kx)*C_in+ci.
    w1p = params["conv1_w"].transpose(0, 2, 3, 1).reshape(C_out, 9 * C_in)
    w2p = params["conv2_w"].transpose(0, 2, 3, 1).reshape(C_out, 9 * C_out)
    ws = params["sc_w"].reshape(C_out, C_in)
    # Fold the scaled 1x1 shortcut into the second conv's matmul / bias.
    w2s = jnp.concatenate([w2p, shortcut_scale * ws], axis=1)
    b2s = params["conv2_b"] + shortcut_scale * params["sc_b"]

    # All per-channel vectors packed into a single (C, 5) f32 input.
    pvec = jnp.stack(
        [params["gn1_w"], params["gn1_b"],
         params["gn2_w"], params["gn2_b"], b2s], axis=1).astype(f32)

    # Horizontal-border masks for the dx=0 / dx=2 taps (one packed array).
    xs = np.arange(HW) % W
    msk = jnp.asarray(np.stack([(xs >= 1), (xs <= W - 2)]).astype(np.float32))

    kernel = functools.partial(
        efficient_resblock_kernel,
        H=H, W=W, C=C_out, B=B, lpad=lpad, rpad=rpad)

    full2 = lambda n: (0, 0)
    grid_spec = pltpu.PrefetchScalarGridSpec(
        num_scalar_prefetch=0,
        grid=(N // B,),
        in_specs=[
            pl.BlockSpec((B, C_in, HW), lambda n: (n, 0, 0)),   # x block
            pl.BlockSpec((B, C_out, 1), lambda n: (n, 0, 0)),   # emb_out (+conv1 bias)
            pl.BlockSpec((2, HW), full2),                       # border masks
            pl.BlockSpec((C_out, 5), full2),                    # packed per-channel vectors
            pl.BlockSpec((C_out, 9 * C_in), full2),             # conv1 weight (bf16)
            pl.BlockSpec((C_out, 9 * C_out + C_in), full2),     # conv2 | scaled shortcut weight
        ],
        out_specs=pl.BlockSpec((B, C_out, HW), lambda n: (n, 0, 0)),
        scratch_shapes=[
            pltpu.VMEM((C_out, lpad + HW + rpad), jnp.bfloat16),   # padded staging (bf16)
            pltpu.VMEM((9 * C_out + C_in, B * HW), jnp.bfloat16),  # wide im2col (+ shortcut rows)
            pltpu.VMEM((C_out, B * HW), jnp.float32),              # conv output staging
        ],
    )

    out_flat = pl.pallas_call(
        kernel,
        out_shape=jax.ShapeDtypeStruct((N, C_out, HW), jnp.float32),
        grid_spec=grid_spec,
        compiler_params=pltpu.CompilerParams(
            dimension_semantics=("parallel",)),   # image blocks independent -> both v7x TCs
    )(x_flat, emb_out, msk, pvec, w1p.astype(bf16), w2s.astype(bf16))

    return out_flat.reshape(N, C_out, H, W)


def reference_forward(x, emb, p, *, shortcut_scale=1.0):
    """Pure-JAX (f32) reference for the same forward pass, NCHW."""
    def gn(h, gamma, beta):
        mean = jnp.mean(h, axis=(2, 3), keepdims=True)
        var = jnp.mean((h - mean) ** 2, axis=(2, 3), keepdims=True)
        hn = (h - mean) * lax.rsqrt(var + EPS)
        return hn * gamma[None, :, None, None] + beta[None, :, None, None]

    def conv(h, w, b):
        out = lax.conv_general_dilated(
            h, w, (1, 1), "SAME", dimension_numbers=("NCHW", "OIHW", "NCHW"))
        return out + b[None, :, None, None]

    h = jax.nn.silu(gn(x, p["gn1_w"], p["gn1_b"]))
    h = conv(h, p["conv1_w"], p["conv1_b"])
    e = jax.nn.silu(emb) @ p["emb_w"].T + p["emb_b"]
    h = h + e[:, :, None, None]
    h = jax.nn.silu(gn(h, p["gn2_w"], p["gn2_b"]))
    h = conv(h, p["conv2_w"], p["conv2_b"])
    sc = conv(x, p["sc_w"], p["sc_b"])
    return h + sc * shortcut_scale


if __name__ == "__main__":
    # normalization() is GroupNorm32(32, C) -> channels must be a multiple of
    # 32; use C=32 (one channel per group).  N=8 so the wrapper picks B=4 and
    # a grid of 2 steps (both v7x TensorCores busy).
    N, C, EMB, H, W = 8, 32, 16, 16, 16

    key = jax.random.PRNGKey(0)
    keys = jax.random.split(key, 14)

    def rnd(k, shape, scale=0.1):
        return scale * jax.random.normal(k, shape, dtype=jnp.float32)

    params = dict(
        gn1_w=1.0 + rnd(keys[0], (C,)),
        gn1_b=rnd(keys[1], (C,)),
        conv1_w=rnd(keys[2], (C, C, 3, 3)),     # torch Conv2d weight (Cout, Cin, kH, kW)
        conv1_b=rnd(keys[3], (C,)),
        emb_w=rnd(keys[4], (C, EMB)),           # torch Linear weight (Cout, E)
        emb_b=rnd(keys[5], (C,)),
        gn2_w=1.0 + rnd(keys[6], (C,)),
        gn2_b=rnd(keys[7], (C,)),
        # NOTE: the PyTorch module zero-inits this conv (zero_module); random
        # values are used here so the full compute path is exercised.
        conv2_w=rnd(keys[8], (C, C, 3, 3)),
        conv2_b=rnd(keys[9], (C,)),
        sc_w=rnd(keys[10], (C, C, 1, 1)),       # shortcut 1x1 conv
        sc_b=rnd(keys[11], (C,)),
    )

    x = jax.random.normal(keys[12], (N, C, H, W), dtype=jnp.float32)
    emb = jax.random.normal(keys[13], (N, EMB), dtype=jnp.float32)

    # skip_connection_scaling=False default -> shortcut_scale = 1
    out = efficient_resblock(x, emb, params, shortcut_scale=1.0)
    out = jax.block_until_ready(out)

    ref = reference_forward(x, emb, params, shortcut_scale=1.0)
    out_np, ref_np = np.asarray(out), np.asarray(ref)
    # bf16 MXU operands (f32 accumulation) -> small elementwise slack plus a
    # tight mean-error check.
    np.testing.assert_allclose(out_np, ref_np, atol=5e-2, rtol=5e-2)
    assert float(np.mean(np.abs(out_np - ref_np))) < 1e-2

    print("KERNEL_OK")
</pallas_src>

<mosaic_0001>
module attributes {stable_mosaic.version = 11 : i64} {
  func.func @efficient_resblock_kernel(%arg0: i32, %arg1: memref<4x32x256xf32, #tpu.memory_space<vmem>>, %arg2: memref<4x32x1xf32, #tpu.memory_space<vmem>>, %arg3: memref<2x256xf32, #tpu.memory_space<vmem>>, %arg4: memref<32x5xf32, #tpu.memory_space<vmem>>, %arg5: memref<32x288xbf16, #tpu.memory_space<vmem>>, %arg6: memref<32x320xbf16, #tpu.memory_space<vmem>>, %arg7: memref<4x32x256xf32, #tpu.memory_space<vmem>>, %arg8: memref<32x512xbf16, #tpu.memory_space<vmem>>, %arg9: memref<320x1024xbf16, #tpu.memory_space<vmem>>, %arg10: memref<32x1024xf32, #tpu.memory_space<vmem>>) attributes {dimension_semantics = [#tpu.dimension_semantics<parallel>], iteration_bounds = array<i64: 2>, scalar_prefetch = 0 : i64, scratch_operands = 3 : i64, tpu.core_type = #tpu.core_type<tc>, window_params = [{transform_indices = @transform_0, window_bounds = array<i64: 4, 32, 256>}, {transform_indices = @transform_1, window_bounds = array<i64: 4, 32, 1>}, {pipeline_mode = #tpu.pipeline_mode<synchronous>, transform_indices = @transform_2, window_bounds = array<i64: 2, 256>}, {pipeline_mode = #tpu.pipeline_mode<synchronous>, transform_indices = @transform_3, window_bounds = array<i64: 32, 5>}, {pipeline_mode = #tpu.pipeline_mode<synchronous>, transform_indices = @transform_4, window_bounds = array<i64: 32, 288>}, {pipeline_mode = #tpu.pipeline_mode<synchronous>, transform_indices = @transform_5, window_bounds = array<i64: 32, 320>}, {transform_indices = @transform_6, window_bounds = array<i64: 4, 32, 256>}]} {
    %cst = arith.constant 0.000000e+00 : bf16
    %0 = vector.broadcast %cst : bf16 to vector<32x128xbf16>
    %c0 = arith.constant 0 : index
    %c0_0 = arith.constant 0 : index
    %1 = vector.load %arg8[%c0, %c0_0] : memref<32x512xbf16, #tpu.memory_space<vmem>>, vector<32x128xbf16>
    tpu.vector_store %arg8[%c0, %c0_0], %0 {strides = array<i32>} : memref<32x512xbf16, #tpu.memory_space<vmem>>, vector<32x128xbf16>,
    %cst_1 = arith.constant 0.000000e+00 : bf16
    %2 = vector.broadcast %cst_1 : bf16 to vector<32x128xbf16>
    %c0_2 = arith.constant 0 : index
    %c384 = arith.constant 384 : index
    %3 = vector.load %arg8[%c0_2, %c384] : memref<32x512xbf16, #tpu.memory_space<vmem>>, vector<32x128xbf16>
    tpu.vector_store %arg8[%c0_2, %c384], %2 {strides = array<i32>} : memref<32x512xbf16, #tpu.memory_space<vmem>>, vector<32x128xbf16>,
    %c0_3 = arith.constant 0 : index
    %c0_4 = arith.constant 0 : index
    %4 = vector.load %arg3[%c0_3, %c0_4] : memref<2x256xf32, #tpu.memory_space<vmem>>, vector<2x256xf32>
    %5 = vector.extract_strided_slice %4 {offsets = [0, 0], sizes = [1, 256], strides = [1, 1]} : vector<2x256xf32> to vector<1x256xf32>
    %cst_5 = arith.constant 5.000000e-01 : f32
    %6 = vector.broadcast %cst_5 : f32 to vector<1x256xf32>
    %7 = arith.cmpf ogt, %5, %6 : vector<1x256xf32>
    %8 = vector.extract_strided_slice %4 {offsets = [1, 0], sizes = [1, 256], strides = [1, 1]} : vector<2x256xf32> to vector<1x256xf32>
    %cst_6 = arith.constant 5.000000e-01 : f32
    %9 = vector.broadcast %cst_6 : f32 to vector<1x256xf32>
    %10 = arith.cmpf ogt, %8, %9 : vector<1x256xf32>
    %c0_7 = arith.constant 0 : index
    %c0_8 = arith.constant 0 : index
    %11 = vector.load %arg4[%c0_7, %c0_8] : memref<32x5xf32, #tpu.memory_space<vmem>>, vector<32x5xf32>
    %12 = vector.extract_strided_slice %11 {offsets = [0, 0], sizes = [32, 1], strides = [1, 1]} : vector<32x5xf32> to vector<32x1xf32>
    %13 = vector.extract_strided_slice %11 {offsets = [0, 1], sizes = [32, 1], strides = [1, 1]} : vector<32x5xf32> to vector<32x1xf32>
    %14 = vector.extract_strided_slice %11 {offsets = [0, 2], sizes = [32, 1], strides = [1, 1]} : vector<32x5xf32> to vector<32x1xf32>
    %15 = vector.extract_strided_slice %11 {offsets = [0, 3], sizes = [32, 1], strides = [1, 1]} : vector<32x5xf32> to vector<32x1xf32>
    %16 = vector.extract_strided_slice %11 {offsets = [0, 4], sizes = [32, 1], strides = [1, 1]} : vector<32x5xf32> to vector<32x1xf32>
    %c0_9 = arith.constant 0 : index
    %c0_10 = arith.constant 0 : index
    %c0_11 = arith.constant 0 : index
    %17 = vector.load %arg1[%c0_9, %c0_10, %c0_11] : memref<4x32x256xf32, #tpu.memory_space<vmem>>, vector<1x32x256xf32>
    %18 = vector.shape_cast %17 : vector<1x32x256xf32> to vector<32x256xf32>
    %19 = arith.truncf %18 : vector<32x256xf32> to vector<32x256xbf16>
    %c288 = arith.constant 288 : index
    %c0_12 = arith.constant 0 : index
    %20 = vector.load %arg9[%c288, %c0_12] : memref<320x1024xbf16, #tpu.memory_space<vmem>>, vector<32x256xbf16>
    tpu.vector_store %arg9[%c288, %c0_12], %19 {strides = array<i32>} : memref<320x1024xbf16, #tpu.memory_space<vmem>>, vector<32x256xbf16>,
    %cst_13 = arith.constant dense<0.000000e+00> : vector<32xf32>
    %21 = vector.multi_reduction <add>, %18, %cst_13 [1] : vector<32x256xf32> to vector<32xf32>
    %22 = vector.shape_cast %21 : vector<32xf32> to vector<32x1xf32>
    %cst_14 = arith.constant 3.906250e-03 : f32
    %23 = vector.broadcast %cst_14 : f32 to vector<32x1xf32>
    %24 = arith.mulf %22, %23 : vector<32x1xf32>
    %25 = vector.broadcast %24 : vector<32x1xf32> to vector<32x256xf32>
    %26 = arith.subf %18, %25 : vector<32x256xf32>
    %27 = arith.mulf %26, %26 : vector<32x256xf32>
    %cst_15 = arith.constant dense<0.000000e+00> : vector<32xf32>
    %28 = vector.multi_reduction <add>, %27, %cst_15 [1] : vector<32x256xf32> to vector<32xf32>
    %29 = vector.shape_cast %28 : vector<32xf32> to vector<32x1xf32>
    %cst_16 = arith.constant 3.906250e-03 : f32
    %30 = vector.broadcast %cst_16 : f32 to vector<32x1xf32>
    %31 = arith.mulf %29, %30 : vector<32x1xf32>
    %cst_17 = arith.constant 9.99999974E-6 : f32
    %32 = vector.broadcast %cst_17 : f32 to vector<32x1xf32>
    %33 = arith.addf %31, %32 : vector<32x1xf32>
    %34 = math.rsqrt %33 : vector<32x1xf32>
    %35 = vector.broadcast %34 : vector<32x1xf32> to vector<32x256xf32>
    %36 = arith.mulf %26, %35 : vector<32x256xf32>
    %37 = vector.broadcast %12 : vector<32x1xf32> to vector<32x256xf32>
    %38 = arith.mulf %36, %37 : vector<32x256xf32>
    %39 = vector.broadcast %13 : vector<32x1xf32> to vector<32x256xf32>
    %40 = arith.addf %38, %39 : vector<32x256xf32>
    %41 = arith.negf %40 : vector<32x256xf32>
    %42 = math.exp %41 : vector<32x256xf32>
    %cst_18 = arith.constant 1.000000e+00 : f32
    %43 = vector.broadcast %cst_18 : f32 to vector<32x256xf32>
    %44 = arith.addf %43, %42 : vector<32x256xf32>
    %45 = arith.divf %43, %44 : vector<32x256xf32>
    %46 = arith.mulf %40, %45 : vector<32x256xf32>
    %47 = arith.truncf %46 : vector<32x256xf32> to vector<32x256xbf16>
    %c0_19 = arith.constant 0 : index
    %c128 = arith.constant 128 : index
    %48 = vector.load %arg8[%c0_19, %c128] : memref<32x512xbf16, #tpu.memory_space<vmem>>, vector<32x256xbf16>
    tpu.vector_store %arg8[%c0_19, %c128], %47 {strides = array<i32>} : memref<32x512xbf16, #tpu.memory_space<vmem>>, vector<32x256xbf16>,
    %c0_20 = arith.constant 0 : index
    %c111 = arith.constant 111 : index
    %49 = vector.load %arg8[%c0_20, %c111] : memref<32x512xbf16, #tpu.memory_space<vmem>>, vector<32x256xbf16>
    %cst_21 = arith.constant 0.000000e+00 : bf16
    %50 = vector.broadcast %cst_21 : bf16 to vector<32x256xbf16>
    %51 = vector.shape_cast %7 : vector<1x256xi1> to vector<1x256xi1>
    %52 = vector.broadcast %51 : vector<1x256xi1> to vector<32x256xi1>
    %53 = arith.select %52, %49, %50 : vector<32x256xi1>, vector<32x256xbf16>
    %c0_22 = arith.constant 0 : index
    %c0_23 = arith.constant 0 : index
    %54 = vector.load %arg9[%c0_22, %c0_23] : memref<320x1024xbf16, #tpu.memory_space<vmem>>, vector<32x256xbf16>
    tpu.vector_store %arg9[%c0_22, %c0_23], %53 {strides = array<i32>} : memref<320x1024xbf16, #tpu.memory_space<vmem>>, vector<32x256xbf16>,
    %c0_24 = arith.constant 0 : index
    %c112 = arith.constant 112 : index
    %55 = vector.load %arg8[%c0_24, %c112] : memref<32x512xbf16, #tpu.memory_space<vmem>>, vector<32x256xbf16>
    %c32 = arith.constant 32 : index
    %c0_25 = arith.constant 0 : index
    %56 = vector.load %arg9[%c32, %c0_25] : memref<320x1024xbf16, #tpu.memory_space<vmem>>, vector<32x256xbf16>
    tpu.vector_store %arg9[%c32, %c0_25], %55 {strides = array<i32>} : memref<320x1024xbf16, #tpu.memory_space<vmem>>, vector<32x256xbf16>,
    %c0_26 = arith.constant 0 : index
    %c113 = arith.constant 113 : index
    %57 = vector.load %arg8[%c0_26, %c113] : memref<32x512xbf16, #tpu.memory_space<vmem>>, vector<32x256xbf16>
    %cst_27 = arith.constant 0.000000e+00 : bf16
    %58 = vector.broadcast %cst_27 : bf16 to vector<32x256xbf16>
    %59 = vector.shape_cast %10 : vector<1x256xi1> to vector<1x256xi1>
    %60 = vector.broadcast %59 : vector<1x256xi1> to vector<32x256xi1>
    %61 = arith.select %60, %57, %58 : vector<32x256xi1>, vector<32x256xbf16>
    %c64 = arith.constant 64 : index
    %c0_28 = arith.constant 0 : index
    %62 = vector.load %arg9[%c64, %c0_28] : memref<320x1024xbf16, #tpu.memory_space<vmem>>, vector<32x256xbf16>
    tpu.vector_store %arg9[%c64, %c0_28], %61 {strides = array<i32>} : memref<320x1024xbf16, #tpu.memory_space<vmem>>, vector<32x256xbf16>,
    %c0_29 = arith.constant 0 : index
    %c127 = arith.constant 127 : index
    %63 = vector.load %arg8[%c0_29, %c127] : memref<32x512xbf16, #tpu.memory_space<vmem>>, vector<32x256xbf16>
    %cst_30 = arith.constant 0.000000e+00 : bf16
    %64 = vector.broadcast %cst_30 : bf16 to vector<32x256xbf16>
    %65 = vector.shape_cast %7 : vector<1x256xi1> to vector<1x256xi1>
    %66 = vector.broadcast %65 : vector<1x256xi1> to vector<32x256xi1>
    %67 = arith.select %66, %63, %64 : vector<32x256xi1>, vector<32x256xbf16>
    %c96 = arith.constant 96 : index
    %c0_31 = arith.constant 0 : index
    %68 = vector.load %arg9[%c96, %c0_31] : memref<320x1024xbf16, #tpu.memory_space<vmem>>, vector<32x256xbf16>
    tpu.vector_store %arg9[%c96, %c0_31], %67 {strides = array<i32>} : memref<320x1024xbf16, #tpu.memory_space<vmem>>, vector<32x256xbf16>,
    %c0_32 = arith.constant 0 : index
    %c128_33 = arith.constant 128 : index
    %69 = vector.load %arg8[%c0_32, %c128_33] : memref<32x512xbf16, #tpu.memory_space<vmem>>, vector<32x256xbf16>
    %c128_34 = arith.constant 128 : index
    %c0_35 = arith.constant 0 : index
    %70 = vector.load %arg9[%c128_34, %c0_35] : memref<320x1024xbf16, #tpu.memory_space<vmem>>, vector<32x256xbf16>
    tpu.vector_store %arg9[%c128_34, %c0_35], %69 {strides = array<i32>} : memref<320x1024xbf16, #tpu.memory_space<vmem>>, vector<32x256xbf16>,
    %c0_36 = arith.constant 0 : index
    %c129 = arith.constant 129 : index
    %71 = vector.load %arg8[%c0_36, %c129] : memref<32x512xbf16, #tpu.memory_space<vmem>>, vector<32x256xbf16>
    %cst_37 = arith.constant 0.000000e+00 : bf16
    %72 = vector.broadcast %cst_37 : bf16 to vector<32x256xbf16>
    %73 = vector.shape_cast %10 : vector<1x256xi1> to vector<1x256xi1>
    %74 = vector.broadcast %73 : vector<1x256xi1> to vector<32x256xi1>
    %75 = arith.select %74, %71, %72 : vector<32x256xi1>, vector<32x256xbf16>
    %c160 = arith.constant 160 : index
    %c0_38 = arith.constant 0 : index
    %76 = vector.load %arg9[%c160, %c0_38] : memref<320x1024xbf16, #tpu.memory_space<vmem>>, vector<32x256xbf16>
    tpu.vector_store %arg9[%c160, %c0_38], %75 {strides = array<i32>} : memref<320x1024xbf16, #tpu.memory_space<vmem>>, vector<32x256xbf16>,
    %c0_39 = arith.constant 0 : index
    %c143 = arith.constant 143 : index
    %77 = vector.load %arg8[%c0_39, %c143] : memref<32x512xbf16, #tpu.memory_space<vmem>>, vector<32x256xbf16>
    %cst_40 = arith.constant 0.000000e+00 : bf16
    %78 = vector.broadcast %cst_40 : bf16 to vector<32x256xbf16>
    %79 = vector.shape_cast %7 : vector<1x256xi1> to vector<1x256xi1>
    %80 = vector.broadcast %79 : vector<1x256xi1> to vector<32x256xi1>
    %81 = arith.select %80, %77, %78 : vector<32x256xi1>, vector<32x256xbf16>
    %c192 = arith.constant 192 : index
    %c0_41 = arith.constant 0 : index
    %82 = vector.load %arg9[%c192, %c0_41] : memref<320x1024xbf16, #tpu.memory_space<vmem>>, vector<32x256xbf16>
    tpu.vector_store %arg9[%c192, %c0_41], %81 {strides = array<i32>} : memref<320x1024xbf16, #tpu.memory_space<vmem>>, vector<32x256xbf16>,
    %c0_42 = arith.constant 0 : index
    %c144 = arith.constant 144 : index
    %83 = vector.load %arg8[%c0_42, %c144] : memref<32x512xbf16, #tpu.memory_space<vmem>>, vector<32x256xbf16>
    %c224 = arith.constant 224 : index
    %c0_43 = arith.constant 0 : index
    %84 = vector.load %arg9[%c224, %c0_43] : memref<320x1024xbf16, #tpu.memory_space<vmem>>, vector<32x256xbf16>
    tpu.vector_store %arg9[%c224, %c0_43], %83 {strides = array<i32>} : memref<320x1024xbf16, #tpu.memory_space<vmem>>, vector<32x256xbf16>,
    %c0_44 = arith.constant 0 : index
    %c145 = arith.constant 145 : index
    %85 = vector.load %arg8[%c0_44, %c145] : memref<32x512xbf16, #tpu.memory_space<vmem>>, vector<32x256xbf16>
    %cst_45 = arith.constant 0.000000e+00 : bf16
    %86 = vector.broadcast %cst_45 : bf16 to vector<32x256xbf16>
    %87 = vector.shape_cast %10 : vector<1x256xi1> to vector<1x256xi1>
    %88 = vector.broadcast %87 : vector<1x256xi1> to vector<32x256xi1>
    %89 = arith.select %88, %85, %86 : vector<32x256xi1>, vector<32x256xbf16>
    %c256 = arith.constant 256 : index
    %c0_46 = arith.constant 0 : index
    %90 = vector.load %arg9[%c256, %c0_46] : memref<320x1024xbf16, #tpu.memory_space<vmem>>, vector<32x256xbf16>
    tpu.vector_store %arg9[%c256, %c0_46], %89 {strides = array<i32>} : memref<320x1024xbf16, #tpu.memory_space<vmem>>, vector<32x256xbf16>,
    %c1 = arith.constant 1 : index
    %c0_47 = arith.constant 0 : index
    %c0_48 = arith.constant 0 : index
    %91 = vector.load %arg1[%c1, %c0_47, %c0_48] : memref<4x32x256xf32, #tpu.memory_space<vmem>>, vector<1x32x256xf32>
    %92 = vector.shape_cast %91 : vector<1x32x256xf32> to vector<32x256xf32>
    %93 = arith.truncf %92 : vector<32x256xf32> to vector<32x256xbf16>
    %c288_49 = arith.constant 288 : index
    %c256_50 = arith.constant 256 : index
    %94 = vector.load %arg9[%c288_49, %c256_50] : memref<320x1024xbf16, #tpu.memory_space<vmem>>, vector<32x256xbf16>
    tpu.vector_store %arg9[%c288_49, %c256_50], %93 {strides = array<i32>} : memref<320x1024xbf16, #tpu.memory_space<vmem>>, vector<32x256xbf16>,
    %cst_51 = arith.constant dense<0.000000e+00> : vector<32xf32>
    %95 = vector.multi_reduction <add>, %92, %cst_51 [1] : vector<32x256xf32> to vector<32xf32>
    %96 = vector.shape_cast %95 : vector<32xf32> to vector<32x1xf32>
    %cst_52 = arith.constant 3.906250e-03 : f32
    %97 = vector.broadcast %cst_52 : f32 to vector<32x1xf32>
    %98 = arith.mulf %96, %97 : vector<32x1xf32>
    %99 = vector.broadcast %98 : vector<32x1xf32> to vector<32x256xf32>
    %100 = arith.subf %92, %99 : vector<32x256xf32>
    %101 = arith.mulf %100, %100 : vector<32x256xf32>
    %cst_53 = arith.constant dense<0.000000e+00> : vector<32xf32>
    %102 = vector.multi_reduction <add>, %101, %cst_53 [1] : vector<32x256xf32> to vector<32xf32>
    %103 = vector.shape_cast %102 : vector<32xf32> to vector<32x1xf32>
    %cst_54 = arith.constant 3.906250e-03 : f32
    %104 = vector.broadcast %cst_54 : f32 to vector<32x1xf32>
    %105 = arith.mulf %103, %104 : vector<32x1xf32>
    %cst_55 = arith.constant 9.99999974E-6 : f32
    %106 = vector.broadcast %cst_55 : f32 to vector<32x1xf32>
    %107 = arith.addf %105, %106 : vector<32x1xf32>
    %108 = math.rsqrt %107 : vector<32x1xf32>
    %109 = vector.broadcast %108 : vector<32x1xf32> to vector<32x256xf32>
    %110 = arith.mulf %100, %109 : vector<32x256xf32>
    %111 = vector.broadcast %12 : vector<32x1xf32> to vector<32x256xf32>
    %112 = arith.mulf %110, %111 : vector<32x256xf32>
    %113 = vector.broadcast %13 : vector<32x1xf32> to vector<32x256xf32>
    %114 = arith.addf %112, %113 : vector<32x256xf32>
    %115 = arith.negf %114 : vector<32x256xf32>
    %116 = math.exp %115 : vector<32x256xf32>
    %cst_56 = arith.constant 1.000000e+00 : f32
    %117 = vector.broadcast %cst_56 : f32 to vector<32x256xf32>
    %118 = arith.addf %117, %116 : vector<32x256xf32>
    %119 = arith.divf %117, %118 : vector<32x256xf32>
    %120 = arith.mulf %114, %119 : vector<32x256xf32>
    %121 = arith.truncf %120 : vector<32x256xf32> to vector<32x256xbf16>
    %c0_57 = arith.constant 0 : index
    %c128_58 = arith.constant 128 : index
    %122 = vector.load %arg8[%c0_57, %c128_58] : memref<32x512xbf16, #tpu.memory_space<vmem>>, vector<32x256xbf16>
    tpu.vector_store %arg8[%c0_57, %c128_58], %121 {strides = array<i32>} : memref<32x512xbf16, #tpu.memory_space<vmem>>, vector<32x256xbf16>,
    %c0_59 = arith.constant 0 : index
    %c111_60 = arith.constant 111 : index
    %123 = vector.load %arg8[%c0_59, %c111_60] : memref<32x512xbf16, #tpu.memory_space<vmem>>, vector<32x256xbf16>
    %cst_61 = arith.constant 0.000000e+00 : bf16
    %124 = vector.broadcast %cst_61 : bf16 to vector<32x256xbf16>
    %125 = vector.shape_cast %7 : vector<1x256xi1> to vector<1x256xi1>
    %126 = vector.broadcast %125 : vector<1x256xi1> to vector<32x256xi1>
    %127 = arith.select %126, %123, %124 : vector<32x256xi1>, vector<32x256xbf16>
    %c0_62 = arith.constant 0 : index
    %c256_63 = arith.constant 256 : index
    %128 = vector.load %arg9[%c0_62, %c256_63] : memref<320x1024xbf16, #tpu.memory_space<vmem>>, vector<32x256xbf16>
    tpu.vector_store %arg9[%c0_62, %c256_63], %127 {strides = array<i32>} : memref<320x1024xbf16, #tpu.memory_space<vmem>>, vector<32x256xbf16>,
    %c0_64 = arith.constant 0 : index
    %c112_65 = arith.constant 112 : index
    %129 = vector.load %arg8[%c0_64, %c112_65] : memref<32x512xbf16, #tpu.memory_space<vmem>>, vector<32x256xbf16>
    %c32_66 = arith.constant 32 : index
    %c256_67 = arith.constant 256 : index
    %130 = vector.load %arg9[%c32_66, %c256_67] : memref<320x1024xbf16, #tpu.memory_space<vmem>>, vector<32x256xbf16>
    tpu.vector_store %arg9[%c32_66, %c256_67], %129 {strides = array<i32>} : memref<320x1024xbf16, #tpu.memory_space<vmem>>, vector<32x256xbf16>,
    %c0_68 = arith.constant 0 : index
    %c113_69 = arith.constant 113 : index
    %131 = vector.load %arg8[%c0_68, %c113_69] : memref<32x512xbf16, #tpu.memory_space<vmem>>, vector<32x256xbf16>
    %cst_70 = arith.constant 0.000000e+00 : bf16
    %132 = vector.broadcast %cst_70 : bf16 to vector<32x256xbf16>
    %133 = vector.shape_cast %10 : vector<1x256xi1> to vector<1x256xi1>
    %134 = vector.broadcast %133 : vector<1x256xi1> to vector<32x256xi1>
    %135 = arith.select %134, %131, %132 : vector<32x256xi1>, vector<32x256xbf16>
    %c64_71 = arith.constant 64 : index
    %c256_72 = arith.constant 256 : index
    %136 = vector.load %arg9[%c64_71, %c256_72] : memref<320x1024xbf16, #tpu.memory_space<vmem>>, vector<32x256xbf16>
    tpu.vector_store %arg9[%c64_71, %c256_72], %135 {strides = array<i32>} : memref<320x1024xbf16, #tpu.memory_space<vmem>>, vector<32x256xbf16>,
    %c0_73 = arith.constant 0 : index
    %c127_74 = arith.constant 127 : index
    %137 = vector.load %arg8[%c0_73, %c127_74] : memref<32x512xbf16, #tpu.memory_space<vmem>>, vector<32x256xbf16>
    %cst_75 = arith.constant 0.000000e+00 : bf16
    %138 = vector.broadcast %cst_75 : bf16 to vector<32x256xbf16>
    %139 = vector.shape_cast %7 : vector<1x256xi1> to vector<1x256xi1>
    %140 = vector.broadcast %139 : vector<1x256xi1> to vector<32x256xi1>
    %141 = arith.select %140, %137, %138 : vector<32x256xi1>, vector<32x256xbf16>
    %c96_76 = arith.constant 96 : index
    %c256_77 = arith.constant 256 : index
    %142 = vector.load %arg9[%c96_76, %c256_77] : memref<320x1024xbf16, #tpu.memory_space<vmem>>, vector<32x256xbf16>
    tpu.vector_store %arg9[%c96_76, %c256_77], %141 {strides = array<i32>} : memref<320x1024xbf16, #tpu.memory_space<vmem>>, vector<32x256xbf16>,
    %c0_78 = arith.constant 0 : index
    %c128_79 = arith.constant 128 : index
    %143 = vector.load %arg8[%c0_78, %c128_79] : memref<32x512xbf16, #tpu.memory_space<vmem>>, vector<32x256xbf16>
    %c128_80 = arith.constant 128 : index
    %c256_81 = arith.constant 256 : index
    %144 = vector.load %arg9[%c128_80, %c256_81] : memref<320x1024xbf16, #tpu.memory_space<vmem>>, vector<32x256xbf16>
    tpu.vector_store %arg9[%c128_80, %c256_81], %143 {strides = array<i32>} : memref<320x1024xbf16, #tpu.memory_space<vmem>>, vector<32x256xbf16>,
    %c0_82 = arith.constant 0 : index
    %c129_83 = arith.constant 129 : index
    %145 = vector.load %arg8[%c0_82, %c129_83] : memref<32x512xbf16, #tpu.memory_space<vmem>>, vector<32x256xbf16>
    %cst_84 = arith.constant 0.000000e+00 : bf16
    %146 = vector.broadcast %cst_84 : bf16 to vector<32x256xbf16>
    %147 = vector.shape_cast %10 : vector<1x256xi1> to vector<1x256xi1>
    %148 = vector.broadcast %147 : vector<1x256xi1> to vector<32x256xi1>
    %149 = arith.select %148, %145, %146 : vector<32x256xi1>, vector<32x256xbf16>
    %c160_85 = arith.constant 160 : index
    %c256_86 = arith.constant 256 : index
    %150 = vector.load %arg9[%c160_85, %c256_86] : memref<320x1024xbf16, #tpu.memory_space<vmem>>, vector<32x256xbf16>
    tpu.vector_store %arg9[%c160_85, %c256_86], %149 {strides = array<i32>} : memref<320x1024xbf16, #tpu.memory_space<vmem>>, vector<32x256xbf16>,
    %c0_87 = arith.constant 0 : index
    %c143_88 = arith.constant 143 : index
    %151 = vector.load %arg8[%c0_87, %c143_88] : memref<32x512xbf16, #tpu.memory_space<vmem>>, vector<32x256xbf16>
    %cst_89 = arith.constant 0.000000e+00 : bf16
    %152 = vector.broadcast %cst_89 : bf16 to vector<32x256xbf16>
    %153 = vector.shape_cast %7 : vector<1x256xi1> to vector<1x256xi1>
    %154 = vector.broadcast %153 : vector<1x256xi1> to vector<32x256xi1>
    %155 = arith.select %154, %151, %152 : vector<32x256xi1>, vector<32x256xbf16>
    %c192_90 = arith.constant 192 : index
    %c256_91 = arith.constant 256 : index
    %156 = vector.load %arg9[%c192_90, %c256_91] : memref<320x1024xbf16, #tpu.memory_space<vmem>>, vector<32x256xbf16>
    tpu.vector_store %arg9[%c192_90, %c256_91], %155 {strides = array<i32>} : memref<320x1024xbf16, #tpu.memory_space<vmem>>, vector<32x256xbf16>,
    %c0_92 = arith.constant 0 : index
    %c144_93 = arith.constant 144 : index
    %157 = vector.load %arg8[%c0_92, %c144_93] : memref<32x512xbf16, #tpu.memory_space<vmem>>, vector<32x256xbf16>
    %c224_94 = arith.constant 224 : index
    %c256_95 = arith.constant 256 : index
    %158 = vector.load %arg9[%c224_94, %c256_95] : memref<320x1024xbf16, #tpu.memory_space<vmem>>, vector<32x256xbf16>
    tpu.vector_store %arg9[%c224_94, %c256_95], %157 {strides = array<i32>} : memref<320x1024xbf16, #tpu.memory_space<vmem>>, vector<32x256xbf16>,
    %c0_96 = arith.constant 0 : index
    %c145_97 = arith.constant 145 : index
    %159 = vector.load %arg8[%c0_96, %c145_97] : memref<32x512xbf16, #tpu.memory_space<vmem>>, vector<32x256xbf16>
    %cst_98 = arith.constant 0.000000e+00 : bf16
    %160 = vector.broadcast %cst_98 : bf16 to vector<32x256xbf16>
    %161 = vector.shape_cast %10 : vector<1x256xi1> to vector<1x256xi1>
    %162 = vector.broadcast %161 : vector<1x256xi1> to vector<32x256xi1>
    %163 = arith.select %162, %159, %160 : vector<32x256xi1>, vector<32x256xbf16>
    %c256_99 = arith.constant 256 : index
    %c256_100 = arith.constant 256 : index
    %164 = vector.load %arg9[%c256_99, %c256_100] : memref<320x1024xbf16, #tpu.memory_space<vmem>>, vector<32x256xbf16>
    tpu.vector_store %arg9[%c256_99, %c256_100], %163 {strides = array<i32>} : memref<320x1024xbf16, #tpu.memory_space<vmem>>, vector<32x256xbf16>,
    %c2 = arith.constant 2 : index
    %c0_101 = arith.constant 0 : index
    %c0_102 = arith.constant 0 : index
    %165 = vector.load %arg1[%c2, %c0_101, %c0_102] : memref<4x32x256xf32, #tpu.memory_space<vmem>>, vector<1x32x256xf32>
    %166 = vector.shape_cast %165 : vector<1x32x256xf32> to vector<32x256xf32>
    %167 = arith.truncf %166 : vector<32x256xf32> to vector<32x256xbf16>
    %c288_103 = arith.constant 288 : index
    %c512 = arith.constant 512 : index
    %168 = vector.load %arg9[%c288_103, %c512] : memref<320x1024xbf16, #tpu.memory_space<vmem>>, vector<32x256xbf16>
    tpu.vector_store %arg9[%c288_103, %c512], %167 {strides = array<i32>} : memref<320x1024xbf16, #tpu.memory_space<vmem>>, vector<32x256xbf16>,
    %cst_104 = arith.constant dense<0.000000e+00> : vector<32xf32>
    %169 = vector.multi_reduction <add>, %166, %cst_104 [1] : vector<32x256xf32> to vector<32xf32>
    %170 = vector.shape_cast %169 : vector<32xf32> to vector<32x1xf32>
    %cst_105 = arith.constant 3.906250e-03 : f32
    %171 = vector.broadcast %cst_105 : f32 to vector<32x1xf32>
    %172 = arith.mulf %170, %171 : vector<32x1xf32>
    %173 = vector.broadcast %172 : vector<32x1xf32> to vector<32x256xf32>
    %174 = arith.subf %166, %173 : vector<32x256xf32>
    %175 = arith.mulf %174, %174 : vector<32x256xf32>
    %cst_106 = arith.constant dense<0.000000e+00> : vector<32xf32>
    %176 = vector.multi_reduction <add>, %175, %cst_106 [1] : vector<32x256xf32> to vector<32xf32>
    %177 = vector.shape_cast %176 : vector<32xf32> to vector<32x1xf32>
    %cst_107 = arith.constant 3.906250e-03 : f32
    %178 = vector.broadcast %cst_107 : f32 to vector<32x1xf32>
    %179 = arith.mulf %177, %178 : vector<32x1xf32>
    %cst_108 = arith.constant 9.99999974E-6 : f32
    %180 = vector.broadcast %cst_108 : f32 to vector<32x1xf32>
    %181 = arith.addf %179, %180 : vector<32x1xf32>
    %182 = math.rsqrt %181 : vector<32x1xf32>
    %183 = vector.broadcast %182 : vector<32x1xf32> to vector<32x256xf32>
    %184 = arith.mulf %174, %183 : vector<32x256xf32>
    %185 = vector.broadcast %12 : vector<32x1xf32> to vector<32x256xf32>
    %186 = arith.mulf %184, %185 : vector<32x256xf32>
    %187 = vector.broadcast %13 : vector<32x1xf32> to vector<32x256xf32>
    %188 = arith.addf %186, %187 : vector<32x256xf32>
    %189 = arith.negf %188 : vector<32x256xf32>
    %190 = math.exp %189 : vector<32x256xf32>
    %cst_109 = arith.constant 1.000000e+00 : f32
    %191 = vector.broadcast %cst_109 : f32 to vector<32x256xf32>
    %192 = arith.addf %191, %190 : vector<32x256xf32>
    %193 = arith.divf %191, %192 : vector<32x256xf32>
    %194 = arith.mulf %188, %193 : vector<32x256xf32>
    %195 = arith.truncf %194 : vector<32x256xf32> to vector<32x256xbf16>
    %c0_110 = arith.constant 0 : index
    %c128_111 = arith.constant 128 : index
    %196 = vector.load %arg8[%c0_110, %c128_111] : memref<32x512xbf16, #tpu.memory_space<vmem>>, vector<32x256xbf16>
    tpu.vector_store %arg8[%c0_110, %c128_111], %195 {strides = array<i32>} : memref<32x512xbf16, #tpu.memory_space<vmem>>, vector<32x256xbf16>,
    %c0_112 = arith.constant 0 : index
    %c111_113 = arith.constant 111 : index
    %197 = vector.load %arg8[%c0_112, %c111_113] : memref<32x512xbf16, #tpu.memory_space<vmem>>, vector<32x256xbf16>
    %cst_114 = arith.constant 0.000000e+00 : bf16
    %198 = vector.broadcast %cst_114 : bf16 to vector<32x256xbf16>
    %199 = vector.shape_cast %7 : vector<1x256xi1> to vector<1x256xi1>
    %200 = vector.broadcast %199 : vector<1x256xi1> to vector<32x256xi1>
    %201 = arith.select %200, %197, %198 : vector<32x256xi1>, vector<32x256xbf16>
    %c0_115 = arith.constant 0 : index
    %c512_116 = arith.constant 512 : index
    %202 = vector.load %arg9[%c0_115, %c512_116] : memref<320x1024xbf16, #tpu.memory_space<vmem>>, vector<32x256xbf16>
    tpu.vector_store %arg9[%c0_115, %c512_116], %201 {strides = array<i32>} : memref<320x1024xbf16, #tpu.memory_space<vmem>>, vector<32x256xbf16>,
    %c0_117 = arith.constant 0 : index
    %c112_118 = arith.constant 112 : index
    %203 = vector.load %arg8[%c0_117, %c112_118] : memref<32x512xbf16, #tpu.memory_space<vmem>>, vector<32x256xbf16>
    %c32_119 = arith.constant 32 : index
    %c512_120 = arith.constant 512 : index
    %204 = vector.load %arg9[%c32_119, %c512_120] : memref<320x1024xbf16, #tpu.memory_space<vmem>>, vector<32x256xbf16>
    tpu.vector_store %arg9[%c32_119, %c512_120], %203 {strides = array<i32>} : memref<320x1024xbf16, #tpu.memory_space<vmem>>, vector<32x256xbf16>,
    %c0_121 = arith.constant 0 : index
    %c113_122 = arith.constant 113 : index
    %205 = vector.load %arg8[%c0_121, %c113_122] : memref<32x512xbf16, #tpu.memory_space<vmem>>, vector<32x256xbf16>
    %cst_123 = arith.constant 0.000000e+00 : bf16
    %206 = vector.broadcast %cst_123 : bf16 to vector<32x256xbf16>
    %207 = vector.shape_cast %10 : vector<1x256xi1> to vector<1x256xi1>
    %208 = vector.broadcast %207 : vector<1x256xi1> to vector<32x256xi1>
    %209 = arith.select %208, %205, %206 : vector<32x256xi1>, vector<32x256xbf16>
    %c64_124 = arith.constant 64 : index
    %c512_125 = arith.constant 512 : index
    %210 = vector.load %arg9[%c64_124, %c512_125] : memref<320x1024xbf16, #tpu.memory_space<vmem>>, vector<32x256xbf16>
    tpu.vector_store %arg9[%c64_124, %c512_125], %209 {strides = array<i32>} : memref<320x1024xbf16, #tpu.memory_space<vmem>>, vector<32x256xbf16>,
    %c0_126 = arith.constant 0 : index
    %c127_127 = arith.constant 127 : index
    %211 = vector.load %arg8[%c0_126, %c127_127] : memref<32x512xbf16, #tpu.memory_space<vmem>>, vector<32x256xbf16>
    %cst_128 = arith.constant 0.000000e+00 : bf16
    %212 = vector.broadcast %cst_128 : bf16 to vector<32x256xbf16>
    %213 = vector.shape_cast %7 : vector<1x256xi1> to vector<1x256xi1>
    %214 = vector.broadcast %213 : vector<1x256xi1> to vector<32x256xi1>
    %215 = arith.select %214, %211, %212 : vector<32x256xi1>, vector<32x256xbf16>
    %c96_129 = arith.constant 96 : index
    %c512_130 = arith.constant 512 : index
    %216 = vector.load %arg9[%c96_129, %c512_130] : memref<320x1024xbf16, #tpu.memory_space<vmem>>, vector<32x256xbf16>
    tpu.vector_store %arg9[%c96_129, %c512_130], %215 {strides = array<i32>} : memref<320x1024xbf16, #tpu.memory_space<vmem>>, vector<32x256xbf16>,
    %c0_131 = arith.constant 0 : index
    %c128_132 = arith.constant 128 : index
    %217 = vector.load %arg8[%c0_131, %c128_132] : memref<32x512xbf16, #tpu.memory_space<vmem>>, vector<32x256xbf16>
    %c128_133 = arith.constant 128 : index
    %c512_134 = arith.constant 512 : index
    %218 = vector.load %arg9[%c128_133, %c512_134] : memref<320x1024xbf16, #tpu.memory_space<vmem>>, vector<32x256xbf16>
    tpu.vector_store %arg9[%c128_133, %c512_134], %217 {strides = array<i32>} : memref<320x1024xbf16, #tpu.memory_space<vmem>>, vector<32x256xbf16>,
    %c0_135 = arith.constant 0 : index
    %c129_136 = arith.constant 129 : index
    %219 = vector.load %arg8[%c0_135, %c129_136] : memref<32x512xbf16, #tpu.memory_space<vmem>>, vector<32x256xbf16>
    %cst_137 = arith.constant 0.000000e+00 : bf16
    %220 = vector.broadcast %cst_137 : bf16 to vector<32x256xbf16>
    %221 = vector.shape_cast %10 : vector<1x256xi1> to vector<1x256xi1>
    %222 = vector.broadcast %221 : vector<1x256xi1> to vector<32x256xi1>
    %223 = arith.select %222, %219, %220 : vector<32x256xi1>, vector<32x256xbf16>
    %c160_138 = arith.constant 160 : index
    %c512_139 = arith.constant 512 : index
    %224 = vector.load %arg9[%c160_138, %c512_139] : memref<320x1024xbf16, #tpu.memory_space<vmem>>, vector<32x256xbf16>
    tpu.vector_store %arg9[%c160_138, %c512_139], %223 {strides = array<i32>} : memref<320x1024xbf16, #tpu.memory_space<vmem>>, vector<32x256xbf16>,
    %c0_140 = arith.constant 0 : index
    %c143_141 = arith.constant 143 : index
    %225 = vector.load %arg8[%c0_140, %c143_141] : memref<32x512xbf16, #tpu.memory_space<vmem>>, vector<32x256xbf16>
    %cst_142 = arith.constant 0.000000e+00 : bf16
    %226 = vector.broadcast %cst_142 : bf16 to vector<32x256xbf16>
    %227 = vector.shape_cast %7 : vector<1x256xi1> to vector<1x256xi1>
    %228 = vector.broadcast %227 : vector<1x256xi1> to vector<32x256xi1>
    %229 = arith.select %228, %225, %226 : vector<32x256xi1>, vector<32x256xbf16>
    %c192_143 = arith.constant 192 : index
    %c512_144 = arith.constant 512 : index
    %230 = vector.load %arg9[%c192_143, %c512_144] : memref<320x1024xbf16, #tpu.memory_space<vmem>>, vector<32x256xbf16>
    tpu.vector_store %arg9[%c192_143, %c512_144], %229 {strides = array<i32>} : memref<320x1024xbf16, #tpu.memory_space<vmem>>, vector<32x256xbf16>,
    %c0_145 = arith.constant 0 : index
    %c144_146 = arith.constant 144 : index
    %231 = vector.load %arg8[%c0_145, %c144_146] : memref<32x512xbf16, #tpu.memory_space<vmem>>, vector<32x256xbf16>
    %c224_147 = arith.constant 224 : index
    %c512_148 = arith.constant 512 : index
    %232 = vector.load %arg9[%c224_147, %c512_148] : memref<320x1024xbf16, #tpu.memory_space<vmem>>, vector<32x256xbf16>
    tpu.vector_store %arg9[%c224_147, %c512_148], %231 {strides = array<i32>} : memref<320x1024xbf16, #tpu.memory_space<vmem>>, vector<32x256xbf16>,
    %c0_149 = arith.constant 0 : index
    %c145_150 = arith.constant 145 : index
    %233 = vector.load %arg8[%c0_149, %c145_150] : memref<32x512xbf16, #tpu.memory_space<vmem>>, vector<32x256xbf16>
    %cst_151 = arith.constant 0.000000e+00 : bf16
    %234 = vector.broadcast %cst_151 : bf16 to vector<32x256xbf16>
    %235 = vector.shape_cast %10 : vector<1x256xi1> to vector<1x256xi1>
    %236 = vector.broadcast %235 : vector<1x256xi1> to vector<32x256xi1>
    %237 = arith.select %236, %233, %234 : vector<32x256xi1>, vector<32x256xbf16>
    %c256_152 = arith.constant 256 : index
    %c512_153 = arith.constant 512 : index
    %238 = vector.load %arg9[%c256_152, %c512_153] : memref<320x1024xbf16, #tpu.memory_space<vmem>>, vector<32x256xbf16>
    tpu.vector_store %arg9[%c256_152, %c512_153], %237 {strides = array<i32>} : memref<320x1024xbf16, #tpu.memory_space<vmem>>, vector<32x256xbf16>,
    %c3 = arith.constant 3 : index
    %c0_154 = arith.constant 0 : index
    %c0_155 = arith.constant 0 : index
    %239 = vector.load %arg1[%c3, %c0_154, %c0_155] : memref<4x32x256xf32, #tpu.memory_space<vmem>>, vector<1x32x256xf32>
    %240 = vector.shape_cast %239 : vector<1x32x256xf32> to vector<32x256xf32>
    %241 = arith.truncf %240 : vector<32x256xf32> to vector<32x256xbf16>
    %c288_156 = arith.constant 288 : index
    %c768 = arith.constant 768 : index
    %242 = vector.load %arg9[%c288_156, %c768] : memref<320x1024xbf16, #tpu.memory_space<vmem>>, vector<32x256xbf16>
    tpu.vector_store %arg9[%c288_156, %c768], %241 {strides = array<i32>} : memref<320x1024xbf16, #tpu.memory_space<vmem>>, vector<32x256xbf16>,
    %cst_157 = arith.constant dense<0.000000e+00> : vector<32xf32>
    %243 = vector.multi_reduction <add>, %240, %cst_157 [1] : vector<32x256xf32> to vector<32xf32>
    %244 = vector.shape_cast %243 : vector<32xf32> to vector<32x1xf32>
    %cst_158 = arith.constant 3.906250e-03 : f32
    %245 = vector.broadcast %cst_158 : f32 to vector<32x1xf32>
    %246 = arith.mulf %244, %245 : vector<32x1xf32>
    %247 = vector.broadcast %246 : vector<32x1xf32> to vector<32x256xf32>
    %248 = arith.subf %240, %247 : vector<32x256xf32>
    %249 = arith.mulf %248, %248 : vector<32x256xf32>
    %cst_159 = arith.constant dense<0.000000e+00> : vector<32xf32>
    %250 = vector.multi_reduction <add>, %249, %cst_159 [1] : vector<32x256xf32> to vector<32xf32>
    %251 = vector.shape_cast %250 : vector<32xf32> to vector<32x1xf32>
    %cst_160 = arith.constant 3.906250e-03 : f32
    %252 = vector.broadcast %cst_160 : f32 to vector<32x1xf32>
    %253 = arith.mulf %251, %252 : vector<32x1xf32>
    %cst_161 = arith.constant 9.99999974E-6 : f32
    %254 = vector.broadcast %cst_161 : f32 to vector<32x1xf32>
    %255 = arith.addf %253, %254 : vector<32x1xf32>
    %256 = math.rsqrt %255 : vector<32x1xf32>
    %257 = vector.broadcast %256 : vector<32x1xf32> to vector<32x256xf32>
    %258 = arith.mulf %248, %257 : vector<32x256xf32>
    %259 = vector.broadcast %12 : vector<32x1xf32> to vector<32x256xf32>
    %260 = arith.mulf %258, %259 : vector<32x256xf32>
    %261 = vector.broadcast %13 : vector<32x1xf32> to vector<32x256xf32>
    %262 = arith.addf %260, %261 : vector<32x256xf32>
    %263 = arith.negf %262 : vector<32x256xf32>
    %264 = math.exp %263 : vector<32x256xf32>
    %cst_162 = arith.constant 1.000000e+00 : f32
    %265 = vector.broadcast %cst_162 : f32 to vector<32x256xf32>
    %266 = arith.addf %265, %264 : vector<32x256xf32>
    %267 = arith.divf %265, %266 : vector<32x256xf32>
    %268 = arith.mulf %262, %267 : vector<32x256xf32>
    %269 = arith.truncf %268 : vector<32x256xf32> to vector<32x256xbf16>
    %c0_163 = arith.constant 0 : index
    %c128_164 = arith.constant 128 : index
    %270 = vector.load %arg8[%c0_163, %c128_164] : memref<32x512xbf16, #tpu.memory_space<vmem>>, vector<32x256xbf16>
    tpu.vector_store %arg8[%c0_163, %c128_164], %269 {strides = array<i32>} : memref<32x512xbf16, #tpu.memory_space<vmem>>, vector<32x256xbf16>,
    %c0_165 = arith.constant 0 : index
    %c111_166 = arith.constant 111 : index
    %271 = vector.load %arg8[%c0_165, %c111_166] : memref<32x512xbf16, #tpu.memory_space<vmem>>, vector<32x256xbf16>
    %cst_167 = arith.constant 0.000000e+00 : bf16
    %272 = vector.broadcast %cst_167 : bf16 to vector<32x256xbf16>
    %273 = vector.shape_cast %7 : vector<1x256xi1> to vector<1x256xi1>
    %274 = vector.broadcast %273 : vector<1x256xi1> to vector<32x256xi1>
    %275 = arith.select %274, %271, %272 : vector<32x256xi1>, vector<32x256xbf16>
    %c0_168 = arith.constant 0 : index
    %c768_169 = arith.constant 768 : index
    %276 = vector.load %arg9[%c0_168, %c768_169] : memref<320x1024xbf16, #tpu.memory_space<vmem>>, vector<32x256xbf16>
    tpu.vector_store %arg9[%c0_168, %c768_169], %275 {strides = array<i32>} : memref<320x1024xbf16, #tpu.memory_space<vmem>>, vector<32x256xbf16>,
    %c0_170 = arith.constant 0 : index
    %c112_171 = arith.constant 112 : index
    %277 = vector.load %arg8[%c0_170, %c112_171] : memref<32x512xbf16, #tpu.memory_space<vmem>>, vector<32x256xbf16>
    %c32_172 = arith.constant 32 : index
    %c768_173 = arith.constant 768 : index
    %278 = vector.load %arg9[%c32_172, %c768_173] : memref<320x1024xbf16, #tpu.memory_space<vmem>>, vector<32x256xbf16>
    tpu.vector_store %arg9[%c32_172, %c768_173], %277 {strides = array<i32>} : memref<320x1024xbf16, #tpu.memory_space<vmem>>, vector<32x256xbf16>,
    %c0_174 = arith.constant 0 : index
    %c113_175 = arith.constant 113 : index
    %279 = vector.load %arg8[%c0_174, %c113_175] : memref<32x512xbf16, #tpu.memory_space<vmem>>, vector<32x256xbf16>
    %cst_176 = arith.constant 0.000000e+00 : bf16
    %280 = vector.broadcast %cst_176 : bf16 to vector<32x256xbf16>
    %281 = vector.shape_cast %10 : vector<1x256xi1> to vector<1x256xi1>
    %282 = vector.broadcast %281 : vector<1x256xi1> to vector<32x256xi1>
    %283 = arith.select %282, %279, %280 : vector<32x256xi1>, vector<32x256xbf16>
    %c64_177 = arith.constant 64 : index
    %c768_178 = arith.constant 768 : index
    %284 = vector.load %arg9[%c64_177, %c768_178] : memref<320x1024xbf16, #tpu.memory_space<vmem>>, vector<32x256xbf16>
    tpu.vector_store %arg9[%c64_177, %c768_178], %283 {strides = array<i32>} : memref<320x1024xbf16, #tpu.memory_space<vmem>>, vector<32x256xbf16>,
    %c0_179 = arith.constant 0 : index
    %c127_180 = arith.constant 127 : index
    %285 = vector.load %arg8[%c0_179, %c127_180] : memref<32x512xbf16, #tpu.memory_space<vmem>>, vector<32x256xbf16>
    %cst_181 = arith.constant 0.000000e+00 : bf16
    %286 = vector.broadcast %cst_181 : bf16 to vector<32x256xbf16>
    %287 = vector.shape_cast %7 : vector<1x256xi1> to vector<1x256xi1>
    %288 = vector.broadcast %287 : vector<1x256xi1> to vector<32x256xi1>
    %289 = arith.select %288, %285, %286 : vector<32x256xi1>, vector<32x256xbf16>
    %c96_182 = arith.constant 96 : index
    %c768_183 = arith.constant 768 : index
    %290 = vector.load %arg9[%c96_182, %c768_183] : memref<320x1024xbf16, #tpu.memory_space<vmem>>, vector<32x256xbf16>
    tpu.vector_store %arg9[%c96_182, %c768_183], %289 {strides = array<i32>} : memref<320x1024xbf16, #tpu.memory_space<vmem>>, vector<32x256xbf16>,
    %c0_184 = arith.constant 0 : index
    %c128_185 = arith.constant 128 : index
    %291 = vector.load %arg8[%c0_184, %c128_185] : memref<32x512xbf16, #tpu.memory_space<vmem>>, vector<32x256xbf16>
    %c128_186 = arith.constant 128 : index
    %c768_187 = arith.constant 768 : index
    %292 = vector.load %arg9[%c128_186, %c768_187] : memref<320x1024xbf16, #tpu.memory_space<vmem>>, vector<32x256xbf16>
    tpu.vector_store %arg9[%c128_186, %c768_187], %291 {strides = array<i32>} : memref<320x1024xbf16, #tpu.memory_space<vmem>>, vector<32x256xbf16>,
    %c0_188 = arith.constant 0 : index
    %c129_189 = arith.constant 129 : index
    %293 = vector.load %arg8[%c0_188, %c129_189] : memref<32x512xbf16, #tpu.memory_space<vmem>>, vector<32x256xbf16>
    %cst_190 = arith.constant 0.000000e+00 : bf16
    %294 = vector.broadcast %cst_190 : bf16 to vector<32x256xbf16>
    %295 = vector.shape_cast %10 : vector<1x256xi1> to vector<1x256xi1>
    %296 = vector.broadcast %295 : vector<1x256xi1> to vector<32x256xi1>
    %297 = arith.select %296, %293, %294 : vector<32x256xi1>, vector<32x256xbf16>
    %c160_191 = arith.constant 160 : index
    %c768_192 = arith.constant 768 : index
    %298 = vector.load %arg9[%c160_191, %c768_192] : memref<320x1024xbf16, #tpu.memory_space<vmem>>, vector<32x256xbf16>
    tpu.vector_store %arg9[%c160_191, %c768_192], %297 {strides = array<i32>} : memref<320x1024xbf16, #tpu.memory_space<vmem>>, vector<32x256xbf16>,
    %c0_193 = arith.constant 0 : index
    %c143_194 = arith.constant 143 : index
    %299 = vector.load %arg8[%c0_193, %c143_194] : memref<32x512xbf16, #tpu.memory_space<vmem>>, vector<32x256xbf16>
    %cst_195 = arith.constant 0.000000e+00 : bf16
    %300 = vector.broadcast %cst_195 : bf16 to vector<32x256xbf16>
    %301 = vector.shape_cast %7 : vector<1x256xi1> to vector<1x256xi1>
    %302 = vector.broadcast %301 : vector<1x256xi1> to vector<32x256xi1>
    %303 = arith.select %302, %299, %300 : vector<32x256xi1>, vector<32x256xbf16>
    %c192_196 = arith.constant 192 : index
    %c768_197 = arith.constant 768 : index
    %304 = vector.load %arg9[%c192_196, %c768_197] : memref<320x1024xbf16, #tpu.memory_space<vmem>>, vector<32x256xbf16>
    tpu.vector_store %arg9[%c192_196, %c768_197], %303 {strides = array<i32>} : memref<320x1024xbf16, #tpu.memory_space<vmem>>, vector<32x256xbf16>,
    %c0_198 = arith.constant 0 : index
    %c144_199 = arith.constant 144 : index
    %305 = vector.load %arg8[%c0_198, %c144_199] : memref<32x512xbf16, #tpu.memory_space<vmem>>, vector<32x256xbf16>
    %c224_200 = arith.constant 224 : index
    %c768_201 = arith.constant 768 : index
    %306 = vector.load %arg9[%c224_200, %c768_201] : memref<320x1024xbf16, #tpu.memory_space<vmem>>, vector<32x256xbf16>
    tpu.vector_store %arg9[%c224_200, %c768_201], %305 {strides = array<i32>} : memref<320x1024xbf16, #tpu.memory_space<vmem>>, vector<32x256xbf16>,
    %c0_202 = arith.constant 0 : index
    %c145_203 = arith.constant 145 : index
    %307 = vector.load %arg8[%c0_202, %c145_203] : memref<32x512xbf16, #tpu.memory_space<vmem>>, vector<32x256xbf16>
    %cst_204 = arith.constant 0.000000e+00 : bf16
    %308 = vector.broadcast %cst_204 : bf16 to vector<32x256xbf16>
    %309 = vector.shape_cast %10 : vector<1x256xi1> to vector<1x256xi1>
    %310 = vector.broadcast %309 : vector<1x256xi1> to vector<32x256xi1>
    %311 = arith.select %310, %307, %308 : vector<32x256xi1>, vector<32x256xbf16>
    %c256_205 = arith.constant 256 : index
    %c768_206 = arith.constant 768 : index
    %312 = vector.load %arg9[%c256_205, %c768_206] : memref<320x1024xbf16, #tpu.memory_space<vmem>>, vector<32x256xbf16>
    tpu.vector_store %arg9[%c256_205, %c768_206], %311 {strides = array<i32>} : memref<320x1024xbf16, #tpu.memory_space<vmem>>, vector<32x256xbf16>,
    %c0_207 = arith.constant 0 : index
    %c0_208 = arith.constant 0 : index
    %313 = vector.load %arg5[%c0_207, %c0_208] : memref<32x288xbf16, #tpu.memory_space<vmem>>, vector<32x288xbf16>
    %c0_209 = arith.constant 0 : index
    %c0_210 = arith.constant 0 : index
    %314 = vector.load %arg9[%c0_209, %c0_210] : memref<320x1024xbf16, #tpu.memory_space<vmem>>, vector<288x1024xbf16>
    %cst_211 = arith.constant dense<0.000000e+00> : vector<32x1024xf32>
    %315 = tpu.matmul %313, %314, %cst_211 {dimension_numbers = #tpu.dot_dimension_numbers<[1], [0], [0], [1], [0, 0, 1, 1], [], []>} : vector<32x288xbf16>, vector<288x1024xbf16>, vector<32x1024xf32> -> vector<32x1024xf32>
    %c0_212 = arith.constant 0 : index
    %c0_213 = arith.constant 0 : index
    %316 = vector.load %arg10[%c0_212, %c0_213] : memref<32x1024xf32, #tpu.memory_space<vmem>>, vector<32x1024xf32>
    tpu.vector_store %arg10[%c0_212, %c0_213], %315 {strides = array<i32>} : memref<32x1024xf32, #tpu.memory_space<vmem>>, vector<32x1024xf32>,
    %c0_214 = arith.constant 0 : index
    %c0_215 = arith.constant 0 : index
    %317 = vector.load %arg10[%c0_214, %c0_215] : memref<32x1024xf32, #tpu.memory_space<vmem>>, vector<32x256xf32>
    %c0_216 = arith.constant 0 : index
    %c0_217 = arith.constant 0 : index
    %c0_218 = arith.constant 0 : index
    %318 = vector.load %arg2[%c0_216, %c0_217, %c0_218] : memref<4x32x1xf32, #tpu.memory_space<vmem>>, vector<1x32x1xf32>
    %319 = vector.shape_cast %318 : vector<1x32x1xf32> to vector<32x1xf32>
    %320 = vector.broadcast %319 : vector<32x1xf32> to vector<32x256xf32>
    %321 = arith.addf %317, %320 : vector<32x256xf32>
    %cst_219 = arith.constant dense<0.000000e+00> : vector<32xf32>
    %322 = vector.multi_reduction <add>, %321, %cst_219 [1] : vector<32x256xf32> to vector<32xf32>
    %323 = vector.shape_cast %322 : vector<32xf32> to vector<32x1xf32>
    %cst_220 = arith.constant 3.906250e-03 : f32
    %324 = vector.broadcast %cst_220 : f32 to vector<32x1xf32>
    %325 = arith.mulf %323, %324 : vector<32x1xf32>
    %326 = vector.broadcast %325 : vector<32x1xf32> to vector<32x256xf32>
    %327 = arith.subf %321, %326 : vector<32x256xf32>
    %328 = arith.mulf %327, %327 : vector<32x256xf32>
    %cst_221 = arith.constant dense<0.000000e+00> : vector<32xf32>
    %329 = vector.multi_reduction <add>, %328, %cst_221 [1] : vector<32x256xf32> to vector<32xf32>
    %330 = vector.shape_cast %329 : vector<32xf32> to vector<32x1xf32>
    %cst_222 = arith.constant 3.906250e-03 : f32
    %331 = vector.broadcast %cst_222 : f32 to vector<32x1xf32>
    %332 = arith.mulf %330, %331 : vector<32x1xf32>
    %cst_223 = arith.constant 9.99999974E-6 : f32
    %333 = vector.broadcast %cst_223 : f32 to vector<32x1xf32>
    %334 = arith.addf %332, %333 : vector<32x1xf32>
    %335 = math.rsqrt %334 : vector<32x1xf32>
    %336 = vector.broadcast %335 : vector<32x1xf32> to vector<32x256xf32>
    %337 = arith.mulf %327, %336 : vector<32x256xf32>
    %338 = vector.broadcast %14 : vector<32x1xf32> to vector<32x256xf32>
    %339 = arith.mulf %337, %338 : vector<32x256xf32>
    %340 = vector.broadcast %15 : vector<32x1xf32> to vector<32x256xf32>
    %341 = arith.addf %339, %340 : vector<32x256xf32>
    %342 = arith.negf %341 : vector<32x256xf32>
    %343 = math.exp %342 : vector<32x256xf32>
    %cst_224 = arith.constant 1.000000e+00 : f32
    %344 = vector.broadcast %cst_224 : f32 to vector<32x256xf32>
    %345 = arith.addf %344, %343 : vector<32x256xf32>
    %346 = arith.divf %344, %345 : vector<32x256xf32>
    %347 = arith.mulf %341, %346 : vector<32x256xf32>
    %348 = arith.truncf %347 : vector<32x256xf32> to vector<32x256xbf16>
    %c0_225 = arith.constant 0 : index
    %c128_226 = arith.constant 128 : index
    %349 = vector.load %arg8[%c0_225, %c128_226] : memref<32x512xbf16, #tpu.memory_space<vmem>>, vector<32x256xbf16>
    tpu.vector_store %arg8[%c0_225, %c128_226], %348 {strides = array<i32>} : memref<32x512xbf16, #tpu.memory_space<vmem>>, vector<32x256xbf16>,
    %c0_227 = arith.constant 0 : index
    %c111_228 = arith.constant 111 : index
    %350 = vector.load %arg8[%c0_227, %c111_228] : memref<32x512xbf16, #tpu.memory_space<vmem>>, vector<32x256xbf16>
    %cst_229 = arith.constant 0.000000e+00 : bf16
    %351 = vector.broadcast %cst_229 : bf16 to vector<32x256xbf16>
    %352 = vector.shape_cast %7 : vector<1x256xi1> to vector<1x256xi1>
    %353 = vector.broadcast %352 : vector<1x256xi1> to vector<32x256xi1>
    %354 = arith.select %353, %350, %351 : vector<32x256xi1>, vector<32x256xbf16>
    %c0_230 = arith.constant 0 : index
    %c0_231 = arith.constant 0 : index
    %355 = vector.load %arg9[%c0_230, %c0_231] : memref<320x1024xbf16, #tpu.memory_space<vmem>>, vector<32x256xbf16>
    tpu.vector_store %arg9[%c0_230, %c0_231], %354 {strides = array<i32>} : memref<320x1024xbf16, #tpu.memory_space<vmem>>, vector<32x256xbf16>,
    %c0_232 = arith.constant 0 : index
    %c112_233 = arith.constant 112 : index
    %356 = vector.load %arg8[%c0_232, %c112_233] : memref<32x512xbf16, #tpu.memory_space<vmem>>, vector<32x256xbf16>
    %c32_234 = arith.constant 32 : index
    %c0_235 = arith.constant 0 : index
    %357 = vector.load %arg9[%c32_234, %c0_235] : memref<320x1024xbf16, #tpu.memory_space<vmem>>, vector<32x256xbf16>
    tpu.vector_store %arg9[%c32_234, %c0_235], %356 {strides = array<i32>} : memref<320x1024xbf16, #tpu.memory_space<vmem>>, vector<32x256xbf16>,
    %c0_236 = arith.constant 0 : index
    %c113_237 = arith.constant 113 : index
    %358 = vector.load %arg8[%c0_236, %c113_237] : memref<32x512xbf16, #tpu.memory_space<vmem>>, vector<32x256xbf16>
    %cst_238 = arith.constant 0.000000e+00 : bf16
    %359 = vector.broadcast %cst_238 : bf16 to vector<32x256xbf16>
    %360 = vector.shape_cast %10 : vector<1x256xi1> to vector<1x256xi1>
    %361 = vector.broadcast %360 : vector<1x256xi1> to vector<32x256xi1>
    %362 = arith.select %361, %358, %359 : vector<32x256xi1>, vector<32x256xbf16>
    %c64_239 = arith.constant 64 : index
    %c0_240 = arith.constant 0 : index
    %363 = vector.load %arg9[%c64_239, %c0_240] : memref<320x1024xbf16, #tpu.memory_space<vmem>>, vector<32x256xbf16>
    tpu.vector_store %arg9[%c64_239, %c0_240], %362 {strides = array<i32>} : memref<320x1024xbf16, #tpu.memory_space<vmem>>, vector<32x256xbf16>,
    %c0_241 = arith.constant 0 : index
    %c127_242 = arith.constant 127 : index
    %364 = vector.load %arg8[%c0_241, %c127_242] : memref<32x512xbf16, #tpu.memory_space<vmem>>, vector<32x256xbf16>
    %cst_243 = arith.constant 0.000000e+00 : bf16
    %365 = vector.broadcast %cst_243 : bf16 to vector<32x256xbf16>
    %366 = vector.shape_cast %7 : vector<1x256xi1> to vector<1x256xi1>
    %367 = vector.broadcast %366 : vector<1x256xi1> to vector<32x256xi1>
    %368 = arith.select %367, %364, %365 : vector<32x256xi1>, vector<32x256xbf16>
    %c96_244 = arith.constant 96 : index
    %c0_245 = arith.constant 0 : index
    %369 = vector.load %arg9[%c96_244, %c0_245] : memref<320x1024xbf16, #tpu.memory_space<vmem>>, vector<32x256xbf16>
    tpu.vector_store %arg9[%c96_244, %c0_245], %368 {strides = array<i32>} : memref<320x1024xbf16, #tpu.memory_space<vmem>>, vector<32x256xbf16>,
    %c0_246 = arith.constant 0 : index
    %c128_247 = arith.constant 128 : index
    %370 = vector.load %arg8[%c0_246, %c128_247] : memref<32x512xbf16, #tpu.memory_space<vmem>>, vector<32x256xbf16>
    %c128_248 = arith.constant 128 : index
    %c0_249 = arith.constant 0 : index
    %371 = vector.load %arg9[%c128_248, %c0_249] : memref<320x1024xbf16, #tpu.memory_space<vmem>>, vector<32x256xbf16>
    tpu.vector_store %arg9[%c128_248, %c0_249], %370 {strides = array<i32>} : memref<320x1024xbf16, #tpu.memory_space<vmem>>, vector<32x256xbf16>,
    %c0_250 = arith.constant 0 : index
    %c129_251 = arith.constant 129 : index
    %372 = vector.load %arg8[%c0_250, %c129_251] : memref<32x512xbf16, #tpu.memory_space<vmem>>, vector<32x256xbf16>
    %cst_252 = arith.constant 0.000000e+00 : bf16
    %373 = vector.broadcast %cst_252 : bf16 to vector<32x256xbf16>
    %374 = vector.shape_cast %10 : vector<1x256xi1> to vector<1x256xi1>
    %375 = vector.broadcast %374 : vector<1x256xi1> to vector<32x256xi1>
    %376 = arith.select %375, %372, %373 : vector<32x256xi1>, vector<32x256xbf16>
    %c160_253 = arith.constant 160 : index
    %c0_254 = arith.constant 0 : index
    %377 = vector.load %arg9[%c160_253, %c0_254] : memref<320x1024xbf16, #tpu.memory_space<vmem>>, vector<32x256xbf16>
    tpu.vector_store %arg9[%c160_253, %c0_254], %376 {strides = array<i32>} : memref<320x1024xbf16, #tpu.memory_space<vmem>>, vector<32x256xbf16>,
    %c0_255 = arith.constant 0 : index
    %c143_256 = arith.constant 143 : index
    %378 = vector.load %arg8[%c0_255, %c143_256] : memref<32x512xbf16, #tpu.memory_space<vmem>>, vector<32x256xbf16>
    %cst_257 = arith.constant 0.000000e+00 : bf16
    %379 = vector.broadcast %cst_257 : bf16 to vector<32x256xbf16>
    %380 = vector.shape_cast %7 : vector<1x256xi1> to vector<1x256xi1>
    %381 = vector.broadcast %380 : vector<1x256xi1> to vector<32x256xi1>
    %382 = arith.select %381, %378, %379 : vector<32x256xi1>, vector<32x256xbf16>
    %c192_258 = arith.constant 192 : index
    %c0_259 = arith.constant 0 : index
    %383 = vector.load %arg9[%c192_258, %c0_259] : memref<320x1024xbf16, #tpu.memory_space<vmem>>, vector<32x256xbf16>
    tpu.vector_store %arg9[%c192_258, %c0_259], %382 {strides = array<i32>} : memref<320x1024xbf16, #tpu.memory_space<vmem>>, vector<32x256xbf16>,
    %c0_260 = arith.constant 0 : index
    %c144_261 = arith.constant 144 : index
    %384 = vector.load %arg8[%c0_260, %c144_261] : memref<32x512xbf16, #tpu.memory_space<vmem>>, vector<32x256xbf16>
    %c224_262 = arith.constant 224 : index
    %c0_263 = arith.constant 0 : index
    %385 = vector.load %arg9[%c224_262, %c0_263] : memref<320x1024xbf16, #tpu.memory_space<vmem>>, vector<32x256xbf16>
    tpu.vector_store %arg9[%c224_262, %c0_263], %384 {strides = array<i32>} : memref<320x1024xbf16, #tpu.memory_space<vmem>>, vector<32x256xbf16>,
    %c0_264 = arith.constant 0 : index
    %c145_265 = arith.constant 145 : index
    %386 = vector.load %arg8[%c0_264, %c145_265] : memref<32x512xbf16, #tpu.memory_space<vmem>>, vector<32x256xbf16>
    %cst_266 = arith.constant 0.000000e+00 : bf16
    %387 = vector.broadcast %cst_266 : bf16 to vector<32x256xbf16>
    %388 = vector.shape_cast %10 : vector<1x256xi1> to vector<1x256xi1>
    %389 = vector.broadcast %388 : vector<1x256xi1> to vector<32x256xi1>
    %390 = arith.select %389, %386, %387 : vector<32x256xi1>, vector<32x256xbf16>
    %c256_267 = arith.constant 256 : index
    %c0_268 = arith.constant 0 : index
    %391 = vector.load %arg9[%c256_267, %c0_268] : memref<320x1024xbf16, #tpu.memory_space<vmem>>, vector<32x256xbf16>
    tpu.vector_store %arg9[%c256_267, %c0_268], %390 {strides = array<i32>} : memref<320x1024xbf16, #tpu.memory_space<vmem>>, vector<32x256xbf16>,
    %c0_269 = arith.constant 0 : index
    %c256_270 = arith.constant 256 : index
    %392 = vector.load %arg10[%c0_269, %c256_270] : memref<32x1024xf32, #tpu.memory_space<vmem>>, vector<32x256xf32>
    %c1_271 = arith.constant 1 : index
    %c0_272 = arith.constant 0 : index
    %c0_273 = arith.constant 0 : index
    %393 = vector.load %arg2[%c1_271, %c0_272, %c0_273] : memref<4x32x1xf32, #tpu.memory_space<vmem>>, vector<1x32x1xf32>
    %394 = vector.shape_cast %393 : vector<1x32x1xf32> to vector<32x1xf32>
    %395 = vector.broadcast %394 : vector<32x1xf32> to vector<32x256xf32>
    %396 = arith.addf %392, %395 : vector<32x256xf32>
    %cst_274 = arith.constant dense<0.000000e+00> : vector<32xf32>
    %397 = vector.multi_reduction <add>, %396, %cst_274 [1] : vector<32x256xf32> to vector<32xf32>
    %398 = vector.shape_cast %397 : vector<32xf32> to vector<32x1xf32>
    %cst_275 = arith.constant 3.906250e-03 : f32
    %399 = vector.broadcast %cst_275 : f32 to vector<32x1xf32>
    %400 = arith.mulf %398, %399 : vector<32x1xf32>
    %401 = vector.broadcast %400 : vector<32x1xf32> to vector<32x256xf32>
    %402 = arith.subf %396, %401 : vector<32x256xf32>
    %403 = arith.mulf %402, %402 : vector<32x256xf32>
    %cst_276 = arith.constant dense<0.000000e+00> : vector<32xf32>
    %404 = vector.multi_reduction <add>, %403, %cst_276 [1] : vector<32x256xf32> to vector<32xf32>
    %405 = vector.shape_cast %404 : vector<32xf32> to vector<32x1xf32>
    %cst_277 = arith.constant 3.906250e-03 : f32
    %406 = vector.broadcast %cst_277 : f32 to vector<32x1xf32>
    %407 = arith.mulf %405, %406 : vector<32x1xf32>
    %cst_278 = arith.constant 9.99999974E-6 : f32
    %408 = vector.broadcast %cst_278 : f32 to vector<32x1xf32>
    %409 = arith.addf %407, %408 : vector<32x1xf32>
    %410 = math.rsqrt %409 : vector<32x1xf32>
    %411 = vector.broadcast %410 : vector<32x1xf32> to vector<32x256xf32>
    %412 = arith.mulf %402, %411 : vector<32x256xf32>
    %413 = vector.broadcast %14 : vector<32x1xf32> to vector<32x256xf32>
    %414 = arith.mulf %412, %413 : vector<32x256xf32>
    %415 = vector.broadcast %15 : vector<32x1xf32> to vector<32x256xf32>
    %416 = arith.addf %414, %415 : vector<32x256xf32>
    %417 = arith.negf %416 : vector<32x256xf32>
    %418 = math.exp %417 : vector<32x256xf32>
    %cst_279 = arith.constant 1.000000e+00 : f32
    %419 = vector.broadcast %cst_279 : f32 to vector<32x256xf32>
    %420 = arith.addf %419, %418 : vector<32x256xf32>
    %421 = arith.divf %419, %420 : vector<32x256xf32>
    %422 = arith.mulf %416, %421 : vector<32x256xf32>
    %423 = arith.truncf %422 : vector<32x256xf32> to vector<32x256xbf16>
    %c0_280 = arith.constant 0 : index
    %c128_281 = arith.constant 128 : index
    %424 = vector.load %arg8[%c0_280, %c128_281] : memref<32x512xbf16, #tpu.memory_space<vmem>>, vector<32x256xbf16>
    tpu.vector_store %arg8[%c0_280, %c128_281], %423 {strides = array<i32>} : memref<32x512xbf16, #tpu.memory_space<vmem>>, vector<32x256xbf16>,
    %c0_282 = arith.constant 0 : index
    %c111_283 = arith.constant 111 : index
    %425 = vector.load %arg8[%c0_282, %c111_283] : memref<32x512xbf16, #tpu.memory_space<vmem>>, vector<32x256xbf16>
    %cst_284 = arith.constant 0.000000e+00 : bf16
    %426 = vector.broadcast %cst_284 : bf16 to vector<32x256xbf16>
    %427 = vector.shape_cast %7 : vector<1x256xi1> to vector<1x256xi1>
    %428 = vector.broadcast %427 : vector<1x256xi1> to vector<32x256xi1>
    %429 = arith.select %428, %425, %426 : vector<32x256xi1>, vector<32x256xbf16>
    %c0_285 = arith.constant 0 : index
    %c256_286 = arith.constant 256 : index
    %430 = vector.load %arg9[%c0_285, %c256_286] : memref<320x1024xbf16, #tpu.memory_space<vmem>>, vector<32x256xbf16>
    tpu.vector_store %arg9[%c0_285, %c256_286], %429 {strides = array<i32>} : memref<320x1024xbf16, #tpu.memory_space<vmem>>, vector<32x256xbf16>,
    %c0_287 = arith.constant 0 : index
    %c112_288 = arith.constant 112 : index
    %431 = vector.load %arg8[%c0_287, %c112_288] : memref<32x512xbf16, #tpu.memory_space<vmem>>, vector<32x256xbf16>
    %c32_289 = arith.constant 32 : index
    %c256_290 = arith.constant 256 : index
    %432 = vector.load %arg9[%c32_289, %c256_290] : memref<320x1024xbf16, #tpu.memory_space<vmem>>, vector<32x256xbf16>
    tpu.vector_store %arg9[%c32_289, %c256_290], %431 {strides = array<i32>} : memref<320x1024xbf16, #tpu.memory_space<vmem>>, vector<32x256xbf16>,
    %c0_291 = arith.constant 0 : index
    %c113_292 = arith.constant 113 : index
    %433 = vector.load %arg8[%c0_291, %c113_292] : memref<32x512xbf16, #tpu.memory_space<vmem>>, vector<32x256xbf16>
    %cst_293 = arith.constant 0.000000e+00 : bf16
    %434 = vector.broadcast %cst_293 : bf16 to vector<32x256xbf16>
    %435 = vector.shape_cast %10 : vector<1x256xi1> to vector<1x256xi1>
    %436 = vector.broadcast %435 : vector<1x256xi1> to vector<32x256xi1>
    %437 = arith.select %436, %433, %434 : vector<32x256xi1>, vector<32x256xbf16>
    %c64_294 = arith.constant 64 : index
    %c256_295 = arith.constant 256 : index
    %438 = vector.load %arg9[%c64_294, %c256_295] : memref<320x1024xbf16, #tpu.memory_space<vmem>>, vector<32x256xbf16>
    tpu.vector_store %arg9[%c64_294, %c256_295], %437 {strides = array<i32>} : memref<320x1024xbf16, #tpu.memory_space<vmem>>, vector<32x256xbf16>,
    %c0_296 = arith.constant 0 : index
    %c127_297 = arith.constant 127 : index
    %439 = vector.load %arg8[%c0_296, %c127_297] : memref<32x512xbf16, #tpu.memory_space<vmem>>, vector<32x256xbf16>
    %cst_298 = arith.constant 0.000000e+00 : bf16
    %440 = vector.broadcast %cst_298 : bf16 to vector<32x256xbf16>
    %441 = vector.shape_cast %7 : vector<1x256xi1> to vector<1x256xi1>
    %442 = vector.broadcast %441 : vector<1x256xi1> to vector<32x256xi1>
    %443 = arith.select %442, %439, %440 : vector<32x256xi1>, vector<32x256xbf16>
    %c96_299 = arith.constant 96 : index
    %c256_300 = arith.constant 256 : index
    %444 = vector.load %arg9[%c96_299, %c256_300] : memref<320x1024xbf16, #tpu.memory_space<vmem>>, vector<32x256xbf16>
    tpu.vector_store %arg9[%c96_299, %c256_300], %443 {strides = array<i32>} : memref<320x1024xbf16, #tpu.memory_space<vmem>>, vector<32x256xbf16>,
    %c0_301 = arith.constant 0 : index
    %c128_302 = arith.constant 128 : index
    %445 = vector.load %arg8[%c0_301, %c128_302] : memref<32x512xbf16, #tpu.memory_space<vmem>>, vector<32x256xbf16>
    %c128_303 = arith.constant 128 : index
    %c256_304 = arith.constant 256 : index
    %446 = vector.load %arg9[%c128_303, %c256_304] : memref<320x1024xbf16, #tpu.memory_space<vmem>>, vector<32x256xbf16>
    tpu.vector_store %arg9[%c128_303, %c256_304], %445 {strides = array<i32>} : memref<320x1024xbf16, #tpu.memory_space<vmem>>, vector<32x256xbf16>,
    %c0_305 = arith.constant 0 : index
    %c129_306 = arith.constant 129 : index
    %447 = vector.load %arg8[%c0_305, %c129_306] : memref<32x512xbf16, #tpu.memory_space<vmem>>, vector<32x256xbf16>
    %cst_307 = arith.constant 0.000000e+00 : bf16
    %448 = vector.broadcast %cst_307 : bf16 to vector<32x256xbf16>
    %449 = vector.shape_cast %10 : vector<1x256xi1> to vector<1x256xi1>
    %450 = vector.broadcast %449 : vector<1x256xi1> to vector<32x256xi1>
    %451 = arith.select %450, %447, %448 : vector<32x256xi1>, vector<32x256xbf16>
    %c160_308 = arith.constant 160 : index
    %c256_309 = arith.constant 256 : index
    %452 = vector.load %arg9[%c160_308, %c256_309] : memref<320x1024xbf16, #tpu.memory_space<vmem>>, vector<32x256xbf16>
    tpu.vector_store %arg9[%c160_308, %c256_309], %451 {strides = array<i32>} : memref<320x1024xbf16, #tpu.memory_space<vmem>>, vector<32x256xbf16>,
    %c0_310 = arith.constant 0 : index
    %c143_311 = arith.constant 143 : index
    %453 = vector.load %arg8[%c0_310, %c143_311] : memref<32x512xbf16, #tpu.memory_space<vmem>>, vector<32x256xbf16>
    %cst_312 = arith.constant 0.000000e+00 : bf16
    %454 = vector.broadcast %cst_312 : bf16 to vector<32x256xbf16>
    %455 = vector.shape_cast %7 : vector<1x256xi1> to vector<1x256xi1>
    %456 = vector.broadcast %455 : vector<1x256xi1> to vector<32x256xi1>
    %457 = arith.select %456, %453, %454 : vector<32x256xi1>, vector<32x256xbf16>
    %c192_313 = arith.constant 192 : index
    %c256_314 = arith.constant 256 : index
    %458 = vector.load %arg9[%c192_313, %c256_314] : memref<320x1024xbf16, #tpu.memory_space<vmem>>, vector<32x256xbf16>
    tpu.vector_store %arg9[%c192_313, %c256_314], %457 {strides = array<i32>} : memref<320x1024xbf16, #tpu.memory_space<vmem>>, vector<32x256xbf16>,
    %c0_315 = arith.constant 0 : index
    %c144_316 = arith.constant 144 : index
    %459 = vector.load %arg8[%c0_315, %c144_316] : memref<32x512xbf16, #tpu.memory_space<vmem>>, vector<32x256xbf16>
    %c224_317 = arith.constant 224 : index
    %c256_318 = arith.constant 256 : index
    %460 = vector.load %arg9[%c224_317, %c256_318] : memref<320x1024xbf16, #tpu.memory_space<vmem>>, vector<32x256xbf16>
    tpu.vector_store %arg9[%c224_317, %c256_318], %459 {strides = array<i32>} : memref<320x1024xbf16, #tpu.memory_space<vmem>>, vector<32x256xbf16>,
    %c0_319 = arith.constant 0 : index
    %c145_320 = arith.constant 145 : index
    %461 = vector.load %arg8[%c0_319, %c145_320] : memref<32x512xbf16, #tpu.memory_space<vmem>>, vector<32x256xbf16>
    %cst_321 = arith.constant 0.000000e+00 : bf16
    %462 = vector.broadcast %cst_321 : bf16 to vector<32x256xbf16>
    %463 = vector.shape_cast %10 : vector<1x256xi1> to vector<1x256xi1>
    %464 = vector.broadcast %463 : vector<1x256xi1> to vector<32x256xi1>
    %465 = arith.select %464, %461, %462 : vector<32x256xi1>, vector<32x256xbf16>
    %c256_322 = arith.constant 256 : index
    %c256_323 = arith.constant 256 : index
    %466 = vector.load %arg9[%c256_322, %c256_323] : memref<320x1024xbf16, #tpu.memory_space<vmem>>, vector<32x256xbf16>
    tpu.vector_store %arg9[%c256_322, %c256_323], %465 {strides = array<i32>} : memref<320x1024xbf16, #tpu.memory_space<vmem>>, vector<32x256xbf16>,
    %c0_324 = arith.constant 0 : index
    %c512_325 = arith.constant 512 : index
    %467 = vector.load %arg10[%c0_324, %c512_325] : memref<32x1024xf32, #tpu.memory_space<vmem>>, vector<32x256xf32>
    %c2_326 = arith.constant 2 : index
    %c0_327 = arith.constant 0 : index
    %c0_328 = arith.constant 0 : index
    %468 = vector.load %arg2[%c2_326, %c0_327, %c0_328] : memref<4x32x1xf32, #tpu.memory_space<vmem>>, vector<1x32x1xf32>
    %469 = vector.shape_cast %468 : vector<1x32x1xf32> to vector<32x1xf32>
    %470 = vector.broadcast %469 : vector<32x1xf32> to vector<32x256xf32>
    %471 = arith.addf %467, %470 : vector<32x256xf32>
    %cst_329 = arith.constant dense<0.000000e+00> : vector<32xf32>
    %472 = vector.multi_reduction <add>, %471, %cst_329 [1] : vector<32x256xf32> to vector<32xf32>
    %473 = vector.shape_cast %472 : vector<32xf32> to vector<32x1xf32>
    %cst_330 = arith.constant 3.906250e-03 : f32
    %474 = vector.broadcast %cst_330 : f32 to vector<32x1xf32>
    %475 = arith.mulf %473, %474 : vector<32x1xf32>
    %476 = vector.broadcast %475 : vector<32x1xf32> to vector<32x256xf32>
    %477 = arith.subf %471, %476 : vector<32x256xf32>
    %478 = arith.mulf %477, %477 : vector<32x256xf32>
    %cst_331 = arith.constant dense<0.000000e+00> : vector<32xf32>
    %479 = vector.multi_reduction <add>, %478, %cst_331 [1] : vector<32x256xf32> to vector<32xf32>
    %480 = vector.shape_cast %479 : vector<32xf32> to vector<32x1xf32>
    %cst_332 = arith.constant 3.906250e-03 : f32
    %481 = vector.broadcast %cst_332 : f32 to vector<32x1xf32>
    %482 = arith.mulf %480, %481 : vector<32x1xf32>
    %cst_333 = arith.constant 9.99999974E-6 : f32
    %483 = vector.broadcast %cst_333 : f32 to vector<32x1xf32>
    %484 = arith.addf %482, %483 : vector<32x1xf32>
    %485 = math.rsqrt %484 : vector<32x1xf32>
    %486 = vector.broadcast %485 : vector<32x1xf32> to vector<32x256xf32>
    %487 = arith.mulf %477, %486 : vector<32x256xf32>
    %488 = vector.broadcast %14 : vector<32x1xf32> to vector<32x256xf32>
    %489 = arith.mulf %487, %488 : vector<32x256xf32>
    %490 = vector.broadcast %15 : vector<32x1xf32> to vector<32x256xf32>
    %491 = arith.addf %489, %490 : vector<32x256xf32>
    %492 = arith.negf %491 : vector<32x256xf32>
    %493 = math.exp %492 : vector<32x256xf32>
    %cst_334 = arith.constant 1.000000e+00 : f32
    %494 = vector.broadcast %cst_334 : f32 to vector<32x256xf32>
    %495 = arith.addf %494, %493 : vector<32x256xf32>
    %496 = arith.divf %494, %495 : vector<32x256xf32>
    %497 = arith.mulf %491, %496 : vector<32x256xf32>
    %498 = arith.truncf %497 : vector<32x256xf32> to vector<32x256xbf16>
    %c0_335 = arith.constant 0 : index
    %c128_336 = arith.constant 128 : index
    %499 = vector.load %arg8[%c0_335, %c128_336] : memref<32x512xbf16, #tpu.memory_space<vmem>>, vector<32x256xbf16>
    tpu.vector_store %arg8[%c0_335, %c128_336], %498 {strides = array<i32>} : memref<32x512xbf16, #tpu.memory_space<vmem>>, vector<32x256xbf16>,
    %c0_337 = arith.constant 0 : index
    %c111_338 = arith.constant 111 : index
    %500 = vector.load %arg8[%c0_337, %c111_338] : memref<32x512xbf16, #tpu.memory_space<vmem>>, vector<32x256xbf16>
    %cst_339 = arith.constant 0.000000e+00 : bf16
    %501 = vector.broadcast %cst_339 : bf16 to vector<32x256xbf16>
    %502 = vector.shape_cast %7 : vector<1x256xi1> to vector<1x256xi1>
    %503 = vector.broadcast %502 : vector<1x256xi1> to vector<32x256xi1>
    %504 = arith.select %503, %500, %501 : vector<32x256xi1>, vector<32x256xbf16>
    %c0_340 = arith.constant 0 : index
    %c512_341 = arith.constant 512 : index
    %505 = vector.load %arg9[%c0_340, %c512_341] : memref<320x1024xbf16, #tpu.memory_space<vmem>>, vector<32x256xbf16>
    tpu.vector_store %arg9[%c0_340, %c512_341], %504 {strides = array<i32>} : memref<320x1024xbf16, #tpu.memory_space<vmem>>, vector<32x256xbf16>,
    %c0_342 = arith.constant 0 : index
    %c112_343 = arith.constant 112 : index
    %506 = vector.load %arg8[%c0_342, %c112_343] : memref<32x512xbf16, #tpu.memory_space<vmem>>, vector<32x256xbf16>
    %c32_344 = arith.constant 32 : index
    %c512_345 = arith.constant 512 : index
    %507 = vector.load %arg9[%c32_344, %c512_345] : memref<320x1024xbf16, #tpu.memory_space<vmem>>, vector<32x256xbf16>
    tpu.vector_store %arg9[%c32_344, %c512_345], %506 {strides = array<i32>} : memref<320x1024xbf16, #tpu.memory_space<vmem>>, vector<32x256xbf16>,
    %c0_346 = arith.constant 0 : index
    %c113_347 = arith.constant 113 : index
    %508 = vector.load %arg8[%c0_346, %c113_347] : memref<32x512xbf16, #tpu.memory_space<vmem>>, vector<32x256xbf16>
    %cst_348 = arith.constant 0.000000e+00 : bf16
    %509 = vector.broadcast %cst_348 : bf16 to vector<32x256xbf16>
    %510 = vector.shape_cast %10 : vector<1x256xi1> to vector<1x256xi1>
    %511 = vector.broadcast %510 : vector<1x256xi1> to vector<32x256xi1>
    %512 = arith.select %511, %508, %509 : vector<32x256xi1>, vector<32x256xbf16>
    %c64_349 = arith.constant 64 : index
    %c512_350 = arith.constant 512 : index
    %513 = vector.load %arg9[%c64_349, %c512_350] : memref<320x1024xbf16, #tpu.memory_space<vmem>>, vector<32x256xbf16>
    tpu.vector_store %arg9[%c64_349, %c512_350], %512 {strides = array<i32>} : memref<320x1024xbf16, #tpu.memory_space<vmem>>, vector<32x256xbf16>,
    %c0_351 = arith.constant 0 : index
    %c127_352 = arith.constant 127 : index
    %514 = vector.load %arg8[%c0_351, %c127_352] : memref<32x512xbf16, #tpu.memory_space<vmem>>, vector<32x256xbf16>
    %cst_353 = arith.constant 0.000000e+00 : bf16
    %515 = vector.broadcast %cst_353 : bf16 to vector<32x256xbf16>
    %516 = vector.shape_cast %7 : vector<1x256xi1> to vector<1x256xi1>
    %517 = vector.broadcast %516 : vector<1x256xi1> to vector<32x256xi1>
    %518 = arith.select %517, %514, %515 : vector<32x256xi1>, vector<32x256xbf16>
    %c96_354 = arith.constant 96 : index
    %c512_355 = arith.constant 512 : index
    %519 = vector.load %arg9[%c96_354, %c512_355] : memref<320x1024xbf16, #tpu.memory_space<vmem>>, vector<32x256xbf16>
    tpu.vector_store %arg9[%c96_354, %c512_355], %518 {strides = array<i32>} : memref<320x1024xbf16, #tpu.memory_space<vmem>>, vector<32x256xbf16>,
    %c0_356 = arith.constant 0 : index
    %c128_357 = arith.constant 128 : index
    %520 = vector.load %arg8[%c0_356, %c128_357] : memref<32x512xbf16, #tpu.memory_space<vmem>>, vector<32x256xbf16>
    %c128_358 = arith.constant 128 : index
    %c512_359 = arith.constant 512 : index
    %521 = vector.load %arg9[%c128_358, %c512_359] : memref<320x1024xbf16, #tpu.memory_space<vmem>>, vector<32x256xbf16>
    tpu.vector_store %arg9[%c128_358, %c512_359], %520 {strides = array<i32>} : memref<320x1024xbf16, #tpu.memory_space<vmem>>, vector<32x256xbf16>,
    %c0_360 = arith.constant 0 : index
    %c129_361 = arith.constant 129 : index
    %522 = vector.load %arg8[%c0_360, %c129_361] : memref<32x512xbf16, #tpu.memory_space<vmem>>, vector<32x256xbf16>
    %cst_362 = arith.constant 0.000000e+00 : bf16
    %523 = vector.broadcast %cst_362 : bf16 to vector<32x256xbf16>
    %524 = vector.shape_cast %10 : vector<1x256xi1> to vector<1x256xi1>
    %525 = vector.broadcast %524 : vector<1x256xi1> to vector<32x256xi1>
    %526 = arith.select %525, %522, %523 : vector<32x256xi1>, vector<32x256xbf16>
    %c160_363 = arith.constant 160 : index
    %c512_364 = arith.constant 512 : index
    %527 = vector.load %arg9[%c160_363, %c512_364] : memref<320x1024xbf16, #tpu.memory_space<vmem>>, vector<32x256xbf16>
    tpu.vector_store %arg9[%c160_363, %c512_364], %526 {strides = array<i32>} : memref<320x1024xbf16, #tpu.memory_space<vmem>>, vector<32x256xbf16>,
    %c0_365 = arith.constant 0 : index
    %c143_366 = arith.constant 143 : index
    %528 = vector.load %arg8[%c0_365, %c143_366] : memref<32x512xbf16, #tpu.memory_space<vmem>>, vector<32x256xbf16>
    %cst_367 = arith.constant 0.000000e+00 : bf16
    %529 = vector.broadcast %cst_367 : bf16 to vector<32x256xbf16>
    %530 = vector.shape_cast %7 : vector<1x256xi1> to vector<1x256xi1>
    %531 = vector.broadcast %530 : vector<1x256xi1> to vector<32x256xi1>
    %532 = arith.select %531, %528, %529 : vector<32x256xi1>, vector<32x256xbf16>
    %c192_368 = arith.constant 192 : index
    %c512_369 = arith.constant 512 : index
    %533 = vector.load %arg9[%c192_368, %c512_369] : memref<320x1024xbf16, #tpu.memory_space<vmem>>, vector<32x256xbf16>
    tpu.vector_store %arg9[%c192_368, %c512_369], %532 {strides = array<i32>} : memref<320x1024xbf16, #tpu.memory_space<vmem>>, vector<32x256xbf16>,
    %c0_370 = arith.constant 0 : index
    %c144_371 = arith.constant 144 : index
    %534 = vector.load %arg8[%c0_370, %c144_371] : memref<32x512xbf16, #tpu.memory_space<vmem>>, vector<32x256xbf16>
    %c224_372 = arith.constant 224 : index
    %c512_373 = arith.constant 512 : index
    %535 = vector.load %arg9[%c224_372, %c512_373] : memref<320x1024xbf16, #tpu.memory_space<vmem>>, vector<32x256xbf16>
    tpu.vector_store %arg9[%c224_372, %c512_373], %534 {strides = array<i32>} : memref<320x1024xbf16, #tpu.memory_space<vmem>>, vector<32x256xbf16>,
    %c0_374 = arith.constant 0 : index
    %c145_375 = arith.constant 145 : index
    %536 = vector.load %arg8[%c0_374, %c145_375] : memref<32x512xbf16, #tpu.memory_space<vmem>>, vector<32x256xbf16>
    %cst_376 = arith.constant 0.000000e+00 : bf16
    %537 = vector.broadcast %cst_376 : bf16 to vector<32x256xbf16>
    %538 = vector.shape_cast %10 : vector<1x256xi1> to vector<1x256xi1>
    %539 = vector.broadcast %538 : vector<1x256xi1> to vector<32x256xi1>
    %540 = arith.select %539, %536, %537 : vector<32x256xi1>, vector<32x256xbf16>
    %c256_377 = arith.constant 256 : index
    %c512_378 = arith.constant 512 : index
    %541 = vector.load %arg9[%c256_377, %c512_378] : memref<320x1024xbf16, #tpu.memory_space<vmem>>, vector<32x256xbf16>
    tpu.vector_store %arg9[%c256_377, %c512_378], %540 {strides = array<i32>} : memref<320x1024xbf16, #tpu.memory_space<vmem>>, vector<32x256xbf16>,
    %c0_379 = arith.constant 0 : index
    %c768_380 = arith.constant 768 : index
    %542 = vector.load %arg10[%c0_379, %c768_380] : memref<32x1024xf32, #tpu.memory_space<vmem>>, vector<32x256xf32>
    %c3_381 = arith.constant 3 : index
    %c0_382 = arith.constant 0 : index
    %c0_383 = arith.constant 0 : index
    %543 = vector.load %arg2[%c3_381, %c0_382, %c0_383] : memref<4x32x1xf32, #tpu.memory_space<vmem>>, vector<1x32x1xf32>
    %544 = vector.shape_cast %543 : vector<1x32x1xf32> to vector<32x1xf32>
    %545 = vector.broadcast %544 : vector<32x1xf32> to vector<32x256xf32>
    %546 = arith.addf %542, %545 : vector<32x256xf32>
    %cst_384 = arith.constant dense<0.000000e+00> : vector<32xf32>
    %547 = vector.multi_reduction <add>, %546, %cst_384 [1] : vector<32x256xf32> to vector<32xf32>
    %548 = vector.shape_cast %547 : vector<32xf32> to vector<32x1xf32>
    %cst_385 = arith.constant 3.906250e-03 : f32
    %549 = vector.broadcast %cst_385 : f32 to vector<32x1xf32>
    %550 = arith.mulf %548, %549 : vector<32x1xf32>
    %551 = vector.broadcast %550 : vector<32x1xf32> to vector<32x256xf32>
    %552 = arith.subf %546, %551 : vector<32x256xf32>
    %553 = arith.mulf %552, %552 : vector<32x256xf32>
    %cst_386 = arith.constant dense<0.000000e+00> : vector<32xf32>
    %554 = vector.multi_reduction <add>, %553, %cst_386 [1] : vector<32x256xf32> to vector<32xf32>
    %555 = vector.shape_cast %554 : vector<32xf32> to vector<32x1xf32>
    %cst_387 = arith.constant 3.906250e-03 : f32
    %556 = vector.broadcast %cst_387 : f32 to vector<32x1xf32>
    %557 = arith.mulf %555, %556 : vector<32x1xf32>
    %cst_388 = arith.constant 9.99999974E-6 : f32
    %558 = vector.broadcast %cst_388 : f32 to vector<32x1xf32>
    %559 = arith.addf %557, %558 : vector<32x1xf32>
    %560 = math.rsqrt %559 : vector<32x1xf32>
    %561 = vector.broadcast %560 : vector<32x1xf32> to vector<32x256xf32>
    %562 = arith.mulf %552, %561 : vector<32x256xf32>
    %563 = vector.broadcast %14 : vector<32x1xf32> to vector<32x256xf32>
    %564 = arith.mulf %562, %563 : vector<32x256xf32>
    %565 = vector.broadcast %15 : vector<32x1xf32> to vector<32x256xf32>
    %566 = arith.addf %564, %565 : vector<32x256xf32>
    %567 = arith.negf %566 : vector<32x256xf32>
    %568 = math.exp %567 : vector<32x256xf32>
    %cst_389 = arith.constant 1.000000e+00 : f32
    %569 = vector.broadcast %cst_389 : f32 to vector<32x256xf32>
    %570 = arith.addf %569, %568 : vector<32x256xf32>
    %571 = arith.divf %569, %570 : vector<32x256xf32>
    %572 = arith.mulf %566, %571 : vector<32x256xf32>
    %573 = arith.truncf %572 : vector<32x256xf32> to vector<32x256xbf16>
    %c0_390 = arith.constant 0 : index
    %c128_391 = arith.constant 128 : index
    %574 = vector.load %arg8[%c0_390, %c128_391] : memref<32x512xbf16, #tpu.memory_space<vmem>>, vector<32x256xbf16>
    tpu.vector_store %arg8[%c0_390, %c128_391], %573 {strides = array<i32>} : memref<32x512xbf16, #tpu.memory_space<vmem>>, vector<32x256xbf16>,
    %c0_392 = arith.constant 0 : index
    %c111_393 = arith.constant 111 : index
    %575 = vector.load %arg8[%c0_392, %c111_393] : memref<32x512xbf16, #tpu.memory_space<vmem>>, vector<32x256xbf16>
    %cst_394 = arith.constant 0.000000e+00 : bf16
    %576 = vector.broadcast %cst_394 : bf16 to vector<32x256xbf16>
    %577 = vector.shape_cast %7 : vector<1x256xi1> to vector<1x256xi1>
    %578 = vector.broadcast %577 : vector<1x256xi1> to vector<32x256xi1>
    %579 = arith.select %578, %575, %576 : vector<32x256xi1>, vector<32x256xbf16>
    %c0_395 = arith.constant 0 : index
    %c768_396 = arith.constant 768 : index
    %580 = vector.load %arg9[%c0_395, %c768_396] : memref<320x1024xbf16, #tpu.memory_space<vmem>>, vector<32x256xbf16>
    tpu.vector_store %arg9[%c0_395, %c768_396], %579 {strides = array<i32>} : memref<320x1024xbf16, #tpu.memory_space<vmem>>, vector<32x256xbf16>,
    %c0_397 = arith.constant 0 : index
    %c112_398 = arith.constant 112 : index
    %581 = vector.load %arg8[%c0_397, %c112_398] : memref<32x512xbf16, #tpu.memory_space<vmem>>, vector<32x256xbf16>
    %c32_399 = arith.constant 32 : index
    %c768_400 = arith.constant 768 : index
    %582 = vector.load %arg9[%c32_399, %c768_400] : memref<320x1024xbf16, #tpu.memory_space<vmem>>, vector<32x256xbf16>
    tpu.vector_store %arg9[%c32_399, %c768_400], %581 {strides = array<i32>} : memref<320x1024xbf16, #tpu.memory_space<vmem>>, vector<32x256xbf16>,
    %c0_401 = arith.constant 0 : index
    %c113_402 = arith.constant 113 : index
    %583 = vector.load %arg8[%c0_401, %c113_402] : memref<32x512xbf16, #tpu.memory_space<vmem>>, vector<32x256xbf16>
    %cst_403 = arith.constant 0.000000e+00 : bf16
    %584 = vector.broadcast %cst_403 : bf16 to vector<32x256xbf16>
    %585 = vector.shape_cast %10 : vector<1x256xi1> to vector<1x256xi1>
    %586 = vector.broadcast %585 : vector<1x256xi1> to vector<32x256xi1>
    %587 = arith.select %586, %583, %584 : vector<32x256xi1>, vector<32x256xbf16>
    %c64_404 = arith.constant 64 : index
    %c768_405 = arith.constant 768 : index
    %588 = vector.load %arg9[%c64_404, %c768_405] : memref<320x1024xbf16, #tpu.memory_space<vmem>>, vector<32x256xbf16>
    tpu.vector_store %arg9[%c64_404, %c768_405], %587 {strides = array<i32>} : memref<320x1024xbf16, #tpu.memory_space<vmem>>, vector<32x256xbf16>,
    %c0_406 = arith.constant 0 : index
    %c127_407 = arith.constant 127 : index
    %589 = vector.load %arg8[%c0_406, %c127_407] : memref<32x512xbf16, #tpu.memory_space<vmem>>, vector<32x256xbf16>
    %cst_408 = arith.constant 0.000000e+00 : bf16
    %590 = vector.broadcast %cst_408 : bf16 to vector<32x256xbf16>
    %591 = vector.shape_cast %7 : vector<1x256xi1> to vector<1x256xi1>
    %592 = vector.broadcast %591 : vector<1x256xi1> to vector<32x256xi1>
    %593 = arith.select %592, %589, %590 : vector<32x256xi1>, vector<32x256xbf16>
    %c96_409 = arith.constant 96 : index
    %c768_410 = arith.constant 768 : index
    %594 = vector.load %arg9[%c96_409, %c768_410] : memref<320x1024xbf16, #tpu.memory_space<vmem>>, vector<32x256xbf16>
    tpu.vector_store %arg9[%c96_409, %c768_410], %593 {strides = array<i32>} : memref<320x1024xbf16, #tpu.memory_space<vmem>>, vector<32x256xbf16>,
    %c0_411 = arith.constant 0 : index
    %c128_412 = arith.constant 128 : index
    %595 = vector.load %arg8[%c0_411, %c128_412] : memref<32x512xbf16, #tpu.memory_space<vmem>>, vector<32x256xbf16>
    %c128_413 = arith.constant 128 : index
    %c768_414 = arith.constant 768 : index
    %596 = vector.load %arg9[%c128_413, %c768_414] : memref<320x1024xbf16, #tpu.memory_space<vmem>>, vector<32x256xbf16>
    tpu.vector_store %arg9[%c128_413, %c768_414], %595 {strides = array<i32>} : memref<320x1024xbf16, #tpu.memory_space<vmem>>, vector<32x256xbf16>,
    %c0_415 = arith.constant 0 : index
    %c129_416 = arith.constant 129 : index
    %597 = vector.load %arg8[%c0_415, %c129_416] : memref<32x512xbf16, #tpu.memory_space<vmem>>, vector<32x256xbf16>
    %cst_417 = arith.constant 0.000000e+00 : bf16
    %598 = vector.broadcast %cst_417 : bf16 to vector<32x256xbf16>
    %599 = vector.shape_cast %10 : vector<1x256xi1> to vector<1x256xi1>
    %600 = vector.broadcast %599 : vector<1x256xi1> to vector<32x256xi1>
    %601 = arith.select %600, %597, %598 : vector<32x256xi1>, vector<32x256xbf16>
    %c160_418 = arith.constant 160 : index
    %c768_419 = arith.constant 768 : index
    %602 = vector.load %arg9[%c160_418, %c768_419] : memref<320x1024xbf16, #tpu.memory_space<vmem>>, vector<32x256xbf16>
    tpu.vector_store %arg9[%c160_418, %c768_419], %601 {strides = array<i32>} : memref<320x1024xbf16, #tpu.memory_space<vmem>>, vector<32x256xbf16>,
    %c0_420 = arith.constant 0 : index
    %c143_421 = arith.constant 143 : index
    %603 = vector.load %arg8[%c0_420, %c143_421] : memref<32x512xbf16, #tpu.memory_space<vmem>>, vector<32x256xbf16>
    %cst_422 = arith.constant 0.000000e+00 : bf16
    %604 = vector.broadcast %cst_422 : bf16 to vector<32x256xbf16>
    %605 = vector.shape_cast %7 : vector<1x256xi1> to vector<1x256xi1>
    %606 = vector.broadcast %605 : vector<1x256xi1> to vector<32x256xi1>
    %607 = arith.select %606, %603, %604 : vector<32x256xi1>, vector<32x256xbf16>
    %c192_423 = arith.constant 192 : index
    %c768_424 = arith.constant 768 : index
    %608 = vector.load %arg9[%c192_423, %c768_424] : memref<320x1024xbf16, #tpu.memory_space<vmem>>, vector<32x256xbf16>
    tpu.vector_store %arg9[%c192_423, %c768_424], %607 {strides = array<i32>} : memref<320x1024xbf16, #tpu.memory_space<vmem>>, vector<32x256xbf16>,
    %c0_425 = arith.constant 0 : index
    %c144_426 = arith.constant 144 : index
    %609 = vector.load %arg8[%c0_425, %c144_426] : memref<32x512xbf16, #tpu.memory_space<vmem>>, vector<32x256xbf16>
    %c224_427 = arith.constant 224 : index
    %c768_428 = arith.constant 768 : index
    %610 = vector.load %arg9[%c224_427, %c768_428] : memref<320x1024xbf16, #tpu.memory_space<vmem>>, vector<32x256xbf16>
    tpu.vector_store %arg9[%c224_427, %c768_428], %609 {strides = array<i32>} : memref<320x1024xbf16, #tpu.memory_space<vmem>>, vector<32x256xbf16>,
    %c0_429 = arith.constant 0 : index
    %c145_430 = arith.constant 145 : index
    %611 = vector.load %arg8[%c0_429, %c145_430] : memref<32x512xbf16, #tpu.memory_space<vmem>>, vector<32x256xbf16>
    %cst_431 = arith.constant 0.000000e+00 : bf16
    %612 = vector.broadcast %cst_431 : bf16 to vector<32x256xbf16>
    %613 = vector.shape_cast %10 : vector<1x256xi1> to vector<1x256xi1>
    %614 = vector.broadcast %613 : vector<1x256xi1> to vector<32x256xi1>
    %615 = arith.select %614, %611, %612 : vector<32x256xi1>, vector<32x256xbf16>
    %c256_432 = arith.constant 256 : index
    %c768_433 = arith.constant 768 : index
    %616 = vector.load %arg9[%c256_432, %c768_433] : memref<320x1024xbf16, #tpu.memory_space<vmem>>, vector<32x256xbf16>
    tpu.vector_store %arg9[%c256_432, %c768_433], %615 {strides = array<i32>} : memref<320x1024xbf16, #tpu.memory_space<vmem>>, vector<32x256xbf16>,
    %c0_434 = arith.constant 0 : index
    %c0_435 = arith.constant 0 : index
    %617 = vector.load %arg6[%c0_434, %c0_435] : memref<32x320xbf16, #tpu.memory_space<vmem>>, vector<32x320xbf16>
    %c0_436 = arith.constant 0 : index
    %c0_437 = arith.constant 0 : index
    %618 = vector.load %arg9[%c0_436, %c0_437] : memref<320x1024xbf16, #tpu.memory_space<vmem>>, vector<320x1024xbf16>
    %cst_438 = arith.constant dense<0.000000e+00> : vector<32x1024xf32>
    %619 = tpu.matmul %617, %618, %cst_438 {dimension_numbers = #tpu.dot_dimension_numbers<[1], [0], [0], [1], [0, 0, 1, 1], [], []>} : vector<32x320xbf16>, vector<320x1024xbf16>, vector<32x1024xf32> -> vector<32x1024xf32>
    %c0_439 = arith.constant 0 : index
    %c0_440 = arith.constant 0 : index
    %620 = vector.load %arg10[%c0_439, %c0_440] : memref<32x1024xf32, #tpu.memory_space<vmem>>, vector<32x1024xf32>
    tpu.vector_store %arg10[%c0_439, %c0_440], %619 {strides = array<i32>} : memref<32x1024xf32, #tpu.memory_space<vmem>>, vector<32x1024xf32>,
    %c0_441 = arith.constant 0 : index
    %c0_442 = arith.constant 0 : index
    %621 = vector.load %arg10[%c0_441, %c0_442] : memref<32x1024xf32, #tpu.memory_space<vmem>>, vector<32x256xf32>
    %622 = vector.broadcast %16 : vector<32x1xf32> to vector<32x256xf32>
    %623 = arith.addf %621, %622 : vector<32x256xf32>
    %c0_443 = arith.constant 0 : index
    %c0_444 = arith.constant 0 : index
    %c0_445 = arith.constant 0 : index
    %624 = vector.load %arg7[%c0_443, %c0_444, %c0_445] : memref<4x32x256xf32, #tpu.memory_space<vmem>>, vector<1x32x256xf32>
    %625 = vector.shape_cast %624 : vector<1x32x256xf32> to vector<32x256xf32>
    %626 = vector.shape_cast %623 : vector<32x256xf32> to vector<1x32x256xf32>
    tpu.vector_store %arg7[%c0_443, %c0_444, %c0_445], %626 {strides = array<i32>} : memref<4x32x256xf32, #tpu.memory_space<vmem>>, vector<1x32x256xf32>,
    %c0_446 = arith.constant 0 : index
    %c256_447 = arith.constant 256 : index
    %627 = vector.load %arg10[%c0_446, %c256_447] : memref<32x1024xf32, #tpu.memory_space<vmem>>, vector<32x256xf32>
    %628 = vector.broadcast %16 : vector<32x1xf32> to vector<32x256xf32>
    %629 = arith.addf %627, %628 : vector<32x256xf32>
    %c1_448 = arith.constant 1 : index
    %c0_449 = arith.constant 0 : index
    %c0_450 = arith.constant 0 : index
    %630 = vector.load %arg7[%c1_448, %c0_449, %c0_450] : memref<4x32x256xf32, #tpu.memory_space<vmem>>, vector<1x32x256xf32>
    %631 = vector.shape_cast %630 : vector<1x32x256xf32> to vector<32x256xf32>
    %632 = vector.shape_cast %629 : vector<32x256xf32> to vector<1x32x256xf32>
    tpu.vector_store %arg7[%c1_448, %c0_449, %c0_450], %632 {strides = array<i32>} : memref<4x32x256xf32, #tpu.memory_space<vmem>>, vector<1x32x256xf32>,
    %c0_451 = arith.constant 0 : index
    %c512_452 = arith.constant 512 : index
    %633 = vector.load %arg10[%c0_451, %c512_452] : memref<32x1024xf32, #tpu.memory_space<vmem>>, vector<32x256xf32>
    %634 = vector.broadcast %16 : vector<32x1xf32> to vector<32x256xf32>
    %635 = arith.addf %633, %634 : vector<32x256xf32>
    %c2_453 = arith.constant 2 : index
    %c0_454 = arith.constant 0 : index
    %c0_455 = arith.constant 0 : index
    %636 = vector.load %arg7[%c2_453, %c0_454, %c0_455] : memref<4x32x256xf32, #tpu.memory_space<vmem>>, vector<1x32x256xf32>
    %637 = vector.shape_cast %636 : vector<1x32x256xf32> to vector<32x256xf32>
    %638 = vector.shape_cast %635 : vector<32x256xf32> to vector<1x32x256xf32>
    tpu.vector_store %arg7[%c2_453, %c0_454, %c0_455], %638 {strides = array<i32>} : memref<4x32x256xf32, #tpu.memory_space<vmem>>, vector<1x32x256xf32>,
    %c0_456 = arith.constant 0 : index
    %c768_457 = arith.constant 768 : index
    %639 = vector.load %arg10[%c0_456, %c768_457] : memref<32x1024xf32, #tpu.memory_space<vmem>>, vector<32x256xf32>
    %640 = vector.broadcast %16 : vector<32x1xf32> to vector<32x256xf32>
    %641 = arith.addf %639, %640 : vector<32x256xf32>
    %c3_458 = arith.constant 3 : index
    %c0_459 = arith.constant 0 : index
    %c0_460 = arith.constant 0 : index
    %642 = vector.load %arg7[%c3_458, %c0_459, %c0_460] : memref<4x32x256xf32, #tpu.memory_space<vmem>>, vector<1x32x256xf32>
    %643 = vector.shape_cast %642 : vector<1x32x256xf32> to vector<32x256xf32>
    %644 = vector.shape_cast %641 : vector<32x256xf32> to vector<1x32x256xf32>
    tpu.vector_store %arg7[%c3_458, %c0_459, %c0_460], %644 {strides = array<i32>} : memref<4x32x256xf32, #tpu.memory_space<vmem>>, vector<1x32x256xf32>,
    return
  }
  func.func @transform_0(%arg0: i32) -> (i32, i32, i32) {
    %c0_i32 = arith.constant 0 : i32
    %c0_i32_0 = arith.constant 0 : i32
    %c0_i32_1 = arith.constant 0 : i32
    return %arg0, %c0_i32, %c0_i32_0 : i32, i32, i32
  }
  func.func @transform_1(%arg0: i32) -> (i32, i32, i32) {
    %c0_i32 = arith.constant 0 : i32
    %c0_i32_0 = arith.constant 0 : i32
    %c0_i32_1 = arith.constant 0 : i32
    return %arg0, %c0_i32, %c0_i32_0 : i32, i32, i32
  }
  func.func @transform_2(%arg0: i32) -> (i32, i32) {
    %c0_i32 = arith.constant 0 : i32
    %c0_i32_0 = arith.constant 0 : i32
    %c0_i32_1 = arith.constant 0 : i32
    return %c0_i32, %c0_i32_0 : i32, i32
  }
  func.func @transform_3(%arg0: i32) -> (i32, i32) {
    %c0_i32 = arith.constant 0 : i32
    %c0_i32_0 = arith.constant 0 : i32
    %c0_i32_1 = arith.constant 0 : i32
    return %c0_i32, %c0_i32_0 : i32, i32
  }
  func.func @transform_4(%arg0: i32) -> (i32, i32) {
    %c0_i32 = arith.constant 0 : i32
    %c0_i32_0 = arith.constant 0 : i32
    %c0_i32_1 = arith.constant 0 : i32
    return %c0_i32, %c0_i32_0 : i32, i32
  }
  func.func @transform_5(%arg0: i32) -> (i32, i32) {
    %c0_i32 = arith.constant 0 : i32
    %c0_i32_0 = arith.constant 0 : i32
    %c0_i32_1 = arith.constant 0 : i32
    return %c0_i32, %c0_i32_0 : i32, i32
  }
  func.func @transform_6(%arg0: i32) -> (i32, i32, i32) {
    %c0_i32 = arith.constant 0 : i32
    %c0_i32_0 = arith.constant 0 : i32
    %c0_i32_1 = arith.constant 0 : i32
    return %arg0, %c0_i32, %c0_i32_0 : i32, i32, i32
  }
}

</mosaic_0001>

<bundles_post_ra>
// kernel: tpu_custom_call.1
= control target key start
LH: loop header
LB: loop body
LE: loop exit
PB: predicated region body
PF: predicated region fallthrough
CT: control target
= control target key end

     0   :  { %11 = vsyncpa [#allocation6], 0  ;;  %s10764_s0 = inlined_call_operand.hbm [shape: f32[8,32,256], index: 0, kind: input, shape index: {}]   ;;  %s10765_s1 = inlined_call_operand.vmem [shape: f32[8,32,1], index: 1, kind: input, shape index: {}]   ;;  %s10766_s2 = inlined_call_operand.vmem [shape: f32[2,256], index: 2, kind: input, shape index: {}]   ;;  %s10767_s3 = inlined_call_operand.vmem [shape: f32[32,5], index: 3, kind: input, shape index: {}]   ;;  %s10768_s4 = inlined_call_operand.vmem [shape: bf16[32,288], index: 4, kind: input, shape index: {}]   ;;  %s10769_s5 = inlined_call_operand.vmem [shape: bf16[32,320], index: 5, kind: input, shape index: {}]   ;;  %s10770_s6 = inlined_call_operand.hbm [shape: f32[8,32,256], index: 6, kind: output, shape index: {}]  }
   0x1   :  { %13 = vsyncpa [#allocation6 + $0x1], 0 }
   0x2   :  { %14 = vsyncpa [#allocation7], 0 }
   0x3   :  { %16 = vsyncpa [#allocation7 + $0x1], 0  ;;  %s7212_s21 = smov 0   ;;  %s7214_s22 = smov 0  }
   0x4   :  { %s7216_s23 = smov 0   ;;  %s7218_s24 = smov 0  }
   0x5 LB: > { %s7233_s25 = sadd.s32 4294967295, %s7157_s24   ;;  %s6051_s26 = sadd.s32 4294967294, %s7157_s24   ;;  %s7157_s24 = sphi %s7218_s24, %s11065_s24   ;;  %s7153_s23 = sphi %s7216_s23, %s11064_s23   ;;  %s7149_s22 = sphi %s7214_s22, %s11063_s22   ;;  %s7145_s21 = sphi %s7212_s21, %s11062_s21  }
   0x6   : > { %s7237_s27 = sadd.s32 1, %s7157_s24   ;;  %s29_s28 = sadd.s32 1, %s7153_s23 }
   0x7   : > { %s26_s29 = ssub.s32 %s7157_s24, %s7237_s27  ;;  %p36_p0 = scmp.ne.s32.totalorder %s7153_s23, %s7149_s22 }
   0x8   : > { %p27_p1 = scmp.eq.s32.totalorder %s26_s29, 0  ;;  %p37_p2 = scmp.eq.s32.totalorder %s7157_s24, 0 }
   0x9   : > { %p42_p3 = scmp.ne.s32.totalorder %s7149_s22, %s7145_s21  ;;  %p43_p4 = scmp.eq.s32.totalorder %s7233_s25, 0 }
   0xa   : > { %s7249_s30 = scalar_select %p27_p1, %s7153_s23, %s29_s28  }
   0xb   : > { %p7251_p5 = por %p37_p2, %p36_p0  ;;  %p7255_p6 = por %p43_p4, %p42_p3 }
   0xc   : > { %p176_p7 = scmp.eq.s32.totalorder %s7233_s25, 1  ;;  %p182_p8 = scmp.eq.s32.totalorder %s6051_s26, 1 }
   0xd   : > { %p6303_p10 = scmp.lt.s32.totalorder %s7157_s24, 2  ;;  %s214_s11 = sand.u32 1, %s7153_s23  }
   0xe   : > { %p7262_p11 = por %p176_p7, %p36_p0  ;;  %p7266_p12 = por %p182_p8, %p42_p3 }
   0xf   : > { %s6223_s12 = sshll.u32 %s7157_s24, 12  ;;  %s6054_s13 = sshll.u32 %s214_s11, 8 }
  0x10   : > { %s10856_s9 = scalar_select %p7262_p11, 1, 0 }
  0x11   : > { %s10857_s10 = scalar_select %p7266_p12, 1, 0 }
  0x12   : > { %s7275_s16 = scalar_lea.hbm %s10764_s0, %s6223_s12  ;;  %s218_s17 = scalar_lea.vmem [#allocation5], %s6054_s13 }
  0x13   : > { %s226_s18 = sshll.u32 %s218_s17, 4  ;;  %p7279_p13 = pnand %p6303_p10, %p7251_p5  ;;  %s7283_s18 = int_to_ptr.vmem [resolvable:$true] %s226_s18 }
  0x14   : > { %s7285_s20 = scalar_lea.sflag [#allocation6], %s214_s11  ;;  %s7061_s26 = scalar_lea.hbm %s7275_s16, 4096 }
  0x15   : > { %p7062_p0 = scmp.ne.s32.totalorder %s7275_s16, %s7061_s26  ;;  %p7063_p1 = pneg %p7279_p13 }
  0x16   : > { %s7066_s7 = scalar_lea.hbm %s10764_s0, 8192  ;;  %p7067_p4 = scmp.lt.u32.totalorder %s7275_s16, %s10764_s0 }
  0x17   : > { %p7064_p2 = pnand %p7063_p1, %p7062_p0  ;;  %p7068_p5 = scmp.lt.u32.totalorder %s7066_s7, %s7061_s26 }
  0x18   : > { %p7070_p8 = scmp.lt.u32.totalorder %s7061_s26, %s7275_s16 }
  0x19   : > { %p7065_p3 = pneg %p7064_p2  ;;  %p7069_p7 = por %p7068_p5, %p7067_p4 }
  0x1b   : > { %p7071_p10 = por %p7070_p8, %p7069_p7 }
  0x1d   : > { %p7072_p9 = pnand %p7071_p10, %p7065_p3 }
  0x1f   : > { %7075 = shalt.err (!%p7072_p9)
}
  0x20   : > { %s7076_s11 = scalar_lea.vmem %s7283_s18, 4096  ;;  %s7159_s14 = smov [#allocation5]  }
  0x21   : > { %p7077_p0 = scmp.ne.s32.totalorder %s7283_s18, %s7076_s11  ;;  %s7081_s15 = sshll.u32 %s7159_s14, 4  ;;  %s7082_s15 = int_to_ptr.vmem [resolvable:$false] %s7081_s15 }
  0x22   : > { %s7083_s17 = scalar_lea.vmem %s7082_s15, 8192  ;;  %p7084_p11 = scmp.lt.s32.totalorder %s7283_s18, %s7082_s15 }
  0x23   : > { %p7079_p2 = pnand %p7077_p0, %p7063_p1  ;;  %p7085_p4 = scmp.lt.s32.totalorder %s7083_s17, %s7076_s11 }
  0x25   : > { %p7080_p12 = pneg %p7079_p2  ;;  %p7086_p5 = por %p7085_p4, %p7084_p11 }
  0x27   : > { %p7087_p7 = pnand %p7086_p5, %p7080_p12 }
  0x29   : > { %7090 = shalt.err (!%p7087_p7)
}
  0x2a   : > { %s7160_s26 = smov 256   ;;  %s7161_s28 = smov 16  }
  0x2b   : > { %6298 = dma.hbm_to_vmem [thread:$0]  (!%p7279_p13), %s7275_s16, 4096, %s7283_s18, %s7285_s20, %s7160_s26, %s7160_s26, %s7161_s28  }
  0x2c   : > { %p6058_p9 = scmp.ge.s32.totalorder %s7157_s24, 1  ;;  %p244_p1 = scmp.lt.s32.totalorder %s7157_s24, 3 }
  0x2e   : > { %p245_p3 = pnand %p6058_p9, %p244_p1 }
  0x30   : > { %248 = sbr.rel (%p245_p3) target bundleno = 1984 (0x7c0), region = 44 }
  0x37   : > { %s7316_s29 = sand.u32 1, %s7149_s22  }
  0x38   : > { %s6059_s7 = sshll.u32 %s7316_s29, 8  ;;  %s251_s12 = scalar_lea.sflag [#allocation6], %s7316_s29 }
  0x39   : > { %s7322_s13 = scalar_lea.vmem [#allocation5], %s6059_s7 }
  0x3a   : > { %7136 = dma.done.wait (%p7255_p6), %s251_s12, 4096  }
  0x3b   : > { %7138 = vsyncadd (%p7255_p6), %s251_s12, 4294963200  ;;  %v7162_v0 = vmov 1   ;;  %v514_v1 = vlaneseq  ;;  %v7329_v2 = vld [vmem:[%s7322_s13 + $0x20] sm:$0xff]  ;;  %v7332_v3 = vld [vmem:[%s7322_s13 + $0x28] sm:$0xff]  ;;  %v10772_v23 = vmov 0   ;;  %s7164_s20 = smov 111  }
  0x3c   : > { %6354 = vset.pattern.permute.xlu0 %v7162_v0  ;;  %6353 = vset.pattern.permute.xlu1 %v7162_v0  ;;  %v7335_v4 = vld [vmem:[%s7322_s13] sm:$0xff]  ;;  %v333_v5 = vadd.f32 %v7332_v3, %v7329_v2  ;;  %v7340_v6 = vld [vmem:[%s7322_s13 + $0x8] sm:$0xff]  ;;  %v7343_v7 = vld [vmem:[%s7322_s13 + $0x30] sm:$0xff]  ;;  %s7165_s15 = smov 17   ;;  %s7166_s8 = smov 113   ;;  %vm546_vm7 = vcmask 908288  }
  0x3d   : > { %v7346_v8 = vld [vmem:[%s7322_s13 + $0x38] sm:$0xff]  ;;  %v327_v9 = vadd.f32 %v7340_v6, %v7335_v4  ;;  %v7351_v10 = vld [vmem:[%s7322_s13 + $0x10] sm:$0xff]  ;;  %v7358_v13 = vshrl.u32 %v514_v1, 7  ;;  %v7363_v15 = vld [vmem:[%s7322_s13 + $0x40] sm:$0xff]  ;;  %s7167_s16 = smov 15   ;;  %s7168_s18 = smov 16  }
  0x3e   : > { %v7354_v11 = vld [vmem:[%s7322_s13 + $0x18] sm:$0xff]  ;;  %334 = vadd.xlane.f32.xlu1 %v333_v5  ;;  %v336_v12 = vadd.f32 %v7346_v8, %v7343_v7  ;;  %v7366_v16 = vld [vmem:[%s7322_s13 + $0x48] sm:$0xff]  ;;  %v305_v17 = vld [vmem:[%s10766_s2] sm:$0xf]  ;;  %s7169_s19 = smov 127   ;;  %s7170_s11 = smov 1  }
  0x3f   : > { %328 = vadd.xlane.f32.xlu0 %v327_v9  ;;  %v330_v14 = vadd.f32 %v7354_v11, %v7351_v10  ;;  %v633_v18 = vsub.s32 1, %v7358_v13  ;;  %v637_v19 = vsub.s32 3, %v7358_v13  ;;  %vm306_vm0 = vcmp.gt.f32.partialorder %v305_v17, 0.5  ;;  %v7376_v21 = vld [vmem:[%s7322_s13 + $0x50] sm:$0xff]  ;;  %v7379_v22 = vld [vmem:[%s7322_s13 + $0x58] sm:$0xff]  ;;  %v7387_v30 = vld [vmem:[%s7322_s13 + $0x60] sm:$0xff] }
  0x40   : > { %v969_v20 = vadd.f32 %v7366_v16, %v7363_v15  ;;  %v513_v24 = vsel %vm306_vm0, 1, %v10772_v23  ;;  %v516_v25 = vsub.s32 0, %v7358_v13  ;;  %v520_v26 = vsub.s32 2, %v7358_v13  ;;  %v7390_v32 = vld [vmem:[%s7322_s13 + $0x68] sm:$0xff]  ;;  %v7393_v36 = vld [vmem:[%s7322_s13 + $0x70] sm:$0xff]  ;;  %v7396_v37 = vld [vmem:[%s7322_s13 + $0x78] sm:$0xff] }
  0x41   : > { %v634_v27 = vrot.slane %v513_v24, %v633_v18  ;;  %v638_v28 = vrot.slane %v513_v24, %v637_v19  ;;  %v972_v29 = vadd.f32 %v7379_v22, %v7376_v21  ;;  %v975_v38 = vadd.f32 %v7390_v32, %v7387_v30  ;;  %v7411_v46 = vld [vmem:[%s10767_s3 + $0x8] sm:$0xff]  ;;  %v7423_v49 = vld [vmem:[%s10767_s3] sm:$0xff]  ;;  %v7431_v50 = vld [vmem:[%s10767_s3 + $0x10] sm:$0xff]  ;;  %s7171_s14 = smov 112   ;;  %s6061_s28 = sshll.u32 %s7233_s25, 2 }
  0x42   : > { %337 = vadd.xlane.f32.xlu1 %v336_v12  ;;  %v517_v33 = vrot.slane %v513_v24, %v516_v25  ;;  %v521_v34 = vrot.slane %v513_v24, %v520_v26  ;;  %v540_v39 = vsub.s32 4, %v7358_v13  ;;  %v978_v45 = vadd.f32 %v7396_v37, %v7393_v36  ;;  %v7437_v51 = vld [vmem:[%s10767_s3 + $0x18] sm:$0xff]  ;;  %v7446_v53 = vld [vmem:[%s7322_s13 + $0x80] sm:$0xff]  ;;  %v7449_v54 = vld [vmem:[%s7322_s13 + $0x88] sm:$0xff]  ;;  %p291_p6 = scmp.lt.s32.totalorder %s6061_s28, 7  ;;  %s5952_s17 = scalar_lea.sflag [#allocation7], %s7316_s29 }
  0x43   : > { %331 = vadd.xlane.f32.xlu0 %v330_v14  ;;  %v642_v31 = vrot.slane %v634_v27, %v633_v18  ;;  %v646_v35 = vrot.slane %v638_v28, %v633_v18  ;;  %v1462_v55 = vadd.f32 %v7449_v54, %v7446_v53  ;;  %v7454_v56 = vld [vmem:[%s7322_s13 + $0xc0] sm:$0xff]  ;;  %v7457_v57 = vld [vmem:[%s7322_s13 + $0xc8] sm:$0xff]  ;;  %v7478_v1 = vld [vmem:[%s7322_s13 + $0x90] sm:$0xff]  ;;  %vm663_vm10 = vcmask 924672   ;;  %p11059_p12 = scmp.ne.s32.totalorder %s10856_s9, 0 }
  0x44   : > { %v525_v40 = vrot.slane %v517_v33, %v516_v25  ;;  %v529_v41 = vrot.slane %v521_v34, %v516_v25  ;;  %v1955_v58 = vadd.f32 %v7457_v57, %v7454_v56  ;;  %v7462_v59 = vld [vmem:[%s7322_s13 + $0xa0] sm:$0xff]  ;;  %v7465_v60 = vld [vmem:[%s7322_s13 + $0xa8] sm:$0xff]  ;;  %v7481_v5 = vld [vmem:[%s7322_s13 + $0x98] sm:$0xff]  ;;  %vm715_vm13 = vcmask 1039360   ;;  %s11067_s28 = smov (!%p291_p6, %s6061_s28), 7 }
  0x45   : > { %vm647_vm1 = vcmp.eq.s32.totalorder %v642_v31, 1  ;;  %vm648_vm2 = vcmp.eq.s32.totalorder %v646_v35, 1  ;;  %v1468_v61 = vadd.f32 %v7465_v60, %v7462_v59  ;;  %v7470_v62 = vld [vmem:[%s7322_s13 + $0xe0] sm:$0xff]  ;;  %v7473_v63 = vld [vmem:[%s7322_s13 + $0xe8] sm:$0xff]  ;;  %v1465_v9 = vadd.f32 %v7481_v5, %v7478_v1  ;;  %v7486_v12 = vld [vmem:[%s7322_s13 + $0xd0] sm:$0xff]  ;;  %s6224_s12 = sshll.u32 %s11067_s28, 5 }
  0x46   : > { %970 = vadd.xlane.f32.xlu1 %v969_v20  ;;  %vm649_vm3 = vmpackc.low %vm648_vm2, %vm647_vm1  ;;  %vm530_vm4 = vcmp.eq.s32.totalorder %v525_v40, 1  ;;  %vm531_vm5 = vcmp.eq.s32.totalorder %v529_v41, 1  ;;  %v1961_v0 = vadd.f32 %v7473_v63, %v7470_v62  ;;  %v7489_v13 = vld [vmem:[%s7322_s13 + $0xd8] sm:$0xff]  ;;  %v7494_v17 = vld [vmem:[%s7322_s13 + $0xb0] sm:$0xff]  ;;  %vm744_vm0 = vcmask 7168   ;;  %s8799_s28 = scalar_lea.vmem %s10765_s1, %s6224_s12 }
  0x47   : > { %v650_v42 = vsel %vm649_vm3, 65537, %v10772_v23  ;;  %vm532_vm6 = vmpackc.low %vm531_vm5, %vm530_vm4  ;;  %v1958_v14 = vadd.f32 %v7489_v13, %v7486_v12  ;;  %v7497_v18 = vld [vmem:[%s7322_s13 + $0xb8] sm:$0xff]  ;;  %v7502_v20 = vld [vmem:[%s7322_s13 + $0xf0] sm:$0xff]  ;;  %vm692_vm3 = vcmask 121856  }
  0x48   : > { %v7402_v43 = vrot.slane %v650_v42, %v516_v25  ;;  %v7404_v44 = vrot.slane %v650_v42, %v540_v39  ;;  %v533_v47 = vsel %vm532_vm6, 65537, %v10772_v23  ;;  %v1471_v19 = vadd.f32 %v7497_v18, %v7494_v17  ;;  %v7505_v24 = vld [vmem:[%s7322_s13 + $0xf8] sm:$0xff] }
  0x49   : > { %v7415_v48 = vrot.slane %v533_v47, %v516_v25  ;;  %v7440_v52 = vrot.slane %v533_v47, %v540_v39  ;;  %v1964_v25 = vadd.f32 %v7505_v24, %v7502_v20  ;;  %vm575_vm6 = vcmask 138240  }
  0x4a   : > { %973 = vadd.xlane.f32.xlu1 %v972_v29 }
  0x4e   : > { %976 = vadd.xlane.f32.xlu1 %v975_v38 }
  0x52   : > { %979 = vadd.xlane.f32.xlu1 %v978_v45 }
  0x59   : > { %424 = vperm.xlu0 %6354, %v7411_v46  }
  0x5d   : > { %542 = vrot.lane.b32.xlu0 %v7415_v48, %s7164_s20 }
  0x5e   : > { %6370 = vset.pattern.permute.xlu0 %v10772_v23 }
  0x61   : > { %6356 = vrot.lane.b32.xlu0 %v10772_v23, %s7165_s15 }
  0x63   : > { %420 = vperm.xlu1 %6353, %v7423_v49  }
  0x67   : > { %428 = vperm.xlu1 %6353, %v7431_v50  }
  0x6b   : > { %432 = vperm.xlu1 %6353, %v7437_v51  }
  0x6f   : > { %544 = vrot.lane.b32.xlu1 %v7440_v52, %s7164_s20 }
  0x70   : > { %6371 = vset.pattern.permute.xlu1 %v10772_v23 }
  0x80   : > { %1463 = vadd.xlane.f32.xlu0 %v1462_v55 }
  0x84   : > { %1956 = vadd.xlane.f32.xlu0 %v1955_v58 }
  0x88   : > { %1469 = vadd.xlane.f32.xlu0 %v1468_v61 }
  0x8c   : > { %1962 = vadd.xlane.f32.xlu0 %v1961_v0 }
  0x93   : > { %1466 = vadd.xlane.f32.xlu1 %v1465_v9 }
  0x97   : > { %1959 = vadd.xlane.f32.xlu1 %v1958_v14 }
  0x9b   : > { %1472 = vadd.xlane.f32.xlu1 %v1471_v19 }
  0x9f   : > { %1965 = vadd.xlane.f32.xlu1 %v1964_v25 }
  0xa2   : > { %659 = vrot.lane.b32.xlu0 %v7402_v43, %s7166_s8 }
  0xa6   : > { %6366 = vrot.lane.b32.xlu0 %v10772_v23, %s7167_s16 }
  0xb0   : > { %6361 = vrot.lane.b32.xlu1 %v10772_v23, %s7168_s18 }
  0xb4   : > { %661 = vrot.lane.b32.xlu1 %v7404_v44, %s7166_s8 }
  0xcb   : > { %v335_v26 = vpop.xlane.xlu1 %334 }
  0xcc   : > { %v341_v27 = vmul.f32 0.00390625, %v335_v26  ;;  %v329_v28 = vpop.xlane.xlu0 %328 }
  0xcd   : > { %v339_v29 = vmul.f32 0.00390625, %v329_v28 }
  0xce   : > { %v7518_v31 = vsub.f32 %v7329_v2, %v341_v27  ;;  %v7521_v33 = vsub.f32 %v7332_v3, %v341_v27 }
  0xcf   : > { %v7524_v34 = vsub.f32 %v7335_v4, %v339_v29  ;;  %v7527_v35 = vsub.f32 %v7340_v6, %v339_v29  ;;  %v338_v38 = vpop.xlane.xlu1 %337 }
  0xd0   : > { %v342_v39 = vmul.f32 0.00390625, %v338_v38  ;;  %v332_v40 = vpop.xlane.xlu0 %331  ;;  %v355_v3 = vmul.f32 %v7518_v31, %v7518_v31  ;;  %v356_v4 = vmul.f32 %v7521_v33, %v7521_v33 }
  0xd1   : > { %v340_v41 = vmul.f32 0.00390625, %v332_v40  ;;  %v351_v42 = vmul.f32 %v7524_v34, %v7524_v34  ;;  %v352_v2 = vmul.f32 %v7527_v35, %v7527_v35 }
  0xd2   : > { %v7534_v45 = vsub.f32 %v7343_v7, %v342_v39  ;;  %v7541_v6 = vsub.f32 %v7346_v8, %v342_v39  ;;  %v365_v14 = vadd.f32 %v356_v4, %v355_v3 }
  0xd3   : > { %v7544_v47 = vsub.f32 %v7351_v10, %v340_v41  ;;  %v7547_v55 = vsub.f32 %v7354_v11, %v340_v41  ;;  %v971_v58 = vpop.xlane.xlu1 %970  ;;  %v359_v61 = vadd.f32 %v352_v2, %v351_v42 }
  0xd4   : > { %v981_v0 = vmul.f32 0.00390625, %v971_v58  ;;  %v357_v8 = vmul.f32 %v7534_v45, %v7534_v45  ;;  %v358_v26 = vmul.f32 %v7541_v6, %v7541_v6 }
  0xd5   : > { %360 = vadd.xlane.f32.xlu0 %v359_v61  ;;  %v353_v7 = vmul.f32 %v7544_v47, %v7544_v47  ;;  %v354_v9 = vmul.f32 %v7547_v55, %v7547_v55 }
  0xd6   : > { %v7556_v10 = vsub.f32 %v7363_v15, %v981_v0  ;;  %v7559_v11 = vsub.f32 %v7366_v16, %v981_v0  ;;  %v368_v15 = vadd.f32 %v358_v26, %v357_v8 }
  0xd7   : > { %v974_v19 = vpop.xlane.xlu1 %973  ;;  %v362_v25 = vadd.f32 %v354_v9, %v353_v7 }
  0xd8   : > { %v982_v27 = vmul.f32 0.00390625, %v974_v19  ;;  %v993_v16 = vmul.f32 %v7556_v10, %v7556_v10  ;;  %v994_v39 = vmul.f32 %v7559_v11, %v7559_v11  ;;  %v7597_v19 = vpop.permute.xlu0 %424 }
  0xd9   : > { %363 = vadd.xlane.f32.xlu1 %v362_v25  ;;  %366 = vadd.xlane.f32.xlu0 %v365_v14 }
  0xda   : > { %v7564_v28 = vsub.f32 %v7376_v21, %v982_v27  ;;  %v7567_v29 = vsub.f32 %v7379_v22, %v982_v27  ;;  %v1001_v4 = vadd.f32 %v994_v39, %v993_v16 }
  0xdb   : > { %v977_v38 = vpop.xlane.xlu1 %976 }
  0xdc   : > { %v983_v40 = vmul.f32 0.00390625, %v977_v38  ;;  %v995_v41 = vmul.f32 %v7564_v28, %v7564_v28  ;;  %v996_v42 = vmul.f32 %v7567_v29, %v7567_v29  ;;  %v7599_v25 = vpop.permute.xlu0 %542 }
  0xdd   : > { %369 = vadd.xlane.f32.xlu1 %v368_v15 }
  0xde   : > { %v7578_v21 = vsub.f32 %v7387_v30, %v983_v40  ;;  %v7581_v22 = vsub.f32 %v7390_v32, %v983_v40  ;;  %v1004_v2 = vadd.f32 %v996_v42, %v995_v41 }
  0xdf   : > { %v980_v3 = vpop.xlane.xlu1 %979 }
  0xe0   : > { %v984_v58 = vmul.f32 0.00390625, %v980_v3  ;;  %1005 = vadd.xlane.f32.xlu0 %v1004_v2  ;;  %v997_v61 = vmul.f32 %v7578_v21, %v7578_v21  ;;  %v998_v0 = vmul.f32 %v7581_v22, %v7581_v22  ;;  %v7601_v26 = vpop.permute.xlu0 %6356 }
  0xe1   : > { %1002 = vadd.xlane.f32.xlu1 %v1001_v4  ;;  %10859 = vst [vmem:[#allocation11_spill] sm:$0xff] %v7601_v26 }
  0xe2   : > { %v7588_v7 = vsub.f32 %v7393_v36, %v984_v58  ;;  %v7591_v30 = vsub.f32 %v7396_v37, %v984_v58  ;;  %v1007_v32 = vadd.f32 %v998_v0, %v997_v61 }
  0xe3   : > { %v7603_v36 = vpop.permute.xlu1 %420 }
  0xe4   : > { %1008 = vadd.xlane.f32.xlu0 %v1007_v32  ;;  %v999_v9 = vmul.f32 %v7588_v7, %v7588_v7  ;;  %v1000_v14 = vmul.f32 %v7591_v30, %v7591_v30 }
  0xe6   : > { %v1010_v8 = vadd.f32 %v1000_v14, %v999_v9 }
  0xe7   : > { %v7605_v38 = vpop.permute.xlu1 %428 }
  0xe8   : > { %1011 = vadd.xlane.f32.xlu1 %v1010_v8  ;;  %10860 = vst [vmem:[#allocation12_spill] sm:$0xff] %v7605_v38 }
  0xeb   : > { %v7617_v2 = vpop.permute.xlu1 %432 }
  0xec   : > { %10861 = vst [vmem:[#allocation13_spill] sm:$0xff] %v7617_v2 }
  0xef   : > { %v7619_v58 = vpop.permute.xlu1 %544 }
  0xf0   : > { %vm550_vm9 = vcmp.ne.s16.totalorder %v7619_v58, 0 }
 0x10d   : > { %v1464_v37 = vpop.xlane.xlu0 %1463 }
 0x10e   : > { %v1474_v27 = vmul.f32 0.00390625, %v1464_v37 }
 0x110   : > { %v7608_v15 = vsub.f32 %v7446_v53, %v1474_v27  ;;  %v7611_v16 = vsub.f32 %v7449_v54, %v1474_v27 }
 0x111   : > { %v1957_v42 = vpop.xlane.xlu0 %1956 }
 0x112   : > { %v1486_v39 = vmul.f32 %v7608_v15, %v7608_v15  ;;  %v1487_v40 = vmul.f32 %v7611_v16, %v7611_v16  ;;  %v1967_v3 = vmul.f32 0.00390625, %v1957_v42 }
 0x114   : > { %v1494_v41 = vadd.f32 %v1487_v40, %v1486_v39  ;;  %v7622_v53 = vsub.f32 %v7454_v56, %v1967_v3  ;;  %v7625_v61 = vsub.f32 %v7457_v57, %v1967_v3 }
 0x115   : > { %v1470_v4 = vpop.xlane.xlu0 %1469 }
 0x116   : > { %1495 = vadd.xlane.f32.xlu1 %v1494_v41  ;;  %v1476_v0 = vmul.f32 0.00390625, %v1470_v4  ;;  %v1979_v37 = vmul.f32 %v7622_v53, %v7622_v53  ;;  %v1980_v40 = vmul.f32 %v7625_v61, %v7625_v61 }
 0x118   : > { %v7636_v56 = vsub.f32 %v7462_v59, %v1476_v0  ;;  %v7639_v39 = vsub.f32 %v7465_v60, %v1476_v0 }
 0x119   : > { %v1963_v9 = vpop.xlane.xlu0 %1962 }
 0x11a   : > { %v1969_v57 = vmul.f32 0.00390625, %v1963_v9  ;;  %v1490_v0 = vmul.f32 %v7636_v56, %v7636_v56 }
 0x11c   : > { %v7654_v4 = vsub.f32 %v7470_v62, %v1969_v57 }
 0x11e   : > { %10862 = vst [vmem:[#allocation14_spill] sm:$0xff] %v7654_v4 }
 0x120   : > { %v1467_v54 = vpop.xlane.xlu1 %1466 }
 0x121   : > { %v1475_v32 = vmul.f32 0.00390625, %v1467_v54  ;;  %v1987_v54 = vadd.f32 %v1980_v40, %v1979_v37 }
 0x123   : > { %v7628_v14 = vsub.f32 %v7478_v1, %v1475_v32  ;;  %v7631_v8 = vsub.f32 %v7481_v5, %v1475_v32  ;;  %v1491_v32 = vmul.f32 %v7639_v39, %v7639_v39 }
 0x124   : > { %v1960_v27 = vpop.xlane.xlu1 %1959 }
 0x125   : > { %v1968_v41 = vmul.f32 0.00390625, %v1960_v27  ;;  %v1488_v1 = vmul.f32 %v7628_v14, %v7628_v14  ;;  %v1489_v5 = vmul.f32 %v7631_v8, %v7631_v8 }
 0x127   : > { %v7648_v42 = vsub.f32 %v7486_v12, %v1968_v41  ;;  %v7651_v59 = vsub.f32 %v7489_v13, %v1968_v41  ;;  %v1497_v3 = vadd.f32 %v1489_v5, %v1488_v1  ;;  %v7661_v12 = vsub.f32 %v7473_v63, %v1969_v57 }
 0x128   : > { %v1473_v60 = vpop.xlane.xlu1 %1472  ;;  %v1500_v1 = vadd.f32 %v1491_v32, %v1490_v0  ;;  %v1983_v5 = vmul.f32 %v7654_v4, %v7654_v4 }
 0x129   : > { %v1477_v9 = vmul.f32 0.00390625, %v1473_v60  ;;  %1498 = vadd.xlane.f32.xlu0 %v1497_v3  ;;  %10863 = vst [vmem:[#allocation15_spill] sm:$0xff] %v7661_v12  ;;  %v1981_v13 = vmul.f32 %v7648_v42, %v7648_v42  ;;  %v1982_v27 = vmul.f32 %v7651_v59, %v7651_v59 }
 0x12b   : > { %v7668_v62 = vsub.f32 %v7494_v17, %v1477_v9  ;;  %v7671_v37 = vsub.f32 %v7497_v18, %v1477_v9  ;;  %v1990_v40 = vadd.f32 %v1982_v27, %v1981_v13  ;;  %v1984_v17 = vmul.f32 %v7661_v12, %v7661_v12 }
 0x12c   : > { %v1966_v41 = vpop.xlane.xlu1 %1965 }
 0x12d   : > { %v1970_v63 = vmul.f32 0.00390625, %v1966_v41  ;;  %1991 = vadd.xlane.f32.xlu1 %v1990_v40  ;;  %1988 = vadd.xlane.f32.xlu0 %v1987_v54  ;;  %v1492_v57 = vmul.f32 %v7668_v62, %v7668_v62  ;;  %v1493_v3 = vmul.f32 %v7671_v37, %v7671_v37  ;;  %v1993_v9 = vadd.f32 %v1984_v17, %v1983_v5 }
 0x12f   : > { %v7682_v18 = vsub.f32 %v7502_v20, %v1970_v63  ;;  %v7685_v60 = vsub.f32 %v7505_v24, %v1970_v63  ;;  %v1503_v0 = vadd.f32 %v1493_v3, %v1492_v57 }
 0x131   : > { %10864 = vst [vmem:[#allocation16_spill] sm:$0xff] %v7682_v18  ;;  %10865 = vst [vmem:[#allocation17_spill] sm:$0xff] %v7685_v60  ;;  %1504 = vadd.xlane.f32.xlu1 %v1503_v0  ;;  %1501 = vadd.xlane.f32.xlu0 %v1500_v1  ;;  %v1985_v54 = vmul.f32 %v7682_v18, %v7682_v18  ;;  %v1986_v32 = vmul.f32 %v7685_v60, %v7685_v60 }
 0x133   : > { %v1996_v13 = vadd.f32 %v1986_v32, %v1985_v54 }
 0x135   : > { %1997 = vadd.xlane.f32.xlu1 %v1996_v13  ;;  %1994 = vadd.xlane.f32.xlu0 %v1993_v9 }
 0x146   : > { %398 = vperm.xlu1 %6371, %v7411_v46   ;;  %v7737_v46 = vpop.permute.xlu0 %659 }
 0x14a   : > { %403 = vperm.xlu1 %6371, %v7431_v50  }
 0x14b   : > { %393 = vperm.xlu0 %6370, %v7423_v49   ;;  %v7739_v49 = vpop.permute.xlu0 %6366 }
 0x14c   : > { %10867 = vst [vmem:[#allocation19_spill] sm:$0xff] %v7739_v49 }
 0x14e   : > { %408 = vperm.xlu1 %6371, %v7437_v51  }
 0x14f   : > { %711 = vrot.lane.b32.xlu0 %v7415_v48, %s7169_s19 }
 0x152   : > { %713 = vrot.lane.b32.xlu1 %v7440_v52, %s7169_s19 }
 0x153   : > { %773 = vrot.lane.b32.xlu0 %v7404_v44, %s7170_s11 }
 0x156   : > { %771 = vrot.lane.b32.xlu1 %v7402_v43, %s7170_s11 }
 0x157   : > { %823 = vrot.lane.b32.xlu0 %v7440_v52, %s7167_s16 }
 0x15a   : > { %821 = vrot.lane.b32.xlu1 %v7415_v48, %s7167_s16 }
 0x15b   : > { %6378 = vrot.lane.b32.xlu0 %v10772_v23, %s7168_s18 }
 0x15e   : > { %6373 = vrot.lane.b32.xlu1 %v10772_v23, %s7165_s15 }
 0x15f   : > { %910 = vrot.lane.b32.xlu0 %v7404_v44, %s7165_s15 }
 0x162   : > { %908 = vrot.lane.b32.xlu1 %v7402_v43, %s7165_s15  ;;  %v7733_v43 = vpop.permute.xlu1 %6361  ;;  %v361_v51 = vpop.xlane.xlu0 %360 }
 0x163   : > { %6388 = vrot.lane.b32.xlu0 %v10772_v23, %s7170_s11  ;;  %10866 = vst [vmem:[#allocation18_spill] sm:$0xff] %v7733_v43  ;;  %v371_v3 = vmul.f32 0.00390625, %v361_v51 }
 0x165   : > { %v375_v32 = vadd.f32 1e-05, %v371_v3 }
 0x166   : > { %6383 = vrot.lane.b32.xlu1 %v10772_v23, %s7167_s16  ;;  %v7735_v44 = vpop.permute.xlu1 %661  ;;  %v367_v20 = vpop.xlane.xlu0 %366 }
 0x167   : > { %6403 = vrot.lane.b32.xlu0 %v10772_v23, %s7169_s19  ;;  %v373_v54 = vmul.f32 0.00390625, %v367_v20  ;;  %vm667_vm12 = vcmp.ne.s16.totalorder %v7735_v44, 0 }
 0x169   : > { %v377_v49 = vadd.f32 1e-05, %v373_v54 }
 0x16a   : > { %6393 = vrot.lane.b32.xlu1 %v10772_v23, %s7170_s11  ;;  %v364_v48 = vpop.xlane.xlu1 %363 }
 0x16b   : > { %6413 = vrot.lane.b32.xlu0 %v10772_v23, %s7166_s8  ;;  %v372_v41 = vmul.f32 0.00390625, %v364_v48 }
 0x16d   : > { %v1006_v27 = vpop.xlane.xlu0 %1005  ;;  %v376_v63 = vadd.f32 1e-05, %v372_v41 }
 0x16e   : > { %6398 = vrot.lane.b32.xlu1 %v10772_v23, %s7169_s19  ;;  %v370_v50 = vpop.xlane.xlu1 %369  ;;  %v1014_v0 = vmul.f32 0.00390625, %v1006_v27 }
 0x16f   : > { %6423 = vrot.lane.b32.xlu0 %v10772_v23, %s7171_s14  ;;  %6700 = vrsqrt.f32 %v376_v63  ;;  %v374_v26 = vmul.f32 0.00390625, %v370_v50 }
 0x170   : > { %6702 = vrsqrt.f32 %v375_v32 }
 0x171   : > { %v1009_v1 = vpop.xlane.xlu0 %1008  ;;  %v378_v63 = vadd.f32 1e-05, %v374_v26 }
 0x172   : > { %6408 = vrot.lane.b32.xlu1 %v10772_v23, %s7166_s8  ;;  %v1003_v52 = vpop.xlane.xlu1 %1002  ;;  %v1015_v3 = vmul.f32 0.00390625, %v1009_v1 }
 0x173   : > { %v1013_v9 = vmul.f32 0.00390625, %v1003_v52 }
 0x175   : > { %v1017_v48 = vadd.f32 1e-05, %v1013_v9  ;;  %v1019_v9 = vadd.f32 1e-05, %v1015_v3 }
 0x176   : > { %6418 = vrot.lane.b32.xlu1 %v10772_v23, %s7171_s14  ;;  %v1012_v24 = vpop.xlane.xlu1 %1011  ;;  %v1018_v23 = vadd.f32 1e-05, %v1014_v0 }
 0x178   : > { %6704 = vrsqrt.f32 %v1018_v23 }
 0x179   : > { %v6701_v51 = vpop.eup %6700  ;;  %6706 = vrsqrt.f32 %v377_v49 }
 0x17a   : > { %6708 = vrsqrt.f32 %v1017_v48  ;;  %v385_v52 = vmul.f32 %v6701_v51, %v7544_v47  ;;  %v386_v20 = vmul.f32 %v6701_v51, %v7547_v55  ;;  %v6703_v50 = vpop.eup %6702 }
 0x17b   : > { %6710 = vrsqrt.f32 %v378_v63  ;;  %v383_v47 = vmul.f32 %v6703_v50, %v7524_v34  ;;  %v384_v51 = vmul.f32 %v6703_v50, %v7527_v35 }
 0x17c   : > { %6712 = vrsqrt.f32 %v1019_v9 }
 0x182   : > { %v6705_v32 = vpop.eup %6704 }
 0x183   : > { %v6707_v48 = vpop.eup %6706  ;;  %v1027_v63 = vmul.f32 %v6705_v32, %v7564_v28 }
 0x184   : > { %v6709_v1 = vpop.eup %6708 }
 0x1a3   : > { %v7741_v40 = vpop.xlane.xlu1 %1495 }
 0x1b6   : > { %v7745_v57 = vpop.xlane.xlu0 %1498 }
 0x1ba   : > { %v7743_v5 = vpop.xlane.xlu1 %1991  ;;  %v7749_v13 = vpop.xlane.xlu0 %1988 }
 0x1be   : > { %v7747_v17 = vpop.xlane.xlu1 %1504  ;;  %v7753_v41 = vpop.xlane.xlu0 %1501 }
 0x1c2   : > { %v7751_v43 = vpop.xlane.xlu1 %1997  ;;  %v7759_v0 = vpop.xlane.xlu0 %1994 }
 0x1c6   : > { %v7755_v27 = vpop.permute.xlu1 %398 }
 0x1c7   : > { %v413_v54 = vmul.f32 %v7755_v27, %v385_v52  ;;  %v414_v23 = vmul.f32 %v7755_v27, %v386_v20  ;;  %v1016_v52 = vmul.f32 0.00390625, %v1012_v24  ;;  %v1035_v35 = vmul.f32 %v1027_v63, %v7755_v27  ;;  %v6711_v24 = vpop.eup %6710 }
 0x1c8   : > { %v389_v63 = vmul.f32 %v6711_v24, %v7534_v45  ;;  %v6713_v45 = vpop.eup %6712 }
 0x1c9   : > { %v7764_v49 = vadd.f32 %v7597_v19, %v413_v54  ;;  %v7770_v55 = vadd.f32 %v7597_v19, %v414_v23  ;;  %v387_v54 = vmul.f32 %v6707_v48, %v7518_v31  ;;  %v1025_v23 = vmul.f32 %v6709_v1, %v7556_v10 }
 0x1ca   : > { %v7766_v26 = vpop.permute.xlu0 %393  ;;  %v7774_v20 = vpop.permute.xlu1 %403  ;;  %v1020_v50 = vadd.f32 1e-05, %v1016_v52  ;;  %v7793_v10 = vadd.f32 %v1035_v35, %v7597_v19 }
 0x1cb   : > { %v411_v3 = vmul.f32 %v7766_v26, %v383_v47  ;;  %v6066_v12 = vmul.f32 -1.442695, %v7764_v49  ;;  %v412_v34 = vmul.f32 %v7766_v26, %v384_v51  ;;  %v6067_v60 = vmul.f32 -1.442695, %v7770_v55 }
 0x1cc   : > { %v415_v28 = vmul.f32 %v7774_v20, %v387_v54  ;;  %v1033_v31 = vmul.f32 %v1025_v23, %v7766_v26  ;;  %v388_v47 = vmul.f32 %v6707_v48, %v7521_v33  ;;  %v1026_v48 = vmul.f32 %v6709_v1, %v7559_v11 }
 0x1cd   : > { %v7785_v18 = vadd.f32 %v7603_v36, %v411_v3  ;;  %6714 = vpow2.f32 %v6066_v12  ;;  %v7789_v9 = vadd.f32 %v7603_v36, %v412_v34  ;;  %v6082_v34 = vmul.f32 -1.442695, %v7793_v10 }
 0x1ce   : > { %6716 = vpow2.f32 %v6067_v60  ;;  %v7795_v51 = vpop.permute.xlu1 %408  ;;  %v7799_v52 = vadd.f32 %v7605_v38, %v415_v28  ;;  %v416_v3 = vmul.f32 %v7774_v20, %v388_v47  ;;  %v7804_v54 = vadd.f32 %v1033_v31, %v7603_v36 }
 0x1cf   : > { %10868 = vst [vmem:[#allocation20_spill] sm:$0xff] %v7795_v51  ;;  %6718 = vrsqrt.f32 %v1020_v50  ;;  %v6064_v12 = vmul.f32 -1.442695, %v7785_v18  ;;  %v6065_v33 = vmul.f32 -1.442695, %v7789_v9  ;;  %v417_v60 = vmul.f32 %v7795_v51, %v389_v63 }
 0x1d0   : > { %v6068_v23 = vmul.f32 -1.442695, %v7799_v52  ;;  %v7812_v35 = vadd.f32 %v7605_v38, %v416_v3  ;;  %v1034_v28 = vmul.f32 %v1026_v48, %v7766_v26  ;;  %v6080_v50 = vmul.f32 -1.442695, %v7804_v54 }
 0x1d1   : > { %6720 = vpow2.f32 %v6064_v12  ;;  %v1028_v31 = vmul.f32 %v6705_v32, %v7567_v29  ;;  %v7818_v47 = vadd.f32 %v7617_v2, %v417_v60  ;;  %v1029_v11 = vmul.f32 %v6713_v45, %v7578_v21 }
 0x1d2   : > { %6722 = vpow2.f32 %v6065_v33  ;;  %v390_v63 = vmul.f32 %v6711_v24, %v7541_v6  ;;  %v1030_v3 = vmul.f32 %v6713_v45, %v7581_v22  ;;  %v6069_v4 = vmul.f32 -1.442695, %v7812_v35 }
 0x1d3   : > { %6724 = vpow2.f32 %v6082_v34  ;;  %v1036_v12 = vmul.f32 %v1028_v31, %v7755_v27  ;;  %v1037_v29 = vmul.f32 %v1029_v11, %v7774_v20  ;;  %v7827_v32 = vadd.f32 %v1034_v28, %v7603_v36 }
 0x1d4   : > { %6726 = vpow2.f32 %v6068_v23  ;;  %v1038_v21 = vmul.f32 %v1030_v3, %v7774_v20  ;;  %v6070_v33 = vmul.f32 -1.442695, %v7818_v47  ;;  %v418_v22 = vmul.f32 %v7795_v51, %v390_v63 }
 0x1d5   : > { %6728 = vpow2.f32 %v6080_v50  ;;  %v7833_v34 = vadd.f32 %v1036_v12, %v7597_v19  ;;  %v7836_v45 = vadd.f32 %v1037_v29, %v7605_v38  ;;  %v6081_v23 = vmul.f32 -1.442695, %v7827_v32 }
 0x1d6   : > { %6730 = vpow2.f32 %v6069_v4  ;;  %v7841_v50 = vadd.f32 %v1038_v21, %v7605_v38 }
 0x1d7   : > { %v6715_v1 = vpop.eup %6714  ;;  %6732 = vpow2.f32 %v6070_v33  ;;  %v6083_v4 = vmul.f32 -1.442695, %v7833_v34 }
 0x1d8   : > { %v6717_v48 = vpop.eup %6716  ;;  %v469_v6 = vadd.f32 1.0, %v6715_v1  ;;  %v7845_v1 = vadd.f32 %v7617_v2, %v418_v22 }
 0x1d9   : > { %v6719_v60 = vpop.eup %6718  ;;  %v470_v24 = vadd.f32 1.0, %v6717_v48 }
 0x1da   : > { %v1031_v28 = vmul.f32 %v6719_v60, %v7588_v7  ;;  %v1032_v11 = vmul.f32 %v6719_v60, %v7591_v30  ;;  %6734 = vrcp.f32 %v469_v6  ;;  %v6084_v7 = vmul.f32 -1.442695, %v7836_v45 }
 0x1db   : > { %v6721_v31 = vpop.eup %6720  ;;  %6736 = vrcp.f32 %v470_v24  ;;  %v6085_v30 = vmul.f32 -1.442695, %v7841_v50  ;;  %v6071_v6 = vmul.f32 -1.442695, %v7845_v1 }
 0x1dc   : > { %v6723_v63 = vpop.eup %6722  ;;  %v467_v3 = vadd.f32 1.0, %v6721_v31  ;;  %v1039_v12 = vmul.f32 %v1031_v28, %v7795_v51  ;;  %6738 = vpow2.f32 %v6081_v23  ;;  %v1040_v21 = vmul.f32 %v1032_v11, %v7795_v51 }
 0x1dd   : > { %v6725_v48 = vpop.eup %6724  ;;  %v468_v29 = vadd.f32 1.0, %v6723_v63 }
 0x1de   : > { %v6727_v33 = vpop.eup %6726  ;;  %6740 = vrcp.f32 %v467_v3  ;;  %v1075_v22 = vadd.f32 1.0, %v6725_v48  ;;  %v7854_v24 = vadd.f32 %v1039_v12, %v7617_v2  ;;  %v7857_v31 = vadd.f32 %v1040_v21, %v7617_v2 }
 0x1df   : > { %v6729_v60 = vpop.eup %6728  ;;  %6742 = vrcp.f32 %v468_v29  ;;  %v471_v28 = vadd.f32 1.0, %v6727_v33 }
 0x1e0   : > { %6744 = vpow2.f32 %v6083_v4  ;;  %v1073_v23 = vadd.f32 1.0, %v6729_v60  ;;  %v6731_v11 = vpop.eup %6730  ;;  %v6086_v3 = vmul.f32 -1.442695, %v7854_v24  ;;  %v6087_v48 = vmul.f32 -1.442695, %v7857_v31 }
 0x1e1   : > { %6746 = vpow2.f32 %v6084_v7  ;;  %v6733_v63 = vpop.eup %6732  ;;  %v472_v2 = vadd.f32 1.0, %v6731_v11 }
 0x1e2   : > { %6748 = vpow2.f32 %v6085_v30  ;;  %v473_v4 = vadd.f32 1.0, %v6733_v63 }
 0x1e3   : > { %6750 = vpow2.f32 %v6071_v6 }
 0x1e4   : > { %6752 = vrcp.f32 %v1075_v22  ;;  %v6735_v29 = vpop.eup %6734 }
 0x1e5   : > { %6754 = vrcp.f32 %v471_v28  ;;  %v6737_v12 = vpop.eup %6736  ;;  %v493_v30 = vmul.f32 %v6735_v29, %v7764_v49 }
 0x1e6   : > { %6756 = vrcp.f32 %v1073_v23  ;;  %v6739_v33 = vpop.eup %6738  ;;  %v494_v22 = vmul.f32 %v6737_v12, %v7770_v55 }
 0x1e7   : > { %6758 = vrcp.f32 %v473_v4  ;;  %v1074_v23 = vadd.f32 1.0, %v6739_v33 }
 0x1e8   : > { %v6741_v7 = vpop.eup %6740  ;;  %6760 = vpow2.f32 %v6086_v3 }
 0x1e9   : > { %v6743_v21 = vpop.eup %6742  ;;  %v491_v60 = vmul.f32 %v6741_v7, %v7785_v18  ;;  %6762 = vpow2.f32 %v6087_v48 }
 0x1ea   : > { %v6745_v6 = vpop.eup %6744  ;;  %v492_v28 = vmul.f32 %v6743_v21, %v7789_v9  ;;  %6764 = vrcp.f32 %v472_v2 }
 0x1eb   : > { %v6747_v63 = vpop.eup %6746  ;;  %v7865_v38 = vpack.c.bf16 %v493_v30, %v491_v60  ;;  %v1076_v18 = vadd.f32 1.0, %v6745_v6  ;;  %6766 = vrcp.f32 %v1074_v23 }
 0x1ec   : > { %v6749_v51 = vpop.eup %6748  ;;  %v7867_v4 = vpack.c.bf16 %v494_v22, %v492_v28  ;;  %v1077_v9 = vadd.f32 1.0, %v6747_v63 }
 0x1ed   : > { %v6751_v3 = vpop.eup %6750  ;;  %602 = vrot.lane.b32.xlu0 %v7865_v38, %s7168_s18  ;;  %v1078_v48 = vadd.f32 1.0, %v6749_v51 }
 0x1ee   : > { %v6753_v49 = vpop.eup %6752  ;;  %v474_v29 = vadd.f32 1.0, %v6751_v3  ;;  %604 = vrot.lane.b32.xlu1 %v7867_v4, %s7168_s18 }
 0x1ef   : > { %v6755_v55 = vpop.eup %6754  ;;  %v1099_v51 = vmul.f32 %v6753_v49, %v7793_v10 }
 0x1f0   : > { %v6757_v11 = vpop.eup %6756  ;;  %6768 = vrcp.f32 %v474_v29  ;;  %v495_v7 = vmul.f32 %v6755_v55, %v7799_v52 }
 0x1f1   : > { %v6759_v12 = vpop.eup %6758  ;;  %6770 = vrcp.f32 %v1076_v18  ;;  %v1097_v60 = vmul.f32 %v6757_v11, %v7804_v54 }
 0x1f2   : > { %v6761_v33 = vpop.eup %6760  ;;  %v497_v21 = vmul.f32 %v6759_v12, %v7818_v47  ;;  %6772 = vrcp.f32 %v1077_v9 }
 0x1f3   : > { %v6763_v30 = vpop.eup %6762  ;;  %v1079_v2 = vadd.f32 1.0, %v6761_v33  ;;  %6774 = vrcp.f32 %v1078_v48  ;;  %v7881_v52 = vpack.c.bf16 %v1099_v51, %v1097_v60 }
 0x1f4   : > { %v7876_v6 = vpack.c.bf16 %v497_v21, %v495_v7  ;;  %v1080_v22 = vadd.f32 1.0, %v6763_v30  ;;  %v6765_v28 = vpop.eup %6764 }
 0x1f5   : > { %6776 = vrcp.f32 %v1079_v2  ;;  %v6767_v47 = vpop.eup %6766  ;;  %v496_v54 = vmul.f32 %v6765_v28, %v7812_v35  ;;  %v1507_v28 = vmul.f32 0.00390625, %v7745_v57 }
 0x1f6   : > { %6778 = vrcp.f32 %v1080_v22  ;;  %608 = vrot.lane.b32.xlu0 %v7876_v6, %s7168_s18  ;;  %v1098_v10 = vmul.f32 %v6767_v47, %v7827_v32 }
 0x1fa   : > { %v6769_v63 = vpop.eup %6768  ;;  %1169 = vrot.lane.b32.xlu0 %v7881_v52, %s7168_s18 }
 0x1fb   : > { %v498_v23 = vmul.f32 %v6769_v63, %v7845_v1  ;;  %v6771_v3 = vpop.eup %6770 }
 0x1fc   : > { %v6773_v18 = vpop.eup %6772  ;;  %v1100_v9 = vmul.f32 %v6771_v3, %v7833_v34  ;;  %v712_v3 = vpop.permute.xlu0 %711 }
 0x1fd   : > { %v7888_v49 = vpack.c.bf16 %v498_v23, %v496_v54  ;;  %v6775_v29 = vpop.eup %6774  ;;  %v1101_v32 = vmul.f32 %v6773_v18, %v7836_v45  ;;  %v7918_v45 = vsel %vm546_vm7, %v7599_v25, %v7619_v58  ;;  %v553_v25 = vsel %vm550_vm9, %v7867_v4, 0  ;;  %v7989_v23 = vpop.permute.xlu1 %713 }
 0x1fe   : > { %v1102_v48 = vmul.f32 %v6775_v29, %v7841_v50  ;;  %v7894_v12 = vpack.c.bf16 %v1100_v9, %v1098_v10  ;;  %vm549_vm8 = vcmp.ne.s16.totalorder %v7918_v45, 0  ;;  %v1511_v54 = vadd.f32 1e-05, %v1507_v28 }
 0x1ff   : > { %v6777_v55 = vpop.eup %6776  ;;  %610 = vrot.lane.b32.xlu1 %v7888_v49, %s7168_s18  ;;  %v552_v50 = vsel %vm549_vm8, %v7865_v38, 0  ;;  %v555_v7 = vsel %vm549_vm8, %v7876_v6, 0  ;;  %v673_v2 = vsel %vm667_vm12, %v7888_v49, 0  ;;  %v1120_v60 = vsel %vm549_vm8, %v7881_v52, 0 }
 0x200   : > { %v6779_v11 = vpop.eup %6778  ;;  %v1103_v35 = vmul.f32 %v6777_v55, %v7854_v24  ;;  %v7937_v24 = vsel %vm663_vm10, %v7737_v46, %v7735_v44  ;;  %v670_v46 = vsel %vm667_vm12, %v7867_v4, 0  ;;  %v1121_v22 = vsel %vm550_vm9, %v7894_v12, 0 }
 0x201   : > { %v1104_v1 = vmul.f32 %v6779_v11, %v7857_v31  ;;  %v556_v31 = vsel %vm550_vm9, %v7888_v49, 0  ;;  %vm10804_vm11 = vcmp.ne.s16.totalorder %v7937_v24, 0  ;;  %v1199_v57 = vsel %vm667_vm12, %v7894_v12, 0 }
 0x202   : > { %v7903_v34 = vpack.c.bf16 %v1103_v35, %v1101_v32  ;;  %v669_v21 = vsel %vm10804_vm11, %v7865_v38, 0  ;;  %v672_v30 = vsel %vm10804_vm11, %v7876_v6, 0  ;;  %v1198_v63 = vsel %vm10804_vm11, %v7881_v52, 0 }
 0x203   : > { %v7899_v33 = vpack.c.bf16 %v1104_v1, %v1102_v48  ;;  %1171 = vrot.lane.b32.xlu1 %v7894_v12, %s7168_s18  ;;  %v7994_v18 = vsel %vm715_vm13, %v712_v3, %v7989_v23  ;;  %6780 = vrsqrt.f32 %v1511_v54  ;;  %vm719_vm14 = vcmp.ne.s16.totalorder %v7989_v23, 0 }
 0x204   : > { %v1123_v47 = vsel %vm549_vm8, %v7903_v34, 0  ;;  %10869 = vst [vmem:[#allocation21_spill] sm:$0xff] %v7994_v18  ;;  %v1201_v29 = vsel %vm10804_vm11, %v7903_v34, 0  ;;  %vm10801_vm15 = vcmp.ne.s16.totalorder %v7994_v18, 0  ;;  %v2000_v55 = vmul.f32 0.00390625, %v7743_v5 }
 0x205   : > { %1177 = vrot.lane.b32.xlu0 %v7899_v33, %s7168_s18  ;;  %v1124_v51 = vsel %vm550_vm9, %v7899_v33, 0  ;;  %v1202_v10 = vsel %vm667_vm12, %v7899_v33, 0  ;;  %v722_v9 = vsel %vm719_vm14, %v7867_v4, 0  ;;  %v1506_v11 = vmul.f32 0.00390625, %v7741_v40 }
 0x206   : > { %v721_v48 = vsel %vm10801_vm15, %v7865_v38, 0  ;;  %v1999_v35 = vmul.f32 0.00390625, %v7749_v13  ;;  %v2004_v1 = vadd.f32 1e-05, %v2000_v55  ;;  %v1241_v5 = vsel %vm719_vm14, %v7894_v12, 0 }
 0x207   : > { %1175 = vrot.lane.b32.xlu1 %v7903_v34, %s7168_s18  ;;  %v1510_v32 = vadd.f32 1e-05, %v1506_v11  ;;  %v1240_v40 = vsel %vm10801_vm15, %v7881_v52, 0  ;;  %v1508_v13 = vmul.f32 0.00390625, %v7753_v41 }
 0x208   : > { %6782 = vrsqrt.f32 %v2004_v1 }
 0x209   : > { %879 = vrot.lane.b32.xlu0 %v7867_v4, %s7171_s14  ;;  %6784 = vrsqrt.f32 %v1510_v32 }
 0x20b   : > { %877 = vrot.lane.b32.xlu1 %v7865_v38, %s7171_s14 }
 0x20d   : > { %1381 = vrot.lane.b32.xlu0 %v7894_v12, %s7171_s14 }
 0x20f   : > { %885 = vrot.lane.b32.xlu1 %v7888_v49, %s7171_s14 }
 0x211   : > { %1379 = vrot.lane.b32.xlu0 %v7881_v52, %s7171_s14 }
 0x213   : > { %565 = vrot.lane.b32.xlu1 %v552_v50, %s7165_s15  ;;  %v8020_v50 = vpop.permute.xlu1 %771 }
 0x214   : > { %10870 = vst [vmem:[#allocation22_spill] sm:$0xff] %v8020_v50  ;;  %vm10803_vm1 = vcmp.ne.s16.totalorder %v8020_v50, 0 }
 0x215   : > { %567 = vrot.lane.b32.xlu0 %v553_v25, %s7165_s15  ;;  %v774_v25 = vpop.permute.xlu0 %773 }
 0x217   : > { %573 = vrot.lane.b32.xlu1 %v556_v31, %s7165_s15  ;;  %v6781_v31 = vpop.eup %6780 }
 0x219   : > { %571 = vrot.lane.b32.xlu0 %v555_v7, %s7165_s15  ;;  %v2003_v7 = vadd.f32 1e-05, %v1999_v35  ;;  %v8039_v41 = vpop.permute.xlu0 %823 }
 0x21b   : > { %682 = vrot.lane.b32.xlu1 %v669_v21, %s7167_s16  ;;  %v724_v21 = vsel %vm10801_vm15, %v7876_v6, 0  ;;  %6786 = vrsqrt.f32 %v2003_v7 }
 0x21d   : > { %684 = vrot.lane.b32.xlu0 %v670_v46, %s7167_s16  ;;  %v1509_v46 = vmul.f32 0.00390625, %v7747_v17  ;;  %v8045_v17 = vsel %vm744_vm0, %v8020_v50, %v774_v25 }
 0x21e   : > { %10872 = vst [vmem:[#allocation24_spill] sm:$0xff] %v8045_v17  ;;  %vm10802_vm2 = vcmp.ne.s16.totalorder %v8045_v17, 0 }
 0x21f   : > { %688 = vrot.lane.b32.xlu1 %v672_v30, %s7167_s16  ;;  %v1520_v30 = vmul.f32 %v6781_v31, %v7628_v14  ;;  %v1243_v14 = vsel %vm10801_vm15, %v7903_v34, 0  ;;  %v1513_v28 = vadd.f32 1e-05, %v1509_v46  ;;  %v783_v35 = vsel %vm10802_vm2, %v7888_v49, 0 }
 0x220   : > { %v1293_v46 = vsel %vm10802_vm2, %v7899_v33, 0 }
 0x221   : > { %690 = vrot.lane.b32.xlu0 %v673_v2, %s7167_s16  ;;  %v725_v2 = vsel %vm719_vm14, %v7888_v49, 0 }
 0x223   : > { %1133 = vrot.lane.b32.xlu1 %v1120_v60, %s7165_s15  ;;  %v8037_v60 = vpop.permute.xlu1 %821 }
 0x224   : > { %10871 = vst [vmem:[#allocation23_spill] sm:$0xff] %v8037_v60  ;;  %vm10787_vm4 = vcmp.ne.s16.totalorder %v8037_v60, 0 }
 0x225   : > { %1135 = vrot.lane.b32.xlu0 %v1121_v22, %s7165_s15  ;;  %v1512_v22 = vadd.f32 1e-05, %v1508_v13 }
 0x227   : > { %1141 = vrot.lane.b32.xlu1 %v1124_v51, %s7165_s15  ;;  %v2001_v51 = vmul.f32 0.00390625, %v7759_v0  ;;  %v1244_v0 = vsel %vm719_vm14, %v7899_v33, 0  ;;  %6788 = vrsqrt.f32 %v1512_v22  ;;  %v8062_v3 = vpop.permute.xlu1 %6373 }
 0x228   : > { %6790 = vrsqrt.f32 %v1513_v28 }
 0x229   : > { %1139 = vrot.lane.b32.xlu0 %v1123_v47, %s7165_s15  ;;  %v2002_v47 = vmul.f32 0.00390625, %v7751_v43  ;;  %v2005_v54 = vadd.f32 1e-05, %v2001_v51  ;;  %v779_v43 = vsel %vm10803_vm1, %v7865_v38, 0 }
 0x22b   : > { %1211 = vrot.lane.b32.xlu1 %v1198_v63, %s7167_s16  ;;  %v1528_v63 = vmul.f32 %v1520_v30, %v7755_v27  ;;  %6792 = vrsqrt.f32 %v2005_v54  ;;  %v8087_v7 = vpop.permute.xlu1 %908 }
 0x22c   : > { %10873 = vst [vmem:[#allocation25_spill] sm:$0xff] %v8087_v7 }
 0x22d   : > { %1213 = vrot.lane.b32.xlu0 %v1199_v57, %s7167_s16  ;;  %v2006_v57 = vadd.f32 1e-05, %v2002_v47  ;;  %v8068_v55 = vadd.f32 %v1528_v63, %v7597_v19 }
 0x22f   : > { %1219 = vrot.lane.b32.xlu1 %v1202_v10, %s7167_s16  ;;  %v8064_v10 = vpop.permute.xlu0 %6378  ;;  %6794 = vrsqrt.f32 %v2006_v57  ;;  %v6098_v25 = vmul.f32 -1.442695, %v8068_v55 }
 0x231   : > { %1217 = vrot.lane.b32.xlu0 %v1201_v29, %s7167_s16  ;;  %v6783_v29 = vpop.eup %6782  ;;  %6796 = vpow2.f32 %v6098_v25 }
 0x232   : > { %v6785_v11 = vpop.eup %6784 }
 0x233   : > { %736 = vrot.lane.b32.xlu1 %v722_v9, %s7170_s11  ;;  %v780_v9 = vsel %vm10802_vm2, %v7867_v4, 0  ;;  %v6787_v1 = vpop.eup %6786  ;;  %v1518_v32 = vmul.f32 %v6785_v11, %v7608_v15  ;;  %v8089_v13 = vpop.permute.xlu0 %910 }
 0x234   : > { %v2011_v15 = vmul.f32 %v6787_v1, %v7622_v53 }
 0x235   : > { %734 = vrot.lane.b32.xlu0 %v721_v48, %s7170_s11  ;;  %v1521_v48 = vmul.f32 %v6781_v31, %v7631_v8  ;;  %v1290_v8 = vsel %vm10802_vm2, %v7894_v12, 0 }
 0x236   : > { %v2019_v63 = vmul.f32 %v2011_v15, %v7766_v26 }
 0x237   : > { %1255 = vrot.lane.b32.xlu1 %v1241_v5, %s7170_s11  ;;  %v2013_v5 = vmul.f32 %v6783_v29, %v7648_v42  ;;  %v1529_v31 = vmul.f32 %v1521_v48, %v7755_v27  ;;  %v1519_v42 = vmul.f32 %v6785_v11, %v7611_v16  ;;  %v1289_v16 = vsel %vm10803_vm1, %v7881_v52, 0  ;;  %v8112_v28 = vpop.permute.xlu0 %6388 }
 0x238   : > { %v782_v11 = vsel %vm10803_vm1, %v7876_v6, 0 }
 0x239   : > { %1253 = vrot.lane.b32.xlu0 %v1240_v40, %s7170_s11  ;;  %v2014_v40 = vmul.f32 %v6783_v29, %v7651_v59  ;;  %v2012_v59 = vmul.f32 %v6787_v1, %v7625_v61  ;;  %v2021_v30 = vmul.f32 %v2013_v5, %v7755_v27  ;;  %v1527_v22 = vmul.f32 %v1519_v42, %v7766_v26  ;;  %v8110_v61 = vpop.permute.xlu1 %6383  ;;  %v10876_v42 = vld [vmem:[#allocation16_spill] sm:$0xff] }
 0x23a   : > { %v8106_v51 = vadd.f32 %v1529_v31, %v7597_v19  ;;  %v8150_v5 = vadd.f32 %v2019_v63, %v7603_v36 }
 0x23b   : > { %740 = vrot.lane.b32.xlu1 %v724_v21, %s7170_s11  ;;  %v1526_v21 = vmul.f32 %v1518_v32, %v7766_v26  ;;  %v2020_v57 = vmul.f32 %v2012_v59, %v7766_v26  ;;  %v10875_v32 = vld [vmem:[#allocation14_spill] sm:$0xff]  ;;  %v8164_v31 = vpop.permute.xlu0 %6403 }
 0x23c   : > { %v6099_v26 = vmul.f32 -1.442695, %v8106_v51  ;;  %v6112_v63 = vmul.f32 -1.442695, %v8150_v5 }
 0x23d   : > { %742 = vrot.lane.b32.xlu0 %v725_v2, %s7170_s11  ;;  %v6789_v2 = vpop.eup %6788  ;;  %v8115_v47 = vadd.f32 %v1526_v21, %v7603_v36 }
 0x23e   : > { %v6791_v53 = vpop.eup %6790  ;;  %v1522_v54 = vmul.f32 %v6789_v2, %v7636_v56  ;;  %6798 = vpow2.f32 %v6099_v26 }
 0x23f   : > { %1259 = vrot.lane.b32.xlu1 %v1243_v14, %s7170_s11  ;;  %v2022_v14 = vmul.f32 %v2014_v40, %v7755_v27  ;;  %v1292_v27 = vsel %vm10803_vm1, %v7903_v34, 0  ;;  %v6793_v29 = vpop.eup %6792  ;;  %v1525_v48 = vmul.f32 %v6791_v53, %v7671_v37  ;;  %v6096_v1 = vmul.f32 -1.442695, %v8115_v47 }
 0x240   : > { %v6795_v56 = vpop.eup %6794  ;;  %v829_v37 = vsel %vm10787_vm4, %v7865_v38, 0  ;;  %v8159_v40 = vadd.f32 %v2020_v57, %v7603_v36 }
 0x241   : > { %1261 = vrot.lane.b32.xlu0 %v1244_v0, %s7170_s11  ;;  %v8121_v0 = vsel %vm692_vm3, %v8037_v60, %v8039_v41  ;;  %v8135_v41 = vadd.f32 %v1527_v22, %v7603_v36  ;;  %v2017_v15 = vmul.f32 %v6795_v56, %v10876_v42  ;;  %v10879_v36 = vld [vmem:[#allocation15_spill] sm:$0xff]  ;;  %6800 = vpow2.f32 %v6096_v1  ;;  %v8202_v42 = vpop.permute.xlu0 %6413 }
 0x242   : > { %10874 = vst [vmem:[#allocation26_spill] sm:$0xff] %v8121_v0  ;;  %vm10789_vm5 = vcmp.ne.s16.totalorder %v8121_v0, 0 }
 0x243   : > { %791 = vrot.lane.b32.xlu1 %v779_v43, %s7169_s19  ;;  %v8128_v43 = vadd.f32 %v2021_v30, %v7597_v19  ;;  %v6097_v21 = vmul.f32 -1.442695, %v8135_v41  ;;  %v830_v30 = vsel %vm10789_vm5, %v7867_v4, 0  ;;  %v1332_v1 = vsel %vm10789_vm5, %v7894_v12, 0 }
 0x245   : > { %793 = vrot.lane.b32.xlu0 %v780_v9, %s7169_s19  ;;  %v1524_v9 = vmul.f32 %v6791_v53, %v7668_v62  ;;  %v8146_v62 = vadd.f32 %v2022_v14, %v7597_v19  ;;  %v6114_v25 = vmul.f32 -1.442695, %v8128_v43  ;;  %v8162_v19 = vpop.permute.xlu1 %6393  ;;  %v6797_v14 = vpop.eup %6796  ;;  %6802 = vpow2.f32 %v6097_v21 }
 0x247   : > { %799 = vrot.lane.b32.xlu1 %v783_v35, %s7169_s19  ;;  %v1523_v35 = vmul.f32 %v6789_v2, %v7639_v39  ;;  %v2015_v39 = vmul.f32 %v6793_v29, %v10875_v32  ;;  %v10878_v2 = vld [vmem:[#allocation17_spill] sm:$0xff]  ;;  %v6115_v57 = vmul.f32 -1.442695, %v8146_v62  ;;  %6804 = vpow2.f32 %v6114_v25 }
 0x248   : > { %v2018_v22 = vmul.f32 %v6795_v56, %v10878_v2  ;;  %v6113_v56 = vmul.f32 -1.442695, %v8159_v40  ;;  %6806 = vpow2.f32 %v6112_v63  ;;  %v1335_v25 = vsel %vm10789_vm5, %v7899_v33, 0  ;;  %v6799_v63 = vpop.eup %6798 }
 0x249   : > { %1303 = vrot.lane.b32.xlu0 %v1290_v8, %s7169_s19  ;;  %v1530_v8 = vmul.f32 %v1522_v54, %v7774_v20  ;;  %v1531_v53 = vmul.f32 %v1523_v35, %v7774_v20  ;;  %v833_v54 = vsel %vm10789_vm5, %v7888_v49, 0  ;;  %v10881_v35 = vld [vmem:[#allocation13_spill] sm:$0xff]  ;;  %6808 = vpow2.f32 %v6115_v57  ;;  %v8239_v57 = vpop.permute.xlu0 %6423 }
 0x24a   : > { %6810 = vpow2.f32 %v6113_v56  ;;  %10882 = vst [vmem:[#allocation14_spill] sm:$0xff] %v8239_v57  ;;  %vm10800_vm5 = vcmp.ne.s16.totalorder %v8087_v7, 0 }
 0x24b   : > { %1309 = vrot.lane.b32.xlu1 %v1293_v46, %s7169_s19  ;;  %v10877_v46 = vld [vmem:[#allocation20_spill] sm:$0xff]  ;;  %v916_v60 = vsel %vm10800_vm5, %v7865_v38, 0 }
 0x24c   : > { %v1532_v59 = vmul.f32 %v1524_v9, %v10877_v46  ;;  %v10880_v9 = vld [vmem:[#allocation12_spill] sm:$0xff]  ;;  %v2026_v21 = vmul.f32 %v2018_v22, %v10877_v46 }
 0x24d   : > { %1301 = vrot.lane.b32.xlu0 %v1289_v16, %s7169_s19  ;;  %v2016_v16 = vmul.f32 %v6793_v29, %v10879_v36  ;;  %v2023_v29 = vmul.f32 %v2015_v39, %v7774_v20  ;;  %v8196_v32 = vadd.f32 %v1531_v53, %v10880_v9 }
 0x24e   : > { %v8189_v26 = vadd.f32 %v1532_v59, %v10881_v35  ;;  %v8230_v53 = vadd.f32 %v2026_v21, %v10881_v35 }
 0x24f   : > { %1307 = vrot.lane.b32.xlu1 %v1292_v27, %s7169_s19  ;;  %v1533_v27 = vmul.f32 %v1525_v48, %v10877_v46  ;;  %v2025_v48 = vmul.f32 %v2017_v15, %v10877_v46  ;;  %v2024_v39 = vmul.f32 %v2016_v16, %v7774_v20  ;;  %v8213_v20 = vadd.f32 %v2023_v29, %v10880_v9  ;;  %v6801_v29 = vpop.eup %6800 }
 0x250   : > { %v1331_v46 = vsel %vm10787_vm4, %v7881_v52, 0  ;;  %v6101_v22 = vmul.f32 -1.442695, %v8196_v32 }
 0x251   : > { %797 = vrot.lane.b32.xlu0 %v782_v11, %s7169_s19  ;;  %v8183_v11 = vadd.f32 %v1530_v8, %v10880_v9  ;;  %v8200_v8 = vpop.permute.xlu1 %6398  ;;  %v8205_v15 = vadd.f32 %v1533_v27, %v10881_v35  ;;  %v8218_v2 = vadd.f32 %v2025_v48, %v10881_v35  ;;  %v8225_v36 = vadd.f32 %v2024_v39, %v10880_v9  ;;  %v8244_v9 = vld [vmem:[%s10768_s4 + $0x4] ss:$12 sps:$4 sm:$0xff]  }
 0x252   : > { %v6116_v27 = vmul.f32 -1.442695, %v8213_v20  ;;  %10883 = vst [vmem:[#allocation16_spill] sm:$0xff] %v8244_v9  ;;  %v832_v35 = vsel %vm10787_vm4, %v7876_v6, 0  ;;  %2652 = vmatprep.mubr.bf16.mxu0 %v8244_v9  ;;  %v8257_v39 = vsel %vm575_vm6, %v8087_v7, %v8089_v13  ;;  %2758 = vmatprep.mubr.bf16.mxu1 %v8244_v9 }
 0x253   : > { %841 = vrot.lane.b32.xlu1 %v829_v37, %s7166_s8  ;;  %v1568_v37 = vadd.f32 1.0, %v6797_v14  ;;  %v6100_v59 = vmul.f32 -1.442695, %v8183_v11  ;;  %v6103_v16 = vmul.f32 -1.442695, %v8205_v15  ;;  %v1334_v14 = vsel %vm10787_vm4, %v7903_v34, 0 }
 0x254   : > { %v6118_v56 = vmul.f32 -1.442695, %v8218_v2  ;;  %v6117_v48 = vmul.f32 -1.442695, %v8225_v36  ;;  %10884 = vst [vmem:[#allocation20_spill] sm:$0xff] %v8257_v39  ;;  %vm914_vm4 = vcmp.ne.s16.totalorder %v8257_v39, 0 }
 0x255   : > { %843 = vrot.lane.b32.xlu0 %v830_v30, %s7166_s8  ;;  %v6102_v30 = vmul.f32 -1.442695, %v8189_v26  ;;  %6812 = vrcp.f32 %v1568_v37  ;;  %v6119_v37 = vmul.f32 -1.442695, %v8230_v53 }
 0x256   : > { %6814 = vpow2.f32 %v6100_v59 }
 0x257   : > { %849 = vrot.lane.b32.xlu1 %v833_v54, %s7166_s8  ;;  %v8237_v54 = vpop.permute.xlu1 %6408  ;;  %6816 = vpow2.f32 %v6102_v30  ;;  %v1569_v30 = vadd.f32 1.0, %v6799_v63 }
 0x258   : > { %6818 = vpow2.f32 %v6101_v22 }
 0x259   : > { %1345 = vrot.lane.b32.xlu0 %v1332_v1, %s7166_s8  ;;  %v6803_v1 = vpop.eup %6802  ;;  %6820 = vpow2.f32 %v6103_v16 }
 0x25a   : > { %v6805_v21 = vpop.eup %6804  ;;  %6822 = vpow2.f32 %v6116_v27  ;;  %v1567_v22 = vadd.f32 1.0, %v6803_v1 }
 0x25b   : > { %1351 = vrot.lane.b32.xlu1 %v1335_v25, %s7166_s8  ;;  %v1566_v25 = vadd.f32 1.0, %v6801_v29  ;;  %v6807_v59 = vpop.eup %6806  ;;  %6824 = vpow2.f32 %v6118_v56  ;;  %v8265_v13 = vpop.permute.xlu1 %6418  ;;  %v2061_v27 = vadd.f32 1.0, %v6805_v21  ;;  %v10886_v21 = vmov 0  }
 0x25c   : > { %6826 = vpow2.f32 %v6117_v48  ;;  %10885 = vst [vmem:[#allocation17_spill] sm:$0xff] %v8265_v13  ;;  %v2059_v29 = vadd.f32 1.0, %v6807_v59 }
 0x25d   : > { %1343 = vrot.lane.b32.xlu0 %v1331_v46, %s7166_s8  ;;  %v6809_v46 = vpop.eup %6808  ;;  %6828 = vpow2.f32 %v6119_v37 }
 0x25e   : > { %6830 = vrcp.f32 %v1566_v25  ;;  %v2062_v56 = vadd.f32 1.0, %v6809_v46 }
 0x25f   : > { %1349 = vrot.lane.b32.xlu1 %v1334_v14, %s7166_s8  ;;  %v8267_v16 = vpop.permute.xlu0 %602  ;;  %v6811_v14 = vpop.eup %6810  ;;  %6832 = vrcp.f32 %v1569_v30 }
 0x260   : > { %v6813_v63 = vpop.eup %6812  ;;  %6834 = vrcp.f32 %v1567_v22  ;;  %v2060_v1 = vadd.f32 1.0, %v6811_v14  ;;  %v8278_v25 = vpop.permute.xlu1 %604  ;;  %v1410_v22 = vsel %vm914_vm4, %v7894_v12, 0 }
 0x261   : > { %847 = vrot.lane.b32.xlu0 %v832_v35, %s7166_s8  ;;  %v917_v35 = vsel %vm914_vm4, %v7867_v4, 0  ;;  %v6815_v48 = vpop.eup %6814  ;;  %6836 = vrcp.f32 %v2061_v27 }
 0x262   : > { %v6817_v9 = vpop.eup %6816  ;;  %6838 = vrcp.f32 %v2059_v29  ;;  %v1570_v46 = vadd.f32 1.0, %v6815_v48 }
 0x263   : > { %1387 = vrot.lane.b32.xlu1 %v7899_v33, %s7171_s14  ;;  %v6819_v37 = vpop.eup %6818  ;;  %6840 = vrcp.f32 %v2062_v56  ;;  %v1572_v27 = vadd.f32 1.0, %v6817_v9 }
 0x264   : > { %v6821_v30 = vpop.eup %6820  ;;  %6842 = vrcp.f32 %v2060_v1  ;;  %v1409_v1 = vsel %vm10800_vm5, %v7881_v52, 0 }
 0x265   : > { %883 = vrot.lane.b32.xlu0 %v7876_v6, %s7171_s14  ;;  %v6823_v14 = vpop.eup %6822  ;;  %v1573_v57 = vadd.f32 1.0, %v6821_v30  ;;  %6844 = vrcp.f32 %v1570_v46 }
 0x266   : > { %v6825_v29 = vpop.eup %6824  ;;  %v2063_v48 = vadd.f32 1.0, %v6823_v14  ;;  %6846 = vrcp.f32 %v1572_v27 }
 0x267   : > { %1385 = vrot.lane.b32.xlu1 %v7903_v34, %s7171_s14  ;;  %v6827_v0 = vpop.eup %6826 }
 0x268   : > { %v8280_v59 = vpop.permute.xlu0 %608  ;;  %v6829_v56 = vpop.eup %6828  ;;  %v2064_v30 = vadd.f32 1.0, %v6827_v0 }
 0x269   : > { %930 = vrot.lane.b32.xlu0 %v917_v35, %s7164_s20  ;;  %v1571_v35 = vadd.f32 1.0, %v6819_v37  ;;  %v6831_v9 = vpop.eup %6830  ;;  %v2066_v14 = vadd.f32 1.0, %v6829_v56  ;;  %v1413_v56 = vsel %vm914_vm4, %v7899_v33, 0 }
 0x26a   : > { %v6833_v50 = vpop.eup %6832 }
 0x26b   : > { %6428 = vrot.lane.b32.xlu1 %v10886_v21, %s7164_s20  ;;  %6848 = vrcp.f32 %v1571_v35  ;;  %v6835_v46 = vpop.eup %6834  ;;  %v1592_v35 = vmul.f32 %v6813_v63, %v8068_v55 }
 0x26c   : > { %v8296_v37 = vpop.permute.xlu0 %1169  ;;  %6850 = vrcp.f32 %v1573_v57  ;;  %v6837_v27 = vpop.eup %6836  ;;  %v1591_v57 = vmul.f32 %v6835_v46, %v8135_v41  ;;  %v919_v41 = vsel %vm10800_vm5, %v7876_v6, 0 }
 0x26d   : > { %1423 = vrot.lane.b32.xlu0 %v1410_v22, %s7164_s20  ;;  %v2065_v22 = vadd.f32 1.0, %v6825_v29  ;;  %6852 = vrcp.f32 %v2063_v48  ;;  %v1590_v29 = vmul.f32 %v6831_v9, %v8115_v47  ;;  %v6839_v17 = vpop.eup %6838  ;;  %v1593_v47 = vmul.f32 %v6833_v50, %v8106_v51 }
 0x26e   : > { %v6841_v0 = vpop.eup %6840  ;;  %v2083_v55 = vmul.f32 %v6839_v17, %v8150_v5 }
 0x26f   : > { %928 = vrot.lane.b32.xlu1 %v916_v60, %s7164_s20  ;;  %v920_v60 = vsel %vm914_vm4, %v7888_v49, 0  ;;  %6854 = vrcp.f32 %v2065_v22  ;;  %v6843_v48 = vpop.eup %6842  ;;  %v2085_v22 = vmul.f32 %v6837_v27, %v8128_v43  ;;  %v2086_v51 = vmul.f32 %v6841_v0, %v8146_v62 }
 0x270   : > { %6856 = vrcp.f32 %v2064_v30  ;;  %v6845_v50 = vpop.eup %6844  ;;  %v8327_v30 = vpack.c.bf16 %v1593_v47, %v1591_v57  ;;  %v2084_v46 = vmul.f32 %v6843_v48, %v8159_v40  ;;  %v1412_v43 = vsel %vm10800_vm5, %v7903_v34, 0 }
 0x271   : > { %v8293_v13 = vpop.permute.xlu1 %610  ;;  %1421 = vrot.lane.b32.xlu0 %v1409_v1, %s7164_s20  ;;  %6858 = vrcp.f32 %v2066_v14  ;;  %v6847_v17 = vpop.eup %6846  ;;  %v8336_v27 = vpack.c.bf16 %v2085_v22, %v2083_v55  ;;  %vm612_vm5 = vcmask 130048  }
 0x272   : > { %v8345_v57 = vpack.c.bf16 %v2086_v51, %v2084_v46  ;;  %v1614_v48 = vsel %vm550_vm9, %v8327_v30, 0 }
 0x273   : > { %936 = vrot.lane.b32.xlu1 %v920_v60, %s7164_s20  ;;  %v8317_v60 = vpack.c.bf16 %v1592_v35, %v1590_v29  ;;  %v1594_v35 = vmul.f32 %v6845_v50, %v8183_v11  ;;  %v2106_v11 = vsel %vm549_vm8, %v8336_v27, 0 }
 0x275   : > { %v8303_v1 = vpop.permute.xlu1 %1171  ;;  %6433 = vrot.lane.b32.xlu0 %v10886_v21, %s7164_s20  ;;  %v6849_v14 = vpop.eup %6848  ;;  %v1613_v62 = vsel %vm549_vm8, %v8317_v60, 0 }
 0x276   : > { %v6851_v29 = vpop.eup %6850 }
 0x277   : > { %1429 = vrot.lane.b32.xlu1 %v1413_v56, %s7164_s20  ;;  %v8314_v9 = vpop.permute.xlu0 %1177  ;;  %v6853_v40 = vpop.eup %6852  ;;  %v1596_v56 = vmul.f32 %v6847_v17, %v8189_v26 }
 0x278   : > { %v2087_v51 = vmul.f32 %v6853_v40, %v8213_v20  ;;  %v10887_v40 = vld [vmem:[#allocation11_spill] sm:$0xff] }
 0x279   : > { %v8323_v63 = vpop.permute.xlu1 %1175  ;;  %934 = vrot.lane.b32.xlu0 %v919_v41, %s7164_s20  ;;  %v6855_v47 = vpop.eup %6854  ;;  %v1595_v41 = vmul.f32 %v6849_v14, %v8196_v32  ;;  %v8363_v46 = vpack.c.bf16 %v1596_v56, %v1594_v35  ;;  %v2107_v32 = vsel %vm550_vm9, %v8345_v57, 0  ;;  %v6358_v35 = vunpack.i.l.bf16 %v10887_v40 }
 0x27a   : > { %v6857_v55 = vpop.eup %6856  ;;  %v2089_v17 = vmul.f32 %v6855_v47, %v8218_v2 }
 0x27b   : > { %1427 = vrot.lane.b32.xlu1 %v1412_v43, %s7164_s20  ;;  %v8334_v5 = vpop.permute.xlu0 %879  ;;  %v1597_v43 = vmul.f32 %v6851_v29, %v8205_v15  ;;  %v6859_v50 = vpop.eup %6858  ;;  %v2088_v14 = vmul.f32 %v6857_v55, %v8225_v36  ;;  %v1616_v2 = vsel %vm549_vm8, %v8363_v46, 0 }
 0x27c   : > { %v2090_v29 = vmul.f32 %v6859_v50, %v8230_v53  ;;  %v8378_v20 = vpack.c.bf16 %v2089_v17, %v2087_v51 }
 0x27d   : > { %v8341_v0 = vpop.permute.xlu1 %877  ;;  %1626 = vrot.lane.b32.xlu0 %v1613_v62, %s7165_s15  ;;  %v8373_v62 = vpack.c.bf16 %v1597_v43, %v1595_v41  ;;  %v6359_v43 = vunpack.i.h.bf16 %v10887_v40 }
 0x27e   : > { %v8385_v36 = vpack.c.bf16 %v2090_v29, %v2088_v14  ;;  %v614_v29 = vsel %vm612_vm5, %v8267_v16, %v8278_v25 }
 0x27f   : > { %1628 = vrot.lane.b32.xlu1 %v1614_v48, %s7165_s15  ;;  %v8352_v22 = vpop.permute.xlu0 %1381  ;;  %v1617_v53 = vsel %vm550_vm9, %v8373_v62, 0 }
 0x280   : > { %v2110_v51 = vsel %vm550_vm9, %v8385_v36, 0 }
 0x281   : > { %v8359_v26 = vpop.permute.xlu1 %885  ;;  %2119 = vrot.lane.b32.xlu0 %v2106_v11, %s7165_s15  ;;  %v2109_v11 = vsel %vm549_vm8, %v8378_v20, 0 }
 0x283   : > { %2121 = vrot.lane.b32.xlu1 %v2107_v32, %s7165_s15  ;;  %v8370_v15 = vpop.permute.xlu0 %1379 }
 0x285   : > { %v566_v48 = vpop.permute.xlu1 %565  ;;  %6438 = vrot.lane.b32.xlu0 %v10886_v21, %s7165_s15 }
 0x286   : > { %v576_v41 = vsel %vm575_vm6, %v6358_v35, %v566_v48 }
 0x287   : > { %1632 = vrot.lane.b32.xlu1 %v1616_v2, %s7165_s15  ;;  %v568_v56 = vpop.permute.xlu0 %567 }
 0x288   : > { %v577_v47 = vsel %vm575_vm6, %v566_v48, %v568_v56  ;;  %v10888_v48 = vld [vmem:[#allocation18_spill] sm:$0xff] }
 0x289   : > { %v574_v55 = vpop.permute.xlu1 %573  ;;  %1634 = vrot.lane.b32.xlu0 %v1617_v53, %s7165_s15  ;;  %2620 = vmatprep.subr.bf16.mxu0 %v577_v47  ;;  %v6363_v2 = vunpack.i.l.bf16 %v10888_v48  ;;  %v616_v53 = vsel %vm612_vm5, %v8280_v59, %v8293_v13  ;;  %v6364_v25 = vunpack.i.h.bf16 %v10888_v48  ;;  %v6375_v13 = vunpack.i.l.bf16 %v8062_v3 }
 0x28a   : > { %2621 = vmatpush1.bf16.msra.mxu0 %v576_v41 }
 0x28b   : > { %2125 = vrot.lane.b32.xlu1 %v2109_v11, %s7165_s15  ;;  %v572_v50 = vpop.permute.xlu0 %571  ;;  %v613_v56 = vsel %vm612_vm5, %v6363_v2, %v8267_v16  ;;  %v615_v41 = vsel %vm612_vm5, %v6364_v25, %v8280_v59  ;;  %v1180_v25 = vsel %vm612_vm5, %v8296_v37, %v8303_v1  ;;  %v6381_v1 = vunpack.i.h.bf16 %v8064_v10 }
 0x28c   : > { %v579_v17 = vsel %vm575_vm6, %v572_v50, %v574_v55  ;;  %v578_v32 = vsel %vm575_vm6, %v6359_v43, %v572_v50  ;;  %v10889_v43 = vld [vmem:[#allocation19_spill] sm:$0xff] }
 0x28d   : > { %v683_v14 = vpop.permute.xlu1 %682  ;;  %2127 = vrot.lane.b32.xlu0 %v2110_v51, %s7165_s15  ;;  %2622 = vmatprep.subr.bf16.mxu0 %v579_v17  ;;  %v6368_v11 = vunpack.i.l.bf16 %v10889_v43  ;;  %v6369_v2 = vunpack.i.h.bf16 %v10889_v43 }
 0x28e   : > { %2623 = vmatpush1.bf16.msra.mxu0 %v578_v32 }
 0x28f   : > { %6443 = vrot.lane.b32.xlu1 %v10886_v21, %s7165_s15  ;;  %v685_v40 = vpop.permute.xlu0 %684  ;;  %2624 = vmatprep.subr.bf16.mxu0 %v614_v29  ;;  %v693_v59 = vsel %vm692_vm3, %v6368_v11, %v683_v14  ;;  %v6376_v29 = vunpack.i.h.bf16 %v8062_v3  ;;  %v1691_v11 = vsel %vm10804_vm11, %v8317_v60, 0 }
 0x290   : > { %v694_v16 = vsel %vm692_vm3, %v683_v14, %v685_v40 }
 0x291   : > { %v689_v35 = vpop.permute.xlu1 %688  ;;  %1662 = vrot.lane.b32.xlu0 %v8317_v60, %s7168_s18 }
 0x292   : > { %2625 = vmatpush1.bf16.msra.mxu0 %v613_v56  ;;  %v695_v3 = vsel %vm692_vm3, %v6369_v2, %v689_v35  ;;  %v2185_v2 = vsel %vm667_vm12, %v8345_v57, 0 }
 0x293   : > { %1664 = vrot.lane.b32.xlu1 %v8327_v30, %s7168_s18  ;;  %v691_v47 = vpop.permute.xlu0 %690  ;;  %2626 = vmatprep.subr.bf16.mxu0 %v616_v53 }
 0x294   : > { %v696_v48 = vsel %vm692_vm3, %v689_v35, %v691_v47  ;;  %v6380_v47 = vunpack.i.l.bf16 %v8064_v10  ;;  %v1692_v10 = vsel %vm667_vm12, %v8327_v30, 0 }
 0x295   : > { %v1134_v55 = vpop.permute.xlu1 %1133  ;;  %2155 = vrot.lane.b32.xlu0 %v8336_v27, %s7168_s18 }
 0x296   : > { %2627 = vmatpush1.bf16.msra.mxu0 %v615_v41  ;;  %v1143_v32 = vsel %vm575_vm6, %v6375_v13, %v1134_v55  ;;  %v1179_v35 = vsel %vm612_vm5, %v6380_v47, %v8296_v37  ;;  %v1181_v37 = vsel %vm612_vm5, %v6381_v1, %v8323_v63 }
 0x297   : > { %2157 = vrot.lane.b32.xlu1 %v8345_v57, %s7168_s18  ;;  %v1136_v50 = vpop.permute.xlu0 %1135  ;;  %2628 = vmatprep.subr.bf16.mxu0 %v694_v16  ;;  %v1182_v16 = vsel %vm612_vm5, %v8323_v63, %v8314_v9 }
 0x298   : > { %v1144_v51 = vsel %vm575_vm6, %v1134_v55, %v1136_v50  ;;  %v6390_v50 = vunpack.i.l.bf16 %v8112_v28 }
 0x299   : > { %v1142_v17 = vpop.permute.xlu1 %1141  ;;  %6448 = vrot.lane.b32.xlu0 %v10886_v21, %s7168_s18  ;;  %2726 = vmatprep.subr.bf16.mxu1 %v1144_v51  ;;  %v6385_v51 = vunpack.i.l.bf16 %v8110_v61 }
 0x29a   : > { %2629 = vmatpush1.bf16.msra.mxu0 %v693_v59  ;;  %2727 = vmatpush1.bf16.msra.mxu1 %v1143_v32  ;;  %v2184_v59 = vsel %vm10804_vm11, %v8336_v27, 0 }
 0x29b   : > { %1668 = vrot.lane.b32.xlu1 %v8363_v46, %s7168_s18  ;;  %v1140_v40 = vpop.permute.xlu0 %1139  ;;  %2630 = vmatprep.subr.bf16.mxu0 %v696_v48 }
 0x29c   : > { %v1146_v56 = vsel %vm575_vm6, %v1140_v40, %v1142_v17  ;;  %v1145_v53 = vsel %vm575_vm6, %v6376_v29, %v1140_v40 }
 0x29d   : > { %v1212_v14 = vpop.permute.xlu1 %1211  ;;  %1670 = vrot.lane.b32.xlu0 %v8373_v62, %s7168_s18  ;;  %2728 = vmatprep.subr.bf16.mxu1 %v1146_v56  ;;  %v6386_v56 = vunpack.i.h.bf16 %v8110_v61  ;;  %v6391_v61 = vunpack.i.h.bf16 %v8112_v28  ;;  %v2187_v28 = vsel %vm10804_vm11, %v8378_v20, 0 }
 0x29e   : > { %2631 = vmatpush1.bf16.msra.mxu0 %v695_v3  ;;  %2729 = vmatpush1.bf16.msra.mxu1 %v1145_v53  ;;  %v1221_v48 = vsel %vm692_vm3, %v6385_v51, %v1212_v14 }
 0x29f   : > { %2161 = vrot.lane.b32.xlu1 %v8378_v20, %s7168_s18  ;;  %2730 = vmatprep.subr.bf16.mxu1 %v1180_v25  ;;  %v1214_v55 = vpop.permute.xlu0 %1213  ;;  %v1694_v25 = vsel %vm10804_vm11, %v8363_v46, 0 }
 0x2a0   : > { %v1222_v9 = vsel %vm692_vm3, %v1212_v14, %v1214_v55  ;;  %v6395_v55 = vunpack.i.l.bf16 %v8162_v19 }
 0x2a1   : > { %v1220_v41 = vpop.permute.xlu1 %1219  ;;  %2163 = vrot.lane.b32.xlu0 %v8385_v36, %s7168_s18 }
 0x2a2   : > { %2731 = vmatpush1.bf16.msra.mxu1 %v1179_v35  ;;  %v1695_v35 = vsel %vm667_vm12, %v8373_v62, 0 }
 0x2a3   : > { %6453 = vrot.lane.b32.xlu1 %v10886_v21, %s7168_s18  ;;  %v1218_v43 = vpop.permute.xlu0 %1217  ;;  %2732 = vmatprep.subr.bf16.mxu1 %v1182_v16 }
 0x2a4   : > { %v1224_v40 = vsel %vm692_vm3, %v1218_v43, %v1220_v41  ;;  %v1223_v14 = vsel %vm692_vm3, %v6386_v56, %v1218_v43 }
 0x2a5   : > { %v737_v13 = vpop.permute.xlu1 %736  ;;  %1704 = vrot.lane.b32.xlu0 %v1691_v11, %s7167_s16 }
 0x2a6   : > { %2733 = vmatpush1.bf16.msra.mxu1 %v1181_v37 }
 0x2a7   : > { %1706 = vrot.lane.b32.xlu1 %v1692_v10, %s7167_s16  ;;  %v735_v17 = vpop.permute.xlu0 %734  ;;  %2734 = vmatprep.subr.bf16.mxu1 %v1222_v9 }
 0x2a8   : > { %v746_v63 = vsel %vm744_vm0, %v735_v17, %v737_v13  ;;  %v745_v32 = vsel %vm744_vm0, %v6390_v50, %v735_v17  ;;  %v6396_v13 = vunpack.i.h.bf16 %v8162_v19  ;;  %v2188_v50 = vsel %vm667_vm12, %v8385_v36, 0 }
 0x2a9   : > { %v1256_v29 = vpop.permute.xlu1 %1255  ;;  %2197 = vrot.lane.b32.xlu0 %v2184_v59, %s7167_s16  ;;  %2632 = vmatprep.subr.bf16.mxu0 %v746_v63  ;;  %v1733_v17 = vsel %vm10801_vm15, %v8317_v60, 0  ;;  %v6405_v63 = vunpack.i.l.bf16 %v8164_v31 }
 0x2aa   : > { %2633 = vmatpush1.bf16.msra.mxu0 %v745_v32  ;;  %2735 = vmatpush1.bf16.msra.mxu1 %v1221_v48  ;;  %v2226_v32 = vsel %vm10801_vm15, %v8336_v27, 0 }
 0x2ab   : > { %2199 = vrot.lane.b32.xlu1 %v2185_v2, %s7167_s16  ;;  %v1254_v53 = vpop.permute.xlu0 %1253  ;;  %2736 = vmatprep.subr.bf16.mxu1 %v1224_v40  ;;  %v6406_v40 = vunpack.i.h.bf16 %v8164_v31  ;;  %v1737_v31 = vsel %vm719_vm14, %v8373_v62, 0 }
 0x2ac   : > { %v1264_v47 = vsel %vm744_vm0, %v1254_v53, %v1256_v29  ;;  %v1263_v11 = vsel %vm744_vm0, %v6391_v61, %v1254_v53  ;;  %v6401_v29 = vunpack.i.h.bf16 %v8200_v8  ;;  %v6410_v61 = vunpack.i.l.bf16 %v8237_v54 }
 0x2ad   : > { %v741_v3 = vpop.permute.xlu1 %740  ;;  %6458 = vrot.lane.b32.xlu0 %v10886_v21, %s7167_s16 }
 0x2ae   : > { %2737 = vmatpush1.bf16.msra.mxu1 %v1223_v14  ;;  %v747_v43 = vsel %vm744_vm0, %v6395_v55, %v741_v3 }
 0x2af   : > { %1710 = vrot.lane.b32.xlu1 %v1694_v25, %s7167_s16  ;;  %v743_v41 = vpop.permute.xlu0 %742  ;;  %2738 = vmatprep.subr.bf16.mxu1 %v1264_v47 }
 0x2b0   : > { %v748_v16 = vsel %vm744_vm0, %v741_v3, %v743_v41  ;;  %v2229_v41 = vsel %vm10801_vm15, %v8378_v20, 0 }
 0x2b1   : > { %v1260_v1 = vpop.permute.xlu1 %1259  ;;  %1712 = vrot.lane.b32.xlu0 %v1695_v35, %s7167_s16  ;;  %2634 = vmatprep.subr.bf16.mxu0 %v748_v16  ;;  %v6415_v16 = vunpack.i.l.bf16 %v8202_v42 }
 0x2b2   : > { %2635 = vmatpush1.bf16.msra.mxu0 %v747_v43  ;;  %2739 = vmatpush1.bf16.msra.mxu1 %v1263_v11  ;;  %v1265_v51 = vsel %vm744_vm0, %v6396_v13, %v1260_v1  ;;  %v6411_v13 = vunpack.i.h.bf16 %v8237_v54  ;;  %v6416_v54 = vunpack.i.h.bf16 %v8202_v42  ;;  %v1782_v42 = vsel %vm10803_vm1, %v8317_v60, 0 }
 0x2b3   : > { %2203 = vrot.lane.b32.xlu1 %v2187_v28, %s7167_s16  ;;  %v1262_v37 = vpop.permute.xlu0 %1261  ;;  %2636 = vmatprep.subr.bf16.mxu0 %v7867_v4  ;;  %v6400_v4 = vunpack.i.l.bf16 %v8200_v8 }
 0x2b4   : > { %v1266_v10 = vsel %vm744_vm0, %v1260_v1, %v1262_v37  ;;  %v2230_v1 = vsel %vm719_vm14, %v8385_v36, 0 }
 0x2b5   : > { %v792_v9 = vpop.permute.xlu1 %791  ;;  %2205 = vrot.lane.b32.xlu0 %v2188_v50, %s7167_s16  ;;  %2740 = vmatprep.subr.bf16.mxu1 %v1266_v10 }
 0x2b6   : > { %2637 = vmatpush1.bf16.msra.mxu0 %v7865_v38  ;;  %2741 = vmatpush1.bf16.msra.mxu1 %v1265_v51  ;;  %v1734_v38 = vsel %vm719_vm14, %v8327_v30, 0 }
 0x2b7   : > { %6463 = vrot.lane.b32.xlu1 %v10886_v21, %s7167_s16  ;;  %v794_v19 = vpop.permute.xlu0 %793  ;;  %2638 = vmatprep.subr.bf16.mxu0 %v7888_v49 }
 0x2b8   : > { %2742 = vmatprep.subr.bf16.mxu1 %v7894_v12  ;;  %v804_v49 = vsel %vm715_vm13, %v794_v19, %v6400_v4 }
 0x2b9   : > { %v800_v59 = vpop.permute.xlu1 %799  ;;  %1746 = vrot.lane.b32.xlu0 %v1733_v17, %s7170_s11  ;;  %v2276_v17 = vsel %vm10802_vm2, %v8345_v57, 0 }
 0x2ba   : > { %2639 = vmatpush1.bf16.msra.mxu0 %v7876_v6  ;;  %2743 = vmatpush1.bf16.msra.mxu1 %v7881_v52  ;;  %v803_v6 = vsel %vm715_vm13, %v792_v9, %v794_v19  ;;  %v2227_v52 = vsel %vm719_vm14, %v8345_v57, 0  ;;  %v1783_v9 = vsel %vm10802_vm2, %v8327_v30, 0 }
 0x2bb   : > { %1748 = vrot.lane.b32.xlu1 %v1734_v38, %s7170_s11  ;;  %v1304_v12 = vpop.permute.xlu0 %1303  ;;  %2640 = vmatprep.subr.bf16.mxu0 %v804_v49 }
 0x2bc   : > { %2744 = vmatprep.subr.bf16.mxu1 %v7899_v33  ;;  %v806_v33 = vsel %vm715_vm13, %v800_v59, %v6405_v63  ;;  %v1314_v8 = vsel %vm715_vm13, %v1304_v12, %v6401_v29  ;;  %v10892_v63 = vld [vmem:[#allocation17_spill] sm:$0xff] }
 0x2bd   : > { %v1310_v48 = vpop.permute.xlu1 %1309  ;;  %2239 = vrot.lane.b32.xlu0 %v2226_v32, %s7170_s11  ;;  %v6420_v32 = vunpack.i.l.bf16 %v10892_v63 }
 0x2be   : > { %2641 = vmatpush1.bf16.msra.mxu0 %v803_v6  ;;  %2745 = vmatpush1.bf16.msra.mxu1 %v7903_v34  ;;  %v1736_v34 = vsel %vm10801_vm15, %v8363_v46, 0  ;;  %v1316_v3 = vsel %vm715_vm13, %v1310_v48, %v6406_v40  ;;  %vm889_vm15 = vcmask 916480   ;;  %v2275_v6 = vsel %vm10803_vm1, %v8336_v27, 0 }
 0x2bf   : > { %2241 = vrot.lane.b32.xlu1 %v2227_v52, %s7170_s11  ;;  %v1302_v2 = vpop.permute.xlu0 %1301  ;;  %2642 = vmatprep.subr.bf16.mxu0 %v806_v33  ;;  %v1786_v40 = vsel %vm10802_vm2, %v8373_v62, 0 }
 0x2c0   : > { %2746 = vmatprep.subr.bf16.mxu1 %v1314_v8  ;;  %v1313_v56 = vsel %vm715_vm13, %v1302_v2, %v1304_v12  ;;  %v891_v8 = vsel %vm889_vm15, %v8334_v5, %v6420_v32 }
 0x2c1   : > { %v1308_v53 = vpop.permute.xlu1 %1307  ;;  %6468 = vrot.lane.b32.xlu0 %v10886_v21, %s7170_s11 }
 0x2c2   : > { %2747 = vmatpush1.bf16.msra.mxu1 %v1313_v56  ;;  %v1315_v55 = vsel %vm715_vm13, %v1308_v53, %v1310_v48  ;;  %v6421_v48 = vunpack.i.h.bf16 %v10892_v63  ;;  %v10893_v53 = vld [vmem:[#allocation14_spill] sm:$0xff] }
 0x2c3   : > { %1752 = vrot.lane.b32.xlu1 %v1736_v34, %s7170_s11  ;;  %v798_v14 = vpop.permute.xlu0 %797  ;;  %2748 = vmatprep.subr.bf16.mxu1 %v1316_v3  ;;  %v6425_v34 = vunpack.i.l.bf16 %v10893_v53 }
 0x2c4   : > { %v805_v25 = vsel %vm715_vm13, %v798_v14, %v800_v59  ;;  %v1392_v56 = vsel %vm889_vm15, %v8352_v22, %v6421_v48  ;;  %v6426_v14 = vunpack.i.h.bf16 %v10893_v53 }
 0x2c5   : > { %v842_v47 = vpop.permute.xlu1 %841  ;;  %1754 = vrot.lane.b32.xlu0 %v1737_v31, %s7170_s11  ;;  %2643 = vmatpush1.bf16.msra.mxu0 %v805_v25  ;;  %v890_v31 = vsel %vm889_vm15, %v8341_v0, %v8334_v5 }
 0x2c6   : > { %2749 = vmatpush1.bf16.msra.mxu1 %v1315_v55  ;;  %v893_v55 = vsel %vm889_vm15, %v8359_v26, %v6425_v34 }
 0x2c7   : > { %2245 = vrot.lane.b32.xlu1 %v2229_v41, %s7170_s11  ;;  %v844_v35 = vpop.permute.xlu0 %843  ;;  %v1785_v41 = vsel %vm10803_vm1, %v8363_v46, 0 }
 0x2c8   : > { %v854_v43 = vsel %vm663_vm10, %v844_v35, %v6410_v61  ;;  %v853_v11 = vsel %vm663_vm10, %v842_v47, %v844_v35  ;;  %v1391_v47 = vsel %vm889_vm15, %v8370_v15, %v8352_v22  ;;  %v2279_v61 = vsel %vm10802_vm2, %v8385_v36, 0  ;;  %v8637_v15 = vld [vmem:[%s10768_s4] ss:$12 sps:$4 sm:$0xff]  }
 0x2c9   : > { %v850_v28 = vpop.permute.xlu1 %849  ;;  %2247 = vrot.lane.b32.xlu0 %v2230_v1, %s7170_s11  ;;  %2644 = vmatprep.subr.bf16.mxu0 %v854_v43 }
 0x2ca   : > { %2645 = vmatpush1.bf16.msra.mxu0 %v853_v11  ;;  %v856_v37 = vsel %vm663_vm10, %v850_v28, %v6415_v16  ;;  %v2278_v11 = vsel %vm10803_vm1, %v8378_v20, 0 }
 0x2cb   : > { %6473 = vrot.lane.b32.xlu1 %v10886_v21, %s7170_s11  ;;  %v1346_v50 = vpop.permute.xlu0 %1345  ;;  %2646 = vmatprep.subr.bf16.mxu0 %v856_v37  ;;  %v8651_v37 = vld [vmem:[%s10768_s4 + $0x1c] ss:$12 sps:$4 sm:$0xff]  }
 0x2cc   : > { %v1356_v51 = vsel %vm663_vm10, %v1346_v50, %v6411_v13 }
 0x2cd   : > { %v1352_v19 = vpop.permute.xlu1 %1351  ;;  %1796 = vrot.lane.b32.xlu0 %v1783_v9, %s7169_s19  ;;  %2750 = vmatprep.subr.bf16.mxu1 %v1356_v51  ;;  %v10894_v9 = vld [vmem:[#allocation26_spill] sm:$0xff] }
 0x2ce   : > { %v1358_v49 = vsel %vm663_vm10, %v1352_v19, %v6416_v54  ;;  %vm10895_vm2 = vcmp.ne.s16.totalorder %v10894_v9, 0 }
 0x2cf   : > { %6478 = vrot.lane.b32.xlu1 %v10886_v21, %s7169_s19  ;;  %v1344_v4 = vpop.permute.xlu0 %1343  ;;  %v1825_v51 = vsel %vm10895_vm2, %v8327_v30, 0 }
 0x2d0   : > { %v1355_v59 = vsel %vm663_vm10, %v1344_v4, %v1346_v50 }
 0x2d1   : > { %v1350_v38 = vpop.permute.xlu1 %1349  ;;  %2289 = vrot.lane.b32.xlu0 %v2276_v17, %s7169_s19  ;;  %2751 = vmatpush1.bf16.msra.mxu1 %v1355_v59  ;;  %v8667_v17 = vld [vmem:[%s10768_s4 + $0x18] ss:$12 sps:$4 sm:$0xff]  }
 0x2d2   : > { %2752 = vmatprep.subr.bf16.mxu1 %v1358_v49  ;;  %v1357_v2 = vsel %vm663_vm10, %v1350_v38, %v1352_v19  ;;  %v2318_v38 = vsel %vm10895_vm2, %v8345_v57, 0  ;;  %v10896_v49 = vld [vmem:[#allocation23_spill] sm:$0xff] }
 0x2d3   : > { %1794 = vrot.lane.b32.xlu1 %v1782_v42, %s7169_s19  ;;  %v848_v29 = vpop.permute.xlu0 %847  ;;  %vm10897_vm1 = vcmp.ne.s16.totalorder %v10896_v49, 0  ;;  %vm10900_vm11 = vcmp.ne.s16.totalorder %v10896_v49, 0 }
 0x2d4   : > { %v855_v52 = vsel %vm663_vm10, %v848_v29, %v850_v28  ;;  %v1824_v42 = vsel %vm10897_vm1, %v8317_v60, 0  ;;  %vm10898_vm2 = vmmov %vm10897_vm1  ;;  %vm10899_vm1 = vcmp.ne.s16.totalorder %v10894_v9, 0 }
 0x2d5   : > { %v1388_v33 = vpop.permute.xlu1 %1387  ;;  %2287 = vrot.lane.b32.xlu0 %v2275_v6, %s7169_s19  ;;  %2647 = vmatpush1.bf16.msra.mxu0 %v855_v52  ;;  %v2317_v6 = vsel %vm10898_vm2, %v8336_v27, 0  ;;  %v1828_v52 = vsel %vm10899_vm1, %v8373_v62, 0  ;;  %vm2613_vm2 = vcmask 261120  }
 0x2d6   : > { %2753 = vmatpush1.bf16.msra.mxu1 %v1357_v2  ;;  %2648 = vmatprep.subr.bf16.mxu0 %v891_v8  ;;  %v1394_v5 = vsel %vm889_vm15, %v1388_v33, %v6426_v14 }
 0x2d7   : > { %1802 = vrot.lane.b32.xlu1 %v1786_v40, %s7169_s19  ;;  %2754 = vmatprep.subr.bf16.mxu1 %v1392_v56  ;;  %v884_v3 = vpop.permute.xlu0 %883  ;;  %v8695_v56 = vld [vmem:[%s10768_s4 + $0x8] ss:$12 sps:$4 sm:$0xff]  }
 0x2d8   : > { %v892_v22 = vsel %vm889_vm15, %v884_v3, %v8359_v26  ;;  %v2321_v3 = vsel %vm10899_vm1, %v8385_v36, 0  ;;  %vm10901_vm1 = vmmov %vm10900_vm11 }
 0x2d9   : > { %v1386_v25 = vpop.permute.xlu1 %1385  ;;  %6483 = vrot.lane.b32.xlu0 %v10886_v21, %s7169_s19  ;;  %2649 = vmatpush1.bf16.msra.mxu0 %v890_v31 }
 0x2da   : > { %2755 = vmatpush1.bf16.msra.mxu1 %v1391_v47  ;;  %2650 = vmatprep.subr.bf16.mxu0 %v893_v55  ;;  %v1393_v16 = vsel %vm889_vm15, %v1386_v25, %v1388_v33  ;;  %v1827_v25 = vsel %vm10900_vm11, %v8363_v46, 0  ;;  %v2320_v47 = vsel %vm10901_vm1, %v8378_v20, 0  ;;  %vm10903_vm11 = vcmp.ne.s16.totalorder %v8087_v7, 0 }
 0x2db   : > { %2295 = vrot.lane.b32.xlu1 %v2279_v61, %s7169_s19  ;;  %2756 = vmatprep.subr.bf16.mxu1 %v1394_v5  ;;  %v931_v0 = vpop.permute.xlu0 %930  ;;  %v8722_v5 = vld [vmem:[%s10768_s4 + $0x20] ss:$12 sps:$4 sm:$0xff]   ;;  %vm10904_vm1 = vmmov %vm10903_vm11 }
 0x2dd   : > { %v6429_v35 = vpop.permute.xlu1 %6428  ;;  %1800 = vrot.lane.b32.xlu0 %v1785_v41, %s7169_s19  ;;  %2651 = vmatpush1.bf16.msra.mxu0 %v892_v22 }
 0x2de   : > { %v6431_v1 = vunpack.i.h.bf16 %v6429_v35  ;;  %v6430_v43 = vunpack.i.l.bf16 %v6429_v35  ;;  %2757 = vmatpush1.bf16.msra.mxu1 %v1393_v16 }
 0x2df   : > { %2293 = vrot.lane.b32.xlu1 %v2278_v11, %s7169_s19  ;;  %v1424_v26 = vpop.permute.xlu0 %1423 }
 0x2e0   : > { %v941_v28 = vsel %vm546_vm7, %v931_v0, %v6430_v43  ;;  %2653 = vmatmul.mubr.bf16.vlgmr.msra.gmra.mrb[0].mxu0 %v8637_v15  ;;  %v1434_v13 = vsel %vm546_vm7, %v1424_v26, %v6431_v1  ;;  %v10902_v43 = vld [vmem:[#allocation16_spill] sm:$0xff] }
 0x2e1   : > { %v929_v50 = vpop.permute.xlu1 %928  ;;  %2673 = vmatprep.subr.bf16.mxu0 %v941_v28  ;;  %2759 = vmatmul.mubr.bf16.vlgmr.msra.gmra.mrb[0].mxu1 %v8637_v15 }
 0x2e2   : > { %v940_v19 = vsel %vm546_vm7, %v929_v50, %v931_v0  ;;  %1838 = vrot.lane.b32.xlu0 %v1825_v51, %s7166_s8  ;;  %2779 = vmatprep.subr.bf16.mxu1 %v1434_v13  ;;  %v7020_v50 = vld [vmem:[%s10768_s4 + $0x4] ss:$12 sps:$4 sm:$0xff]  }
 0x2e3   : > { %6488 = vrot.lane.b32.xlu1 %v10886_v21, %s7166_s8  ;;  %2674 = vmatpush1.bf16.msra.mxu0 %v940_v19  ;;  %v1422_v54 = vpop.permute.xlu0 %1421 }
 0x2e4   : > { %v1433_v4 = vsel %vm546_vm7, %v1422_v54, %v1424_v26  ;;  %2662 = vmatprep.mubr.bf16.mxu0 %v8651_v37  ;;  %2768 = vmatprep.mubr.bf16.mxu1 %v8651_v37 }
 0x2e5   : > { %v937_v59 = vpop.permute.xlu1 %936  ;;  %2780 = vmatpush1.bf16.msra.mxu1 %v1433_v4 }
 0x2e6   : > { %2331 = vrot.lane.b32.xlu0 %v2318_v38, %s7166_s8 }
 0x2e7   : > { %1836 = vrot.lane.b32.xlu1 %v1824_v42, %s7166_s8  ;;  %v6434_v63 = vpop.permute.xlu0 %6433 }
 0x2e8   : > { %v6436_v32 = vunpack.i.h.bf16 %v6434_v63  ;;  %v6435_v29 = vunpack.i.l.bf16 %v6434_v63  ;;  %2663 = vmatmul.mubr.bf16.gmra.mrb[4].mxu0 %v8667_v17 }
 0x2e9   : > { %v1430_v48 = vpop.permute.xlu1 %1429  ;;  %2769 = vmatmul.mubr.bf16.gmra.mrb[4].mxu1 %v8667_v17  ;;  %2705 = vmatprep.mubr.bf16.mxu0 %v10886_v21 }
 0x2ea   : > { %2329 = vrot.lane.b32.xlu0 %v2317_v6, %s7166_s8  ;;  %v943_v33 = vsel %vm546_vm7, %v937_v59, %v6435_v29  ;;  %v1436_v2 = vsel %vm546_vm7, %v1430_v48, %v6436_v32  ;;  %2811 = vmatprep.mubr.bf16.mxu1 %v10886_v21 }
 0x2eb   : > { %1844 = vrot.lane.b32.xlu1 %v1828_v52, %s7166_s8  ;;  %v935_v8 = vpop.permute.xlu0 %934  ;;  %2675 = vmatprep.subr.bf16.mxu0 %v943_v33  ;;  %v1903_v33 = vsel %vm914_vm4, %v8327_v30, 0 }
 0x2ec   : > { %v942_v40 = vsel %vm546_vm7, %v935_v8, %v937_v59  ;;  %2781 = vmatprep.subr.bf16.mxu1 %v1436_v2 }
 0x2ed   : > { %v1428_v53 = vpop.permute.xlu1 %1427  ;;  %2676 = vmatpush1.bf16.msra.mxu0 %v942_v40 }
 0x2ee   : > { %v1435_v34 = vsel %vm546_vm7, %v1428_v53, %v1430_v48  ;;  %6493 = vrot.lane.b32.xlu0 %v10886_v21, %s7166_s8 }
 0x2ef   : > { %2337 = vrot.lane.b32.xlu1 %v2321_v3, %s7166_s8  ;;  %2782 = vmatpush1.bf16.msra.mxu1 %v1435_v34  ;;  %v1627_v14 = vpop.permute.xlu0 %1626  ;;  %v2396_v3 = vsel %vm914_vm4, %v8345_v57, 0 }
 0x2f0   : > { %6126 = vmatmul.mubr.msk.bf16.vlgmr.msra.gmra.mrb[0].mxu0 %vm2613_vm2, %v8695_v56 }
 0x2f1   : > { %v1629_v31 = vpop.permute.xlu1 %1628  ;;  %2715 = vmatprep.mubr.bf16.mxu0 %v10886_v21 }
 0x2f2   : > { %6128 = vmatmul.mubr.msk.bf16.vlgmr.msra.gmra.mrb[0].mxu1 %vm2613_vm2, %v8695_v56  ;;  %1842 = vrot.lane.b32.xlu0 %v1827_v25, %s7166_s8  ;;  %v1637_v55 = vsel %vm575_vm6, %v1627_v14, %v1629_v31 }
 0x2f3   : > { %2335 = vrot.lane.b32.xlu1 %v2320_v47, %s7166_s8  ;;  %2832 = vmatprep.subr.bf16.mxu0 %v1637_v55  ;;  %v2120_v61 = vpop.permute.xlu0 %2119 }
 0x2f4   : > { %2821 = vmatprep.mubr.bf16.mxu1 %v10886_v21 }
 0x2f5   : > { %v2122_v0 = vpop.permute.xlu1 %2121 }
 0x2f6   : > { %1874 = vrot.lane.b32.xlu0 %v8327_v30, %s7171_s14  ;;  %v2130_v41 = vsel %vm575_vm6, %v2120_v61, %v2122_v0  ;;  %v2395_v0 = vsel %vm10904_vm1, %v8336_v27, 0 }
 0x2f7   : > { %6498 = vrot.lane.b32.xlu1 %v10886_v21, %s7171_s14  ;;  %2938 = vmatprep.subr.bf16.mxu1 %v2130_v41  ;;  %v6439_v22 = vpop.permute.xlu0 %6438  ;;  %v1906_v41 = vsel %vm914_vm4, %v8373_v62, 0 }
 0x2f8   : > { %v6441_v35 = vunpack.i.h.bf16 %v6439_v22  ;;  %v6440_v16 = vunpack.i.l.bf16 %v6439_v22  ;;  %6127 = vmatmul.mubr.msk.bf16.gmra.mrb[4].mxu0 %vm2613_vm2, %v8722_v5 }
 0x2f9   : > { %v1633_v1 = vpop.permute.xlu1 %1632  ;;  %2864 = vmatprep.mubr.bf16.mxu0 %v10902_v43 }
 0x2fa   : > { %6129 = vmatmul.mubr.msk.bf16.gmra.mrb[4].mxu1 %vm2613_vm2, %v8722_v5  ;;  %2367 = vrot.lane.b32.xlu0 %v8345_v57, %s7171_s14  ;;  %v1636_v11 = vsel %vm575_vm6, %v6440_v16, %v1627_v14  ;;  %v2129_v26 = vsel %vm575_vm6, %v6441_v35, %v2120_v61  ;;  %v1902_v14 = vsel %vm10903_vm11, %v8317_v60, 0  ;;  %vm10905_vm11 = vmmov %vm10904_vm1 }
 0x2fb   : > { %1872 = vrot.lane.b32.xlu1 %v8317_v60, %s7171_s14  ;;  %v1635_v28 = vpop.permute.xlu0 %1634  ;;  %2833 = vmatpush1.bf16.msra.mxu0 %v1636_v11  ;;  %v2399_v11 = vsel %vm914_vm4, %v8385_v36, 0 }
 0x2fc   : > { %2939 = vmatpush1.bf16.msra.mxu1 %v2129_v26  ;;  %v1639_v13 = vsel %vm575_vm6, %v1633_v1, %v1635_v28  ;;  %2970 = vmatprep.mubr.bf16.mxu1 %v7020_v50 }
 0x2fd   : > { %v2126_v51 = vpop.permute.xlu1 %2125  ;;  %2834 = vmatprep.subr.bf16.mxu0 %v1639_v13 }
 0x2fe   : > { %2365 = vrot.lane.b32.xlu0 %v8336_v27, %s7171_s14 }
 0x2ff   : > { %1880 = vrot.lane.b32.xlu1 %v8373_v62, %s7171_s14  ;;  %v2128_v19 = vpop.permute.xlu0 %2127 }
 0x300   : > { %v2132_v54 = vsel %vm575_vm6, %v2126_v51, %v2128_v19  ;;  %v2398_v19 = vsel %vm10904_vm1, %v8378_v20, 0 }
 0x301   : > { %v6444_v4 = vpop.permute.xlu1 %6443  ;;  %2940 = vmatprep.subr.bf16.mxu1 %v2132_v54 }
 0x302   : > { %v6446_v59 = vunpack.i.h.bf16 %v6444_v4  ;;  %v6445_v38 = vunpack.i.l.bf16 %v6444_v4  ;;  %6503 = vrot.lane.b32.xlu0 %v10886_v21, %s7171_s14 }
 0x303   : > { %2373 = vrot.lane.b32.xlu1 %v8385_v36, %s7171_s14  ;;  %v1663_v42 = vpop.permute.xlu0 %1662 }
 0x304   : > { %v1638_v63 = vsel %vm575_vm6, %v6445_v38, %v1633_v1  ;;  %v2131_v32 = vsel %vm575_vm6, %v6446_v59, %v2126_v51  ;;  %v1905_v51 = vsel %vm10905_vm11, %v8363_v46, 0  ;;  %v3084_v59 = vld [vmem:[%s8799_s28] sm:$0xff]  ;;  %v3085_v38 = vld [vmem:[%s8799_s28 + $0x8] sm:$0xff] }
 0x305   : > { %v1665_v29 = vpop.permute.xlu1 %1664  ;;  %2835 = vmatpush1.bf16.msra.mxu0 %v1638_v63  ;;  %2941 = vmatpush1.bf16.msra.mxu1 %v2131_v32 }
 0x306   : > { %1878 = vrot.lane.b32.xlu0 %v8363_v46, %s7171_s14  ;;  %v1673_v48 = vsel %vm612_vm5, %v1663_v42, %v1665_v29  ;;  %v6143_v29 = vld [vmem:[%s8799_s28 + $0x28] sm:$0xff] }
 0x307   : > { %2371 = vrot.lane.b32.xlu1 %v8378_v20, %s7171_s14  ;;  %2836 = vmatprep.subr.bf16.mxu0 %v1673_v48  ;;  %v2156_v6 = vpop.permute.xlu0 %2155 }
 0x309   : > { %v2158_v52 = vpop.permute.xlu1 %2157 }
 0x30a   : > { %1916 = vrot.lane.b32.xlu0 %v1903_v33, %s7164_s20  ;;  %v2166_v2 = vsel %vm612_vm5, %v2156_v6, %v2158_v52  ;;  %v6142_v52 = vld [vmem:[%s8799_s28 + $0x20] sm:$0xff] }
 0x30b   : > { %6508 = vrot.lane.b32.xlu1 %v10886_v21, %s7164_s20  ;;  %2942 = vmatprep.subr.bf16.mxu1 %v2166_v2  ;;  %v6449_v8 = vpop.permute.xlu0 %6448 }
 0x30c   : > { %v6451_v40 = vunpack.i.h.bf16 %v6449_v8  ;;  %v6450_v53 = vunpack.i.l.bf16 %v6449_v8 }
 0x30d   : > { %v1669_v34 = vpop.permute.xlu1 %1668 }
 0x30e   : > { %2409 = vrot.lane.b32.xlu0 %v2396_v3, %s7164_s20  ;;  %v1672_v31 = vsel %vm612_vm5, %v6450_v53, %v1663_v42  ;;  %v2165_v25 = vsel %vm612_vm5, %v6451_v40, %v2156_v6  ;;  %v3087_v53 = vld [vmem:[%s8799_s28 + $0x18] sm:$0xff] }
 0x30f   : > { %1914 = vrot.lane.b32.xlu1 %v1902_v14, %s7164_s20  ;;  %v1671_v47 = vpop.permute.xlu0 %1670  ;;  %2837 = vmatpush1.bf16.msra.mxu0 %v1672_v31 }
 0x310   : > { %2943 = vmatpush1.bf16.msra.mxu1 %v2165_v25  ;;  %v1675_v55 = vsel %vm612_vm5, %v1669_v34, %v1671_v47  ;;  %v6145_v25 = vld [vmem:[%s8799_s28 + $0x38] sm:$0xff]  ;;  %v6144_v47 = vld [vmem:[%s8799_s28 + $0x30] sm:$0xff] }
 0x311   : > { %v2162_v61 = vpop.permute.xlu1 %2161  ;;  %2838 = vmatprep.subr.bf16.mxu0 %v1675_v55 }
 0x312   : > { %2407 = vrot.lane.b32.xlu0 %v2395_v0, %s7164_s20 }
 0x313   : > { %1922 = vrot.lane.b32.xlu1 %v1906_v41, %s7164_s20  ;;  %v2164_v22 = vpop.permute.xlu0 %2163 }
 0x314   : > { %v2168_v35 = vsel %vm612_vm5, %v2162_v61, %v2164_v22 }
 0x315   : > { %v6454_v16 = vpop.permute.xlu1 %6453  ;;  %2944 = vmatprep.subr.bf16.mxu1 %v2168_v35  ;;  %v6154_v35 = vld [vmem:[%s8799_s28 + $0x40] sm:$0xff] }
 0x316   : > { %v6456_v1 = vunpack.i.h.bf16 %v6454_v16  ;;  %v6455_v43 = vunpack.i.l.bf16 %v6454_v16  ;;  %6513 = vrot.lane.b32.xlu0 %v10886_v21, %s7164_s20 }
 0x317   : > { %2415 = vrot.lane.b32.xlu1 %v2399_v11, %s7164_s20  ;;  %v1705_v26 = vpop.permute.xlu0 %1704 }
 0x318   : > { %v1674_v28 = vsel %vm612_vm5, %v6455_v43, %v1669_v34  ;;  %v2167_v13 = vsel %vm612_vm5, %v6456_v1, %v2162_v61  ;;  %v3086_v34 = vld [vmem:[%s8799_s28 + $0x10] sm:$0xff]  ;;  %v6155_v43 = vld [vmem:[%s8799_s28 + $0x48] sm:$0xff] }
 0x319   : > { %v1707_v50 = vpop.permute.xlu1 %1706  ;;  %2839 = vmatpush1.bf16.msra.mxu0 %v1674_v28  ;;  %2945 = vmatpush1.bf16.msra.mxu1 %v2167_v13  ;;  %v6167_v13 = vld [vmem:[%s8799_s28 + $0x68] sm:$0xff] }
 0x31a   : > { %1920 = vrot.lane.b32.xlu0 %v1905_v51, %s7164_s20  ;;  %v1715_v54 = vsel %vm692_vm3, %v1705_v26, %v1707_v50  ;;  %v6166_v50 = vld [vmem:[%s8799_s28 + $0x60] sm:$0xff] }
 0x31b   : > { %2413 = vrot.lane.b32.xlu1 %v2398_v19, %s7164_s20  ;;  %2840 = vmatprep.subr.bf16.mxu0 %v1715_v54  ;;  %v2198_v4 = vpop.permute.xlu0 %2197 }
 0x31d   : > { %v2200_v42 = vpop.permute.xlu1 %2199 }
 0x31e   : > { %3090 = vperm.xlu0 %6370, %v3084_v59   ;;  %v2208_v63 = vsel %vm692_vm3, %v2198_v4, %v2200_v42  ;;  %v6156_v42 = vld [vmem:[%s8799_s28 + $0x50] sm:$0xff] }
 0x31f   : > { %3095 = vperm.xlu1 %6371, %v3085_v38   ;;  %2946 = vmatprep.subr.bf16.mxu1 %v2208_v63  ;;  %v6459_v32 = vpop.permute.xlu0 %6458 }
 0x320   : > { %v6461_v48 = vunpack.i.h.bf16 %v6459_v32  ;;  %v6460_v6 = vunpack.i.l.bf16 %v6459_v32 }
 0x321   : > { %v1711_v33 = vpop.permute.xlu1 %1710 }
 0x322   : > { %3644 = vperm.xlu0 %6370, %v6143_v29   ;;  %v1714_v2 = vsel %vm692_vm3, %v6460_v6, %v1705_v26  ;;  %v2207_v8 = vsel %vm692_vm3, %v6461_v48, %v2198_v4  ;;  %v6157_v4 = vld [vmem:[%s8799_s28 + $0x58] sm:$0xff] }
 0x323   : > { %3639 = vperm.xlu1 %6371, %v6142_v52   ;;  %v1713_v40 = vpop.permute.xlu0 %1712  ;;  %2841 = vmatpush1.bf16.msra.mxu0 %v1714_v2  ;;  %v6169_v6 = vld [vmem:[%s8799_s28 + $0x78] sm:$0xff]  ;;  %v6168_v52 = vld [vmem:[%s8799_s28 + $0x70] sm:$0xff] }
 0x324   : > { %2947 = vmatpush1.bf16.msra.mxu1 %v2207_v8  ;;  %v1717_v3 = vsel %vm692_vm3, %v1711_v33, %v1713_v40 }
 0x325   : > { %v2204_v14 = vpop.permute.xlu1 %2203  ;;  %2842 = vmatprep.subr.bf16.mxu0 %v1717_v3 }
 0x326   : > { %3105 = vperm.xlu0 %6370, %v3087_v53  }
 0x327   : > { %3100 = vperm.xlu1 %6371, %v3086_v34   ;;  %v2206_v31 = vpop.permute.xlu0 %2205 }
 0x328   : > { %v2210_v55 = vsel %vm692_vm3, %v2204_v14, %v2206_v31 }
 0x329   : > { %v6464_v61 = vpop.permute.xlu1 %6463  ;;  %2948 = vmatprep.subr.bf16.mxu1 %v2210_v55 }
 0x32a   : > { %v6466_v0 = vunpack.i.h.bf16 %v6464_v61  ;;  %v6465_v41 = vunpack.i.l.bf16 %v6464_v61  ;;  %3654 = vperm.xlu0 %6370, %v6145_v25   ;;  %v7021_v25 = vld [vmem:[%s10767_s3] sm:$0xff]  ;;  %v7022_v61 = vld [vmem:[%s10767_s3 + $0x8] sm:$0xff] }
 0x32b   : > { %3649 = vperm.xlu1 %6371, %v6144_v47   ;;  %v1747_v22 = vpop.permute.xlu0 %1746 }
 0x32c   : > { %v1716_v16 = vsel %vm692_vm3, %v6465_v41, %v1711_v33  ;;  %v2209_v1 = vsel %vm692_vm3, %v6466_v0, %v2204_v14  ;;  %v7172_v14 = vmov 2  }
 0x32d   : > { %v1749_v11 = vpop.permute.xlu1 %1748  ;;  %2843 = vmatpush1.bf16.msra.mxu0 %v1716_v16  ;;  %2949 = vmatpush1.bf16.msra.mxu1 %v2209_v1 }
 0x32e   : > { %4156 = vperm.xlu0 %6370, %v6154_v35   ;;  %v1757_v26 = vsel %vm744_vm0, %v1747_v22, %v1749_v11 }
 0x32f   : > { %4161 = vperm.xlu1 %6371, %v6155_v43   ;;  %2844 = vmatprep.subr.bf16.mxu0 %v1757_v26  ;;  %v2240_v28 = vpop.permute.xlu0 %2239 }
 0x331   : > { %v2242_v51 = vpop.permute.xlu1 %2241 }
 0x332   : > { %4678 = vperm.xlu0 %6370, %v6167_v13   ;;  %v2250_v19 = vsel %vm744_vm0, %v2240_v28, %v2242_v51 }
 0x333   : > { %4673 = vperm.xlu1 %6371, %v6166_v50   ;;  %2950 = vmatprep.subr.bf16.mxu1 %v2250_v19  ;;  %v6469_v54 = vpop.permute.xlu0 %6468  ;;  %v7023_v19 = vld [vmem:[%s10767_s3 + $0x10] sm:$0xff] }
 0x334   : > { %v6471_v59 = vunpack.i.h.bf16 %v6469_v54  ;;  %v6470_v38 = vunpack.i.l.bf16 %v6469_v54 }
 0x335   : > { %v1753_v63 = vpop.permute.xlu1 %1752 }
 0x336   : > { %4171 = vperm.xlu0 %6370, %v6157_v4   ;;  %v1756_v32 = vsel %vm744_vm0, %v6470_v38, %v1747_v22  ;;  %v2249_v29 = vsel %vm744_vm0, %v6471_v59, %v2240_v28  ;;  %v7173_v22 = vmov 3   ;;  %v7024_v38 = vld [vmem:[%s10767_s3 + $0x18] sm:$0xff] }
 0x337   : > { %4166 = vperm.xlu1 %6371, %v6156_v42   ;;  %v1755_v48 = vpop.permute.xlu0 %1754  ;;  %2845 = vmatpush1.bf16.msra.mxu0 %v1756_v32 }
 0x338   : > { %2951 = vmatpush1.bf16.msra.mxu1 %v2249_v29  ;;  %v1759_v33 = vsel %vm744_vm0, %v1753_v63, %v1755_v48 }
 0x339   : > { %v2246_v2 = vpop.permute.xlu1 %2245  ;;  %2846 = vmatprep.subr.bf16.mxu0 %v1759_v33 }
 0x33a   : > { %4688 = vperm.xlu0 %6370, %v6169_v6  }
 0x33b   : > { %4683 = vperm.xlu1 %6371, %v6168_v52   ;;  %v2248_v8 = vpop.permute.xlu0 %2247 }
 0x33c   : > { %v2252_v40 = vsel %vm744_vm0, %v2246_v2, %v2248_v8 }
 0x33d   : > { %v6474_v53 = vpop.permute.xlu1 %6473  ;;  %2952 = vmatprep.subr.bf16.mxu1 %v2252_v40 }
 0x33e   : > { %v6476_v34 = vunpack.i.h.bf16 %v6474_v53  ;;  %v6475_v3 = vunpack.i.l.bf16 %v6474_v53  ;;  %6517 = vset.pattern.permute.xlu0 %v7172_v14 }
 0x33f   : > { %v1797_v31 = vpop.permute.xlu0 %1796  ;;  %6518 = vset.pattern.permute.xlu1 %v7172_v14  ;;  %3181 = vperm.xlu0 %6517, %v7021_v25  }
 0x340   : > { %v1758_v47 = vsel %vm744_vm0, %v6475_v3, %v1753_v63  ;;  %v2251_v55 = vsel %vm744_vm0, %v6476_v34, %v2246_v2  ;;  %3185 = vperm.xlu1 %6518, %v7022_v61  }
 0x341   : > { %v6479_v0 = vpop.permute.xlu1 %6478  ;;  %2847 = vmatpush1.bf16.msra.mxu0 %v1758_v47  ;;  %2953 = vmatpush1.bf16.msra.mxu1 %v2251_v55 }
 0x342   : > { %2848 = vmatprep.subr.bf16.mxu0 %v8327_v30  ;;  %2954 = vmatprep.subr.bf16.mxu1 %v8345_v57  ;;  %v6481_v35 = vunpack.i.h.bf16 %v6479_v0  ;;  %v6480_v16 = vunpack.i.l.bf16 %v6479_v0 }
 0x343   : > { %v2290_v41 = vpop.permute.xlu0 %2289  ;;  %6528 = vrot.lane.b32.xlu0 %v10886_v21, %s7165_s15 }
 0x344   : > { %6519 = vset.pattern.permute.xlu1 %v7173_v22  ;;  %v1807_v43 = vsel %vm715_vm13, %v1797_v31, %v6480_v16 }
 0x345   : > { %v1795_v1 = vpop.permute.xlu1 %1794  ;;  %2849 = vmatpush1.bf16.msra.mxu0 %v8317_v60  ;;  %2955 = vmatpush1.bf16.msra.mxu1 %v8336_v27  ;;  %v2300_v60 = vsel %vm715_vm13, %v2290_v41, %v6481_v35 }
 0x346   : > { %2850 = vmatprep.subr.bf16.mxu0 %v8373_v62  ;;  %2956 = vmatprep.subr.bf16.mxu1 %v8385_v36  ;;  %v1806_v62 = vsel %vm715_vm13, %v1795_v1, %v1797_v31 }
 0x347   : > { %v2288_v30 = vpop.permute.xlu0 %2287  ;;  %3205 = vperm.xlu1 %6519, %v7021_v25   ;;  %6538 = vrot.lane.b32.xlu0 %v10886_v21, %s7168_s18 }
 0x348   : > { %v2299_v36 = vsel %vm715_vm13, %v2288_v30, %v2290_v41 }
 0x349   : > { %v1803_v57 = vpop.permute.xlu1 %1802  ;;  %2851 = vmatpush1.bf16.msra.mxu0 %v8363_v46  ;;  %2957 = vmatpush1.bf16.msra.mxu1 %v8378_v20 }
 0x34a   : > { %2852 = vmatprep.subr.bf16.mxu0 %v1807_v43  ;;  %2958 = vmatprep.subr.bf16.mxu1 %v2300_v60 }
 0x34b   : > { %v6484_v27 = vpop.permute.xlu0 %6483  ;;  %3209 = vperm.xlu1 %6519, %v7022_v61   ;;  %6548 = vrot.lane.b32.xlu0 %v10886_v21, %s7167_s16 }
 0x34c   : > { %v6486_v11 = vunpack.i.h.bf16 %v6484_v27  ;;  %v6485_v26 = vunpack.i.l.bf16 %v6484_v27 }
 0x34d   : > { %v2296_v46 = vpop.permute.xlu1 %2295  ;;  %2853 = vmatpush1.bf16.msra.mxu0 %v1806_v62  ;;  %2959 = vmatpush1.bf16.msra.mxu1 %v2299_v36 }
 0x34e   : > { %v1809_v20 = vsel %vm715_vm13, %v1803_v57, %v6485_v26  ;;  %v2302_v28 = vsel %vm715_vm13, %v2296_v46, %v6486_v11 }
 0x34f   : > { %v1801_v13 = vpop.permute.xlu0 %1800  ;;  %2854 = vmatprep.subr.bf16.mxu0 %v1809_v20  ;;  %2960 = vmatprep.subr.bf16.mxu1 %v2302_v28 }
 0x350   : > { %v1808_v50 = vsel %vm715_vm13, %v1801_v13, %v1803_v57  ;;  %6520 = vset.pattern.permute.xlu1 %v7172_v14  ;;  %6558 = vrot.lane.b32.xlu0 %v10886_v21, %s7170_s11 }
 0x351   : > { %v2294_v51 = vpop.permute.xlu1 %2293  ;;  %2855 = vmatpush1.bf16.msra.mxu0 %v1808_v50  ;;  %3189 = vperm.xlu1 %6520, %v7023_v19  }
 0x352   : > { %v2301_v54 = vsel %vm715_vm13, %v2294_v51, %v2296_v46 }
 0x353   : > { %2961 = vmatpush1.bf16.msra.mxu1 %v2301_v54 }
 0x354   : > { %v1839_v4 = vpop.permute.xlu0 %1838  ;;  %6563 = vrot.lane.b32.xlu0 %v10886_v21, %s7169_s19 }
 0x355   : > { %v6489_v59 = vpop.permute.xlu1 %6488  ;;  %3193 = vperm.xlu1 %6520, %v7024_v38  }
 0x356   : > { %v6491_v42 = vunpack.i.h.bf16 %v6489_v59  ;;  %v6490_v63 = vunpack.i.l.bf16 %v6489_v59 }
 0x358   : > { %v2332_v32 = vpop.permute.xlu0 %2331  ;;  %v1849_v29 = vsel %vm663_vm10, %v1839_v4, %v6490_v63  ;;  %6573 = vrot.lane.b32.xlu0 %v10886_v21, %s7166_s8 }
 0x359   : > { %v1837_v48 = vpop.permute.xlu1 %1836  ;;  %2856 = vmatprep.subr.bf16.mxu0 %v1849_v29  ;;  %v2342_v6 = vsel %vm663_vm10, %v2332_v32, %v6491_v42  ;;  %6521 = vset.pattern.permute.xlu1 %v7173_v22 }
 0x35a   : > { %v1848_v52 = vsel %vm663_vm10, %v1837_v48, %v1839_v4  ;;  %2962 = vmatprep.subr.bf16.mxu1 %v2342_v6  ;;  %3213 = vperm.xlu1 %6521, %v7023_v19  }
 0x35b   : > { %2857 = vmatpush1.bf16.msra.mxu0 %v1848_v52 }
 0x35c   : > { %v2330_v33 = vpop.permute.xlu0 %2329  ;;  %6583 = vrot.lane.b32.xlu0 %v10886_v21, %s7171_s14 }
 0x35d   : > { %v1845_v2 = vpop.permute.xlu1 %1844  ;;  %v2341_v8 = vsel %vm663_vm10, %v2330_v33, %v2332_v32 }
 0x35e   : > { %2963 = vmatpush1.bf16.msra.mxu1 %v2341_v8  ;;  %3217 = vperm.xlu1 %6521, %v7024_v38  }
 0x360   : > { %v6494_v40 = vpop.permute.xlu0 %6493  ;;  %6593 = vrot.lane.b32.xlu0 %v10886_v21, %s7164_s20 }
 0x361   : > { %v2338_v53 = vpop.permute.xlu1 %2337  ;;  %v6496_v34 = vunpack.i.h.bf16 %v6494_v40  ;;  %v6495_v3 = vunpack.i.l.bf16 %v6494_v40 }
 0x362   : > { %6523 = vrot.lane.b32.xlu1 %v10886_v21, %s7165_s15 }
 0x363   : > { %v1851_v14 = vsel %vm663_vm10, %v1845_v2, %v6495_v3  ;;  %v2344_v31 = vsel %vm663_vm10, %v2338_v53, %v6496_v34 }
 0x364   : > { %v1843_v25 = vpop.permute.xlu0 %1842  ;;  %2858 = vmatprep.subr.bf16.mxu0 %v1851_v14  ;;  %2964 = vmatprep.subr.bf16.mxu1 %v2344_v31 }
 0x365   : > { %v2336_v47 = vpop.permute.xlu1 %2335  ;;  %v1850_v55 = vsel %vm663_vm10, %v1843_v25, %v1845_v2  ;;  %6608 = vrot.lane.b32.xlu0 %v10886_v21, %s7165_s15 }
 0x366   : > { %v2343_v61 = vsel %vm663_vm10, %v2336_v47, %v2338_v53  ;;  %2859 = vmatpush1.bf16.msra.mxu0 %v1850_v55  ;;  %6533 = vrot.lane.b32.xlu1 %v10886_v21, %s7168_s18 }
 0x367   : > { %2965 = vmatpush1.bf16.msra.mxu1 %v2343_v61 }
 0x368   : > { %v1875_v0 = vpop.permute.xlu0 %1874 }
 0x369   : > { %v6499_v41 = vpop.permute.xlu1 %6498  ;;  %6618 = vrot.lane.b32.xlu0 %v10886_v21, %s7168_s18 }
 0x36a   : > { %v6501_v22 = vunpack.i.h.bf16 %v6499_v41  ;;  %v6500_v35 = vunpack.i.l.bf16 %v6499_v41  ;;  %6543 = vrot.lane.b32.xlu1 %v10886_v21, %s7167_s16 }
 0x36c   : > { %v2368_v16 = vpop.permute.xlu0 %2367  ;;  %v1885_v1 = vsel %vm889_vm15, %v1875_v0, %v6500_v35 }
 0x36d   : > { %v1873_v30 = vpop.permute.xlu1 %1872  ;;  %2860 = vmatprep.subr.bf16.mxu0 %v1885_v1  ;;  %v2378_v57 = vsel %vm889_vm15, %v2368_v16, %v6501_v22  ;;  %6628 = vrot.lane.b32.xlu0 %v10886_v21, %s7167_s16 }
 0x36e   : > { %v1884_v43 = vsel %vm889_vm15, %v1873_v30, %v1875_v0  ;;  %2966 = vmatprep.subr.bf16.mxu1 %v2378_v57  ;;  %6553 = vrot.lane.b32.xlu1 %v10886_v21, %s7170_s11 }
 0x36f   : > { %2861 = vmatpush1.bf16.msra.mxu0 %v1884_v43 }
 0x370   : > { %v2366_v60 = vpop.permute.xlu0 %2365 }
 0x371   : > { %v1881_v27 = vpop.permute.xlu1 %1880  ;;  %v2377_v62 = vsel %vm889_vm15, %v2366_v60, %v2368_v16  ;;  %6638 = vrot.lane.b32.xlu0 %v10886_v21, %s7170_s11 }
 0x372   : > { %2967 = vmatpush1.bf16.msra.mxu1 %v2377_v62  ;;  %6568 = vrot.lane.b32.xlu1 %v10886_v21, %s7169_s19 }
 0x374   : > { %v6504_v36 = vpop.permute.xlu0 %6503 }
 0x375   : > { %v2374_v11 = vpop.permute.xlu1 %2373  ;;  %v6506_v26 = vunpack.i.h.bf16 %v6504_v36  ;;  %v6505_v46 = vunpack.i.l.bf16 %v6504_v36  ;;  %6643 = vrot.lane.b32.xlu0 %v10886_v21, %s7169_s19 }
 0x376   : > { %6578 = vrot.lane.b32.xlu1 %v10886_v21, %s7166_s8 }
 0x377   : > { %v1887_v20 = vsel %vm889_vm15, %v1881_v27, %v6505_v46  ;;  %v2380_v28 = vsel %vm889_vm15, %v2374_v11, %v6506_v26 }
 0x378   : > { %v1879_v13 = vpop.permute.xlu0 %1878  ;;  %2862 = vmatprep.subr.bf16.mxu0 %v1887_v20  ;;  %2968 = vmatprep.subr.bf16.mxu1 %v2380_v28 }
 0x379   : > { %v2372_v50 = vpop.permute.xlu1 %2371  ;;  %v1886_v51 = vsel %vm889_vm15, %v1879_v13, %v1881_v27 }
 0x37a   : > { %v2379_v19 = vsel %vm889_vm15, %v2372_v50, %v2374_v11  ;;  %2863 = vmatpush1.bf16.msra.mxu0 %v1886_v51  ;;  %6588 = vrot.lane.b32.xlu1 %v10886_v21, %s7171_s14 }
 0x37b   : > { %2969 = vmatpush1.bf16.msra.mxu1 %v2379_v19 }
 0x37c   : > { %v1917_v54 = vpop.permute.xlu0 %1916 }
 0x37d   : > { %v6509_v4 = vpop.permute.xlu1 %6508  ;;  %2865 = vmatmul.mubr.bf16.vlgmr.msra.gmra.mrb[8].mxu0 %v8637_v15 }
 0x37e   : > { %v6511_v59 = vunpack.i.h.bf16 %v6509_v4  ;;  %v6510_v38 = vunpack.i.l.bf16 %v6509_v4  ;;  %2971 = vmatmul.mubr.bf16.vlgmr.msra.gmra.mrb[8].mxu1 %v8637_v15  ;;  %2874 = vmatprep.mubr.bf16.mxu0 %v8651_v37 }
 0x37f   : > { %2980 = vmatprep.mubr.bf16.mxu1 %v8651_v37  ;;  %6598 = vrot.lane.b32.xlu1 %v10886_v21, %s7164_s20 }
 0x380   : > { %v2410_v42 = vpop.permute.xlu0 %2409  ;;  %v1927_v63 = vsel %vm546_vm7, %v1917_v54, %v6510_v38 }
 0x381   : > { %v1915_v32 = vpop.permute.xlu1 %1914  ;;  %2885 = vmatprep.subr.bf16.mxu0 %v1927_v63  ;;  %v2420_v29 = vsel %vm546_vm7, %v2410_v42, %v6511_v59 }
 0x382   : > { %v1926_v48 = vsel %vm546_vm7, %v1915_v32, %v1917_v54  ;;  %2991 = vmatprep.subr.bf16.mxu1 %v2420_v29 }
 0x383   : > { %2886 = vmatpush1.bf16.msra.mxu0 %v1926_v48  ;;  %6603 = vrot.lane.b32.xlu1 %v10886_v21, %s7165_s15 }
 0x384   : > { %v2408_v15 = vpop.permute.xlu0 %2407 }
 0x385   : > { %v1923_v6 = vpop.permute.xlu1 %1922  ;;  %v2419_v37 = vsel %vm546_vm7, %v2408_v15, %v2410_v42  ;;  %2875 = vmatmul.mubr.bf16.gmra.mrb[12].mxu0 %v8667_v17 }
 0x386   : > { %2992 = vmatpush1.bf16.msra.mxu1 %v2419_v37  ;;  %2917 = vmatprep.mubr.bf16.mxu0 %v10886_v21 }
 0x387   : > { %2981 = vmatmul.mubr.bf16.gmra.mrb[12].mxu1 %v8667_v17  ;;  %6613 = vrot.lane.b32.xlu1 %v10886_v21, %s7168_s18 }
 0x388   : > { %v6514_v52 = vpop.permute.xlu0 %6513  ;;  %3023 = vmatprep.mubr.bf16.mxu1 %v10886_v21 }
 0x389   : > { %v2416_v33 = vpop.permute.xlu1 %2415  ;;  %v6516_v2 = vunpack.i.h.bf16 %v6514_v52  ;;  %v6515_v8 = vunpack.i.l.bf16 %v6514_v52 }
 0x38b   : > { %v1929_v40 = vsel %vm546_vm7, %v1923_v6, %v6515_v8  ;;  %v2422_v53 = vsel %vm546_vm7, %v2416_v33, %v6516_v2  ;;  %6623 = vrot.lane.b32.xlu1 %v10886_v21, %s7167_s16 }
 0x38c   : > { %v1921_v34 = vpop.permute.xlu0 %1920  ;;  %2887 = vmatprep.subr.bf16.mxu0 %v1929_v40  ;;  %2993 = vmatprep.subr.bf16.mxu1 %v2422_v53 }
 0x38d   : > { %v2414_v17 = vpop.permute.xlu1 %2413  ;;  %v1928_v3 = vsel %vm546_vm7, %v1921_v34, %v1923_v6 }
 0x38e   : > { %v2421_v14 = vsel %vm546_vm7, %v2414_v17, %v2416_v33  ;;  %2888 = vmatpush1.bf16.msra.mxu0 %v1928_v3 }
 0x38f   : > { %2994 = vmatpush1.bf16.msra.mxu1 %v2421_v14  ;;  %6633 = vrot.lane.b32.xlu1 %v10886_v21, %s7170_s11 }
 0x391   : > { %6130 = vmatmul.mubr.msk.bf16.vlgmr.msra.gmra.mrb[8].mxu0 %vm2613_vm2, %v8695_v56 }
 0x392   : > { %6132 = vmatmul.mubr.msk.bf16.vlgmr.msra.gmra.mrb[8].mxu1 %vm2613_vm2, %v8695_v56  ;;  %2927 = vmatprep.mubr.bf16.mxu0 %v10886_v21 }
 0x393   : > { %3033 = vmatprep.mubr.bf16.mxu1 %v10886_v21 }
 0x399   : > { %6131 = vmatmul.mubr.msk.bf16.gmra.mrb[12].mxu0 %vm2613_vm2, %v8722_v5 }
 0x39a   : > { %6133 = vmatmul.mubr.msk.bf16.gmra.mrb[12].mxu1 %vm2613_vm2, %v8722_v5  ;;  %vm10935_vm2 = vcmp.ne.s16.totalorder %v7937_v24, 0 }
 0x39b   : > { %vm10938_vm1 = vmmov %vm10935_vm2 }
 0x39d   : > { %v3091_v25 = vpop.permute.xlu0 %3090 }
 0x39e   : > { %v3096_v31 = vpop.permute.xlu1 %3095 }
 0x3a1   : > { %v3645_v61 = vpop.permute.xlu0 %3644 }
 0x3a2   : > { %v3640_v47 = vpop.permute.xlu1 %3639 }
 0x3a5   : > { %v3106_v20 = vpop.permute.xlu0 %3105 }
 0x3a6   : > { %v3101_v62 = vpop.permute.xlu1 %3100 }
 0x3a9   : > { %v3655_v6 = vpop.permute.xlu0 %3654 }
 0x3aa   : > { %v3650_v32 = vpop.permute.xlu1 %3649 }
 0x3ae   : > { %v4162_v17 = vpop.permute.xlu1 %4161 }
 0x3b2   : > { %v4674_v3 = vpop.permute.xlu1 %4673 }
 0x3b6   : > { %v9011_v14 = vpop.permute.xlu1 %4166 }
 0x3c3   : > { %v2707_v55 = vpop.f32.mrb[0].mxu0 }
 0x3c4   : > { %v8961_v0 = vadd.f32 %v3091_v25, %v2707_v55  ;;  %v2709_v41 = vpop.f32.mrb[1].mxu0  ;;  %v4157_v55 = vpop.permute.xlu0 %4156 }
 0x3c5   : > { %v2813_v22 = vpop.f32.mrb[0].mxu1  ;;  %v8963_v56 = vadd.f32 %v3091_v25, %v2709_v41  ;;  %v2711_v35 = vpop.f32.mrb[2].mxu0 }
 0x3c6   : > { %v8965_v16 = vadd.f32 %v3640_v47, %v2813_v22  ;;  %v2815_v1 = vpop.f32.mrb[1].mxu1  ;;  %v2713_v30 = vpop.f32.mrb[3].mxu0  ;;  %v8975_v11 = vadd.f32 %v3096_v31, %v2711_v35 }
 0x3c7   : > { %v3116_v57 = vadd.f32 %v8963_v56, %v8961_v0  ;;  %v8969_v5 = vadd.f32 %v3640_v47, %v2815_v1  ;;  %v2817_v43 = vpop.f32.mrb[2].mxu1  ;;  %v8977_v26 = vadd.f32 %v3096_v31, %v2713_v30  ;;  %v9015_v31 = vpop.permute.xlu1 %4683 }
 0x3c8   : > { %v8971_v60 = vadd.f32 %v3645_v61, %v2817_v43  ;;  %v2819_v27 = vpop.f32.mrb[3].mxu1  ;;  %v4679_v41 = vpop.permute.xlu0 %4678 }
 0x3c9   : > { %v3665_v36 = vadd.f32 %v8969_v5, %v8965_v16  ;;  %v8979_v46 = vadd.f32 %v3645_v61, %v2819_v27  ;;  %3117 = vadd.xlane.f32.xlu1 %v3116_v57  ;;  %v3119_v19 = vadd.f32 %v8977_v26, %v8975_v11 }
 0x3cb   : > { %v3668_v28 = vadd.f32 %v8979_v46, %v8971_v60  ;;  %3666 = vadd.xlane.f32.xlu0 %v3665_v36  ;;  %v2717_v13 = vpop.f32.mrb[4].mxu0  ;;  %v9017_v25 = vpop.permute.xlu1 %3185 }
 0x3cc   : > { %v8983_v50 = vadd.f32 %v3101_v62, %v2717_v13  ;;  %v2719_v51 = vpop.f32.mrb[5].mxu0  ;;  %v9025_v35 = vpop.permute.xlu0 %4171 }
 0x3cd   : > { %v2823_v54 = vpop.f32.mrb[4].mxu1  ;;  %v8987_v4 = vadd.f32 %v3101_v62, %v2719_v51  ;;  %3669 = vadd.xlane.f32.xlu1 %v3668_v28  ;;  %v2721_v59 = vpop.f32.mrb[6].mxu0 }
 0x3ce   : > { %v2825_v38 = vpop.f32.mrb[5].mxu1  ;;  %v8989_v42 = vadd.f32 %v3106_v20, %v2721_v59  ;;  %v2723_v63 = vpop.f32.mrb[7].mxu0  ;;  %v8995_v37 = vadd.f32 %v3650_v32, %v2823_v54 }
 0x3cf   : > { %v3122_v29 = vadd.f32 %v8987_v4, %v8983_v50  ;;  %v2827_v48 = vpop.f32.mrb[6].mxu1  ;;  %3120 = vadd.xlane.f32.xlu0 %v3119_v19  ;;  %v8993_v15 = vadd.f32 %v3106_v20, %v2723_v63  ;;  %v8997_v33 = vadd.f32 %v3650_v32, %v2825_v38  ;;  %v9019_v47 = vpop.permute.xlu1 %3205 }
 0x3d0   : > { %v2829_v52 = vpop.f32.mrb[7].mxu1  ;;  %v8999_v2 = vadd.f32 %v3655_v6, %v2827_v48  ;;  %v9029_v30 = vpop.permute.xlu0 %4688 }
 0x3d1   : > { %v3125_v8 = vadd.f32 %v8993_v15, %v8989_v42  ;;  %v9003_v40 = vadd.f32 %v3655_v6, %v2829_v52  ;;  %v3671_v53 = vadd.f32 %v8997_v33, %v8995_v37 }
 0x3d3   : > { %3123 = vadd.xlane.f32.xlu0 %v3122_v29  ;;  %3126 = vadd.xlane.f32.xlu1 %v3125_v8  ;;  %v3674_v34 = vadd.f32 %v9003_v40, %v8999_v2  ;;  %v9021_v61 = vpop.permute.xlu1 %3209 }
 0x3d4   : > { %v9031_v57 = vpop.permute.xlu0 %3181 }
 0x3d7   : > { %3672 = vadd.xlane.f32.xlu0 %v3671_v53  ;;  %3675 = vadd.xlane.f32.xlu1 %v3674_v34  ;;  %v9023_v22 = vpop.permute.xlu1 %3189 }
 0x3d8   : > { %v9035_v27 = vpop.permute.xlu0 %6528 }
 0x3d9   : > { %10906 = vst [vmem:[#allocation15_spill] sm:$0xff] %v9035_v27 }
 0x3db   : > { %v9027_v1 = vpop.permute.xlu1 %3193 }
 0x3dc   : > { %v9039_v36 = vpop.permute.xlu0 %6538 }
 0x3dd   : > { %10907 = vst [vmem:[#allocation12_spill] sm:$0xff] %v9039_v36 }
 0x3df   : > { %v9033_v43 = vpop.permute.xlu1 %3213 }
 0x3e0   : > { %v9043_v28 = vpop.permute.xlu0 %6548  ;;  %v11004_v58 = vld [vmem:[#allocation15_spill] sm:$0xff] }
 0x3e1   : > { %10909 = vst [vmem:[#allocation11_spill] sm:$0xff] %v9043_v28 }
 0x3e3   : > { %v9037_v62 = vpop.permute.xlu1 %3217 }
 0x3e4   : > { %v9047_v51 = vpop.permute.xlu0 %6558 }
 0x3e5   : > { %10911 = vst [vmem:[#allocation19_spill] sm:$0xff] %v9047_v51 }
 0x3e7   : > { %v9041_v20 = vpop.permute.xlu1 %6523 }
 0x3e8   : > { %6648 = vrot.lane.b32.xlu1 %v10886_v21, %s7169_s19  ;;  %10908 = vst [vmem:[#allocation13_spill] sm:$0xff] %v9041_v20  ;;  %v9051_v54 = vpop.permute.xlu0 %6563 }
 0x3e9   : > { %10913 = vst [vmem:[#allocation14_spill] sm:$0xff] %v9051_v54 }
 0x3eb   : > { %v9045_v13 = vpop.permute.xlu1 %6533 }
 0x3ec   : > { %10910 = vst [vmem:[#allocation18_spill] sm:$0xff] %v9045_v13  ;;  %v9055_v38 = vpop.permute.xlu0 %6573 }
 0x3ed   : > { %6653 = vrot.lane.b32.xlu0 %v10886_v21, %s7166_s8  ;;  %10915 = vst [vmem:[#allocation27_spill] sm:$0xff] %v9055_v38 }
 0x3ef   : > { %v9049_v19 = vpop.permute.xlu1 %6543 }
 0x3f0   : > { %10912 = vst [vmem:[#allocation17_spill] sm:$0xff] %v9049_v19  ;;  %v9059_v32 = vpop.permute.xlu0 %6583 }
 0x3f1   : > { %10917 = vst [vmem:[#allocation29_spill] sm:$0xff] %v9059_v32 }
 0x3f3   : > { %v9053_v59 = vpop.permute.xlu1 %6553 }
 0x3f4   : > { %10914 = vst [vmem:[#allocation16_spill] sm:$0xff] %v9053_v59  ;;  %v9063_v48 = vpop.permute.xlu0 %6593 }
 0x3f5   : > { %10919 = vst [vmem:[#allocation31_spill] sm:$0xff] %v9063_v48 }
 0x3f7   : > { %v9057_v63 = vpop.permute.xlu1 %6568 }
 0x3f8   : > { %10916 = vst [vmem:[#allocation28_spill] sm:$0xff] %v9057_v63  ;;  %v9067_v52 = vpop.permute.xlu0 %6608 }
 0x3f9   : > { %10921 = vst [vmem:[#allocation33_spill] sm:$0xff] %v9067_v52 }
 0x3fb   : > { %v9061_v29 = vpop.permute.xlu1 %6578 }
 0x3fc   : > { %10918 = vst [vmem:[#allocation30_spill] sm:$0xff] %v9061_v29  ;;  %v9071_v53 = vpop.permute.xlu0 %6618 }
 0x3fd   : > { %10923 = vst [vmem:[#allocation35_spill] sm:$0xff] %v9071_v53 }
 0x3ff   : > { %v9065_v6 = vpop.permute.xlu1 %6588 }
 0x400   : > { %10920 = vst [vmem:[#allocation32_spill] sm:$0xff] %v9065_v6  ;;  %v9075_v54 = vpop.permute.xlu0 %6628 }
 0x401   : > { %10925 = vst [vmem:[#allocation37_spill] sm:$0xff] %v9075_v54 }
 0x403   : > { %v9069_v8 = vpop.permute.xlu1 %6598 }
 0x404   : > { %10922 = vst [vmem:[#allocation34_spill] sm:$0xff] %v9069_v8  ;;  %v9079_v63 = vpop.permute.xlu0 %6638 }
 0x405   : > { %10927 = vst [vmem:[#allocation39_spill] sm:$0xff] %v9079_v63 }
 0x407   : > { %v9073_v34 = vpop.permute.xlu1 %6603 }
 0x408   : > { %10924 = vst [vmem:[#allocation36_spill] sm:$0xff] %v9073_v34  ;;  %v9083_v29 = vpop.permute.xlu0 %6643 }
 0x409   : > { %10929 = vst [vmem:[#allocation41_spill] sm:$0xff] %v9083_v29 }
 0x40b   : > { %v9077_v38 = vpop.permute.xlu1 %6613 }
 0x40c   : > { %10926 = vst [vmem:[#allocation38_spill] sm:$0xff] %v9077_v38 }
 0x40f   : > { %v9081_v32 = vpop.permute.xlu1 %6623 }
 0x410   : > { %10928 = vst [vmem:[#allocation40_spill] sm:$0xff] %v9081_v32 }
 0x413   : > { %v9085_v48 = vpop.permute.xlu1 %6633 }
 0x414   : > { %10930 = vst [vmem:[#allocation42_spill] sm:$0xff] %v9085_v48 }
 0x456   : > { %v3118_v51 = vpop.xlane.xlu1 %3117 }
 0x458   : > { %v3667_v6 = vpop.xlane.xlu0 %3666 }
 0x45c   : > { %v3121_v13 = vpop.xlane.xlu0 %3120 }
 0x45d   : > { %v3129_v10 = vmul.f32 0.00390625, %v3121_v13 }
 0x464   : > { %v2919_v52 = vpop.f32.mrb[8].mxu0 }
 0x465   : > { %v3025_v8 = vpop.f32.mrb[8].mxu1  ;;  %v9087_v59 = vadd.f32 %v4157_v55, %v2919_v52  ;;  %v2921_v34 = vpop.f32.mrb[9].mxu0  ;;  %v3677_v52 = vmul.f32 0.00390625, %v3667_v6 }
 0x466   : > { %v3027_v53 = vpop.f32.mrb[9].mxu1  ;;  %v9089_v28 = vadd.f32 %v4157_v55, %v2921_v34  ;;  %v2923_v54 = vpop.f32.mrb[10].mxu0  ;;  %v9091_v19 = vadd.f32 %v4674_v3, %v3025_v8 }
 0x467   : > { %v3029_v38 = vpop.f32.mrb[10].mxu1  ;;  %v9093_v63 = vadd.f32 %v4674_v3, %v3027_v53  ;;  %v2925_v32 = vpop.f32.mrb[11].mxu0  ;;  %v9097_v36 = vadd.f32 %v4162_v17, %v2923_v54  ;;  %v9116_v9 = vsub.f32 %v8965_v16, %v3677_v52 }
 0x468   : > { %v3031_v29 = vpop.f32.mrb[11].mxu1  ;;  %v4182_v48 = vadd.f32 %v9089_v28, %v9087_v59  ;;  %v9099_v27 = vadd.f32 %v4162_v17, %v2925_v32  ;;  %v3670_v55 = vpop.xlane.xlu1 %3669  ;;  %v9103_v21 = vadd.f32 %v4679_v41, %v3029_v38  ;;  %v3128_v17 = vmul.f32 0.00390625, %v3118_v51 }
 0x469   : > { %v4699_v34 = vadd.f32 %v9093_v63, %v9091_v19  ;;  %v9107_v53 = vadd.f32 %v4679_v41, %v3031_v29  ;;  %v3124_v51 = vpop.xlane.xlu0 %3123 }
 0x46a   : > { %4183 = vadd.xlane.f32.xlu0 %v4182_v48  ;;  %v4185_v3 = vadd.f32 %v9099_v27, %v9097_v36  ;;  %v9141_v13 = vsub.f32 %v8963_v56, %v3128_v17  ;;  %v9153_v56 = vsub.f32 %v8977_v26, %v3129_v10 }
 0x46c   : > { %v2929_v8 = vpop.f32.mrb[12].mxu0  ;;  %4186 = vadd.xlane.f32.xlu1 %v4185_v3  ;;  %v4702_v3 = vadd.f32 %v9107_v53, %v9103_v21 }
 0x46d   : > { %v3035_v20 = vpop.f32.mrb[12].mxu1  ;;  %v9110_v54 = vadd.f32 %v9011_v14, %v2929_v8  ;;  %v2931_v6 = vpop.f32.mrb[13].mxu0  ;;  %v9122_v8 = vsub.f32 %v8969_v5, %v3677_v52  ;;  %v9138_v5 = vsub.f32 %v8961_v0, %v3128_v17  ;;  %v3678_v52 = vmul.f32 0.00390625, %v3670_v55 }
 0x46e   : > { %v9113_v32 = vadd.f32 %v9011_v14, %v2931_v6  ;;  %v3037_v48 = vpop.f32.mrb[13].mxu1  ;;  %v2933_v39 = vpop.f32.mrb[14].mxu0  ;;  %4700 = vadd.xlane.f32.xlu0 %v4699_v34  ;;  %v9132_v34 = vadd.f32 %v9015_v31, %v3035_v20  ;;  %v3130_v0 = vmul.f32 0.00390625, %v3124_v51 }
 0x46f   : > { %v3039_v38 = vpop.f32.mrb[14].mxu1  ;;  %v9119_v41 = vadd.f32 %v9025_v35, %v2933_v39  ;;  %v2935_v29 = vpop.f32.mrb[15].mxu0  ;;  %v9135_v39 = vadd.f32 %v9015_v31, %v3037_v48  ;;  %v3690_v20 = vmul.f32 %v9122_v8, %v9122_v8  ;;  %v9150_v31 = vsub.f32 %v8975_v11, %v3129_v10 }
 0x470   : > { %v4188_v14 = vadd.f32 %v9113_v32, %v9110_v54  ;;  %v9127_v6 = vadd.f32 %v9025_v35, %v2935_v29  ;;  %v3041_v16 = vpop.f32.mrb[15].mxu1  ;;  %4703 = vadd.xlane.f32.xlu1 %v4702_v3  ;;  %v3689_v29 = vmul.f32 %v9116_v9, %v9116_v9  ;;  %v3127_v48 = vpop.xlane.xlu1 %3126  ;;  %v9158_v17 = vadd.f32 %v9029_v30, %v3039_v38 }
 0x471   : > { %v4705_v55 = vadd.f32 %v9135_v39, %v9132_v34  ;;  %v3140_v3 = vmul.f32 %v9138_v5, %v9138_v5  ;;  %v3673_v7 = vpop.xlane.xlu0 %3672  ;;  %v3141_v11 = vmul.f32 %v9141_v13, %v9141_v13  ;;  %v9168_v51 = vsub.f32 %v8971_v60, %v3678_v52 }
 0x472   : > { %v4191_v35 = vadd.f32 %v9127_v6, %v9119_v41  ;;  %4189 = vadd.xlane.f32.xlu0 %v4188_v14  ;;  %v9161_v14 = vadd.f32 %v9029_v30, %v3041_v16  ;;  %v9171_v10 = vsub.f32 %v8979_v46, %v3678_v52  ;;  %v9174_v26 = vsub.f32 %v8983_v50, %v3130_v0 }
 0x473   : > { %v9177_v30 = vsub.f32 %v8987_v4, %v3130_v0  ;;  %v3131_v38 = vmul.f32 0.00390625, %v3127_v48  ;;  %v3697_v16 = vadd.f32 %v3690_v20, %v3689_v29  ;;  %v3142_v18 = vmul.f32 %v9150_v31, %v9150_v31 }
 0x474   : > { %4192 = vadd.xlane.f32.xlu1 %v4191_v35  ;;  %v3143_v60 = vmul.f32 %v9153_v56, %v9153_v56  ;;  %v3679_v49 = vmul.f32 0.00390625, %v3673_v7  ;;  %v4708_v46 = vadd.f32 %v9161_v14, %v9158_v17  ;;  %v3676_v52 = vpop.xlane.xlu1 %3675  ;;  %v3691_v50 = vmul.f32 %v9168_v51, %v9168_v51 }
 0x475   : > { %v3692_v4 = vmul.f32 %v9171_v10, %v9171_v10  ;;  %v3148_v35 = vadd.f32 %v3141_v11, %v3140_v3  ;;  %v3144_v29 = vmul.f32 %v9174_v26, %v9174_v26  ;;  %v3145_v20 = vmul.f32 %v9177_v30, %v9177_v30 }
 0x476   : > { %4706 = vadd.xlane.f32.xlu0 %v4705_v55  ;;  %v9194_v7 = vsub.f32 %v8989_v42, %v3131_v38  ;;  %v9197_v0 = vsub.f32 %v8993_v15, %v3131_v38  ;;  %v9200_v48 = vsub.f32 %v8995_v37, %v3679_v49  ;;  %v9203_v55 = vsub.f32 %v8997_v33, %v3679_v49 }
 0x477   : > { %v3151_v3 = vadd.f32 %v3143_v60, %v3142_v18  ;;  %v3154_v12 = vadd.f32 %v3145_v20, %v3144_v29 }
 0x478   : > { %4709 = vadd.xlane.f32.xlu1 %v4708_v46  ;;  %v3146_v11 = vmul.f32 %v9194_v7, %v9194_v7  ;;  %v3147_v42 = vmul.f32 %v9197_v0, %v9197_v0  ;;  %v3700_v46 = vadd.f32 %v3692_v4, %v3691_v50  ;;  %v3693_v15 = vmul.f32 %v9200_v48, %v9200_v48  ;;  %v9223_v4 = vpop.permute.xlu0 %6653 }
 0x479   : > { %v3694_v37 = vmul.f32 %v9203_v55, %v9203_v55  ;;  %10931 = vst [vmem:[#allocation43_spill] sm:$0xff] %v9223_v4 }
 0x47a   : > { %3698 = vadd.xlane.f32.xlu0 %v3697_v16  ;;  %v3680_v16 = vmul.f32 0.00390625, %v3676_v52  ;;  %v3157_v60 = vadd.f32 %v3147_v42, %v3146_v11 }
 0x47b   : > { %v3703_v52 = vadd.f32 %v3694_v37, %v3693_v15 }
 0x47c   : > { %3149 = vadd.xlane.f32.xlu1 %v3148_v35  ;;  %v9214_v49 = vsub.f32 %v8999_v2, %v3680_v16  ;;  %v9217_v18 = vsub.f32 %v9003_v40, %v3680_v16  ;;  %v9225_v2 = vpop.permute.xlu1 %6648 }
 0x47d   : > { %10932 = vst [vmem:[#allocation44_spill] sm:$0xff] %v9225_v2 }
 0x47e   : > { %3152 = vadd.xlane.f32.xlu0 %v3151_v3  ;;  %v3695_v33 = vmul.f32 %v9214_v49, %v9214_v49  ;;  %v3696_v38 = vmul.f32 %v9217_v18, %v9217_v18 }
 0x480   : > { %3701 = vadd.xlane.f32.xlu1 %v3700_v46  ;;  %v3706_v50 = vadd.f32 %v3696_v38, %v3695_v33 }
 0x482   : > { %3155 = vadd.xlane.f32.xlu0 %v3154_v12 }
 0x484   : > { %3158 = vadd.xlane.f32.xlu1 %v3157_v60 }
 0x486   : > { %3704 = vadd.xlane.f32.xlu0 %v3703_v52 }
 0x488   : > { %3707 = vadd.xlane.f32.xlu1 %v3706_v50 }
 0x4f7   : > { %v4184_v40 = vpop.xlane.xlu0 %4183 }
 0x4f8   : > { %v4194_v35 = vmul.f32 0.00390625, %v4184_v40 }
 0x4f9   : > { %v4187_v20 = vpop.xlane.xlu1 %4186 }
 0x4fa   : > { %v9228_v12 = vsub.f32 %v9087_v59, %v4194_v35  ;;  %v9231_v29 = vsub.f32 %v9089_v28, %v4194_v35  ;;  %v4195_v42 = vmul.f32 0.00390625, %v4187_v20 }
 0x4fb   : > { %v4701_v16 = vpop.xlane.xlu0 %4700 }
 0x4fc   : > { %v4206_v3 = vmul.f32 %v9228_v12, %v9228_v12  ;;  %v4207_v11 = vmul.f32 %v9231_v29, %v9231_v29  ;;  %v4711_v46 = vmul.f32 0.00390625, %v4701_v16  ;;  %v9238_v15 = vsub.f32 %v9097_v36, %v4195_v42 }
 0x4fd   : > { %v9241_v37 = vsub.f32 %v9099_v27, %v4195_v42  ;;  %v4704_v33 = vpop.xlane.xlu1 %4703 }
 0x4fe   : > { %v9244_v59 = vsub.f32 %v9091_v19, %v4711_v46  ;;  %v9247_v28 = vsub.f32 %v9093_v63, %v4711_v46  ;;  %v4214_v60 = vadd.f32 %v4207_v11, %v4206_v3  ;;  %v4208_v52 = vmul.f32 %v9238_v15, %v9238_v15 }
 0x4ff   : > { %v4190_v38 = vpop.xlane.xlu0 %4189  ;;  %v4209_v50 = vmul.f32 %v9241_v37, %v9241_v37  ;;  %v4712_v19 = vmul.f32 0.00390625, %v4704_v33 }
 0x500   : > { %v4723_v36 = vmul.f32 %v9244_v59, %v9244_v59  ;;  %v4724_v27 = vmul.f32 %v9247_v28, %v9247_v28  ;;  %v4196_v40 = vmul.f32 0.00390625, %v4190_v38  ;;  %4215 = vadd.xlane.f32.xlu1 %v4214_v60 }
 0x501   : > { %v9258_v35 = vsub.f32 %v9103_v21, %v4712_v19  ;;  %v9261_v20 = vsub.f32 %v9107_v53, %v4712_v19  ;;  %v4193_v11 = vpop.xlane.xlu1 %4192  ;;  %v4217_v33 = vadd.f32 %v4209_v50, %v4208_v52 }
 0x502   : > { %v4731_v63 = vadd.f32 %v4724_v27, %v4723_v36  ;;  %v9264_v16 = vsub.f32 %v9110_v54, %v4196_v40  ;;  %v9267_v3 = vsub.f32 %v9113_v32, %v4196_v40  ;;  %v4197_v46 = vmul.f32 0.00390625, %v4193_v11 }
 0x503   : > { %v4707_v42 = vpop.xlane.xlu0 %4706  ;;  %v4725_v38 = vmul.f32 %v9258_v35, %v9258_v35  ;;  %v4726_v21 = vmul.f32 %v9261_v20, %v9261_v20 }
 0x504   : > { %10933 = vst [vmem:[#allocation45_spill] sm:$0xff] %v9267_v3  ;;  %v4713_v4 = vmul.f32 0.00390625, %v4707_v42  ;;  %4732 = vadd.xlane.f32.xlu0 %v4731_v63  ;;  %v4210_v53 = vmul.f32 %v9264_v16, %v9264_v16  ;;  %v4211_v54 = vmul.f32 %v9267_v3, %v9267_v3  ;;  %v9278_v32 = vsub.f32 %v9119_v41, %v4197_v46 }
 0x505   : > { %v9281_v60 = vsub.f32 %v9127_v6, %v4197_v46  ;;  %v4710_v36 = vpop.xlane.xlu1 %4709 }
 0x506   : > { %v9284_v52 = vsub.f32 %v9132_v34, %v4713_v4  ;;  %v9287_v50 = vsub.f32 %v9135_v39, %v4713_v4  ;;  %v4220_v19 = vadd.f32 %v4211_v54, %v4210_v53  ;;  %v4212_v41 = vmul.f32 %v9278_v32, %v9278_v32 }
 0x507   : > { %v3699_v27 = vpop.xlane.xlu0 %3698  ;;  %v4213_v6 = vmul.f32 %v9281_v60, %v9281_v60  ;;  %v4714_v34 = vmul.f32 0.00390625, %v4710_v36  ;;  %v4734_v39 = vadd.f32 %v4726_v21, %v4725_v38 }
 0x508   : > { %10934 = vst [vmem:[#allocation46_spill] sm:$0xff] %v9287_v50  ;;  %v4727_v40 = vmul.f32 %v9284_v52, %v9284_v52  ;;  %v4728_v63 = vmul.f32 %v9287_v50, %v9287_v50  ;;  %4218 = vadd.xlane.f32.xlu0 %v4217_v33  ;;  %v3709_v11 = vmul.f32 0.00390625, %v3699_v27  ;;  %4221 = vadd.xlane.f32.xlu1 %v4220_v19 }
 0x509   : > { %v9298_v42 = vsub.f32 %v9158_v17, %v4714_v34  ;;  %v9301_v46 = vsub.f32 %v9161_v14, %v4714_v34  ;;  %v3150_v54 = vpop.xlane.xlu1 %3149  ;;  %v4223_v3 = vadd.f32 %v4213_v6, %v4212_v41 }
 0x50a   : > { %v4737_v4 = vadd.f32 %v4728_v63, %v4727_v40  ;;  %v3713_v53 = vadd.f32 1e-05, %v3709_v11  ;;  %v3160_v2 = vmul.f32 0.00390625, %v3150_v54 }
 0x50b   : > { %v3153_v33 = vpop.xlane.xlu0 %3152  ;;  %v4729_v36 = vmul.f32 %v9298_v42, %v9298_v42  ;;  %v4730_v38 = vmul.f32 %v9301_v46, %v9301_v46 }
 0x50c   : > { %v3161_v50 = vmul.f32 0.00390625, %v3153_v33  ;;  %4735 = vadd.xlane.f32.xlu0 %v4734_v39  ;;  %6860 = vrsqrt.f32 %v3713_v53  ;;  %4738 = vadd.xlane.f32.xlu1 %v4737_v4  ;;  %v3164_v17 = vadd.f32 1e-05, %v3160_v2 }
 0x50d   : > { %v3702_v27 = vpop.xlane.xlu1 %3701  ;;  %v4740_v40 = vadd.f32 %v4730_v38, %v4729_v36 }
 0x50e   : > { %v3165_v21 = vadd.f32 1e-05, %v3161_v50  ;;  %6862 = vrsqrt.f32 %v3164_v17  ;;  %v3710_v14 = vmul.f32 0.00390625, %v3702_v27 }
 0x50f   : > { %v3156_v4 = vpop.xlane.xlu0 %3155 }
 0x510   : > { %4224 = vadd.xlane.f32.xlu0 %v4223_v3  ;;  %6864 = vrsqrt.f32 %v3165_v21  ;;  %v3714_v19 = vadd.f32 1e-05, %v3710_v14 }
 0x511   : > { %v3159_v33 = vpop.xlane.xlu1 %3158 }
 0x512   : > { %6866 = vrsqrt.f32 %v3714_v19 }
 0x514   : > { %4741 = vadd.xlane.f32.xlu0 %v4740_v40 }
 0x516   : > { %v6861_v63 = vpop.eup %6860 }
 0x517   : > { %v3721_v41 = vmul.f32 %v6861_v63, %v9116_v9  ;;  %v3722_v6 = vmul.f32 %v6861_v63, %v9122_v8 }
 0x518   : > { %v6863_v34 = vpop.eup %6862 }
 0x519   : > { %v3729_v11 = vmul.f32 %v3721_v41, %v9031_v57  ;;  %v3730_v2 = vmul.f32 %v3722_v6, %v9031_v57  ;;  %v3172_v39 = vmul.f32 %v6863_v34, %v9138_v5  ;;  %v3173_v3 = vmul.f32 %v6863_v34, %v9141_v13 }
 0x51a   : > { %v6865_v50 = vpop.eup %6864 }
 0x51b   : > { %v9314_v53 = vadd.f32 %v3729_v11, %v9019_v47  ;;  %v9317_v54 = vadd.f32 %v3730_v2, %v9019_v47  ;;  %v3174_v9 = vmul.f32 %v6865_v50, %v9150_v31  ;;  %v3175_v8 = vmul.f32 %v6865_v50, %v9153_v56  ;;  %v3705_v11 = vpop.xlane.xlu0 %3704 }
 0x51c   : > { %v3196_v36 = vmul.f32 %v9031_v57, %v3172_v39  ;;  %v3197_v38 = vmul.f32 %v9031_v57, %v3173_v3  ;;  %v6867_v17 = vpop.eup %6866  ;;  %v3162_v50 = vmul.f32 0.00390625, %v3156_v4  ;;  %v3708_v39 = vpop.xlane.xlu1 %3707 }
 0x51d   : > { %v6146_v5 = vmul.f32 -1.442695, %v9314_v53  ;;  %v6147_v13 = vmul.f32 -1.442695, %v9317_v54  ;;  %v3198_v21 = vmul.f32 %v9017_v25, %v3174_v9  ;;  %v3199_v27 = vmul.f32 %v9017_v25, %v3175_v8 }
 0x51e   : > { %v9328_v14 = vadd.f32 %v9019_v47, %v3196_v36  ;;  %v9331_v31 = vadd.f32 %v9019_v47, %v3197_v38  ;;  %v3723_v56 = vmul.f32 %v6867_v17, %v9168_v51  ;;  %v3724_v19 = vmul.f32 %v6867_v17, %v9171_v10 }
 0x51f   : > { %6868 = vpow2.f32 %v6146_v5  ;;  %v9336_v40 = vadd.f32 %v9021_v61, %v3198_v21  ;;  %v9339_v63 = vadd.f32 %v9021_v61, %v3199_v27  ;;  %v3163_v9 = vmul.f32 0.00390625, %v3159_v33 }
 0x520   : > { %6870 = vpow2.f32 %v6147_v13  ;;  %v6134_v41 = vmul.f32 -1.442695, %v9328_v14  ;;  %v6135_v6 = vmul.f32 -1.442695, %v9331_v31  ;;  %v3731_v34 = vmul.f32 %v3723_v56, %v9017_v25 }
 0x521   : > { %v6136_v2 = vmul.f32 -1.442695, %v9336_v40  ;;  %v6137_v51 = vmul.f32 -1.442695, %v9339_v63  ;;  %v3732_v10 = vmul.f32 %v3724_v19, %v9017_v25  ;;  %v3711_v36 = vmul.f32 0.00390625, %v3705_v11 }
 0x522   : > { %6872 = vpow2.f32 %v6134_v41  ;;  %v9348_v3 = vadd.f32 %v3731_v34, %v9021_v61  ;;  %v3712_v17 = vmul.f32 0.00390625, %v3708_v39  ;;  %v3166_v13 = vadd.f32 1e-05, %v3162_v50 }
 0x523   : > { %6874 = vpow2.f32 %v6135_v6  ;;  %v9351_v8 = vadd.f32 %v3732_v10, %v9021_v61  ;;  %v3167_v4 = vadd.f32 1e-05, %v3163_v9  ;;  %v3715_v21 = vadd.f32 1e-05, %v3711_v36 }
 0x524   : > { %6876 = vpow2.f32 %v6136_v2  ;;  %v6148_v38 = vmul.f32 -1.442695, %v9348_v3  ;;  %v3716_v27 = vadd.f32 1e-05, %v3712_v17 }
 0x525   : > { %6878 = vpow2.f32 %v6137_v51  ;;  %v6149_v5 = vmul.f32 -1.442695, %v9351_v8 }
 0x526   : > { %6880 = vpow2.f32 %v6148_v38 }
 0x527   : > { %6882 = vpow2.f32 %v6149_v5 }
 0x528   : > { %6884 = vrsqrt.f32 %v3166_v13 }
 0x529   : > { %v6869_v56 = vpop.eup %6868  ;;  %6886 = vrsqrt.f32 %v3167_v4 }
 0x52a   : > { %v6871_v33 = vpop.eup %6870  ;;  %v3769_v19 = vadd.f32 1.0, %v6869_v56  ;;  %6888 = vrsqrt.f32 %v3715_v21 }
 0x52b   : > { %v3770_v41 = vadd.f32 1.0, %v6871_v33  ;;  %6890 = vrsqrt.f32 %v3716_v27 }
 0x52c   : > { %v6873_v6 = vpop.eup %6872  ;;  %6892 = vrcp.f32 %v3769_v19 }
 0x52d   : > { %v6875_v34 = vpop.eup %6874  ;;  %v3252_v11 = vadd.f32 1.0, %v6873_v6  ;;  %6894 = vrcp.f32 %v3770_v41 }
 0x52e   : > { %v6877_v2 = vpop.eup %6876  ;;  %v3253_v51 = vadd.f32 1.0, %v6875_v34 }
 0x52f   : > { %v6879_v10 = vpop.eup %6878  ;;  %6896 = vrcp.f32 %v3252_v11  ;;  %v3254_v50 = vadd.f32 1.0, %v6877_v2 }
 0x530   : > { %v6881_v39 = vpop.eup %6880  ;;  %6898 = vrcp.f32 %v3253_v51  ;;  %v3255_v9 = vadd.f32 1.0, %v6879_v10 }
 0x531   : > { %v6883_v36 = vpop.eup %6882  ;;  %6900 = vrcp.f32 %v3254_v50  ;;  %v3771_v38 = vadd.f32 1.0, %v6881_v39 }
 0x532   : > { %6902 = vrcp.f32 %v3255_v9  ;;  %v3772_v17 = vadd.f32 1.0, %v6883_v36  ;;  %v6885_v5 = vpop.eup %6884 }
 0x533   : > { %6904 = vrcp.f32 %v3771_v38  ;;  %v6887_v13 = vpop.eup %6886  ;;  %v3176_v34 = vmul.f32 %v6885_v5, %v9174_v26 }
 0x534   : > { %6906 = vrcp.f32 %v3772_v17  ;;  %v6889_v4 = vpop.eup %6888  ;;  %v3178_v19 = vmul.f32 %v6887_v13, %v9194_v7 }
 0x535   : > { %v6891_v21 = vpop.eup %6890 }
 0x536   : > { %v6893_v27 = vpop.eup %6892  ;;  %v3202_v9 = vmul.f32 %v9027_v1, %v3178_v19  ;;  %v3727_v36 = vmul.f32 %v6891_v21, %v9214_v49 }
 0x537   : > { %v6895_v56 = vpop.eup %6894 }
 0x538   : > { %v3794_v49 = vmul.f32 %v6895_v56, %v9317_v54  ;;  %v9377_v19 = vadd.f32 %v9037_v62, %v3202_v9  ;;  %v3728_v56 = vmul.f32 %v6891_v21, %v9217_v18 }
 0x539   : > { %v6897_v33 = vpop.eup %6896 }
 0x53a   : > { %v6899_v41 = vpop.eup %6898  ;;  %v3276_v2 = vmul.f32 %v6897_v33, %v9328_v14  ;;  %v3725_v33 = vmul.f32 %v6889_v4, %v9200_v48  ;;  %v3736_v21 = vmul.f32 %v3728_v56, %v9027_v1 }
 0x53b   : > { %v6901_v6 = vpop.eup %6900  ;;  %v3277_v50 = vmul.f32 %v6899_v41, %v9331_v31  ;;  %v3793_v31 = vmul.f32 %v6893_v27, %v9314_v53  ;;  %v3177_v53 = vmul.f32 %v6885_v5, %v9177_v30 }
 0x53c   : > { %v6903_v11 = vpop.eup %6902  ;;  %v3278_v51 = vmul.f32 %v6901_v6, %v9336_v40  ;;  %v3200_v40 = vmul.f32 %v9023_v22, %v3176_v34  ;;  %v3733_v54 = vmul.f32 %v3725_v33, %v9023_v22  ;;  %v3726_v6 = vmul.f32 %v6889_v4, %v9203_v55 }
 0x53d   : > { %v6905_v10 = vpop.eup %6904  ;;  %v3279_v39 = vmul.f32 %v6903_v11, %v9339_v63  ;;  %v3179_v63 = vmul.f32 %v6887_v13, %v9197_v0  ;;  %v6140_v13 = vmul.f32 -1.442695, %v9377_v19  ;;  %v3201_v30 = vmul.f32 %v9023_v22, %v3177_v53 }
 0x53e   : > { %v6907_v38 = vpop.eup %6906  ;;  %v9363_v7 = vpack.c.bf16 %v3278_v51, %v3276_v2  ;;  %v3795_v17 = vmul.f32 %v6905_v10, %v9348_v3  ;;  %v3735_v3 = vmul.f32 %v3727_v36, %v9027_v1  ;;  %v9388_v27 = vadd.f32 %v9033_v43, %v3200_v40 }
 0x53f   : > { %v9366_v26 = vpack.c.bf16 %v3279_v39, %v3277_v50  ;;  %v3796_v14 = vmul.f32 %v6907_v38, %v9351_v8  ;;  %v3203_v0 = vmul.f32 %v9027_v1, %v3179_v63  ;;  %v9405_v34 = vadd.f32 %v3733_v54, %v9033_v43 }
 0x540   : > { %3348 = vrot.lane.b32.xlu1 %v9363_v7, %s7168_s18  ;;  %v9382_v8 = vpack.c.bf16 %v3795_v17, %v3793_v31  ;;  %v9397_v41 = vadd.f32 %v3735_v3, %v9037_v62  ;;  %v6138_v5 = vmul.f32 -1.442695, %v9388_v27  ;;  %6908 = vpow2.f32 %v6140_v13 }
 0x541   : > { %3350 = vrot.lane.b32.xlu0 %v9366_v26, %s7168_s18  ;;  %v9384_v48 = vpack.c.bf16 %v3796_v14, %v3794_v49  ;;  %v9410_v18 = vadd.f32 %v9037_v62, %v3203_v0  ;;  %v9417_v2 = vadd.f32 %v9033_v43, %v3201_v30  ;;  %v3734_v55 = vmul.f32 %v3726_v6, %v9023_v22 }
 0x542   : > { %v6152_v11 = vmul.f32 -1.442695, %v9397_v41  ;;  %6910 = vpow2.f32 %v6138_v5  ;;  %v6150_v4 = vmul.f32 -1.442695, %v9405_v34  ;;  %v3300_v51 = vsel %vm550_vm9, %v9366_v26, 0 }
 0x543   : > { %v6141_v10 = vmul.f32 -1.442695, %v9410_v18  ;;  %v9428_v50 = vadd.f32 %v3736_v21, %v9037_v62  ;;  %v6139_v39 = vmul.f32 -1.442695, %v9417_v2  ;;  %v9433_v9 = vadd.f32 %v3734_v55, %v9033_v43 }
 0x544   : > { %3865 = vrot.lane.b32.xlu1 %v9382_v8, %s7168_s18  ;;  %6912 = vpow2.f32 %v6152_v11  ;;  %v3378_v36 = vsel %vm667_vm12, %v9366_v26, 0  ;;  %v3299_v40 = vsel %vm549_vm8, %v9363_v7, 0  ;;  %v3895_v33 = vsel %vm667_vm12, %v9384_v48, 0 }
 0x545   : > { %3867 = vrot.lane.b32.xlu0 %v9384_v48, %s7168_s18  ;;  %6914 = vpow2.f32 %v6150_v4  ;;  %v6153_v38 = vmul.f32 -1.442695, %v9428_v50  ;;  %v6151_v14 = vmul.f32 -1.442695, %v9433_v9  ;;  %v3816_v3 = vsel %vm549_vm8, %v9382_v8, 0 }
 0x546   : > { %6916 = vpow2.f32 %v6141_v10  ;;  %v3420_v54 = vsel %vm719_vm14, %v9366_v26, 0  ;;  %v3817_v30 = vsel %vm550_vm9, %v9384_v48, 0  ;;  %v3937_v6 = vsel %vm719_vm14, %v9384_v48, 0  ;;  %v10936_v10 = vld [vmem:[#allocation22_spill] sm:$0xff] }
 0x547   : > { %6918 = vpow2.f32 %v6139_v39  ;;  %v3377_v4 = vsel %vm10935_vm2, %v9363_v7, 0  ;;  %vm10937_vm11 = vcmp.ne.s16.totalorder %v10936_v10, 0 }
 0x548   : > { %3560 = vrot.lane.b32.xlu1 %v9366_v26, %s7171_s14  ;;  %6920 = vpow2.f32 %v6153_v38  ;;  %v3468_v39 = vsel %vm10937_vm11, %v9363_v7, 0 }
 0x549   : > { %3558 = vrot.lane.b32.xlu0 %v9363_v7, %s7171_s14  ;;  %6922 = vpow2.f32 %v6151_v14 }
 0x54a   : > { %v6909_v17 = vpop.eup %6908 }
 0x54b   : > { %v3258_v49 = vadd.f32 1.0, %v6909_v17  ;;  %v3894_v17 = vsel %vm10938_vm1, %v9382_v8, 0 }
 0x54c   : > { %4077 = vrot.lane.b32.xlu1 %v9384_v48, %s7171_s14  ;;  %v6911_v31 = vpop.eup %6910 }
 0x54d   : > { %3314 = vrot.lane.b32.xlu0 %v3300_v51, %s7165_s15  ;;  %v3256_v53 = vadd.f32 1.0, %v6911_v31  ;;  %6924 = vrcp.f32 %v3258_v49 }
 0x54e   : > { %v6913_v63 = vpop.eup %6912 }
 0x54f   : > { %v6915_v0 = vpop.eup %6914  ;;  %v3775_v13 = vadd.f32 1.0, %v6913_v63  ;;  %6926 = vrcp.f32 %v3256_v53 }
 0x550   : > { %4075 = vrot.lane.b32.xlu1 %v9382_v8, %s7171_s14  ;;  %v6917_v56 = vpop.eup %6916  ;;  %v3773_v5 = vadd.f32 1.0, %v6915_v0  ;;  %v10943_v0 = vld [vmem:[#allocation25_spill] sm:$0xff] }
 0x551   : > { %3392 = vrot.lane.b32.xlu0 %v3378_v36, %s7167_s16  ;;  %v6919_v21 = vpop.eup %6918  ;;  %v3259_v11 = vadd.f32 1.0, %v6917_v56  ;;  %6928 = vrcp.f32 %v3775_v13  ;;  %vm10944_vm1 = vcmp.ne.s16.totalorder %v10943_v0, 0 }
 0x552   : > { %v6921_v55 = vpop.eup %6920  ;;  %v3257_v51 = vadd.f32 1.0, %v6919_v21  ;;  %6930 = vrcp.f32 %v3773_v5  ;;  %v3588_v13 = vsel %vm10944_vm1, %v9363_v7, 0 }
 0x553   : > { %v6923_v36 = vpop.eup %6922  ;;  %6932 = vrcp.f32 %v3259_v11  ;;  %v3776_v38 = vadd.f32 1.0, %v6921_v55 }
 0x554   : > { %3312 = vrot.lane.b32.xlu1 %v3299_v40, %s7165_s15  ;;  %6934 = vrcp.f32 %v3257_v51  ;;  %v3774_v40 = vadd.f32 1.0, %v6923_v36  ;;  %v10946_v51 = vld [vmem:[#allocation24_spill] sm:$0xff] }
 0x555   : > { %3909 = vrot.lane.b32.xlu0 %v3895_v33, %s7167_s16  ;;  %v10939_v33 = vld [vmem:[#allocation23_spill] sm:$0xff]  ;;  %6936 = vrcp.f32 %v3776_v38 }
 0x556   : > { %vm10940_vm2 = vcmp.ne.s16.totalorder %v10939_v33, 0  ;;  %6938 = vrcp.f32 %v3774_v40 }
 0x557   : > { %v6925_v14 = vpop.eup %6924  ;;  %v3510_v31 = vsel %vm10940_vm2, %v9363_v7, 0 }
 0x558   : > { %3829 = vrot.lane.b32.xlu1 %v3816_v3, %s7165_s15  ;;  %v3282_v63 = vmul.f32 %v6925_v14, %v9377_v19  ;;  %v10941_v3 = vld [vmem:[#allocation21_spill] sm:$0xff] }
 0x559   : > { %3434 = vrot.lane.b32.xlu0 %v3420_v54, %s7170_s11  ;;  %v6927_v49 = vpop.eup %6926  ;;  %vm10942_vm11 = vcmp.ne.s16.totalorder %v10941_v3, 0 }
 0x55a   : > { %v3419_v53 = vsel %vm10942_vm11, %v9363_v7, 0  ;;  %v3280_v56 = vmul.f32 %v6927_v49, %v9388_v27  ;;  %vm10945_vm2 = vmmov %vm10942_vm11  ;;  %vm10947_vm11 = vcmp.ne.s16.totalorder %v10946_v51, 0 }
 0x55b   : > { %v6929_v54 = vpop.eup %6928  ;;  %vm10948_vm1 = vmmov %vm10947_vm11 }
 0x55c   : > { %3831 = vrot.lane.b32.xlu1 %v3817_v30, %s7165_s15  ;;  %v6931_v30 = vpop.eup %6930  ;;  %v9493_v5 = vpack.c.bf16 %v3282_v63, %v3280_v56  ;;  %v3799_v19 = vmul.f32 %v6929_v54, %v9397_v41  ;;  %v3469_v41 = vsel %vm10947_vm11, %v9366_v26, 0 }
 0x55d   : > { %3951 = vrot.lane.b32.xlu0 %v3937_v6, %s7170_s11  ;;  %v3936_v6 = vsel %vm10945_vm2, %v9382_v8, 0  ;;  %v6933_v21 = vpop.eup %6932  ;;  %v3797_v11 = vmul.f32 %v6931_v30, %v9405_v34  ;;  %vm10949_vm2 = vcmp.ne.s16.totalorder %v10936_v10, 0  ;;  %v4106_v30 = vsel %vm914_vm4, %v9384_v48, 0 }
 0x55e   : > { %v6935_v27 = vpop.eup %6934  ;;  %v3283_v55 = vmul.f32 %v6933_v21, %v9410_v18  ;;  %v3986_v18 = vsel %vm10948_vm1, %v9384_v48, 0  ;;  %v3985_v40 = vsel %vm10949_vm2, %v9382_v8, 0  ;;  %v3302_v49 = vsel %vm549_vm8, %v9493_v5, 0 }
 0x55f   : > { %v3281_v36 = vmul.f32 %v6935_v27, %v9417_v2  ;;  %vm10953_vm2 = vcmp.ne.s16.totalorder %v10939_v33, 0 }
 0x560   : > { %3390 = vrot.lane.b32.xlu1 %v3377_v4, %s7167_s16  ;;  %v9504_v4 = vpack.c.bf16 %v3799_v19, %v3797_v11  ;;  %v4027_v63 = vsel %vm10953_vm2, %v9382_v8, 0  ;;  %vm10957_vm2 = vcmp.ne.s16.totalorder %v10943_v0, 0 }
 0x561   : > { %3480 = vrot.lane.b32.xlu0 %v3468_v39, %s7169_s19  ;;  %v6937_v39 = vpop.eup %6936  ;;  %v9513_v38 = vpack.c.bf16 %v3283_v55, %v3281_v36  ;;  %v4105_v11 = vsel %vm10957_vm2, %v9382_v8, 0  ;;  %vm10960_vm2 = vcmp.ne.s16.totalorder %v10946_v51, 0 }
 0x562   : > { %v6939_v34 = vpop.eup %6938 }
 0x563   : > { %v3798_v14 = vmul.f32 %v6939_v34, %v9433_v9 }
 0x564   : > { %3907 = vrot.lane.b32.xlu1 %v3894_v17, %s7167_s16  ;;  %v3800_v17 = vmul.f32 %v6937_v39, %v9428_v50  ;;  %v10950_v50 = vld [vmem:[#allocation26_spill] sm:$0xff] }
 0x565   : > { %3522 = vrot.lane.b32.xlu0 %v3510_v31, %s7166_s8  ;;  %vm10951_vm11 = vcmp.ne.s16.totalorder %v10950_v50, 0 }
 0x566   : > { %v9523_v2 = vpack.c.bf16 %v3800_v17, %v3798_v14  ;;  %v3511_v31 = vsel %vm10951_vm11, %v9366_v26, 0  ;;  %vm10952_vm1 = vmmov %vm10951_vm11  ;;  %vm10955_vm11 = vcmp.ne.s16.totalorder %v7937_v24, 0 }
 0x567   : > { %v4028_v9 = vsel %vm10952_vm1, %v9384_v48, 0  ;;  %v3380_v56 = vsel %vm10955_vm11, %v9493_v5, 0  ;;  %vm10956_vm1 = vmmov %vm10955_vm11  ;;  %vm10958_vm11 = vcmp.ne.s16.totalorder %v10941_v3, 0 }
 0x568   : > { %3432 = vrot.lane.b32.xlu1 %v3419_v53, %s7170_s11  ;;  %v3819_v53 = vsel %vm549_vm8, %v9504_v4, 0  ;;  %v3897_v19 = vsel %vm10956_vm1, %v9504_v4, 0  ;;  %v3422_v55 = vsel %vm10958_vm11, %v9493_v5, 0  ;;  %vm10959_vm1 = vmmov %vm10958_vm11 }
 0x569   : > { %3600 = vrot.lane.b32.xlu0 %v3588_v13, %s7164_s20  ;;  %v3589_v13 = vsel %vm914_vm4, %v9366_v26, 0  ;;  %v3939_v34 = vsel %vm10959_vm1, %v9504_v4, 0  ;;  %vm10961_vm11 = vmmov %vm10960_vm2  ;;  %vm10962_vm1 = vcmp.ne.s16.totalorder %v10936_v10, 0 }
 0x56c   : > { %3949 = vrot.lane.b32.xlu1 %v3936_v6, %s7170_s11 }
 0x56d   : > { %3354 = vrot.lane.b32.xlu0 %v9493_v5, %s7168_s18 }
 0x570   : > { %3482 = vrot.lane.b32.xlu1 %v3469_v41, %s7169_s19 }
 0x571   : > { %3871 = vrot.lane.b32.xlu0 %v9504_v4, %s7168_s18 }
 0x574   : > { %3999 = vrot.lane.b32.xlu1 %v3986_v18, %s7169_s19 }
 0x575   : > { %3566 = vrot.lane.b32.xlu0 %v9513_v38, %s7171_s14 }
 0x578   : > { %3997 = vrot.lane.b32.xlu1 %v3985_v40, %s7169_s19  ;;  %v3472_v40 = vsel %vm10960_vm2, %v9513_v38, 0  ;;  %vm10963_vm2 = vcmp.ne.s16.totalorder %v10950_v50, 0 }
 0x579   : > { %4083 = vrot.lane.b32.xlu0 %v9523_v2, %s7171_s14 }
 0x57c   : > { %3524 = vrot.lane.b32.xlu1 %v3511_v31, %s7166_s8 }
 0x57d   : > { %4081 = vrot.lane.b32.xlu0 %v9504_v4, %s7171_s14 }
 0x580   : > { %4041 = vrot.lane.b32.xlu1 %v4028_v9, %s7166_s8 }
 0x581   : > { %3318 = vrot.lane.b32.xlu0 %v3302_v49, %s7165_s15 }
 0x584   : > { %4039 = vrot.lane.b32.xlu1 %v4027_v63, %s7166_s8 }
 0x585   : > { %3835 = vrot.lane.b32.xlu0 %v3819_v53, %s7165_s15  ;;  %v3989_v53 = vsel %vm10961_vm11, %v9523_v2, 0  ;;  %vm10964_vm11 = vmmov %vm10963_vm2 }
 0x588   : > { %3602 = vrot.lane.b32.xlu1 %v3589_v13, %s7164_s20 }
 0x589   : > { %3396 = vrot.lane.b32.xlu0 %v3380_v56, %s7167_s16 }
 0x58c   : > { %4119 = vrot.lane.b32.xlu1 %v4106_v30, %s7164_s20 }
 0x58d   : > { %3913 = vrot.lane.b32.xlu0 %v3897_v19, %s7167_s16  ;;  %v4216_v6 = vpop.xlane.xlu1 %4215 }
 0x58e   : > { %v4226_v21 = vmul.f32 0.00390625, %v4216_v6 }
 0x590   : > { %v4230_v27 = vadd.f32 1e-05, %v4226_v21  ;;  %4117 = vrot.lane.b32.xlu1 %v4105_v11, %s7164_s20  ;;  %v3303_v21 = vsel %vm550_vm9, %v9513_v38, 0 }
 0x591   : > { %v4733_v41 = vpop.xlane.xlu0 %4732  ;;  %3438 = vrot.lane.b32.xlu0 %v3422_v55, %s7170_s11 }
 0x592   : > { %v4743_v39 = vmul.f32 0.00390625, %v4733_v41  ;;  %6940 = vrsqrt.f32 %v4230_v27 }
 0x594   : > { %v4747_v36 = vadd.f32 1e-05, %v4743_v39  ;;  %3356 = vrot.lane.b32.xlu1 %v9513_v38, %s7168_s18 }
 0x595   : > { %v4219_v17 = vpop.xlane.xlu0 %4218  ;;  %3955 = vrot.lane.b32.xlu0 %v3939_v34, %s7170_s11  ;;  %v4222_v39 = vpop.xlane.xlu1 %4221 }
 0x596   : > { %6942 = vrsqrt.f32 %v4747_v36  ;;  %v4227_v18 = vmul.f32 0.00390625, %v4219_v17 }
 0x598   : > { %v4231_v14 = vadd.f32 1e-05, %v4227_v18  ;;  %3873 = vrot.lane.b32.xlu1 %v9523_v2, %s7168_s18  ;;  %v3820_v18 = vsel %vm550_vm9, %v9523_v2, 0 }
 0x599   : > { %v4736_v31 = vpop.xlane.xlu0 %4735  ;;  %3488 = vrot.lane.b32.xlu0 %v3472_v40, %s7169_s19 }
 0x59a   : > { %6944 = vrsqrt.f32 %v4231_v14  ;;  %v4744_v9 = vmul.f32 0.00390625, %v4736_v31  ;;  %v3514_v14 = vsel %vm10963_vm2, %v9513_v38, 0  ;;  %vm10966_vm2 = vcmp.ne.s16.totalorder %v10936_v10, 0 }
 0x59c   : > { %v4748_v49 = vadd.f32 1e-05, %v4744_v9  ;;  %v6941_v63 = vpop.eup %6940  ;;  %3564 = vrot.lane.b32.xlu1 %v9493_v5, %s7171_s14 }
 0x59d   : > { %v4238_v13 = vmul.f32 %v6941_v63, %v9228_v12  ;;  %v4239_v56 = vmul.f32 %v6941_v63, %v9231_v29  ;;  %4005 = vrot.lane.b32.xlu0 %v3989_v53, %s7169_s19  ;;  %v3988_v12 = vsel %vm10962_vm1, %v9504_v4, 0  ;;  %v4225_v17 = vpop.xlane.xlu0 %4224  ;;  %vm10965_vm1 = vcmp.ne.s16.totalorder %v10939_v33, 0 }
 0x59e   : > { %6946 = vrsqrt.f32 %v4748_v49  ;;  %v4228_v49 = vmul.f32 0.00390625, %v4222_v39 }
 0x59f   : > { %v4246_v19 = vmul.f32 %v4238_v13, %v9031_v57  ;;  %v4247_v6 = vmul.f32 %v4239_v56, %v9031_v57  ;;  %v3381_v13 = vsel %vm667_vm12, %v9513_v38, 0  ;;  %v4229_v56 = vmul.f32 0.00390625, %v4225_v17 }
 0x5a0   : > { %v6943_v30 = vpop.eup %6942  ;;  %3320 = vrot.lane.b32.xlu1 %v3303_v21, %s7165_s15  ;;  %v4031_v21 = vsel %vm10964_vm11, %v9523_v2, 0  ;;  %vm10967_vm11 = vcmp.ne.s16.totalorder %v10943_v0, 0 }
 0x5a1   : > { %v4755_v11 = vmul.f32 %v6943_v30, %v9244_v59  ;;  %v4756_v27 = vmul.f32 %v6943_v30, %v9247_v28  ;;  %v9609_v29 = vadd.f32 %v4246_v19, %v9019_v47  ;;  %v9612_v55 = vadd.f32 %v4247_v6, %v9019_v47  ;;  %4003 = vrot.lane.b32.xlu0 %v3988_v12, %s7169_s19  ;;  %v4742_v12 = vpop.xlane.xlu0 %4741 }
 0x5a3   : > { %v4763_v41 = vmul.f32 %v4755_v11, %v9031_v57  ;;  %v4764_v59 = vmul.f32 %v4756_v27, %v9031_v57  ;;  %v6158_v36 = vmul.f32 -1.442695, %v9609_v29  ;;  %v6159_v34 = vmul.f32 -1.442695, %v9612_v55 }
 0x5a4   : > { %v6945_v28 = vpop.eup %6944  ;;  %3837 = vrot.lane.b32.xlu1 %v3820_v18, %s7165_s15  ;;  %v4232_v27 = vadd.f32 1e-05, %v4228_v49  ;;  %v3423_v49 = vsel %vm719_vm14, %v9513_v38, 0 }
 0x5a5   : > { %v9626_v40 = vadd.f32 %v4763_v41, %v9019_v47  ;;  %v9629_v57 = vadd.f32 %v4764_v59, %v9019_v47  ;;  %v4240_v31 = vmul.f32 %v6945_v28, %v9238_v15  ;;  %v4241_v9 = vmul.f32 %v6945_v28, %v9241_v37  ;;  %3530 = vrot.lane.b32.xlu0 %v3514_v14, %s7166_s8  ;;  %v4739_v28 = vpop.xlane.xlu1 %4738 }
 0x5a6   : > { %6948 = vpow2.f32 %v6158_v36  ;;  %v4030_v41 = vsel %vm10965_vm1, %v9504_v4, 0  ;;  %v4233_v36 = vadd.f32 1e-05, %v4229_v56  ;;  %v4746_v14 = vmul.f32 0.00390625, %v4742_v12 }
 0x5a7   : > { %v6170_v63 = vmul.f32 -1.442695, %v9626_v40  ;;  %v4248_v53 = vmul.f32 %v4240_v31, %v9017_v25  ;;  %6950 = vpow2.f32 %v6159_v34  ;;  %v6171_v15 = vmul.f32 -1.442695, %v9629_v57 }
 0x5a8   : > { %v6947_v47 = vpop.eup %6946  ;;  %v4249_v37 = vmul.f32 %v4241_v9, %v9017_v25  ;;  %3398 = vrot.lane.b32.xlu1 %v3381_v13, %s7167_s16  ;;  %v3898_v34 = vsel %vm667_vm12, %v9523_v2, 0  ;;  %v4745_v9 = vmul.f32 0.00390625, %v4739_v28 }
 0x5a9   : > { %v9643_v30 = vadd.f32 %v4248_v53, %v9021_v61  ;;  %v4757_v19 = vmul.f32 %v6947_v47, %v9258_v35  ;;  %v4758_v6 = vmul.f32 %v6947_v47, %v9261_v20  ;;  %4047 = vrot.lane.b32.xlu0 %v4031_v21, %s7166_s8  ;;  %6952 = vpow2.f32 %v6170_v63 }
 0x5aa   : > { %v9652_v11 = vadd.f32 %v4249_v37, %v9021_v61  ;;  %6954 = vpow2.f32 %v6171_v15  ;;  %v3592_v53 = vsel %vm914_vm4, %v9513_v38, 0  ;;  %v4749_v47 = vadd.f32 1e-05, %v4745_v9 }
 0x5ab   : > { %v6160_v35 = vmul.f32 -1.442695, %v9643_v30  ;;  %v4765_v20 = vmul.f32 %v4757_v19, %v9017_v25  ;;  %v4766_v59 = vmul.f32 %v4758_v6, %v9017_v25  ;;  %v3940_v19 = vsel %vm719_vm14, %v9523_v2, 0 }
 0x5ac   : > { %v6161_v39 = vmul.f32 -1.442695, %v9652_v11  ;;  %3915 = vrot.lane.b32.xlu1 %v3898_v34, %s7167_s16 }
 0x5ad   : > { %6956 = vpow2.f32 %v6160_v35  ;;  %v9666_v17 = vadd.f32 %v4765_v20, %v9021_v61  ;;  %v9669_v18 = vadd.f32 %v4766_v59, %v9021_v61  ;;  %4045 = vrot.lane.b32.xlu0 %v4030_v41, %s7166_s8  ;;  %v4750_v61 = vadd.f32 1e-05, %v4746_v14 }
 0x5ae   : > { %6958 = vpow2.f32 %v6161_v39 }
 0x5af   : > { %6960 = vrsqrt.f32 %v4232_v27  ;;  %v6172_v25 = vmul.f32 -1.442695, %v9666_v17  ;;  %v6173_v31 = vmul.f32 -1.442695, %v9669_v18  ;;  %v4109_v27 = vsel %vm914_vm4, %v9523_v2, 0 }
 0x5b0   : > { %6962 = vrsqrt.f32 %v4233_v36  ;;  %v6949_v63 = vpop.eup %6948  ;;  %3440 = vrot.lane.b32.xlu1 %v3423_v49, %s7170_s11  ;;  %v3471_v36 = vsel %vm10966_vm2, %v9493_v5, 0  ;;  %vm10971_vm2 = vmmov %vm10967_vm11 }
 0x5b1   : > { %6964 = vpow2.f32 %v6172_v25  ;;  %v6951_v13 = vpop.eup %6950  ;;  %3608 = vrot.lane.b32.xlu0 %v3592_v53, %s7164_s20  ;;  %v4286_v37 = vadd.f32 1.0, %v6949_v63 }
 0x5b2   : > { %6966 = vpow2.f32 %v6173_v31  ;;  %v9683_v15 = vpop.permute.xlu1 %3348  ;;  %v4287_v21 = vadd.f32 1.0, %v6951_v13  ;;  %v4108_v31 = vsel %vm10967_vm11, %v9504_v4, 0  ;;  %vm10978_vm11 = vcmp.ne.s16.totalorder %v7937_v24, 0 }
 0x5b3   : > { %v9685_v56 = vpop.permute.xlu0 %3350  ;;  %v6953_v6 = vpop.eup %6952  ;;  %6968 = vrsqrt.f32 %v4750_v61 }
 0x5b4   : > { %3957 = vrot.lane.b32.xlu1 %v3940_v19, %s7170_s11  ;;  %v6955_v12 = vpop.eup %6954  ;;  %6970 = vrsqrt.f32 %v4749_v47  ;;  %v4803_v59 = vadd.f32 1.0, %v6953_v6  ;;  %v3513_v47 = vsel %vm10965_vm1, %v9493_v5, 0  ;;  %vm10980_vm1 = vmmov %vm10978_vm11 }
 0x5b5   : > { %4125 = vrot.lane.b32.xlu0 %v4109_v27, %s7164_s20  ;;  %6972 = vrcp.f32 %v4286_v37  ;;  %v4804_v14 = vadd.f32 1.0, %v6955_v12 }
 0x5b6   : > { %v9695_v35 = vpop.permute.xlu1 %3865  ;;  %6974 = vrcp.f32 %v4287_v21 }
 0x5b7   : > { %v6957_v41 = vpop.eup %6956  ;;  %v9697_v28 = vpop.permute.xlu0 %3867 }
 0x5b8   : > { %v6959_v20 = vpop.eup %6958  ;;  %v4288_v39 = vadd.f32 1.0, %v6957_v41  ;;  %3486 = vrot.lane.b32.xlu1 %v3471_v36, %s7169_s19  ;;  %v3591_v41 = vsel %vm10971_vm2, %v9493_v5, 0  ;;  %vm10981_vm2 = vcmp.ne.s16.totalorder %v10941_v3, 0 }
 0x5b9   : > { %v9702_v34 = vpop.eup %6960  ;;  %v4289_v25 = vadd.f32 1.0, %v6959_v20  ;;  %4123 = vrot.lane.b32.xlu0 %v4108_v31, %s7164_s20 }
 0x5ba   : > { %v9708_v9 = vpop.eup %6962  ;;  %6976 = vrcp.f32 %v4288_v39  ;;  %v9711_v63 = vpop.permute.xlu1 %3560  ;;  %v4242_v21 = vmul.f32 %v9702_v34, %v9264_v16 }
 0x5bb   : > { %v6965_v49 = vpop.eup %6964  ;;  %6978 = vrcp.f32 %v4289_v25  ;;  %10968 = vst [vmem:[#allocation22_spill] sm:$0xff] %v9711_v63  ;;  %v9713_v13 = vpop.permute.xlu0 %3558  ;;  %v4244_v19 = vmul.f32 %v9708_v9, %v9278_v32 }
 0x5bc   : > { %v6967_v61 = vpop.eup %6966  ;;  %6980 = vrcp.f32 %v4803_v59  ;;  %v4805_v53 = vadd.f32 1.0, %v6965_v49  ;;  %10969 = vst [vmem:[#allocation23_spill] sm:$0xff] %v9713_v13  ;;  %3528 = vrot.lane.b32.xlu1 %v3513_v47, %s7166_s8  ;;  %v4250_v16 = vmul.f32 %v4242_v21, %v9023_v22 }
 0x5bd   : > { %6982 = vrcp.f32 %v4804_v14  ;;  %v4806_v37 = vadd.f32 1.0, %v6967_v61  ;;  %v9721_v6 = vpop.eup %6968  ;;  %v4252_v32 = vmul.f32 %v4244_v19, %v9027_v1 }
 0x5be   : > { %6984 = vrcp.f32 %v4805_v53  ;;  %v9725_v27 = vpop.permute.xlu1 %4077  ;;  %v9730_v20 = vpop.eup %6970  ;;  %v4761_v39 = vmul.f32 %v9721_v6, %v9298_v42  ;;  %v10973_v53 = vld [vmem:[#allocation13_spill] sm:$0xff]  ;;  %v9755_v63 = vadd.f32 %v4250_v16, %v9033_v43 }
 0x5bf   : > { %6986 = vrcp.f32 %v4806_v37  ;;  %10970 = vst [vmem:[#allocation21_spill] sm:$0xff] %v9725_v27  ;;  %v3315_v12 = vpop.permute.xlu0 %3314  ;;  %v6973_v59 = vpop.eup %6972  ;;  %v4759_v31 = vmul.f32 %v9730_v20, %v9284_v52  ;;  %v6525_v47 = vunpack.i.l.bf16 %v10973_v53 }
 0x5c0   : > { %3606 = vrot.lane.b32.xlu1 %v3591_v41, %s7164_s20  ;;  %v6975_v36 = vpop.eup %6974  ;;  %v4310_v37 = vmul.f32 %v6973_v59, %v9609_v29  ;;  %v4769_v27 = vmul.f32 %v4761_v39, %v9027_v1 }
 0x5c1   : > { %v4311_v42 = vmul.f32 %v6975_v36, %v9612_v55 }
 0x5c2   : > { %v9737_v14 = vpop.permute.xlu1 %4075 }
 0x5c3   : > { %10972 = vst [vmem:[#allocation24_spill] sm:$0xff] %v9737_v14  ;;  %v9741_v49 = vpop.permute.xlu0 %3392  ;;  %v9749_v14 = vadd.f32 %v4252_v32, %v9037_v62 }
 0x5c4   : > { %v6977_v25 = vpop.eup %6976 }
 0x5c5   : > { %v6979_v61 = vpop.eup %6978  ;;  %v4312_v19 = vmul.f32 %v6977_v25, %v9643_v30  ;;  %v4767_v30 = vmul.f32 %v4759_v31, %v9023_v22  ;;  %v6164_v31 = vmul.f32 -1.442695, %v9749_v14 }
 0x5c6   : > { %v6981_v41 = vpop.eup %6980  ;;  %v4313_v21 = vmul.f32 %v6979_v61, %v9652_v11  ;;  %v3313_v0 = vpop.permute.xlu1 %3312 }
 0x5c7   : > { %v6983_v52 = vpop.eup %6982  ;;  %v9752_v13 = vpack.c.bf16 %v4312_v19, %v4310_v37  ;;  %v9760_v55 = vpop.permute.xlu0 %3909  ;;  %v3323_v11 = vsel %vm575_vm6, %v3313_v0, %v3315_v12  ;;  %v3322_v32 = vsel %vm575_vm6, %v6525_v47, %v3313_v0  ;;  %v4827_v39 = vmul.f32 %v6981_v41, %v9626_v40  ;;  %v10974_v47 = vld [vmem:[#allocation45_spill] sm:$0xff] }
 0x5c8   : > { %v6985_v29 = vpop.eup %6984  ;;  %v9757_v59 = vpack.c.bf16 %v4313_v21, %v4311_v42  ;;  %5380 = vmatprep.subr.bf16.mxu0 %v3323_v11  ;;  %v4828_v16 = vmul.f32 %v6983_v52, %v9629_v57  ;;  %v9772_v37 = vadd.f32 %v4769_v27, %v9037_v62  ;;  %v6162_v0 = vmul.f32 -1.442695, %v9755_v63 }
 0x5c9   : > { %v6987_v36 = vpop.eup %6986  ;;  %v4829_v25 = vmul.f32 %v6985_v29, %v9666_v17  ;;  %4382 = vrot.lane.b32.xlu1 %v9752_v13, %s7168_s18  ;;  %5381 = vmatpush1.bf16.msra.mxu0 %v3322_v32  ;;  %v9782_v57 = vadd.f32 %v4767_v30, %v9033_v43  ;;  %v4245_v27 = vmul.f32 %v9708_v9, %v9281_v60  ;;  %6988 = vpow2.f32 %v6164_v31  ;;  %v9806_v9 = vld [vmem:[%s10769_s5 + $0x4] ss:$12 sps:$4 sm:$0xff]  }
 0x5ca   : > { %v4830_v61 = vmul.f32 %v6987_v36, %v9669_v18  ;;  %4384 = vrot.lane.b32.xlu0 %v9757_v59, %s7168_s18  ;;  %v3830_v17 = vpop.permute.xlu1 %3829  ;;  %v4243_v19 = vmul.f32 %v9702_v34, %v10974_v47  ;;  %v6176_v41 = vmul.f32 -1.442695, %v9772_v37  ;;  %v6526_v42 = vunpack.i.h.bf16 %v10973_v53  ;;  %10975 = vst [vmem:[#allocation26_spill] sm:$0xff] %v9806_v9  ;;  %5412 = vmatprep.mubr.bf16.mxu0 %v9806_v9  ;;  %v11036_v54 = vld [vmem:[#allocation24_spill] sm:$0xff] }
 0x5cb   : > { %v9777_v40 = vpack.c.bf16 %v4829_v25, %v4827_v39  ;;  %v9784_v18 = vpop.permute.xlu0 %3434  ;;  %6990 = vpow2.f32 %v6162_v0  ;;  %v6174_v52 = vmul.f32 -1.442695, %v9782_v57  ;;  %v4333_v34 = vsel %vm549_vm8, %v9752_v13, 0  ;;  %v10976_v39 = vld [vmem:[#allocation46_spill] sm:$0xff]  ;;  %5518 = vmatprep.mubr.bf16.mxu1 %v9806_v9 }
 0x5cc   : > { %v9779_v12 = vpack.c.bf16 %v4830_v61, %v4828_v16  ;;  %v4253_v30 = vmul.f32 %v4245_v27, %v9027_v1  ;;  %v4762_v53 = vmul.f32 %v9721_v6, %v9301_v46  ;;  %v3839_v11 = vsel %vm575_vm6, %v6526_v42, %v3830_v17 }
 0x5cd   : > { %4899 = vrot.lane.b32.xlu1 %v9777_v40, %s7168_s18  ;;  %v4334_v32 = vsel %vm550_vm9, %v9757_v59, 0  ;;  %v4251_v36 = vmul.f32 %v4243_v19, %v9023_v22  ;;  %v4760_v25 = vmul.f32 %v9730_v20, %v10976_v39  ;;  %6992 = vpow2.f32 %v6176_v41 }
 0x5ce   : > { %4901 = vrot.lane.b32.xlu0 %v9779_v12, %s7168_s18  ;;  %v3832_v21 = vpop.permute.xlu1 %3831  ;;  %6994 = vpow2.f32 %v6174_v52  ;;  %v4850_v6 = vsel %vm549_vm8, %v9777_v40, 0  ;;  %v9830_v61 = vadd.f32 %v4253_v30, %v9037_v62  ;;  %v4770_v20 = vmul.f32 %v4762_v53, %v9027_v1 }
 0x5cf   : > { %v9797_v29 = vpop.permute.xlu0 %3951  ;;  %v3840_v60 = vsel %vm575_vm6, %v3830_v17, %v3832_v21  ;;  %v4851_v31 = vsel %vm550_vm9, %v9779_v12, 0  ;;  %v9838_v0 = vadd.f32 %v4251_v36, %v9033_v43  ;;  %v4768_v17 = vmul.f32 %v4760_v25, %v9023_v22 }
 0x5d0   : > { %5486 = vmatprep.subr.bf16.mxu1 %v3840_v60  ;;  %v4411_v1 = vsel %vm10978_vm11, %v9752_v13, 0  ;;  %v6165_v42 = vmul.f32 -1.442695, %v9830_v61  ;;  %v9851_v21 = vadd.f32 %v4770_v20, %v9037_v62  ;;  %v4412_v22 = vsel %vm667_vm12, %v9757_v59, 0  ;;  %vm10982_vm11 = vmmov %vm10981_vm2 }
 0x5d1   : > { %4346 = vrot.lane.b32.xlu1 %v4333_v34, %s7165_s15  ;;  %5487 = vmatpush1.bf16.msra.mxu1 %v3839_v11  ;;  %v6163_v52 = vmul.f32 -1.442695, %v9838_v0  ;;  %v9859_v60 = vadd.f32 %v4768_v17, %v9033_v43  ;;  %v4929_v43 = vsel %vm667_vm12, %v9779_v12, 0  ;;  %v4453_v17 = vsel %vm10981_vm2, %v9752_v13, 0 }
 0x5d2   : > { %4348 = vrot.lane.b32.xlu0 %v4334_v32, %s7165_s15  ;;  %v9820_v16 = vpop.permute.xlu1 %3390  ;;  %v4928_v32 = vsel %vm10980_vm1, %v9777_v40, 0  ;;  %6996 = vpow2.f32 %v6165_v42  ;;  %v6177_v36 = vmul.f32 -1.442695, %v9851_v21  ;;  %vm10984_vm1 = vcmp.ne.s16.totalorder %v10946_v51, 0 }
 0x5d3   : > { %v9824_v46 = vpop.permute.xlu0 %3480  ;;  %v6989_v47 = vpop.eup %6988  ;;  %6998 = vpow2.f32 %v6163_v52  ;;  %v6175_v25 = vmul.f32 -1.442695, %v9859_v60  ;;  %v4971_v52 = vsel %vm719_vm14, %v9779_v12, 0  ;;  %vm10985_vm2 = vcmp.ne.s16.totalorder %v10936_v10, 0 }
 0x5d4   : > { %v4292_v34 = vadd.f32 1.0, %v6989_v47 }
 0x5d5   : > { %4863 = vrot.lane.b32.xlu1 %v4850_v6, %s7165_s15  ;;  %v6991_v41 = vpop.eup %6990 }
 0x5d6   : > { %4865 = vrot.lane.b32.xlu0 %v4851_v31, %s7165_s15  ;;  %v9842_v27 = vpop.permute.xlu1 %3907  ;;  %v4290_v11 = vadd.f32 1.0, %v6991_v41  ;;  %7000 = vrcp.f32 %v4292_v34 }
 0x5d7   : > { %v9844_v19 = vpop.permute.xlu0 %3522  ;;  %v6993_v53 = vpop.eup %6992 }
 0x5d8   : > { %10977 = vst [vmem:[#allocation20_spill] sm:$0xff] %v9844_v19  ;;  %v6995_v39 = vpop.eup %6994  ;;  %v4809_v6 = vadd.f32 1.0, %v6993_v53  ;;  %7002 = vrcp.f32 %v4290_v11 }
 0x5d9   : > { %4424 = vrot.lane.b32.xlu1 %v4411_v1, %s7167_s16  ;;  %v4807_v47 = vadd.f32 1.0, %v6995_v39  ;;  %7004 = vpow2.f32 %v6177_v36  ;;  %v4454_v1 = vsel %vm719_vm14, %v9757_v59, 0  ;;  %v4503_v36 = vsel %vm10984_vm1, %v9757_v59, 0 }
 0x5da   : > { %4426 = vrot.lane.b32.xlu0 %v4412_v22, %s7167_s16  ;;  %v9862_v30 = vpop.permute.xlu1 %3432  ;;  %7006 = vpow2.f32 %v6175_v25  ;;  %v4970_v22 = vsel %vm10982_vm11, %v9777_v40, 0  ;;  %v4502_v39 = vsel %vm10985_vm2, %v9752_v13, 0  ;;  %vm10988_vm11 = vmmov %vm10984_vm1  ;;  %vm10989_vm1 = vcmp.ne.s16.totalorder %v10939_v33, 0 }
 0x5db   : > { %v9864_v62 = vpop.permute.xlu0 %3600  ;;  %7008 = vrcp.f32 %v4809_v6  ;;  %v3443_v23 = vsel %vm744_vm0, %v9862_v30, %v9784_v18 }
 0x5dc   : > { %10979 = vst [vmem:[#allocation13_spill] sm:$0xff] %v9864_v62  ;;  %7010 = vrcp.f32 %v4807_v47  ;;  %v6997_v34 = vpop.eup %6996  ;;  %v5020_v62 = vsel %vm10988_vm11, %v9779_v12, 0  ;;  %vm10991_vm11 = vcmp.ne.s16.totalorder %v10950_v50, 0 }
 0x5dd   : > { %4941 = vrot.lane.b32.xlu1 %v4928_v32, %s7167_s16  ;;  %v6999_v11 = vpop.eup %6998  ;;  %v4293_v6 = vadd.f32 1.0, %v6997_v34  ;;  %v4544_v34 = vsel %vm10989_vm1, %v9752_v13, 0  ;;  %vm10993_vm1 = vmmov %vm10991_vm11 }
 0x5de   : > { %4943 = vrot.lane.b32.xlu0 %v4929_v43, %s7167_s16  ;;  %v9876_v20 = vpop.permute.xlu1 %3949  ;;  %v4291_v47 = vadd.f32 1.0, %v6999_v11 }
 0x5df   : > { %v9878_v31 = vpop.permute.xlu0 %3354  ;;  %7012 = vrcp.f32 %v4293_v6 }
 0x5e0   : > { %v7001_v43 = vpop.eup %7000  ;;  %7014 = vrcp.f32 %v4291_v47 }
 0x5e1   : > { %4466 = vrot.lane.b32.xlu1 %v4453_v17, %s7170_s11 }
 0x5e2   : > { %4468 = vrot.lane.b32.xlu0 %v4454_v1, %s7170_s11  ;;  %v9888_v41 = vpop.permute.xlu1 %3482  ;;  %v7003_v25 = vpop.eup %7002 }
 0x5e3   : > { %v9890_v42 = vpop.permute.xlu0 %3871  ;;  %v7005_v17 = vpop.eup %7004  ;;  %v4314_v11 = vmul.f32 %v7003_v25, %v9755_v63 }
 0x5e5   : > { %4983 = vrot.lane.b32.xlu1 %v4970_v22, %s7170_s11  ;;  %v7007_v22 = vpop.eup %7006 }
 0x5e6   : > { %4985 = vrot.lane.b32.xlu0 %v4971_v52, %s7170_s11  ;;  %v9900_v53 = vpop.permute.xlu1 %3999  ;;  %v4316_v52 = vmul.f32 %v7001_v43, %v9749_v14 }
 0x5e7   : > { %v9902_v32 = vpop.permute.xlu0 %3566 }
 0x5e8   : > { %10983 = vst [vmem:[#allocation45_spill] sm:$0xff] %v9902_v32  ;;  %v7009_v32 = vpop.eup %7008 }
 0x5e9   : > { %4516 = vrot.lane.b32.xlu1 %v4503_v36, %s7169_s19  ;;  %v4810_v36 = vadd.f32 1.0, %v7005_v17  ;;  %v7011_v14 = vpop.eup %7010  ;;  %v4833_v19 = vmul.f32 %v7009_v32, %v9772_v37  ;;  %v4545_v32 = vsel %vm10991_vm11, %v9757_v59, 0 }
 0x5ea   : > { %4514 = vrot.lane.b32.xlu0 %v4502_v39, %s7169_s19  ;;  %v9912_v1 = vpop.permute.xlu1 %3997  ;;  %v4808_v39 = vadd.f32 1.0, %v7007_v22  ;;  %v4831_v63 = vmul.f32 %v7011_v14, %v9782_v57  ;;  %v7013_v17 = vpop.eup %7012 }
 0x5eb   : > { %10986 = vst [vmem:[#allocation46_spill] sm:$0xff] %v9912_v1  ;;  %v9915_v9 = vpop.permute.xlu0 %4083  ;;  %7016 = vrcp.f32 %v4810_v36  ;;  %v7015_v22 = vpop.eup %7014 }
 0x5ec   : > { %10987 = vst [vmem:[#allocation47_spill] sm:$0xff] %v9915_v9  ;;  %v9928_v9 = vpack.c.bf16 %v4316_v52, %v4314_v11  ;;  %7018 = vrcp.f32 %v4808_v39  ;;  %v9942_v6 = vpack.c.bf16 %v4833_v19, %v4831_v63  ;;  %v5062_v19 = vsel %vm10993_vm1, %v9779_v12, 0 }
 0x5ed   : > { %5033 = vrot.lane.b32.xlu1 %v5020_v62, %s7169_s19  ;;  %v5019_v62 = vsel %vm10985_vm2, %v9777_v40, 0  ;;  %vm10995_vm2 = vcmp.ne.s16.totalorder %v10939_v33, 0  ;;  %vm11001_vm1 = vcmp.ne.s16.totalorder %v10941_v3, 0  ;;  %v3359_v3 = vsel %vm612_vm5, %v9683_v15, %v9685_v56 }
 0x5ee   : > { %4556 = vrot.lane.b32.xlu0 %v4544_v34, %s7166_s8  ;;  %v9926_v43 = vpop.permute.xlu1 %3524  ;;  %v4336_v52 = vsel %vm549_vm8, %v9928_v9, 0  ;;  %v4317_v34 = vmul.f32 %v7013_v17, %v9830_v61  ;;  %v5061_v39 = vsel %vm10995_vm2, %v9777_v40, 0  ;;  %v4853_v63 = vsel %vm549_vm8, %v9942_v6, 0  ;;  %vm11003_vm2 = vmmov %vm11001_vm1 }
 0x5ef   : > { %v9931_v1 = vpop.permute.xlu0 %4081  ;;  %vm10999_vm8 = vcmp.ne.s16.totalorder %v7937_v24, 0 }
 0x5f0   : > { %10990 = vst [vmem:[#allocation48_spill] sm:$0xff] %v9931_v1  ;;  %vm11000_vm11 = vmmov %vm10999_vm8 }
 0x5f1   : > { %5031 = vrot.lane.b32.xlu1 %v5019_v62, %s7169_s19  ;;  %v4315_v62 = vmul.f32 %v7015_v22, %v9838_v0  ;;  %v10997_v0 = vmov 0  }
 0x5f2   : > { %4388 = vrot.lane.b32.xlu0 %v9928_v9, %s7168_s18  ;;  %v9940_v25 = vpop.permute.xlu1 %4041 }
 0x5f3   : > { %v3319_v37 = vpop.permute.xlu0 %3318  ;;  %v9976_v61 = vpack.c.bf16 %v4317_v34, %v4315_v62 }
 0x5f5   : > { %4558 = vrot.lane.b32.xlu1 %v4545_v32, %s7166_s8  ;;  %v7017_v36 = vpop.eup %7016 }
 0x5f6   : > { %4905 = vrot.lane.b32.xlu0 %v9942_v6, %s7168_s18  ;;  %v9950_v57 = vpop.permute.xlu1 %4039  ;;  %v7019_v32 = vpop.eup %7018  ;;  %v4834_v17 = vmul.f32 %v7017_v36, %v9851_v21  ;;  %v4414_v21 = vsel %vm10999_vm8, %v9928_v9, 0  ;;  %vm11015_vm8 = vcmp.ne.s16.totalorder %v10950_v50, 0 }
 0x5f7   : > { %10992 = vst [vmem:[#allocation49_spill] sm:$0xff] %v9950_v57  ;;  %v9952_v47 = vpop.permute.xlu0 %3835  ;;  %v4832_v1 = vmul.f32 %v7019_v32, %v9859_v60 }
 0x5f9   : > { %5075 = vrot.lane.b32.xlu1 %v5062_v19, %s7166_s8  ;;  %v9988_v45 = vpack.c.bf16 %v4834_v17, %v4832_v1  ;;  %v4337_v1 = vsel %vm550_vm9, %v9976_v61, 0  ;;  %v4456_v17 = vsel %vm11001_vm1, %v9928_v9, 0  ;;  %vm11018_vm1 = vmmov %vm11015_vm8 }
 0x5fa   : > { %4352 = vrot.lane.b32.xlu0 %v4336_v52, %s7165_s15  ;;  %v9963_v11 = vpop.permute.xlu1 %3602 }
 0x5fb   : > { %10994 = vst [vmem:[#allocation50_spill] sm:$0xff] %v9963_v11  ;;  %v9965_v14 = vpop.permute.xlu0 %3396  ;;  %v4854_v32 = vsel %vm550_vm9, %v9988_v45, 0  ;;  %v11005_v11 = vld [vmem:[#allocation18_spill] sm:$0xff]  ;;  %vm11009_vm9 = vcmp.ne.s16.totalorder %v10946_v51, 0 }
 0x5fc   : > { %v6536_v57 = vunpack.i.h.bf16 %v11005_v11 }
 0x5fd   : > { %5073 = vrot.lane.b32.xlu1 %v5061_v39, %s7166_s8  ;;  %v4931_v39 = vsel %vm11000_vm11, %v9942_v6, 0 }
 0x5fe   : > { %4869 = vrot.lane.b32.xlu0 %v4853_v63, %s7165_s15  ;;  %v9979_v19 = vpop.permute.xlu1 %4119 }
 0x5ff   : > { %10996 = vst [vmem:[#allocation51_spill] sm:$0xff] %v9979_v19  ;;  %v9981_v52 = vpop.permute.xlu0 %3913 }
 0x601   : > { %4390 = vrot.lane.b32.xlu1 %v9976_v61, %s7168_s18 }
 0x602   : > { %6663 = vrot.lane.b32.xlu0 %v10997_v0, %s7171_s14  ;;  %v9990_v22 = vpop.permute.xlu1 %4117 }
 0x603   : > { %10998 = vst [vmem:[#allocation52_spill] sm:$0xff] %v9990_v22  ;;  %v9992_v34 = vpop.permute.xlu0 %3438 }
 0x605   : > { %4907 = vrot.lane.b32.xlu1 %v9988_v45, %s7168_s18 }
 0x606   : > { %4430 = vrot.lane.b32.xlu0 %v4414_v21, %s7167_s16  ;;  %v3357_v60 = vpop.permute.xlu1 %3356 }
 0x607   : > { %v10000_v36 = vpop.permute.xlu0 %3955 }
 0x609   : > { %4354 = vrot.lane.b32.xlu1 %v4337_v1, %s7165_s15  ;;  %v4973_v1 = vsel %vm11003_vm2, %v9942_v6, 0  ;;  %vm11021_vm2 = vcmp.ne.s16.totalorder %v10939_v33, 0  ;;  %v11025_v33 = vld [vmem:[#allocation25_spill] sm:$0xff] }
 0x60a   : > { %4947 = vrot.lane.b32.xlu0 %v4931_v39, %s7167_s16  ;;  %v3874_v62 = vpop.permute.xlu1 %3873  ;;  %v6530_v39 = vunpack.i.l.bf16 %v11004_v58 }
 0x60b   : > { %v10010_v63 = vpop.permute.xlu0 %3488  ;;  %v3878_v44 = vsel %vm612_vm5, %v9890_v42, %v3874_v62 }
 0x60d   : > { %4871 = vrot.lane.b32.xlu1 %v4854_v32, %s7165_s15 }
 0x60e   : > { %4472 = vrot.lane.b32.xlu0 %v4456_v17, %s7170_s11  ;;  %v10020_v24 = vpop.permute.xlu1 %3564  ;;  %v3324_v17 = vsel %vm575_vm6, %v6530_v39, %v3319_v37  ;;  %v4415_v39 = vsel %vm667_vm12, %v9976_v61, 0 }
 0x60f   : > { %11002 = vst [vmem:[#allocation53_spill] sm:$0xff] %v10020_v24  ;;  %v10022_v21 = vpop.permute.xlu0 %4005  ;;  %v6535_v24 = vunpack.i.l.bf16 %v11005_v11  ;;  %v3875_v11 = vsel %vm612_vm5, %v6536_v57, %v9695_v35  ;;  %v4457_v57 = vsel %vm719_vm14, %v9976_v61, 0 }
 0x611   : > { %6658 = vrot.lane.b32.xlu1 %v10997_v0, %s7166_s8  ;;  %v3358_v56 = vsel %vm612_vm5, %v6535_v24, %v9683_v15  ;;  %v3876_v15 = vsel %vm612_vm5, %v9695_v35, %v9697_v28  ;;  %v4932_v24 = vsel %vm667_vm12, %v9988_v45, 0  ;;  %v3401_v28 = vsel %vm692_vm3, %v9820_v16, %v9741_v49  ;;  %vm11011_vm12 = vmmov %vm11009_vm9 }
 0x612   : > { %4989 = vrot.lane.b32.xlu0 %v4973_v1, %s7170_s11  ;;  %v3321_v22 = vpop.permute.xlu1 %3320  ;;  %v6531_v1 = vunpack.i.h.bf16 %v11004_v58  ;;  %v5023_v18 = vsel %vm11011_vm12, %v9988_v45, 0  ;;  %vm11026_vm12 = vcmp.ne.s16.totalorder %v11025_v33, 0 }
 0x613   : > { %v10031_v19 = vpop.permute.xlu0 %4003  ;;  %v3325_v32 = vsel %vm575_vm6, %v3319_v37, %v3321_v22 }
 0x614   : > { %5382 = vmatprep.subr.bf16.mxu0 %v3325_v32  ;;  %v3841_v32 = vsel %vm575_vm6, %v6531_v1, %v9952_v47 }
 0x615   : > { %4594 = vrot.lane.b32.xlu1 %v9757_v59, %s7171_s14  ;;  %5383 = vmatpush1.bf16.msra.mxu0 %v3324_v17  ;;  %v3361_v17 = vsel %vm612_vm5, %v9878_v31, %v3357_v60 }
 0x616   : > { %4592 = vrot.lane.b32.xlu0 %v9752_v13, %s7171_s14  ;;  %5384 = vmatprep.subr.bf16.mxu0 %v3359_v3  ;;  %v3838_v22 = vpop.permute.xlu1 %3837  ;;  %v11006_v3 = vld [vmem:[#allocation12_spill] sm:$0xff] }
 0x617   : > { %v3842_v37 = vsel %vm575_vm6, %v9952_v47, %v3838_v22  ;;  %v10054_v58 = vpop.permute.xlu0 %3530  ;;  %v6540_v22 = vunpack.i.l.bf16 %v11006_v3  ;;  %v6541_v1 = vunpack.i.h.bf16 %v11006_v3 }
 0x618   : > { %5488 = vmatprep.subr.bf16.mxu1 %v3842_v37  ;;  %v11007_v37 = vld [vmem:[#allocation17_spill] sm:$0xff] }
 0x619   : > { %4432 = vrot.lane.b32.xlu1 %v4415_v39, %s7167_s16  ;;  %5385 = vmatpush1.bf16.msra.mxu0 %v3358_v56  ;;  %v3360_v60 = vsel %vm612_vm5, %v6540_v22, %v9878_v31  ;;  %v6545_v39 = vunpack.i.l.bf16 %v11007_v37  ;;  %v11008_v56 = vld [vmem:[#allocation11_spill] sm:$0xff]  ;;  %v6546_v3 = vunpack.i.h.bf16 %v11007_v37  ;;  %v4974_v22 = vsel %vm719_vm14, %v9988_v45, 0 }
 0x61a   : > { %5489 = vmatpush1.bf16.msra.mxu1 %v3841_v32  ;;  %4600 = vrot.lane.b32.xlu0 %v9976_v61, %s7171_s14  ;;  %v3399_v47 = vpop.permute.xlu1 %3398  ;;  %v3877_v32 = vsel %vm612_vm5, %v6541_v1, %v9890_v42  ;;  %vm11013_vm14 = vcmp.ne.s16.totalorder %v10936_v10, 0 }
 0x61b   : > { %5386 = vmatprep.subr.bf16.mxu0 %v3361_v17  ;;  %5490 = vmatprep.subr.bf16.mxu1 %v3876_v15  ;;  %v10082_v31 = vpop.permute.xlu0 %4047  ;;  %v3400_v49 = vsel %vm692_vm3, %v6545_v39, %v9820_v16  ;;  %v3403_v62 = vsel %vm692_vm3, %v9965_v14, %v3399_v47  ;;  %v6550_v17 = vunpack.i.l.bf16 %v11008_v56  ;;  %v3918_v16 = vsel %vm692_vm3, %v9842_v27, %v9760_v55  ;;  %vm11017_vm11 = vmmov %vm11013_vm14 }
 0x61c   : > { %v3917_v47 = vsel %vm692_vm3, %v6546_v3, %v9842_v27  ;;  %v4506_v55 = vsel %vm11009_vm9, %v9976_v61, 0  ;;  %vm11023_vm9 = vmmov %vm11021_vm2 }
 0x61d   : > { %4949 = vrot.lane.b32.xlu1 %v4932_v24, %s7167_s16  ;;  %5387 = vmatpush1.bf16.msra.mxu0 %v3360_v60  ;;  %v3402_v15 = vsel %vm692_vm3, %v6550_v17, %v9965_v14  ;;  %v6551_v60 = vunpack.i.h.bf16 %v11008_v56  ;;  %v11010_v14 = vld [vmem:[#allocation16_spill] sm:$0xff]  ;;  %v11014_v17 = vld [vmem:[#allocation14_spill] sm:$0xff] }
 0x61e   : > { %5491 = vmatpush1.bf16.msra.mxu1 %v3875_v11  ;;  %5117 = vrot.lane.b32.xlu0 %v9988_v45, %s7171_s14  ;;  %v3916_v35 = vpop.permute.xlu1 %3915  ;;  %v6555_v11 = vunpack.i.l.bf16 %v11010_v14 }
 0x61f   : > { %5388 = vmatprep.subr.bf16.mxu0 %v3401_v28  ;;  %5492 = vmatprep.subr.bf16.mxu1 %v3878_v44  ;;  %v10109_v24 = vpop.permute.xlu0 %4045  ;;  %v3920_v27 = vsel %vm692_vm3, %v9981_v52, %v3916_v35  ;;  %v3919_v1 = vsel %vm692_vm3, %v6551_v60, %v9981_v52  ;;  %v11012_v44 = vld [vmem:[#allocation19_spill] sm:$0xff] }
 0x620   : > { %v3442_v37 = vsel %vm744_vm0, %v6555_v11, %v9862_v30  ;;  %v6560_v35 = vunpack.i.l.bf16 %v11012_v44  ;;  %v3960_v30 = vsel %vm744_vm0, %v9876_v20, %v9797_v29 }
 0x621   : > { %4474 = vrot.lane.b32.xlu1 %v4457_v57, %s7170_s11  ;;  %5389 = vmatpush1.bf16.msra.mxu0 %v3400_v49  ;;  %v6556_v57 = vunpack.i.h.bf16 %v11010_v14 }
 0x622   : > { %5493 = vmatpush1.bf16.msra.mxu1 %v3877_v32  ;;  %5115 = vrot.lane.b32.xlu0 %v9942_v6, %s7171_s14  ;;  %v3441_v42 = vpop.permute.xlu1 %3440  ;;  %v3444_v51 = vsel %vm744_vm0, %v6560_v35, %v9992_v34  ;;  %v4011_v35 = vsel %vm715_vm13, %v10031_v19, %v10022_v21 }
 0x623   : > { %5390 = vmatprep.subr.bf16.mxu0 %v3403_v62  ;;  %5494 = vmatprep.subr.bf16.mxu1 %v3918_v16  ;;  %v3445_v39 = vsel %vm744_vm0, %v9992_v34, %v3441_v42  ;;  %v10139_v49 = vpop.permute.xlu0 %3608  ;;  %v3959_v32 = vsel %vm744_vm0, %v6556_v57, %v9876_v20  ;;  %v6561_v62 = vunpack.i.h.bf16 %v11012_v44  ;;  %v11024_v57 = vld [vmem:[#allocation20_spill] sm:$0xff] }
 0x625   : > { %4991 = vrot.lane.b32.xlu1 %v4974_v22, %s7170_s11  ;;  %5391 = vmatpush1.bf16.msra.mxu0 %v3402_v15  ;;  %v3961_v34 = vsel %vm744_vm0, %v6561_v62, %v10000_v36  ;;  %v3492_v22 = vsel %vm715_vm13, %v9824_v46, %v9888_v41  ;;  %v5065_v15 = vsel %vm11018_vm1, %v9988_v45, 0  ;;  %v11019_v46 = vld [vmem:[#allocation27_spill] sm:$0xff] }
 0x626   : > { %5495 = vmatpush1.bf16.msra.mxu1 %v3917_v47  ;;  %4522 = vrot.lane.b32.xlu0 %v4506_v55, %s7169_s19  ;;  %v3958_v28 = vpop.permute.xlu1 %3957  ;;  %v6576_v44 = vunpack.i.h.bf16 %v11019_v46 }
 0x627   : > { %5392 = vmatprep.subr.bf16.mxu0 %v3443_v23  ;;  %5496 = vmatprep.subr.bf16.mxu1 %v3920_v27  ;;  %v3962_v29 = vsel %vm744_vm0, %v10000_v36, %v3958_v28  ;;  %v10159_v56 = vpop.permute.xlu0 %4125  ;;  %v6565_v36 = vunpack.i.l.bf16 %v11014_v17  ;;  %v11020_v23 = vld [vmem:[#allocation46_spill] sm:$0xff]  ;;  %v5064_v27 = vsel %vm11021_vm2, %v9942_v6, 0 }
 0x628   : > { %v4009_v60 = vsel %vm715_vm13, %v11020_v23, %v9900_v53 }
 0x629   : > { %5111 = vrot.lane.b32.xlu1 %v9779_v12, %s7171_s14  ;;  %5393 = vmatpush1.bf16.msra.mxu0 %v3442_v37  ;;  %v3493_v3 = vsel %vm715_vm13, %v9888_v41, %v6565_v36  ;;  %v6575_v41 = vunpack.i.l.bf16 %v11019_v46  ;;  %v11032_v46 = vld [vmem:[#allocation23_spill] sm:$0xff] }
 0x62a   : > { %5497 = vmatpush1.bf16.msra.mxu1 %v3919_v1  ;;  %5039 = vrot.lane.b32.xlu0 %v5023_v18, %s7169_s19  ;;  %v3487_v52 = vpop.permute.xlu1 %3486  ;;  %v11022_v1 = vld [vmem:[#allocation30_spill] sm:$0xff] }
 0x62b   : > { %5394 = vmatprep.subr.bf16.mxu0 %v3445_v39  ;;  %5498 = vmatprep.subr.bf16.mxu1 %v3960_v30  ;;  %v10182_v42 = vpop.permute.xlu0 %4123  ;;  %v3494_v14 = vsel %vm715_vm13, %v3487_v52, %v10010_v63  ;;  %v3535_v28 = vsel %vm663_vm10, %v9926_v43, %v6575_v41  ;;  %v6580_v37 = vunpack.i.l.bf16 %v11022_v1  ;;  %v4547_v39 = vsel %vm11023_vm9, %v9928_v9, 0 }
 0x62c   : > { %v3534_v30 = vsel %vm663_vm10, %v11024_v57, %v9926_v43  ;;  %v4052_v43 = vsel %vm663_vm10, %v9940_v25, %v6576_v44  ;;  %v11039_v44 = vld [vmem:[#allocation50_spill] sm:$0xff]  ;;  %v11040_v57 = vld [vmem:[#allocation47_spill] sm:$0xff] }
 0x62d   : > { %5109 = vrot.lane.b32.xlu1 %v9777_v40, %s7171_s14  ;;  %5395 = vmatpush1.bf16.msra.mxu0 %v3444_v51  ;;  %v4622_v51 = vsel %vm11026_vm12, %v9752_v13, 0 }
 0x62e   : > { %5499 = vmatpush1.bf16.msra.mxu1 %v3959_v32  ;;  %6673 = vrot.lane.b32.xlu0 %v10997_v0, %s7164_s20  ;;  %v10155_v20 = vpop.permute.xlu1 %3528  ;;  %v3537_v32 = vsel %vm663_vm10, %v10054_v58, %v6580_v37 }
 0x62f   : > { %5396 = vmatprep.subr.bf16.mxu0 %v9366_v26  ;;  %5500 = vmatprep.subr.bf16.mxu1 %v3962_v29  ;;  %v5022_v26 = vsel %vm11013_vm14, %v9942_v6, 0  ;;  %vm11031_vm14 = vmmov %vm11026_vm12 }
 0x631   : > { %6668 = vrot.lane.b32.xlu1 %v10997_v0, %s7171_s14  ;;  %5397 = vmatpush1.bf16.msra.mxu0 %v9363_v7  ;;  %v4548_v7 = vsel %vm11015_vm8, %v9976_v61, 0 }
 0x632   : > { %5501 = vmatpush1.bf16.msra.mxu1 %v3961_v34  ;;  %5037 = vrot.lane.b32.xlu0 %v5022_v26, %s7169_s19  ;;  %v10178_v16 = vpop.permute.xlu1 %3606  ;;  %v5140_v34 = vsel %vm914_vm4, %v9779_v12, 0  ;;  %v6581_v26 = vunpack.i.h.bf16 %v11022_v1  ;;  %v11037_v1 = vld [vmem:[#allocation53_spill] sm:$0xff] }
 0x633   : > { %5398 = vmatprep.subr.bf16.mxu0 %v9513_v38  ;;  %5502 = vmatprep.subr.bf16.mxu1 %v9384_v48  ;;  %v11016_v48 = vld [vmem:[#allocation28_spill] sm:$0xff] }
 0x634   : > { %v6570_v38 = vunpack.i.l.bf16 %v11016_v48  ;;  %v6571_v50 = vunpack.i.h.bf16 %v11016_v48  ;;  %v11029_v48 = vld [vmem:[#allocation22_spill] sm:$0xff] }
 0x635   : > { %4598 = vrot.lane.b32.xlu1 %v9928_v9, %s7171_s14  ;;  %5399 = vmatpush1.bf16.msra.mxu0 %v9493_v5  ;;  %v6566_v5 = vunpack.i.h.bf16 %v11014_v17  ;;  %v11028_v17 = vld [vmem:[#allocation49_spill] sm:$0xff]  ;;  %v3570_v41 = vsel %vm889_vm15, %v11032_v46, %v11029_v48  ;;  %v11046_v46 = vld [vmem:[#allocation52_spill] sm:$0xff] }
 0x636   : > { %5503 = vmatpush1.bf16.msra.mxu1 %v9382_v8  ;;  %4564 = vrot.lane.b32.xlu0 %v4548_v7, %s7166_s8  ;;  %v4505_v8 = vsel %vm11017_vm11, %v9928_v9, 0  ;;  %v4051_v36 = vsel %vm663_vm10, %v11028_v17, %v9940_v25  ;;  %v3536_v7 = vsel %vm663_vm10, %v10155_v20, %v10054_v58  ;;  %v4054_v25 = vsel %vm663_vm10, %v10082_v31, %v6581_v26  ;;  %v11030_v58 = vld [vmem:[#allocation32_spill] sm:$0xff] }
 0x637   : > { %5400 = vmatprep.subr.bf16.mxu0 %v3493_v3  ;;  %5504 = vmatprep.subr.bf16.mxu1 %v9523_v2  ;;  %v3495_v2 = vsel %vm715_vm13, %v10010_v63, %v6570_v38  ;;  %v4010_v10 = vsel %vm715_vm13, %v9900_v53, %v6566_v5  ;;  %v4012_v53 = vsel %vm715_vm13, %v10022_v21, %v6571_v50  ;;  %v11027_v21 = vld [vmem:[#allocation29_spill] sm:$0xff]  ;;  %v4626_v3 = vsel %vm914_vm4, %v9976_v61, 0  ;;  %v10340_v26 = vld [vmem:[%s10769_s5 + $0x1c] ss:$12 sps:$4 sm:$0xff]  }
 0x638   : > { %v6585_v62 = vunpack.i.l.bf16 %v11027_v21  ;;  %v6590_v20 = vunpack.i.l.bf16 %v11030_v58  ;;  %v11043_v17 = vld [vmem:[#allocation48_spill] sm:$0xff]  ;;  %vm5373_vm11 = vcmask 523264  }
 0x639   : > { %4520 = vrot.lane.b32.xlu1 %v4505_v8, %s7169_s19  ;;  %5401 = vmatpush1.bf16.msra.mxu0 %v3492_v22  ;;  %v5139_v22 = vsel %vm11031_vm14, %v9777_v40, 0 }
 0x63a   : > { %5505 = vmatpush1.bf16.msra.mxu1 %v9504_v4  ;;  %5081 = vrot.lane.b32.xlu0 %v5065_v15, %s7166_s8  ;;  %v4623_v4 = vsel %vm914_vm4, %v9757_v59, 0  ;;  %v3571_v38 = vsel %vm889_vm15, %v11029_v48, %v6585_v62  ;;  %v7174_v15 = vmov 4   ;;  %v11045_v48 = vld [vmem:[#allocation51_spill] sm:$0xff] }
 0x63b   : > { %5402 = vmatprep.subr.bf16.mxu0 %v3495_v2  ;;  %v10202_v47 = vpop.permute.xlu1 %4382  ;;  %5506 = vmatprep.subr.bf16.mxu1 %v4010_v10  ;;  %v6586_v2 = vunpack.i.h.bf16 %v11027_v21  ;;  %v4053_v10 = vsel %vm663_vm10, %v10109_v24, %v10082_v31  ;;  %v11034_v31 = vld [vmem:[#allocation21_spill] sm:$0xff] }
 0x63c   : > { %v4385_v55 = vpop.permute.xlu0 %4384  ;;  %6682 = vset.pattern.permute.xlu1 %v7174_v15  ;;  %6683 = vset.pattern.permute.xlu0 %v7174_v15 }
 0x63d   : > { %4636 = vrot.lane.b32.xlu1 %v4623_v4, %s7164_s20  ;;  %v10217_v11 = vsel %vm612_vm5, %v10202_v47, %v4385_v55  ;;  %5403 = vmatpush1.bf16.msra.mxu0 %v3494_v14  ;;  %v5143_v55 = vsel %vm914_vm4, %v9988_v45, 0  ;;  %v11033_v4 = vld [vmem:[#allocation45_spill] sm:$0xff]  ;;  %v4088_v24 = vsel %vm889_vm15, %v11034_v31, %v6586_v2  ;;  %vm11038_vm4 = vmmov %vm11026_vm12 }
 0x63e   : > { %5507 = vmatpush1.bf16.msra.mxu1 %v4009_v60  ;;  %5079 = vrot.lane.b32.xlu0 %v5064_v27, %s7166_s8  ;;  %v3573_v50 = vsel %vm889_vm15, %v11033_v4, %v6590_v20  ;;  %v11035_v60 = vld [vmem:[#allocation31_spill] sm:$0xff]  ;;  %v3572_v37 = vsel %vm889_vm15, %v11037_v1, %v11033_v4  ;;  %vm11042_vm8 = vmmov %vm11038_vm4  ;;  %v7026_v20 = vld [vmem:[%s7322_s13 + $0x18] sm:$0xff] }
 0x63f   : > { %5404 = vmatprep.subr.bf16.mxu0 %v3535_v28  ;;  %v10227_v63 = vpop.permute.xlu1 %4899  ;;  %5508 = vmatprep.subr.bf16.mxu1 %v4012_v53  ;;  %v6595_v14 = vunpack.i.l.bf16 %v11035_v60  ;;  %v6591_v28 = vunpack.i.h.bf16 %v11030_v58  ;;  %v4087_v53 = vsel %vm889_vm15, %v11036_v54, %v11034_v31  ;;  %v7025_v58 = vld [vmem:[%s7322_s13 + $0x8] sm:$0xff]  ;;  %v10375_v4 = vld [vmem:[%s10769_s5 + $0x18] ss:$12 sps:$4 sm:$0xff]  }
 0x640   : > { %v4902_v18 = vpop.permute.xlu0 %4901  ;;  %v7029_v31 = vld [vmem:[%s7322_s13] sm:$0xff]  ;;  %v7034_v1 = vld [vmem:[%s7322_s13 + $0x58] sm:$0xff] }
 0x641   : > { %4562 = vrot.lane.b32.xlu1 %v4547_v39, %s7166_s8  ;;  %v10243_v52 = vsel %vm612_vm5, %v10227_v63, %v4902_v18  ;;  %5405 = vmatpush1.bf16.msra.mxu0 %v3534_v30  ;;  %v10318_v18 = vld [vmem:[%s10769_s5] ss:$12 sps:$4 sm:$0xff]   ;;  %v5142_v39 = vsel %vm11038_vm4, %v9942_v6, 0  ;;  %v4090_v30 = vsel %vm889_vm15, %v11040_v57, %v6591_v28  ;;  %v7032_v28 = vld [vmem:[%s7322_s13 + $0x38] sm:$0xff]  ;;  %s7175_s8 = smov [#allocation8]  }
 0x642   : > { %5509 = vmatpush1.bf16.msra.mxu1 %v4011_v35  ;;  %4634 = vrot.lane.b32.xlu0 %v4622_v51, %s7164_s20  ;;  %v3613_v35 = vsel %vm546_vm7, %v11039_v44, %v6595_v14  ;;  %v7031_v14 = vld [vmem:[%s7322_s13 + $0x28] sm:$0xff]  ;;  %s7095_s16 = sshll.u32 %s7175_s8, 4  ;;  %s7096_s16 = int_to_ptr.vmem [resolvable:$false] %s7095_s16 }
 0x643   : > { %5406 = vmatprep.subr.bf16.mxu0 %v3537_v32  ;;  %v10253_v19 = vpop.permute.xlu1 %4346  ;;  %5510 = vmatprep.subr.bf16.mxu1 %v4052_v43  ;;  %v6596_v32 = vunpack.i.h.bf16 %v11035_v60  ;;  %v11041_v43 = vld [vmem:[#allocation34_spill] sm:$0xff]  ;;  %v322_v54 = vpack.c.bf16 %v7032_v28, %v7031_v14  ;;  %s7097_s19 = scalar_lea.vmem %s7096_s16, 8192 }
 0x644   : > { %v10256_v29 = vpop.permute.xlu0 %4348  ;;  %v6600_v21 = vunpack.i.l.bf16 %v11041_v43  ;;  %v6601_v15 = vunpack.i.h.bf16 %v11041_v43  ;;  %v7038_v43 = vld [vmem:[%s7322_s13 + $0x40] sm:$0xff] }
 0x645   : > { %5153 = vrot.lane.b32.xlu1 %v5140_v34, %s7164_s20  ;;  %5407 = vmatpush1.bf16.msra.mxu0 %v3536_v7  ;;  %v4625_v34 = vsel %vm11042_vm8, %v9928_v9, 0  ;;  %v11044_v7 = vld [vmem:[#allocation13_spill] sm:$0xff] }
 0x646   : > { %5511 = vmatpush1.bf16.msra.mxu1 %v4051_v36  ;;  %4642 = vrot.lane.b32.xlu0 %v4626_v3, %s7164_s20  ;;  %v4089_v36 = vsel %vm889_vm15, %v11043_v17, %v11040_v57  ;;  %v3612_v3 = vsel %vm546_vm7, %v11044_v7, %v11039_v44  ;;  %v3615_v33 = vsel %vm546_vm7, %v10139_v49, %v6600_v21  ;;  %v7036_v57 = vld [vmem:[%s7322_s13 + $0x20] sm:$0xff]  ;;  %v7039_v21 = vld [vmem:[%s7322_s13 + $0x50] sm:$0xff]  ;;  %v7041_v17 = vld [vmem:[%s7322_s13 + $0x78] sm:$0xff] }
 0x647   : > { %5408 = vmatprep.subr.bf16.mxu0 %v3571_v38  ;;  %v10277_v8 = vpop.permute.xlu1 %4863  ;;  %5512 = vmatprep.subr.bf16.mxu1 %v4054_v25  ;;  %v4130_v38 = vsel %vm546_vm7, %v11045_v48, %v6596_v32  ;;  %v4131_v44 = vsel %vm546_vm7, %v10182_v42, %v10159_v56  ;;  %v7040_v42 = vld [vmem:[%s7322_s13 + $0x68] sm:$0xff] }
 0x648   : > { %v10280_v5 = vpop.permute.xlu0 %4865 }
 0x649   : > { %5151 = vrot.lane.b32.xlu1 %v5139_v22, %s7164_s20  ;;  %5409 = vmatpush1.bf16.msra.mxu0 %v3570_v41  ;;  %v320_v22 = vpack.c.bf16 %v7026_v20, %v7025_v58  ;;  %v4129_v41 = vsel %vm546_vm7, %v11046_v46, %v11045_v48  ;;  %v7042_v48 = vld [vmem:[%s10767_s3 + $0x18] sm:$0xff]  ;;  %v7044_v58 = vld [vmem:[%s7322_s13 + $0x70] sm:$0xff] }
 0x64a   : > { %5513 = vmatpush1.bf16.msra.mxu1 %v4053_v10  ;;  %5159 = vrot.lane.b32.xlu0 %v5143_v55, %s7164_s20  ;;  %v7027_v10 = vld [vmem:[%s10767_s3 + $0x8] sm:$0xff]  ;;  %v3614_v55 = vsel %vm546_vm7, %v10178_v16, %v10139_v49  ;;  %v4132_v49 = vsel %vm546_vm7, %v10159_v56, %v6601_v15 }
 0x64b   : > { %5410 = vmatprep.subr.bf16.mxu0 %v3573_v50  ;;  %v10301_v23 = vpop.permute.xlu1 %4424  ;;  %5514 = vmatprep.subr.bf16.mxu1 %v4088_v24  ;;  %v7028_v50 = vld [vmem:[%s10767_s3] sm:$0xff]  ;;  %v7030_v24 = vld [vmem:[%s7322_s13 + $0x10] sm:$0xff]  ;;  %v11047_v15 = vld [vmem:[#allocation36_spill] sm:$0xff] }
 0x64c   : > { %v10304_v27 = vpop.permute.xlu0 %4426  ;;  %v319_v60 = vpack.c.bf16 %v7030_v24, %v7029_v31 }
 0x64d   : > { %6678 = vrot.lane.b32.xlu1 %v10997_v0, %s7164_s20  ;;  %5411 = vmatpush1.bf16.msra.mxu0 %v3572_v37 }
 0x64e   : > { %5515 = vmatpush1.bf16.msra.mxu1 %v4087_v53  ;;  %5157 = vrot.lane.b32.xlu0 %v5142_v39, %s7164_s20  ;;  %v7033_v53 = vld [vmem:[%s7322_s13 + $0x48] sm:$0xff] }
 0x64f   : > { %5433 = vmatprep.subr.bf16.mxu0 %v3613_v35  ;;  %v10328_v51 = vpop.permute.xlu1 %4941  ;;  %5516 = vmatprep.subr.bf16.mxu1 %v4090_v30  ;;  %v962_v37 = vpack.c.bf16 %v7034_v1, %v7033_v53  ;;  %v7035_v35 = vld [vmem:[%s10767_s3 + $0x10] sm:$0xff] }
 0x650   : > { %v10332_v62 = vpop.permute.xlu0 %4943  ;;  %5413 = vmatmul.mubr.bf16.vlgmr.msra.gmra.mrb[16].mxu0 %v10318_v18  ;;  %v7037_v30 = vld [vmem:[%s7322_s13 + $0x30] sm:$0xff] }
 0x651   : > { %4640 = vrot.lane.b32.xlu1 %v4625_v34, %s7164_s20  ;;  %5434 = vmatpush1.bf16.msra.mxu0 %v3612_v3  ;;  %v321_v32 = vpack.c.bf16 %v7037_v30, %v7036_v57  ;;  %v961_v34 = vpack.c.bf16 %v7039_v21, %v7038_v43 }
 0x652   : > { %5517 = vmatpush1.bf16.msra.mxu1 %v4089_v36  ;;  %5435 = vmatprep.subr.bf16.mxu0 %v3615_v33  ;;  %v964_v36 = vpack.c.bf16 %v7041_v17, %v7040_v42  ;;  %v10417_v33 = vld [vmem:[%s10769_s5 + $0x8] ss:$12 sps:$4 sm:$0xff]  }
 0x653   : > { %5539 = vmatprep.subr.bf16.mxu1 %v4130_v38  ;;  %v10354_v25 = vpop.permute.xlu1 %4466  ;;  %5422 = vmatprep.mubr.bf16.mxu0 %v10340_v26  ;;  %v7043_v38 = vld [vmem:[%s7322_s13 + $0x60] sm:$0xff] }
 0x654   : > { %v10359_v2 = vpop.permute.xlu0 %4468  ;;  %5849 = vperm.xlu0 %6683, %v7027_v10   ;;  %v963_v20 = vpack.c.bf16 %v7044_v58, %v7043_v38  ;;  %v6605_v10 = vunpack.i.l.bf16 %v11047_v15 }
 0x655   : > { %5519 = vmatmul.mubr.bf16.vlgmr.msra.gmra.mrb[16].mxu1 %v10318_v18  ;;  %5845 = vperm.xlu1 %6682, %v7028_v50   ;;  %v6606_v50 = vunpack.i.h.bf16 %v11047_v15 }
 0x656   : > { %5436 = vmatpush1.bf16.msra.mxu0 %v3614_v55  ;;  %5540 = vmatpush1.bf16.msra.mxu1 %v4129_v41  ;;  %v4356_v55 = vsel %vm575_vm6, %v6605_v10, %v10253_v19 }
 0x657   : > { %5541 = vmatprep.subr.bf16.mxu1 %v4132_v49  ;;  %5437 = vmatprep.subr.bf16.mxu0 %v320_v22  ;;  %v10384_v16 = vpop.permute.xlu1 %4983  ;;  %v4357_v22 = vsel %vm575_vm6, %v10253_v19, %v10256_v29  ;;  %v4874_v29 = vsel %vm575_vm6, %v10277_v8, %v10280_v5  ;;  %v4873_v19 = vsel %vm575_vm6, %v6606_v50, %v10277_v8  ;;  %v10451_v5 = vld [vmem:[%s10769_s5 + $0x20] ss:$12 sps:$4 sm:$0xff]   ;;  %v11048_v8 = vld [vmem:[#allocation26_spill] sm:$0xff] }
 0x658   : > { %v10390_v39 = vpop.permute.xlu0 %4985  ;;  %5528 = vmatprep.mubr.bf16.mxu1 %v10340_v26  ;;  %5423 = vmatmul.mubr.bf16.gmra.mrb[20].mxu0 %v10375_v4 }
 0x659   : > { %5853 = vperm.xlu1 %6682, %v7035_v35   ;;  %5465 = vmatprep.mubr.bf16.mxu0 %v10997_v0 }
 0x65a   : > { %5438 = vmatpush1.bf16.msra.mxu0 %v319_v60  ;;  %5542 = vmatpush1.bf16.msra.mxu1 %v4131_v44 }
 0x65b   : > { %5439 = vmatprep.subr.bf16.mxu0 %v322_v54  ;;  %5543 = vmatprep.subr.bf16.mxu1 %v962_v37  ;;  %v10404_v56 = vpop.permute.xlu1 %4516 }
 0x65c   : > { %v4515_v7 = vpop.permute.xlu0 %4514 }
 0x65d   : > { %v10411_v3 = vsel %vm715_vm13, %v4515_v7, %v10404_v56  ;;  %5529 = vmatmul.mubr.bf16.gmra.mrb[20].mxu1 %v10375_v4  ;;  %5857 = vperm.xlu1 %6682, %v7042_v48   ;;  %v11050_v7 = vld [vmem:[#allocation38_spill] sm:$0xff] }
 0x65e   : > { %5440 = vmatpush1.bf16.msra.mxu0 %v321_v32  ;;  %5544 = vmatpush1.bf16.msra.mxu1 %v961_v34  ;;  %v11049_v32 = vld [vmem:[#allocation33_spill] sm:$0xff]  ;;  %v6615_v48 = vunpack.i.l.bf16 %v11050_v7 }
 0x65f   : > { %5592 = vmatprep.subr.bf16.mxu0 %v4357_v22  ;;  %5545 = vmatprep.subr.bf16.mxu1 %v964_v36  ;;  %v10428_v46 = vpop.permute.xlu1 %5033  ;;  %v6610_v43 = vunpack.i.l.bf16 %v11049_v32  ;;  %v6611_v36 = vunpack.i.h.bf16 %v11049_v32 }
 0x660   : > { %v4557_v41 = vpop.permute.xlu0 %4556  ;;  %5571 = vmatprep.mubr.bf16.mxu1 %v10997_v0  ;;  %v4392_v22 = vsel %vm612_vm5, %v6615_v48, %v10202_v47  ;;  %v11054_v48 = vld [vmem:[#allocation42_spill] sm:$0xff] }
 0x661   : > { %6184 = vmatmul.mubr.msk.bf16.vlgmr.msra.gmra.mrb[16].mxu0 %vm5373_vm11, %v10417_v33 }
 0x662   : > { %5546 = vmatpush1.bf16.msra.mxu1 %v963_v20  ;;  %5593 = vmatpush1.bf16.msra.mxu0 %v4356_v55 }
 0x663   : > { %5698 = vmatprep.subr.bf16.mxu1 %v4874_v29  ;;  %v5032_v31 = vpop.permute.xlu1 %5031  ;;  %5475 = vmatprep.mubr.bf16.mxu0 %v10997_v0  ;;  %v6616_v29 = vunpack.i.h.bf16 %v11050_v7 }
 0x664   : > { %v4389_v24 = vpop.permute.xlu0 %4388  ;;  %v10442_v60 = vsel %vm715_vm13, %v5032_v31, %v10428_v46 }
 0x665   : > { %6186 = vmatmul.mubr.msk.bf16.vlgmr.msra.gmra.mrb[16].mxu1 %vm5373_vm11, %v10417_v33  ;;  %v4909_v47 = vsel %vm612_vm5, %v6616_v29, %v10227_v63 }
 0x666   : > { %5699 = vmatpush1.bf16.msra.mxu1 %v4873_v19  ;;  %5581 = vmatprep.mubr.bf16.mxu1 %v10997_v0  ;;  %v4435_v19 = vsel %vm692_vm3, %v10301_v23, %v10304_v27  ;;  %v4952_v27 = vsel %vm692_vm3, %v10328_v51, %v10332_v62  ;;  %v4477_v62 = vsel %vm744_vm0, %v10354_v25, %v10359_v2 }
 0x667   : > { %v10454_v49 = vpop.permute.xlu1 %4558  ;;  %v4994_v2 = vsel %vm744_vm0, %v10384_v16, %v10390_v39 }
 0x668   : > { %v4906_v14 = vpop.permute.xlu0 %4905  ;;  %v10458_v28 = vsel %vm663_vm10, %v4557_v41, %v10454_v49  ;;  %v11051_v41 = vld [vmem:[#allocation35_spill] sm:$0xff] }
 0x669   : > { %6185 = vmatmul.mubr.msk.bf16.gmra.mrb[20].mxu0 %vm5373_vm11, %v10451_v5  ;;  %v6620_v55 = vunpack.i.l.bf16 %v11051_v41 }
 0x66a   : > { %5624 = vmatprep.mubr.bf16.mxu0 %v11048_v8 }
 0x66b   : > { %v10463_v54 = vpop.permute.xlu1 %5075  ;;  %v4394_v31 = vsel %vm612_vm5, %v6620_v55, %v4389_v24  ;;  %v6636_v55 = vunpack.i.h.bf16 %v11054_v48 }
 0x66c   : > { %v4353_v53 = vpop.permute.xlu0 %4352 }
 0x66d   : > { %6187 = vmatmul.mubr.msk.bf16.gmra.mrb[20].mxu1 %vm5373_vm11, %v10451_v5  ;;  %v4358_v17 = vsel %vm575_vm6, %v6610_v43, %v4353_v53 }
 0x66e   : > { %5730 = vmatprep.mubr.bf16.mxu1 %v11048_v8 }
 0x66f   : > { %v10468_v1 = vpop.permute.xlu1 %5073 }
 0x670   : > { %v4870_v37 = vpop.permute.xlu0 %4869 }
 0x671   : > { %v4875_v15 = vsel %vm575_vm6, %v6611_v36, %v4870_v37 }
 0x673   : > { %v4391_v44 = vpop.permute.xlu1 %4390 }
 0x674   : > { %v10470_v35 = vpop.permute.xlu0 %6663  ;;  %v4395_v10 = vsel %vm612_vm5, %v4389_v24, %v4391_v44 }
 0x677   : > { %v4908_v57 = vpop.permute.xlu1 %4907 }
 0x678   : > { %v4431_v30 = vpop.permute.xlu0 %4430  ;;  %v4912_v8 = vsel %vm612_vm5, %v4906_v14, %v4908_v57  ;;  %v11053_v57 = vld [vmem:[#allocation37_spill] sm:$0xff] }
 0x679   : > { %v6630_v43 = vunpack.i.l.bf16 %v11053_v57  ;;  %v6631_v7 = vunpack.i.h.bf16 %v11053_v57 }
 0x67b   : > { %v4355_v21 = vpop.permute.xlu1 %4354 }
 0x67c   : > { %v4948_v34 = vpop.permute.xlu0 %4947  ;;  %v4359_v42 = vsel %vm575_vm6, %v4353_v53, %v4355_v21  ;;  %v6621_v53 = vunpack.i.h.bf16 %v11051_v41 }
 0x67d   : > { %5594 = vmatprep.subr.bf16.mxu0 %v4359_v42 }
 0x67e   : > { %5595 = vmatpush1.bf16.msra.mxu0 %v4358_v17  ;;  %v4911_v24 = vsel %vm612_vm5, %v6621_v53, %v4906_v14 }
 0x67f   : > { %5596 = vmatprep.subr.bf16.mxu0 %v10217_v11  ;;  %v4872_v38 = vpop.permute.xlu1 %4871 }
 0x680   : > { %v4473_v58 = vpop.permute.xlu0 %4472  ;;  %v4876_v20 = vsel %vm575_vm6, %v4870_v37, %v4872_v38  ;;  %v11052_v37 = vld [vmem:[#allocation40_spill] sm:$0xff]  ;;  %v6635_v38 = vunpack.i.l.bf16 %v11054_v48 }
 0x681   : > { %5700 = vmatprep.subr.bf16.mxu1 %v4876_v20  ;;  %v6626_v21 = vunpack.i.h.bf16 %v11052_v37 }
 0x682   : > { %5597 = vmatpush1.bf16.msra.mxu0 %v4392_v22  ;;  %5701 = vmatpush1.bf16.msra.mxu1 %v4875_v15 }
 0x683   : > { %5598 = vmatprep.subr.bf16.mxu0 %v4395_v10  ;;  %5702 = vmatprep.subr.bf16.mxu1 %v10243_v52  ;;  %v10486_v11 = vpop.permute.xlu1 %6658  ;;  %v6625_v52 = vunpack.i.l.bf16 %v11052_v37  ;;  %v4951_v36 = vsel %vm692_vm3, %v6626_v21, %v10328_v51  ;;  %v4476_v51 = vsel %vm744_vm0, %v6635_v38, %v10354_v25  ;;  %v11055_v10 = vld [vmem:[#allocation39_spill] sm:$0xff]  ;;  %v4993_v25 = vsel %vm744_vm0, %v6636_v55, %v10384_v16 }
 0x684   : > { %v4990_v50 = vpop.permute.xlu0 %4989  ;;  %v6640_v41 = vunpack.i.l.bf16 %v11055_v10  ;;  %v6641_v39 = vunpack.i.h.bf16 %v11055_v10 }
 0x685   : > { %v4434_v63 = vsel %vm692_vm3, %v6625_v52, %v10301_v23  ;;  %v4436_v23 = vsel %vm692_vm3, %v6630_v43, %v4431_v30 }
 0x686   : > { %5599 = vmatpush1.bf16.msra.mxu0 %v4394_v31  ;;  %5703 = vmatpush1.bf16.msra.mxu1 %v4909_v47  ;;  %v4995_v53 = vsel %vm744_vm0, %v6641_v39, %v4990_v50 }
 0x687   : > { %5600 = vmatprep.subr.bf16.mxu0 %v4435_v19  ;;  %5704 = vmatprep.subr.bf16.mxu1 %v4912_v8  ;;  %v10497_v44 = vpop.permute.xlu1 %4594 }
 0x688   : > { %v10499_v32 = vpop.permute.xlu0 %4592 }
 0x68a   : > { %5601 = vmatpush1.bf16.msra.mxu0 %v4434_v63  ;;  %5705 = vmatpush1.bf16.msra.mxu1 %v4911_v24 }
 0x68b   : > { %5706 = vmatprep.subr.bf16.mxu1 %v4952_v27  ;;  %v4433_v42 = vpop.permute.xlu1 %4432 }
 0x68c   : > { %v4437_v17 = vsel %vm692_vm3, %v4431_v30, %v4433_v42  ;;  %v10513_v14 = vpop.permute.xlu0 %4600  ;;  %v4953_v30 = vsel %vm692_vm3, %v6631_v7, %v4948_v34 }
 0x68d   : > { %5602 = vmatprep.subr.bf16.mxu0 %v4437_v17 }
 0x68e   : > { %5603 = vmatpush1.bf16.msra.mxu0 %v4436_v23  ;;  %5707 = vmatpush1.bf16.msra.mxu1 %v4951_v36  ;;  %v6661_v23 = vunpack.i.h.bf16 %v10486_v11 }
 0x68f   : > { %5604 = vmatprep.subr.bf16.mxu0 %v4477_v62  ;;  %v4950_v20 = vpop.permute.xlu1 %4949  ;;  %v5085_v62 = vsel %vm663_vm10, %v10468_v1, %v10463_v54 }
 0x690   : > { %v4954_v22 = vsel %vm692_vm3, %v4948_v34, %v4950_v20  ;;  %v10524_v15 = vpop.permute.xlu0 %5117  ;;  %v4478_v34 = vsel %vm744_vm0, %v6640_v41, %v4473_v58  ;;  %v6660_v20 = vunpack.i.l.bf16 %v10486_v11 }
 0x691   : > { %5708 = vmatprep.subr.bf16.mxu1 %v4954_v22 }
 0x692   : > { %5605 = vmatpush1.bf16.msra.mxu0 %v4476_v51  ;;  %5709 = vmatpush1.bf16.msra.mxu1 %v4953_v30  ;;  %v6666_v51 = vunpack.i.h.bf16 %v10470_v35 }
 0x693   : > { %5710 = vmatprep.subr.bf16.mxu1 %v4994_v2  ;;  %v4475_v29 = vpop.permute.xlu1 %4474 }
 0x694   : > { %v4479_v47 = vsel %vm744_vm0, %v4473_v58, %v4475_v29  ;;  %v10535_v31 = vpop.permute.xlu0 %5115  ;;  %v11056_v58 = vld [vmem:[#allocation41_spill] sm:$0xff] }
 0x695   : > { %5606 = vmatprep.subr.bf16.mxu0 %v4479_v47  ;;  %v6645_v52 = vunpack.i.l.bf16 %v11056_v58 }
 0x696   : > { %5607 = vmatpush1.bf16.msra.mxu0 %v4478_v34  ;;  %5711 = vmatpush1.bf16.msra.mxu1 %v4993_v25  ;;  %v4604_v34 = vsel %vm889_vm15, %v10499_v32, %v10497_v44 }
 0x697   : > { %5608 = vmatprep.subr.bf16.mxu0 %v9757_v59  ;;  %v4992_v19 = vpop.permute.xlu1 %4991  ;;  %v4527_v59 = vsel %vm715_vm13, %v10404_v56, %v6645_v52 }
 0x698   : > { %v4996_v8 = vsel %vm744_vm0, %v4990_v50, %v4992_v19  ;;  %v4523_v37 = vpop.permute.xlu0 %4522  ;;  %v11057_v50 = vld [vmem:[#allocation44_spill] sm:$0xff] }
 0x699   : > { %5712 = vmatprep.subr.bf16.mxu1 %v4996_v8 }
 0x69a   : > { %5609 = vmatpush1.bf16.msra.mxu0 %v9752_v13  ;;  %5713 = vmatpush1.bf16.msra.mxu1 %v4995_v53  ;;  %v5123_v53 = vsel %vm889_vm15, %v10535_v31, %v10524_v15 }
 0x69b   : > { %5610 = vmatprep.subr.bf16.mxu0 %v9976_v61  ;;  %5714 = vmatprep.subr.bf16.mxu1 %v9779_v12  ;;  %v10544_v16 = vpop.permute.xlu1 %5111  ;;  %v6646_v61 = vunpack.i.h.bf16 %v11056_v58  ;;  %v6650_v12 = vunpack.i.l.bf16 %v11057_v50 }
 0x69c   : > { %v5040_v63 = vpop.permute.xlu0 %5039  ;;  %v5122_v11 = vsel %vm889_vm15, %v10544_v16, %v6666_v51 }
 0x69e   : > { %5611 = vmatpush1.bf16.msra.mxu0 %v9928_v9  ;;  %5715 = vmatpush1.bf16.msra.mxu1 %v9777_v40  ;;  %v4529_v9 = vsel %vm715_vm13, %v4523_v37, %v6650_v12  ;;  %v5044_v40 = vsel %vm715_vm13, %v10428_v46, %v6646_v61  ;;  %v7045_v61 = vld [vmem:[%s7322_s13 + $0xc8] sm:$0xff] }
 0x69f   : > { %5612 = vmatprep.subr.bf16.mxu0 %v4527_v59  ;;  %5716 = vmatprep.subr.bf16.mxu1 %v9988_v45  ;;  %v5110_v13 = vpop.permute.xlu1 %5109  ;;  %v6651_v45 = vunpack.i.h.bf16 %v11057_v50  ;;  %v7046_v50 = vld [vmem:[%s7322_s13 + $0xd8] sm:$0xff] }
 0x6a0   : > { %v10554_v24 = vpop.permute.xlu0 %6673  ;;  %v5121_v47 = vsel %vm889_vm15, %v5110_v13, %v10544_v16  ;;  %v1948_v12 = vpack.c.bf16 %v7046_v50, %v7045_v61 }
 0x6a1   : > { %v5046_v57 = vsel %vm715_vm13, %v5040_v63, %v6651_v45  ;;  %v6676_v39 = vunpack.i.h.bf16 %v10554_v24 }
 0x6a2   : > { %5613 = vmatpush1.bf16.msra.mxu0 %v10411_v3  ;;  %5717 = vmatpush1.bf16.msra.mxu1 %v9942_v6  ;;  %v11058_v3 = vld [vmem:[#allocation43_spill] sm:$0xff] }
 0x6a3   : > { %5614 = vmatprep.subr.bf16.mxu0 %v4529_v9  ;;  %5718 = vmatprep.subr.bf16.mxu1 %v5044_v40  ;;  %v6669_v56 = vpop.permute.xlu1 %6668  ;;  %v6656_v21 = vunpack.i.h.bf16 %v11058_v3  ;;  %v6655_v17 = vunpack.i.l.bf16 %v11058_v3  ;;  %v7047_v40 = vld [vmem:[%s7322_s13 + $0x88] sm:$0xff] }
 0x6a4   : > { %v5038_v27 = vpop.permute.xlu0 %5037  ;;  %v6671_v2 = vunpack.i.h.bf16 %v6669_v56  ;;  %v6670_v55 = vunpack.i.l.bf16 %v6669_v56  ;;  %v7048_v56 = vld [vmem:[%s7322_s13 + $0x98] sm:$0xff] }
 0x6a5   : > { %v5045_v6 = vsel %vm715_vm13, %v5038_v27, %v5040_v63  ;;  %v5086_v46 = vsel %vm663_vm10, %v10463_v54, %v6656_v21  ;;  %v4569_v48 = vsel %vm663_vm10, %v10454_v49, %v6655_v17  ;;  %v6665_v49 = vunpack.i.l.bf16 %v10470_v35  ;;  %v7051_v21 = vld [vmem:[%s7322_s13 + $0x80] sm:$0xff]  ;;  %v7054_v17 = vld [vmem:[%s7322_s13 + $0xf8] sm:$0xff] }
 0x6a6   : > { %5719 = vmatpush1.bf16.msra.mxu1 %v10442_v60  ;;  %v5124_v25 = vsel %vm889_vm15, %v10524_v15, %v6671_v2  ;;  %v4607_v8 = vsel %vm889_vm15, %v10513_v14, %v6670_v55  ;;  %v1455_v45 = vpack.c.bf16 %v7048_v56, %v7047_v40 }
 0x6a7   : > { %5720 = vmatprep.subr.bf16.mxu1 %v5046_v57  ;;  %v4599_v43 = vpop.permute.xlu1 %4598  ;;  %v7050_v57 = vld [vmem:[%s7322_s13 + $0xd0] sm:$0xff] }
 0x6a8   : > { %v4565_v42 = vpop.permute.xlu0 %4564 }
 0x6a9   : > { %v4571_v54 = vsel %vm663_vm10, %v4565_v42, %v6660_v20  ;;  %v7059_v20 = vld [vmem:[%s7322_s13 + $0xa0] sm:$0xff] }
 0x6aa   : > { %5721 = vmatpush1.bf16.msra.mxu1 %v5045_v6  ;;  %v7052_v6 = vld [vmem:[%s7322_s13 + $0x90] sm:$0xff] }
 0x6ab   : > { %5722 = vmatprep.subr.bf16.mxu1 %v5086_v46  ;;  %v4521_v36 = vpop.permute.xlu1 %4520  ;;  %v7053_v46 = vld [vmem:[%s7322_s13 + $0xe8] sm:$0xff] }
 0x6ac   : > { %v4528_v60 = vsel %vm715_vm13, %v4521_v36, %v4523_v37  ;;  %v5082_v7 = vpop.permute.xlu0 %5081  ;;  %v6675_v37 = vunpack.i.l.bf16 %v10554_v24  ;;  %v1950_v36 = vpack.c.bf16 %v7054_v17, %v7053_v46 }
 0x6ad   : > { %5615 = vmatpush1.bf16.msra.mxu0 %v4528_v60  ;;  %v5088_v38 = vsel %vm663_vm10, %v5082_v7, %v6661_v23  ;;  %v7055_v23 = vld [vmem:[%s7322_s13 + $0xa8] sm:$0xff]  ;;  %v7056_v60 = vld [vmem:[%s7322_s13 + $0xb8] sm:$0xff] }
 0x6ae   : > { %5616 = vmatprep.subr.bf16.mxu0 %v4569_v48  ;;  %5723 = vmatpush1.bf16.msra.mxu1 %v5085_v62  ;;  %v1457_v62 = vpack.c.bf16 %v7056_v60, %v7055_v23  ;;  %v7058_v48 = vld [vmem:[%s7322_s13 + $0xf0] sm:$0xff] }
 0x6af   : > { %v4637_v22 = vpop.permute.xlu1 %4636  ;;  %5724 = vmatprep.subr.bf16.mxu1 %v5088_v38 }
 0x6b0   : > { %v5080_v30 = vpop.permute.xlu0 %5079  ;;  %v4647_v63 = vsel %vm546_vm7, %v4637_v22, %v6675_v37 }
 0x6b1   : > { %5617 = vmatpush1.bf16.msra.mxu0 %v10458_v28  ;;  %v5087_v1 = vsel %vm663_vm10, %v5080_v30, %v5082_v7  ;;  %v4605_v28 = vsel %vm889_vm15, %v10497_v44, %v6665_v49  ;;  %v4606_v44 = vsel %vm889_vm15, %v4599_v43, %v10513_v14  ;;  %v7057_v7 = vld [vmem:[%s7322_s13 + $0xe0] sm:$0xff] }
 0x6b2   : > { %5618 = vmatprep.subr.bf16.mxu0 %v4571_v54  ;;  %5725 = vmatpush1.bf16.msra.mxu1 %v5087_v1  ;;  %v1949_v38 = vpack.c.bf16 %v7058_v48, %v7057_v7 }
 0x6b3   : > { %v4563_v10 = vpop.permute.xlu1 %4562  ;;  %5726 = vmatprep.subr.bf16.mxu1 %v5122_v11 }
 0x6b4   : > { %v4570_v41 = vsel %vm663_vm10, %v4563_v10, %v4565_v42  ;;  %v4635_v29 = vpop.permute.xlu0 %4634  ;;  %v1454_v42 = vpack.c.bf16 %v7052_v6, %v7051_v21 }
 0x6b5   : > { %5619 = vmatpush1.bf16.msra.mxu0 %v4570_v41  ;;  %v4646_v14 = vsel %vm546_vm7, %v4635_v29, %v4637_v22  ;;  %v7060_v22 = vld [vmem:[%s7322_s13 + $0xb0] sm:$0xff] }
 0x6b6   : > { %5620 = vmatprep.subr.bf16.mxu0 %v4605_v28  ;;  %5727 = vmatpush1.bf16.msra.mxu1 %v5121_v47  ;;  %v1456_v51 = vpack.c.bf16 %v7060_v22, %v7059_v20 }
 0x6b7   : > { %v5154_v35 = vpop.permute.xlu1 %5153  ;;  %5728 = vmatprep.subr.bf16.mxu1 %v5124_v25 }
 0x6b8   : > { %v4643_v19 = vpop.permute.xlu0 %4642  ;;  %v5164_v58 = vsel %vm546_vm7, %v5154_v35, %v6676_v39 }
 0x6b9   : > { %5621 = vmatpush1.bf16.msra.mxu0 %v4604_v34 }
 0x6ba   : > { %5622 = vmatprep.subr.bf16.mxu0 %v4607_v8  ;;  %5729 = vmatpush1.bf16.msra.mxu1 %v5123_v53 }
 0x6bb   : > { %v5152_v16 = vpop.permute.xlu1 %5151  ;;  %5751 = vmatprep.subr.bf16.mxu1 %v5164_v58 }
 0x6bc   : > { %v5163_v32 = vsel %vm546_vm7, %v5152_v16, %v5154_v35  ;;  %v5160_v52 = vpop.permute.xlu0 %5159 }
 0x6bd   : > { %5623 = vmatpush1.bf16.msra.mxu0 %v4606_v44  ;;  %5731 = vmatmul.mubr.bf16.vlgmr.msra.gmra.mrb[24].mxu1 %v10318_v18 }
 0x6be   : > { %5645 = vmatprep.subr.bf16.mxu0 %v4647_v63  ;;  %5752 = vmatpush1.bf16.msra.mxu1 %v5163_v32 }
 0x6bf   : > { %v6679_v15 = vpop.permute.xlu1 %6678  ;;  %5740 = vmatprep.mubr.bf16.mxu1 %v10340_v26 }
 0x6c0   : > { %v6681_v31 = vunpack.i.h.bf16 %v6679_v15  ;;  %v6680_v59 = vunpack.i.l.bf16 %v6679_v15  ;;  %5625 = vmatmul.mubr.bf16.vlgmr.msra.gmra.mrb[24].mxu0 %v10318_v18  ;;  %v5158_v13 = vpop.permute.xlu0 %5157 }
 0x6c1   : > { %5646 = vmatpush1.bf16.msra.mxu0 %v4646_v14  ;;  %5634 = vmatprep.mubr.bf16.mxu0 %v10340_v26  ;;  %v5165_v18 = vsel %vm546_vm7, %v5158_v13, %v5160_v52  ;;  %v7049_v26 = vld [vmem:[%s7322_s13 + $0xc0] sm:$0xff]  ;;  %s10653_s13 = scalar_lea.vmem [#allocation8], %s6059_s7  ;;  %s6226_s7 = sshll.u32 %s7233_s25, 12 }
 0x6c2   : > { %v4649_v24 = vsel %vm546_vm7, %v4643_v19, %v6680_v59  ;;  %v5166_v9 = vsel %vm546_vm7, %v5160_v52, %v6681_v31  ;;  %v1947_v43 = vpack.c.bf16 %v7050_v57, %v7049_v26  ;;  %s5966_s26 = sshll.u32 %s10653_s13, 4  ;;  %s10711_s12 = scalar_lea.hbm %s10770_s6, %s6226_s7  ;;  %s10716_s26 = int_to_ptr.vmem [resolvable:$true] %s5966_s26 }
 0x6c3   : > { %v4641_v27 = vpop.permute.xlu1 %4640  ;;  %5647 = vmatprep.subr.bf16.mxu0 %v4649_v24  ;;  %5753 = vmatprep.subr.bf16.mxu1 %v5166_v9  ;;  %s7091_s15 = scalar_lea.vmem %s10716_s26, 4096  ;;  %p7098_p10 = scmp.lt.s32.totalorder %s10716_s26, %s7096_s16 }
 0x6c4   : > { %v4648_v3 = vsel %vm546_vm7, %v4641_v27, %v4643_v19  ;;  %5754 = vmatpush1.bf16.msra.mxu1 %v5165_v18  ;;  %p7092_p11 = scmp.ne.s32.totalorder %s10716_s26, %s7091_s15  ;;  %p7099_p0 = scmp.lt.s32.totalorder %s7097_s19, %s7091_s15 }
 0x6c5   : > { %5648 = vmatpush1.bf16.msra.mxu0 %v4648_v3  ;;  %5755 = vmatprep.subr.bf16.mxu1 %v1948_v12 }
 0x6c6   : > { %5741 = vmatmul.mubr.bf16.gmra.mrb[28].mxu1 %v10375_v4  ;;  %5649 = vmatprep.subr.bf16.mxu0 %v1455_v45  ;;  %p7093_p13 = pnand %p7092_p11, %p11059_p12  ;;  %p7100_p2 = por %p7099_p0, %p7098_p10 }
 0x6c7   : > { %5783 = vmatprep.mubr.bf16.mxu1 %v10997_v0 }
 0x6c8   : > { %5635 = vmatmul.mubr.bf16.gmra.mrb[28].mxu0 %v10375_v4  ;;  %5756 = vmatpush1.bf16.msra.mxu1 %v1947_v43  ;;  %p7094_p8 = pneg %p7093_p13 }
 0x6c9   : > { %5650 = vmatpush1.bf16.msra.mxu0 %v1454_v42  ;;  %5757 = vmatprep.subr.bf16.mxu1 %v1950_v36 }
 0x6ca   : > { %5651 = vmatprep.subr.bf16.mxu0 %v1457_v62  ;;  %5677 = vmatprep.mubr.bf16.mxu0 %v10997_v0  ;;  %p7101_p4 = pnand %p7100_p2, %p7094_p8 }
 0x6cc   : > { %5758 = vmatpush1.bf16.msra.mxu1 %v1949_v38 }
 0x6cd   : > { %5652 = vmatpush1.bf16.msra.mxu0 %v1456_v51 }
 0x6cf   : > { %6190 = vmatmul.mubr.msk.bf16.vlgmr.msra.gmra.mrb[24].mxu1 %vm5373_vm11, %v10417_v33 }
 0x6d0   : > { %6188 = vmatmul.mubr.msk.bf16.vlgmr.msra.gmra.mrb[24].mxu0 %vm5373_vm11, %v10417_v33  ;;  %5793 = vmatprep.mubr.bf16.mxu1 %v10997_v0 }
 0x6d1   : > { %5687 = vmatprep.mubr.bf16.mxu0 %v10997_v0 }
 0x6d3   : > { %v10646_v54 = vpop.permute.xlu0 %5849 }
 0x6d4   : > { %v5846_v4 = vpop.permute.xlu1 %5845 }
 0x6d7   : > { %6191 = vmatmul.mubr.msk.bf16.gmra.mrb[28].mxu1 %vm5373_vm11, %v10451_v5 }
 0x6d8   : > { %6189 = vmatmul.mubr.msk.bf16.gmra.mrb[28].mxu0 %vm5373_vm11, %v10451_v5  ;;  %v10648_v11 = vpop.permute.xlu1 %5853 }
 0x6dc   : > { %v10664_v19 = vpop.permute.xlu1 %5857 }
 0x734   : > { %v5467_v30 = vpop.f32.mrb[16].mxu0 }
 0x735   : > { %v5469_v1 = vpop.f32.mrb[17].mxu0  ;;  %v5860_v49 = vadd.f32 %v5846_v4, %v5467_v30 }
 0x736   : > { %v5471_v2 = vpop.f32.mrb[18].mxu0  ;;  %v5861_v10 = vadd.f32 %v5846_v4, %v5469_v1 }
 0x737   : > { %v5862_v33 = vadd.f32 %v10646_v54, %v5471_v2  ;;  %v5473_v41 = vpop.f32.mrb[19].mxu0  ;;  %5868 = vst [vmem:[%s10653_s13] sm:$0xff] %v5860_v49 }
 0x738   : > { %v5573_v0 = vpop.f32.mrb[16].mxu1  ;;  %v5863_v5 = vadd.f32 %v10646_v54, %v5473_v41  ;;  %5869 = vst [vmem:[%s10653_s13 + $0x8] sm:$0xff] %v5861_v10 }
 0x739   : > { %v5575_v55 = vpop.f32.mrb[17].mxu1  ;;  %5870 = vst [vmem:[%s10653_s13 + $0x10] sm:$0xff] %v5862_v33  ;;  %v5884_v29 = vadd.f32 %v5846_v4, %v5573_v0 }
 0x73a   : > { %v5577_v28 = vpop.f32.mrb[18].mxu1  ;;  %5871 = vst [vmem:[%s10653_s13 + $0x18] sm:$0xff] %v5863_v5  ;;  %v5885_v47 = vadd.f32 %v5846_v4, %v5575_v55 }
 0x73b   : > { %v5886_v35 = vadd.f32 %v10646_v54, %v5577_v28  ;;  %v5579_v25 = vpop.f32.mrb[19].mxu1  ;;  %6192 = vst [vmem:[%s10653_s13 + $0x40] sm:$0xff] %v5884_v29 }
 0x73c   : > { %v5887_v34 = vadd.f32 %v10646_v54, %v5579_v25  ;;  %6193 = vst [vmem:[%s10653_s13 + $0x48] sm:$0xff] %v5885_v47  ;;  %v5477_v39 = vpop.f32.mrb[20].mxu0 }
 0x73d   : > { %6194 = vst [vmem:[%s10653_s13 + $0x50] sm:$0xff] %v5886_v35  ;;  %v5864_v8 = vadd.f32 %v10648_v11, %v5477_v39  ;;  %v5479_v53 = vpop.f32.mrb[21].mxu0 }
 0x73e   : > { %6195 = vst [vmem:[%s10653_s13 + $0x58] sm:$0xff] %v5887_v34  ;;  %v5865_v37 = vadd.f32 %v10648_v11, %v5479_v53  ;;  %v5481_v16 = vpop.f32.mrb[22].mxu0 }
 0x73f   : > { %5872 = vst [vmem:[%s10653_s13 + $0x20] sm:$0xff] %v5864_v8  ;;  %v5483_v58 = vpop.f32.mrb[23].mxu0  ;;  %v5866_v44 = vadd.f32 %v10664_v19, %v5481_v16 }
 0x740   : > { %v5583_v32 = vpop.f32.mrb[20].mxu1  ;;  %5873 = vst [vmem:[%s10653_s13 + $0x28] sm:$0xff] %v5865_v37  ;;  %v5867_v52 = vadd.f32 %v10664_v19, %v5483_v58 }
 0x741   : > { %v5888_v63 = vadd.f32 %v10648_v11, %v5583_v32  ;;  %v5585_v15 = vpop.f32.mrb[21].mxu1  ;;  %5874 = vst [vmem:[%s10653_s13 + $0x30] sm:$0xff] %v5866_v44 }
 0x742   : > { %v5889_v14 = vadd.f32 %v10648_v11, %v5585_v15  ;;  %v5587_v31 = vpop.f32.mrb[22].mxu1  ;;  %5875 = vst [vmem:[%s10653_s13 + $0x38] sm:$0xff] %v5867_v52 }
 0x743   : > { %6196 = vst [vmem:[%s10653_s13 + $0x60] sm:$0xff] %v5888_v63  ;;  %v5589_v59 = vpop.f32.mrb[23].mxu1  ;;  %v5890_v13 = vadd.f32 %v10664_v19, %v5587_v31 }
 0x744   : > { %6197 = vst [vmem:[%s10653_s13 + $0x68] sm:$0xff] %v5889_v14  ;;  %v5891_v61 = vadd.f32 %v10664_v19, %v5589_v59 }
 0x745   : > { %6198 = vst [vmem:[%s10653_s13 + $0x70] sm:$0xff] %v5890_v13 }
 0x746   : > { %6199 = vst [vmem:[%s10653_s13 + $0x78] sm:$0xff] %v5891_v61 }
 0x7a2   : > { %v5785_v50 = vpop.f32.mrb[24].mxu1 }
 0x7a3   : > { %v5934_v12 = vadd.f32 %v5846_v4, %v5785_v50  ;;  %v5679_v24 = vpop.f32.mrb[24].mxu0  ;;  %v5787_v9 = vpop.f32.mrb[25].mxu1 }
 0x7a4   : > { %v5909_v40 = vadd.f32 %v5846_v4, %v5679_v24  ;;  %v5935_v56 = vadd.f32 %v5846_v4, %v5787_v9  ;;  %v5681_v45 = vpop.f32.mrb[25].mxu0  ;;  %v5789_v18 = vpop.f32.mrb[26].mxu1 }
 0x7a5   : > { %6208 = vst [vmem:[%s10653_s13 + $0xc0] sm:$0xff] %v5934_v12  ;;  %v5910_v27 = vadd.f32 %v5846_v4, %v5681_v45  ;;  %v5936_v26 = vadd.f32 %v10646_v54, %v5789_v18  ;;  %v5683_v57 = vpop.f32.mrb[26].mxu0  ;;  %v5791_v43 = vpop.f32.mrb[27].mxu1 }
 0x7a6   : > { %6200 = vst [vmem:[%s10653_s13 + $0x80] sm:$0xff] %v5909_v40  ;;  %6209 = vst [vmem:[%s10653_s13 + $0xc8] sm:$0xff] %v5935_v56  ;;  %v5911_v3 = vadd.f32 %v10646_v54, %v5683_v57  ;;  %v5937_v21 = vadd.f32 %v10646_v54, %v5791_v43  ;;  %v5685_v6 = vpop.f32.mrb[27].mxu0 }
 0x7a7   : > { %6201 = vst [vmem:[%s10653_s13 + $0x88] sm:$0xff] %v5910_v27  ;;  %6210 = vst [vmem:[%s10653_s13 + $0xd0] sm:$0xff] %v5936_v26  ;;  %v5912_v42 = vadd.f32 %v10646_v54, %v5685_v6 }
 0x7a8   : > { %6202 = vst [vmem:[%s10653_s13 + $0x90] sm:$0xff] %v5911_v3  ;;  %6211 = vst [vmem:[%s10653_s13 + $0xd8] sm:$0xff] %v5937_v21 }
 0x7a9   : > { %6203 = vst [vmem:[%s10653_s13 + $0x98] sm:$0xff] %v5912_v42 }
 0x7aa   : > { %v5795_v46 = vpop.f32.mrb[28].mxu1 }
 0x7ab   : > { %v5938_v17 = vadd.f32 %v10648_v11, %v5795_v46  ;;  %v5689_v36 = vpop.f32.mrb[28].mxu0  ;;  %v5797_v23 = vpop.f32.mrb[29].mxu1 }
 0x7ac   : > { %v5913_v60 = vadd.f32 %v10648_v11, %v5689_v36  ;;  %v5939_v62 = vadd.f32 %v10648_v11, %v5797_v23  ;;  %v5691_v7 = vpop.f32.mrb[29].mxu0  ;;  %v5799_v48 = vpop.f32.mrb[30].mxu1 }
 0x7ad   : > { %6212 = vst [vmem:[%s10653_s13 + $0xe0] sm:$0xff] %v5938_v17  ;;  %v5914_v38 = vadd.f32 %v10648_v11, %v5691_v7  ;;  %v5940_v20 = vadd.f32 %v10664_v19, %v5799_v48  ;;  %v5693_v22 = vpop.f32.mrb[30].mxu0  ;;  %v5801_v51 = vpop.f32.mrb[31].mxu1 }
 0x7ae   : > { %6204 = vst [vmem:[%s10653_s13 + $0xa0] sm:$0xff] %v5913_v60  ;;  %6213 = vst [vmem:[%s10653_s13 + $0xe8] sm:$0xff] %v5939_v62  ;;  %v5915_v4 = vadd.f32 %v10664_v19, %v5693_v22  ;;  %v5941_v30 = vadd.f32 %v10664_v19, %v5801_v51  ;;  %v5695_v54 = vpop.f32.mrb[31].mxu0 }
 0x7af   : > { %6205 = vst [vmem:[%s10653_s13 + $0xa8] sm:$0xff] %v5914_v38  ;;  %6214 = vst [vmem:[%s10653_s13 + $0xf0] sm:$0xff] %v5940_v20  ;;  %v5916_v1 = vadd.f32 %v10664_v19, %v5695_v54 }
 0x7b0   : > { %6206 = vst [vmem:[%s10653_s13 + $0xb0] sm:$0xff] %v5915_v4  ;;  %6215 = vst [vmem:[%s10653_s13 + $0xf8] sm:$0xff] %v5941_v30 }
 0x7b1   : > { %6207 = vst [vmem:[%s10653_s13 + $0xb8] sm:$0xff] %v5916_v1 }
 0x7b2   : > { %7104 = shalt.err (!%p7101_p4)
}
 0x7b3   : > { %s7105_s20 = scalar_lea.hbm %s10711_s12, 4096  ;;  %s7109_s13 = scalar_lea.hbm %s10770_s6, 8192 }
 0x7b4   : > { %p7106_p5 = scmp.ne.s32.totalorder %s10711_s12, %s7105_s20  ;;  %p7110_p1 = scmp.lt.u32.totalorder %s10711_s12, %s10770_s6 }
 0x7b5   : > { %p7111_p3 = scmp.lt.u32.totalorder %s7109_s13, %s7105_s20  ;;  %p7113_p11 = scmp.lt.u32.totalorder %s7105_s20, %s10711_s12 }
 0x7b6   : > { %p7107_p7 = pnand %p7106_p5, %p11059_p12 }
 0x7b7   : > { %p7112_p6 = por %p7111_p3, %p7110_p1 }
 0x7b8   : > { %p7108_p9 = pneg %p7107_p7 }
 0x7b9   : > { %p7114_p13 = por %p7113_p11, %p7112_p6 }
 0x7bb   : > { %p7115_p8 = pnand %p7114_p13, %p7108_p9 }
 0x7bd   : > { %7118 = shalt.err (!%p7115_p8)
}
 0x7be   : > { %s7176_s28 = smov 256  }
 0x7bf   : > { %6293 = dma.vmem_to_hbm [thread:$0]  (%p11059_p12), %s10716_s26, 4096, %s10711_s12, %s5952_s17, %s7176_s28, %s7176_s28, %s7168_s18  }
 0x7c0 PF: > { %s5981_s15 = sand.u32 1, %s7145_s21   ;;  %p11060_p10 = scmp.ne.s32.totalorder %s10857_s10, 0 }
 0x7c1   : > { %p11061_p0 = scmp.ge.s32.totalorder %s7157_s24, 2  ;;  %s5982_s8 = scalar_lea.sflag [#allocation7], %s5981_s15 }
 0x7c3   : > { %p6300_p2 = pnand %p11061_p0, %p11060_p10 }
 0x7c5   : > { %7140 = dma.done.wait (!%p6300_p2), %s5982_s8, 4096  }
 0x7c6   : > { %7142 = vsyncadd (!%p6300_p2), %s5982_s8, 4294963200  ;;  %p19_p4 = scmp.ge.s32.totalorder %s7237_s27, 4   ;;  %s11062_s21 = smov %s7149_s22 }
 0x7c7   : > { %s11063_s22 = smov %s7153_s23  ;;  %s11064_s23 = smov %s7249_s30 }
 0x7c8   : > { %s11065_s24 = smov %s7237_s27  ;;  %21 = sbr.rel (!%p19_p4) target bundleno = 5 (0x5), region = 101 }
 0x7cf   :  { %5987 = vsyncpa [#allocation6], 1 }
 0x7d0   :  { %5989 = vsyncpa [#allocation6 + $0x1], 1 }
 0x7d1   :  { %5990 = vsyncpa [#allocation7], 1 }
 0x7d2   :  { %5992 = vsyncpa [#allocation7 + $0x1], 1 }

</bundles_post_ra>
